<compile_context>
chip_gen: v5e
topology: v5e:2x2
jax: 0.10.0
libtpu: 0.0.40
codegen_flags: <defaults>
</compile_context>

<pallas_src>
from functools import partial

import jax
import jax.numpy as jnp
from jax.experimental import pallas as pl
from jax.experimental.pallas import tpu as pltpu

_LANE = 128
_SUB = 8


def _round_up(x, m):
    return ((x + m - 1) // m) * m


def _pick_tile_rows(H, Wp, target_px=2048):
    """Largest divisor of H whose row tile fits the target pixel budget."""
    best = 1
    for d in range(1, H + 1):
        if H % d == 0 and d * Wp <= target_px:
            best = d
    return best


def bottleneck_kernel(x_ref, halo_ref,
                      w1_ref, b1_ref, w2_ref, b2_ref, w3_ref, b3_ref,
                      out_ref, h1_pad, *, TH, W, Wp, nt):
    """One (batch, row-tile) block per grid step.

    x_ref:    (1, TH*Wp, Cin_p) bf16   main pixels of this tile (W padded to Wp)
    halo_ref: (1, 1, 2*Wp, Cin_p) bf16 image rows just above / below the tile
    h1_pad:   VMEM scratch (TH*Wp + 2*Wp + 16, width_p) bf16 - h1 with a one
              image-row halo on each side, sliced statically to feed conv2.
    """
    t = pl.program_id(1)
    TW = TH * Wp
    P = _SUB + Wp                    # sublane-aligned start of the main h1 rows
    f32 = jnp.float32
    bf16 = jnp.bfloat16
    wid_p = w1_ref.shape[1]

    w1 = w1_ref[...]
    b1 = b1_ref[...]

    # ---- conv1 (1x1, BN scale folded into w1) + bias + relu ----------------
    x_main = x_ref[0]                                            # (TW, Cin_p)
    h1 = jnp.maximum(
        jnp.dot(x_main, w1, preferred_element_type=f32) + b1, 0.0)
    h1_pad[P:P + TW, :] = h1.astype(bf16)

    # Halo h1 rows: conv2's zero padding applies to *h1* at the image borders.
    if nt == 1:
        zrow = jnp.zeros((Wp, wid_p), bf16)
        h1_pad[P - Wp:P, :] = zrow
        h1_pad[P + TW:P + TW + Wp, :] = zrow
    else:
        # Single fused (2*Wp, Cin) matmul for both halo rows.
        hh = jnp.maximum(
            jnp.dot(halo_ref[0, 0], w1, preferred_element_type=f32) + b1, 0.0)
        top = hh[:Wp] * (t > 0).astype(f32)
        bot = hh[Wp:] * (t < nt - 1).astype(f32)
        h1_pad[P - Wp:P, :] = top.astype(bf16)
        h1_pad[P + TW:P + TW + Wp, :] = bot.astype(bf16)
    # NOTE: the 8 slack rows at each end of h1_pad are never written; the only
    # taps that can touch them (the single-element over-reads of the +-1
    # column shifts) are always removed by the jnp.where selects below.

    # ---- conv2 (3x3, pad=1, stride=1, BN scale folded) + bias + relu -------
    # Column-validity masks for the ow = -1 / +1 taps (also mask the padded
    # columns W..Wp-1, whose h1 equals relu(b1) != 0).
    col = jax.lax.broadcasted_iota(jnp.int32, (TW, 1), 0) % Wp
    mask_l = col >= 1              # valid when reading the ow = -1 neighbour
    mask_r = col <= W - 2          # valid when reading the ow = +1 neighbour

    # 9 accumulating dots straight from h1_pad (no tap-slab materialization).
    acc = None
    for oh in (-1, 0, 1):
        for ow in (-1, 0, 1):
            s = P + oh * Wp + ow
            tap = h1_pad[s:s + TW, :]                           # (TW, wid_p)
            if ow == -1:
                tap = jnp.where(mask_l, tap, 0)
            elif ow == 1:
                tap = jnp.where(mask_r, tap, 0)
            k = ((oh + 1) * 3 + (ow + 1)) * wid_p
            d = jnp.dot(tap, w2_ref[k:k + wid_p, :],
                        preferred_element_type=f32)
            acc = d if acc is None else acc + d
    h2 = jnp.maximum(acc + b2_ref[...], 0.0)

    # ---- conv3 (1x1, BN scale folded) + bias + residual + relu -------------
    h3 = jnp.dot(h2.astype(bf16), w3_ref[...], preferred_element_type=f32)
    out = jnp.maximum(h3 + b3_ref[...] + x_main.astype(f32), 0.0)
    out_ref[0] = out.astype(out_ref.dtype)


def bottleneck_forward(x_nchw, params, *, target_px=2048):
    """x_nchw: (N, Cin, H, W) float32; returns (N, Cout, H, W) float32."""
    w1, s1, b1, w2, s2, b2, w3, s3, b3 = params
    N, Cin, H, W = x_nchw.shape
    width = w1.shape[1]
    Cout = w3.shape[1]
    assert Cin == Cout, "identity path requires inplanes == planes * expansion"

    # ---- one-time parameter prep: fold BN scale into the conv weights, pad
    # every channel axis to a multiple of 128 lanes, cast weights to bf16. ----
    cin_p = _round_up(Cin, _LANE)
    wid_p = _round_up(width, _LANE)
    cout_p = _round_up(Cout, _LANE)
    Wp = _round_up(W, _SUB)

    w1f = w1 * s1                                  # scale per output channel
    w2f = w2 * s2.reshape(1, 1, 1, width)
    w3f = w3 * s3

    w1p = jnp.zeros((cin_p, wid_p), jnp.float32).at[:Cin, :width].set(w1f)
    w2p = jnp.zeros((3, 3, wid_p, wid_p), jnp.float32
                    ).at[:, :, :width, :width].set(w2f)
    w3p = jnp.zeros((wid_p, cout_p), jnp.float32).at[:width, :Cout].set(w3f)
    b1p = jnp.zeros((1, wid_p), jnp.float32).at[:, :width].set(b1)
    b2p = jnp.zeros((1, wid_p), jnp.float32).at[:, :width].set(b2)
    b3p = jnp.zeros((1, cout_p), jnp.float32).at[:, :Cout].set(b3)

    w1b = w1p.astype(jnp.bfloat16)
    w2b = w2p.reshape(9 * wid_p, wid_p).astype(jnp.bfloat16)  # (kh*kw*ci, co)
    w3b = w3p.astype(jnp.bfloat16)

    # ---- activation prep: NCHW -> NHWC, W/channel pad, bf16, row tiles ------
    TH = _pick_tile_rows(H, Wp, target_px)
    nt = H // TH
    TW = TH * Wp

    x_nhwc = jnp.transpose(x_nchw, (0, 2, 3, 1))
    xb = jnp.pad(x_nhwc, ((0, 0), (0, 0), (0, Wp - W), (0, cin_p - Cin))
                 ).astype(jnp.bfloat16)
    x_flat = xb.reshape(N, H * Wp, cin_p)

    # Row halos: original rows t*TH-1 (above) and t*TH+TH (below) each tile,
    # stacked as one (2*Wp, C) block so the kernel runs a single fused matmul.
    xz = jnp.pad(xb, ((0, 0), (1, 1), (0, 0), (0, 0)))          # (N, H+2, Wp, C)
    halo = jnp.concatenate([xz[:, 0:H:TH], xz[:, TH + 1::TH]], axis=2)

    # ---- VMEM budget from the actual tile sizes (+ double-buffer + slack) ---
    est = (2 * TW * cin_p * 2                       # x blocks (bf16, dbl-buf)
           + 2 * 2 * Wp * cin_p * 2                 # halo blocks
           + 2 * TW * cout_p * 2                    # out blocks (bf16, dbl-buf)
           + 2 * 2 * (cin_p * wid_p + 9 * wid_p * wid_p + wid_p * cout_p)
           + 2 * 4 * (2 * wid_p + cout_p)           # biases
           + (TW + 2 * Wp + 16) * wid_p * 2         # h1_pad scratch
           + 6 * TW * max(wid_p, cout_p) * 4)       # f32 intermediates
    try:
        info = pltpu.get_tpu_info()
        phys = int(getattr(info, "vmem_capacity_bytes", 128 << 20))
    except Exception:  # pragma: no cover - conservative fallback
        phys = 128 << 20
    cap = min((phys * 7) // 10, 100 << 20)          # ~45 MiB on v7x, ~89 MiB v5e/v6e
    vmem_limit = int(min(max(2 * est + (8 << 20), 32 << 20), cap))

    kern = partial(bottleneck_kernel, TH=TH, W=W, Wp=Wp, nt=nt)
    out = pl.pallas_call(
        kern,
        out_shape=jax.ShapeDtypeStruct((N, H * Wp, cout_p), jnp.bfloat16),
        grid_spec=pltpu.PrefetchScalarGridSpec(
            num_scalar_prefetch=0,
            grid=(N, nt),
            in_specs=[
                pl.BlockSpec((1, TW, cin_p), lambda n, t: (n, t, 0)),
                pl.BlockSpec((1, 1, 2 * Wp, cin_p), lambda n, t: (n, t, 0, 0)),
                pl.BlockSpec((cin_p, wid_p), lambda n, t: (0, 0)),
                pl.BlockSpec((1, wid_p), lambda n, t: (0, 0)),
                pl.BlockSpec((9 * wid_p, wid_p), lambda n, t: (0, 0)),
                pl.BlockSpec((1, wid_p), lambda n, t: (0, 0)),
                pl.BlockSpec((wid_p, cout_p), lambda n, t: (0, 0)),
                pl.BlockSpec((1, cout_p), lambda n, t: (0, 0)),
            ],
            out_specs=pl.BlockSpec((1, TW, cout_p), lambda n, t: (n, t, 0)),
            scratch_shapes=[
                pltpu.VMEM((TW + 2 * Wp + 16, wid_p), jnp.bfloat16)],
        ),
        compiler_params=pltpu.CompilerParams(
            dimension_semantics=("parallel", "parallel"),
            vmem_limit_bytes=vmem_limit),
    )(x_flat, halo, w1b, b1p, w2b, b2p, w3b, b3p)

    # For stacked Bottlenecks the caller should keep this bf16 NHWC output;
    # we restore f32 NCHW here only to match the PyTorch module interface.
    out = out[:, :, :Cout].astype(jnp.float32)
    out = out.reshape(N, H, Wp, Cout)[:, :, :W]
    return jnp.transpose(out, (0, 3, 1, 2))


def init_params(key, inplanes, planes, base_width=64, groups=1):
    """Deterministic synthetic parameters matching the module's shapes."""
    width = int(planes * (base_width / 64.0)) * groups
    cout = planes * 4            # Bottleneck.expansion = 4
    eps = 1e-5
    ks = jax.random.split(key, 6)

    def folded_bn(k, c):
        k1, k2, k3, k4 = jax.random.split(k, 4)
        gamma = 1.0 + 0.1 * jax.random.normal(k1, (c,), jnp.float32)
        beta = 0.1 * jax.random.normal(k2, (c,), jnp.float32)
        mean = 0.1 * jax.random.normal(k3, (c,), jnp.float32)
        var = jnp.abs(jax.random.normal(k4, (c,), jnp.float32)) + 0.5
        scale = gamma / jnp.sqrt(var + eps)
        shift = beta - mean * scale
        return scale.reshape(1, c), shift.reshape(1, c)

    # Weights stored as (cin, cout) / (kh, kw, cin, cout)  (HWIO).
    w1 = 0.1 * jax.random.normal(ks[0], (inplanes, width), jnp.float32)
    w2 = 0.1 * jax.random.normal(ks[1], (3, 3, width, width), jnp.float32)
    w3 = 0.1 * jax.random.normal(ks[2], (width, cout), jnp.float32)
    s1, b1 = folded_bn(ks[3], width)
    s2, b2 = folded_bn(ks[4], width)
    s3, b3 = folded_bn(ks[5], cout)
    return (w1, s1, b1, w2, s2, b2, w3, s3, b3)


def reference(x_nchw, params):
    """Pure-JAX f32 NHWC reference using lax.conv_general_dilated."""
    w1, s1, b1, w2, s2, b2, w3, s3, b3 = params
    dn = ('NHWC', 'HWIO', 'NHWC')
    x = jnp.transpose(x_nchw, (0, 2, 3, 1))
    h = jax.lax.conv_general_dilated(x, w1.reshape(1, 1, *w1.shape), (1, 1),
                                     'VALID', dimension_numbers=dn)
    h = jnp.maximum(h * s1.reshape(1, 1, 1, -1) + b1.reshape(1, 1, 1, -1), 0.0)
    h = jax.lax.conv_general_dilated(h, w2, (1, 1), 'SAME',
                                     dimension_numbers=dn)
    h = jnp.maximum(h * s2.reshape(1, 1, 1, -1) + b2.reshape(1, 1, 1, -1), 0.0)
    h = jax.lax.conv_general_dilated(h, w3.reshape(1, 1, *w3.shape), (1, 1),
                                     'VALID', dimension_numbers=dn)
    h = h * s3.reshape(1, 1, 1, -1) + b3.reshape(1, 1, 1, -1)
    out = jnp.maximum(h + x, 0.0)
    return jnp.transpose(out, (0, 3, 1, 2))


if __name__ == "__main__":
    key = jax.random.PRNGKey(0)
    kx1, kp1, kx2, kp2 = jax.random.split(key, 4)

    # inplanes == planes * expansion so the identity path applies
    # (downsample=None), matching the module's default configuration.
    inplanes, planes = 16, 4

    # Case 1: whole image in a single tile (nt == 1), W already 8-aligned.
    N, H, W = 2, 16, 16
    x1 = jax.random.normal(kx1, (N, inplanes, H, W), jnp.float32)
    p1 = init_params(kp1, inplanes, planes)
    out1 = jax.block_until_ready(bottleneck_forward(x1, p1))
    ref1 = jax.block_until_ready(reference(x1, p1))
    assert out1.shape == (N, planes * 4, H, W), out1.shape
    err1 = float(jnp.max(jnp.abs(out1 - ref1)))
    assert err1 < 5e-2, f"case1 max abs error too large: {err1}"

    # Case 2: multi-tile halo path (nt > 1) with W not a multiple of 8.
    N2, H2, W2 = 2, 16, 12
    x2 = jax.random.normal(kx2, (N2, inplanes, H2, W2), jnp.float32)
    p2 = init_params(kp2, inplanes, planes)
    out2 = jax.block_until_ready(bottleneck_forward(x2, p2, target_px=64))
    ref2 = jax.block_until_ready(reference(x2, p2))
    assert out2.shape == (N2, planes * 4, H2, W2), out2.shape
    err2 = float(jnp.max(jnp.abs(out2 - ref2)))
    assert err2 < 5e-2, f"case2 max abs error too large: {err2}"

    print("KERNEL_OK")
</pallas_src>

<mosaic_0001>
module attributes {stable_mosaic.version = 11 : i64} {
  func.func @bottleneck_kernel(%arg0: i32, %arg1: i32, %arg2: memref<1x256x128xbf16, #tpu.memory_space<vmem>>, %arg3: memref<1x1x32x128xbf16, #tpu.memory_space<vmem>>, %arg4: memref<128x128xbf16, #tpu.memory_space<vmem>>, %arg5: memref<1x128xf32, #tpu.memory_space<vmem>>, %arg6: memref<1152x128xbf16, #tpu.memory_space<vmem>>, %arg7: memref<1x128xf32, #tpu.memory_space<vmem>>, %arg8: memref<128x128xbf16, #tpu.memory_space<vmem>>, %arg9: memref<1x128xf32, #tpu.memory_space<vmem>>, %arg10: memref<1x256x128xbf16, #tpu.memory_space<vmem>>, %arg11: memref<304x128xbf16, #tpu.memory_space<vmem>>) attributes {dimension_semantics = [#tpu.dimension_semantics<parallel>, #tpu.dimension_semantics<parallel>], iteration_bounds = array<i64: 2, 1>, scalar_prefetch = 0 : i64, scratch_operands = 1 : i64, tpu.core_type = #tpu.core_type<tc>, window_params = [{transform_indices = @transform_0, window_bounds = array<i64: 1, 256, 128>}, {transform_indices = @transform_1, window_bounds = array<i64: 1, 1, 32, 128>}, {pipeline_mode = #tpu.pipeline_mode<synchronous>, transform_indices = @transform_2, window_bounds = array<i64: 128, 128>}, {pipeline_mode = #tpu.pipeline_mode<synchronous>, transform_indices = @transform_3, window_bounds = array<i64: 1, 128>}, {pipeline_mode = #tpu.pipeline_mode<synchronous>, transform_indices = @transform_4, window_bounds = array<i64: 1152, 128>}, {pipeline_mode = #tpu.pipeline_mode<synchronous>, transform_indices = @transform_5, window_bounds = array<i64: 1, 128>}, {pipeline_mode = #tpu.pipeline_mode<synchronous>, transform_indices = @transform_6, window_bounds = array<i64: 128, 128>}, {pipeline_mode = #tpu.pipeline_mode<synchronous>, transform_indices = @transform_7, window_bounds = array<i64: 1, 128>}, {transform_indices = @transform_8, window_bounds = array<i64: 1, 256, 128>}]} {
    %c0 = arith.constant 0 : index
    %c0_0 = arith.constant 0 : index
    %0 = vector.load %arg4[%c0, %c0_0] : memref<128x128xbf16, #tpu.memory_space<vmem>>, vector<128x128xbf16>
    %c0_1 = arith.constant 0 : index
    %c0_2 = arith.constant 0 : index
    %1 = vector.load %arg5[%c0_1, %c0_2] : memref<1x128xf32, #tpu.memory_space<vmem>>, vector<1x128xf32>
    %c0_3 = arith.constant 0 : index
    %c0_4 = arith.constant 0 : index
    %c0_5 = arith.constant 0 : index
    %2 = vector.load %arg2[%c0_3, %c0_4, %c0_5] : memref<1x256x128xbf16, #tpu.memory_space<vmem>>, vector<1x256x128xbf16>
    %3 = vector.shape_cast %2 : vector<1x256x128xbf16> to vector<256x128xbf16>
    %cst = arith.constant dense<0.000000e+00> : vector<256x128xf32>
    %4 = tpu.matmul %3, %0, %cst {dimension_numbers = #tpu.dot_dimension_numbers<[1], [0], [0], [1], [0, 0, 1, 1], [], []>} : vector<256x128xbf16>, vector<128x128xbf16>, vector<256x128xf32> -> vector<256x128xf32>
    %5 = vector.broadcast %1 : vector<1x128xf32> to vector<256x128xf32>
    %6 = arith.addf %4, %5 : vector<256x128xf32>
    %cst_6 = arith.constant 0.000000e+00 : f32
    %7 = vector.broadcast %cst_6 : f32 to vector<256x128xf32>
    %8 = arith.maximumf %6, %7 : vector<256x128xf32>
    %9 = arith.truncf %8 : vector<256x128xf32> to vector<256x128xbf16>
    %c24 = arith.constant 24 : index
    %c0_7 = arith.constant 0 : index
    %10 = vector.load %arg11[%c24, %c0_7] : memref<304x128xbf16, #tpu.memory_space<vmem>>, vector<256x128xbf16>
    tpu.vector_store %arg11[%c24, %c0_7], %9 {strides = array<i32>} : memref<304x128xbf16, #tpu.memory_space<vmem>>, vector<256x128xbf16>,
    %cst_8 = arith.constant 0.000000e+00 : bf16
    %11 = vector.broadcast %cst_8 : bf16 to vector<16x128xbf16>
    %c8 = arith.constant 8 : index
    %c0_9 = arith.constant 0 : index
    %12 = vector.load %arg11[%c8, %c0_9] : memref<304x128xbf16, #tpu.memory_space<vmem>>, vector<16x128xbf16>
    tpu.vector_store %arg11[%c8, %c0_9], %11 {strides = array<i32>} : memref<304x128xbf16, #tpu.memory_space<vmem>>, vector<16x128xbf16>,
    %c280 = arith.constant 280 : index
    %c0_10 = arith.constant 0 : index
    %13 = vector.load %arg11[%c280, %c0_10] : memref<304x128xbf16, #tpu.memory_space<vmem>>, vector<16x128xbf16>
    tpu.vector_store %arg11[%c280, %c0_10], %11 {strides = array<i32>} : memref<304x128xbf16, #tpu.memory_space<vmem>>, vector<16x128xbf16>,
    %14 = tpu.iota {dimensions = array<i32: 0>} : vector<256x1xi32>
    %c16_i32 = arith.constant 16 : i32
    %c0_i32 = arith.constant 0 : i32
    %15 = arith.cmpi eq, %c16_i32, %c0_i32 : i32
    %c1_i32 = arith.constant 1 : i32
    %16 = arith.select %15, %c1_i32, %c16_i32 : i32
    %17 = vector.broadcast %16 : i32 to vector<256x1xi32>
    %18 = arith.remsi %14, %17 : vector<256x1xi32>
    %c0_i32_11 = arith.constant 0 : i32
    %19 = vector.broadcast %c0_i32_11 : i32 to vector<256x1xi32>
    %20 = arith.cmpi ne, %18, %19 : vector<256x1xi32>
    %c0_i32_12 = arith.constant 0 : i32
    %21 = vector.broadcast %c0_i32_12 : i32 to vector<256x1xi32>
    %22 = arith.cmpi slt, %18, %21 : vector<256x1xi32>
    %c0_i32_13 = arith.constant 0 : i32
    %23 = arith.cmpi slt, %16, %c0_i32_13 : i32
    %24 = vector.broadcast %23 : i1 to vector<256x1xi1>
    %25 = vector.broadcast %24 : vector<256x1xi1> to vector<256x1xi1>
    %26 = arith.xori %22, %25 : vector<256x1xi1>
    %27 = arith.andi %26, %20 : vector<256x1xi1>
    %28 = vector.broadcast %16 : i32 to vector<256x1xi32>
    %29 = arith.addi %18, %28 : vector<256x1xi32>
    %30 = arith.select %27, %29, %18 : vector<256x1xi1>, vector<256x1xi32>
    %c1_i32_14 = arith.constant 1 : i32
    %31 = vector.broadcast %c1_i32_14 : i32 to vector<256x1xi32>
    %32 = arith.cmpi sge, %30, %31 : vector<256x1xi32>
    %c14_i32 = arith.constant 14 : i32
    %33 = vector.broadcast %c14_i32 : i32 to vector<256x1xi32>
    %34 = arith.cmpi sle, %30, %33 : vector<256x1xi32>
    %c7 = arith.constant 7 : index
    %c0_15 = arith.constant 0 : index
    %35 = vector.load %arg11[%c7, %c0_15] : memref<304x128xbf16, #tpu.memory_space<vmem>>, vector<256x128xbf16>
    %c0_i32_16 = arith.constant 0 : i32
    %36 = arith.sitofp %c0_i32_16 : i32 to bf16
    %37 = vector.shape_cast %32 : vector<256x1xi1> to vector<256x1xi1>
    %38 = vector.broadcast %37 : vector<256x1xi1> to vector<256x128xi1>
    %39 = vector.broadcast %36 : bf16 to vector<256x128xbf16>
    %40 = arith.select %38, %35, %39 : vector<256x128xi1>, vector<256x128xbf16>
    %c0_17 = arith.constant 0 : index
    %c0_18 = arith.constant 0 : index
    %41 = vector.load %arg6[%c0_17, %c0_18] : memref<1152x128xbf16, #tpu.memory_space<vmem>>, vector<128x128xbf16>
    %cst_19 = arith.constant dense<0.000000e+00> : vector<256x128xf32>
    %42 = tpu.matmul %40, %41, %cst_19 {dimension_numbers = #tpu.dot_dimension_numbers<[1], [0], [0], [1], [0, 0, 1, 1], [], []>} : vector<256x128xbf16>, vector<128x128xbf16>, vector<256x128xf32> -> vector<256x128xf32>
    %c8_20 = arith.constant 8 : index
    %c0_21 = arith.constant 0 : index
    %43 = vector.load %arg11[%c8_20, %c0_21] : memref<304x128xbf16, #tpu.memory_space<vmem>>, vector<256x128xbf16>
    %c128 = arith.constant 128 : index
    %c0_22 = arith.constant 0 : index
    %44 = vector.load %arg6[%c128, %c0_22] : memref<1152x128xbf16, #tpu.memory_space<vmem>>, vector<128x128xbf16>
    %cst_23 = arith.constant dense<0.000000e+00> : vector<256x128xf32>
    %45 = tpu.matmul %43, %44, %cst_23 {dimension_numbers = #tpu.dot_dimension_numbers<[1], [0], [0], [1], [0, 0, 1, 1], [], []>} : vector<256x128xbf16>, vector<128x128xbf16>, vector<256x128xf32> -> vector<256x128xf32>
    %46 = arith.addf %42, %45 : vector<256x128xf32>
    %c9 = arith.constant 9 : index
    %c0_24 = arith.constant 0 : index
    %47 = vector.load %arg11[%c9, %c0_24] : memref<304x128xbf16, #tpu.memory_space<vmem>>, vector<256x128xbf16>
    %c0_i32_25 = arith.constant 0 : i32
    %48 = arith.sitofp %c0_i32_25 : i32 to bf16
    %49 = vector.shape_cast %34 : vector<256x1xi1> to vector<256x1xi1>
    %50 = vector.broadcast %49 : vector<256x1xi1> to vector<256x128xi1>
    %51 = vector.broadcast %48 : bf16 to vector<256x128xbf16>
    %52 = arith.select %50, %47, %51 : vector<256x128xi1>, vector<256x128xbf16>
    %c256 = arith.constant 256 : index
    %c0_26 = arith.constant 0 : index
    %53 = vector.load %arg6[%c256, %c0_26] : memref<1152x128xbf16, #tpu.memory_space<vmem>>, vector<128x128xbf16>
    %cst_27 = arith.constant dense<0.000000e+00> : vector<256x128xf32>
    %54 = tpu.matmul %52, %53, %cst_27 {dimension_numbers = #tpu.dot_dimension_numbers<[1], [0], [0], [1], [0, 0, 1, 1], [], []>} : vector<256x128xbf16>, vector<128x128xbf16>, vector<256x128xf32> -> vector<256x128xf32>
    %55 = arith.addf %46, %54 : vector<256x128xf32>
    %c23 = arith.constant 23 : index
    %c0_28 = arith.constant 0 : index
    %56 = vector.load %arg11[%c23, %c0_28] : memref<304x128xbf16, #tpu.memory_space<vmem>>, vector<256x128xbf16>
    %c0_i32_29 = arith.constant 0 : i32
    %57 = arith.sitofp %c0_i32_29 : i32 to bf16
    %58 = vector.shape_cast %32 : vector<256x1xi1> to vector<256x1xi1>
    %59 = vector.broadcast %58 : vector<256x1xi1> to vector<256x128xi1>
    %60 = vector.broadcast %57 : bf16 to vector<256x128xbf16>
    %61 = arith.select %59, %56, %60 : vector<256x128xi1>, vector<256x128xbf16>
    %c384 = arith.constant 384 : index
    %c0_30 = arith.constant 0 : index
    %62 = vector.load %arg6[%c384, %c0_30] : memref<1152x128xbf16, #tpu.memory_space<vmem>>, vector<128x128xbf16>
    %cst_31 = arith.constant dense<0.000000e+00> : vector<256x128xf32>
    %63 = tpu.matmul %61, %62, %cst_31 {dimension_numbers = #tpu.dot_dimension_numbers<[1], [0], [0], [1], [0, 0, 1, 1], [], []>} : vector<256x128xbf16>, vector<128x128xbf16>, vector<256x128xf32> -> vector<256x128xf32>
    %64 = arith.addf %55, %63 : vector<256x128xf32>
    %c24_32 = arith.constant 24 : index
    %c0_33 = arith.constant 0 : index
    %65 = vector.load %arg11[%c24_32, %c0_33] : memref<304x128xbf16, #tpu.memory_space<vmem>>, vector<256x128xbf16>
    %c512 = arith.constant 512 : index
    %c0_34 = arith.constant 0 : index
    %66 = vector.load %arg6[%c512, %c0_34] : memref<1152x128xbf16, #tpu.memory_space<vmem>>, vector<128x128xbf16>
    %cst_35 = arith.constant dense<0.000000e+00> : vector<256x128xf32>
    %67 = tpu.matmul %65, %66, %cst_35 {dimension_numbers = #tpu.dot_dimension_numbers<[1], [0], [0], [1], [0, 0, 1, 1], [], []>} : vector<256x128xbf16>, vector<128x128xbf16>, vector<256x128xf32> -> vector<256x128xf32>
    %68 = arith.addf %64, %67 : vector<256x128xf32>
    %c25 = arith.constant 25 : index
    %c0_36 = arith.constant 0 : index
    %69 = vector.load %arg11[%c25, %c0_36] : memref<304x128xbf16, #tpu.memory_space<vmem>>, vector<256x128xbf16>
    %c0_i32_37 = arith.constant 0 : i32
    %70 = arith.sitofp %c0_i32_37 : i32 to bf16
    %71 = vector.shape_cast %34 : vector<256x1xi1> to vector<256x1xi1>
    %72 = vector.broadcast %71 : vector<256x1xi1> to vector<256x128xi1>
    %73 = vector.broadcast %70 : bf16 to vector<256x128xbf16>
    %74 = arith.select %72, %69, %73 : vector<256x128xi1>, vector<256x128xbf16>
    %c640 = arith.constant 640 : index
    %c0_38 = arith.constant 0 : index
    %75 = vector.load %arg6[%c640, %c0_38] : memref<1152x128xbf16, #tpu.memory_space<vmem>>, vector<128x128xbf16>
    %cst_39 = arith.constant dense<0.000000e+00> : vector<256x128xf32>
    %76 = tpu.matmul %74, %75, %cst_39 {dimension_numbers = #tpu.dot_dimension_numbers<[1], [0], [0], [1], [0, 0, 1, 1], [], []>} : vector<256x128xbf16>, vector<128x128xbf16>, vector<256x128xf32> -> vector<256x128xf32>
    %77 = arith.addf %68, %76 : vector<256x128xf32>
    %c39 = arith.constant 39 : index
    %c0_40 = arith.constant 0 : index
    %78 = vector.load %arg11[%c39, %c0_40] : memref<304x128xbf16, #tpu.memory_space<vmem>>, vector<256x128xbf16>
    %c0_i32_41 = arith.constant 0 : i32
    %79 = arith.sitofp %c0_i32_41 : i32 to bf16
    %80 = vector.shape_cast %32 : vector<256x1xi1> to vector<256x1xi1>
    %81 = vector.broadcast %80 : vector<256x1xi1> to vector<256x128xi1>
    %82 = vector.broadcast %79 : bf16 to vector<256x128xbf16>
    %83 = arith.select %81, %78, %82 : vector<256x128xi1>, vector<256x128xbf16>
    %c768 = arith.constant 768 : index
    %c0_42 = arith.constant 0 : index
    %84 = vector.load %arg6[%c768, %c0_42] : memref<1152x128xbf16, #tpu.memory_space<vmem>>, vector<128x128xbf16>
    %cst_43 = arith.constant dense<0.000000e+00> : vector<256x128xf32>
    %85 = tpu.matmul %83, %84, %cst_43 {dimension_numbers = #tpu.dot_dimension_numbers<[1], [0], [0], [1], [0, 0, 1, 1], [], []>} : vector<256x128xbf16>, vector<128x128xbf16>, vector<256x128xf32> -> vector<256x128xf32>
    %86 = arith.addf %77, %85 : vector<256x128xf32>
    %c40 = arith.constant 40 : index
    %c0_44 = arith.constant 0 : index
    %87 = vector.load %arg11[%c40, %c0_44] : memref<304x128xbf16, #tpu.memory_space<vmem>>, vector<256x128xbf16>
    %c896 = arith.constant 896 : index
    %c0_45 = arith.constant 0 : index
    %88 = vector.load %arg6[%c896, %c0_45] : memref<1152x128xbf16, #tpu.memory_space<vmem>>, vector<128x128xbf16>
    %cst_46 = arith.constant dense<0.000000e+00> : vector<256x128xf32>
    %89 = tpu.matmul %87, %88, %cst_46 {dimension_numbers = #tpu.dot_dimension_numbers<[1], [0], [0], [1], [0, 0, 1, 1], [], []>} : vector<256x128xbf16>, vector<128x128xbf16>, vector<256x128xf32> -> vector<256x128xf32>
    %90 = arith.addf %86, %89 : vector<256x128xf32>
    %c41 = arith.constant 41 : index
    %c0_47 = arith.constant 0 : index
    %91 = vector.load %arg11[%c41, %c0_47] : memref<304x128xbf16, #tpu.memory_space<vmem>>, vector<256x128xbf16>
    %c0_i32_48 = arith.constant 0 : i32
    %92 = arith.sitofp %c0_i32_48 : i32 to bf16
    %93 = vector.shape_cast %34 : vector<256x1xi1> to vector<256x1xi1>
    %94 = vector.broadcast %93 : vector<256x1xi1> to vector<256x128xi1>
    %95 = vector.broadcast %92 : bf16 to vector<256x128xbf16>
    %96 = arith.select %94, %91, %95 : vector<256x128xi1>, vector<256x128xbf16>
    %c1024 = arith.constant 1024 : index
    %c0_49 = arith.constant 0 : index
    %97 = vector.load %arg6[%c1024, %c0_49] : memref<1152x128xbf16, #tpu.memory_space<vmem>>, vector<128x128xbf16>
    %cst_50 = arith.constant dense<0.000000e+00> : vector<256x128xf32>
    %98 = tpu.matmul %96, %97, %cst_50 {dimension_numbers = #tpu.dot_dimension_numbers<[1], [0], [0], [1], [0, 0, 1, 1], [], []>} : vector<256x128xbf16>, vector<128x128xbf16>, vector<256x128xf32> -> vector<256x128xf32>
    %99 = arith.addf %90, %98 : vector<256x128xf32>
    %c0_51 = arith.constant 0 : index
    %c0_52 = arith.constant 0 : index
    %100 = vector.load %arg7[%c0_51, %c0_52] : memref<1x128xf32, #tpu.memory_space<vmem>>, vector<1x128xf32>
    %101 = vector.broadcast %100 : vector<1x128xf32> to vector<256x128xf32>
    %102 = arith.addf %99, %101 : vector<256x128xf32>
    %cst_53 = arith.constant 0.000000e+00 : f32
    %103 = vector.broadcast %cst_53 : f32 to vector<256x128xf32>
    %104 = arith.maximumf %102, %103 : vector<256x128xf32>
    %105 = arith.truncf %104 : vector<256x128xf32> to vector<256x128xbf16>
    %c0_54 = arith.constant 0 : index
    %c0_55 = arith.constant 0 : index
    %106 = vector.load %arg8[%c0_54, %c0_55] : memref<128x128xbf16, #tpu.memory_space<vmem>>, vector<128x128xbf16>
    %cst_56 = arith.constant dense<0.000000e+00> : vector<256x128xf32>
    %107 = tpu.matmul %105, %106, %cst_56 {dimension_numbers = #tpu.dot_dimension_numbers<[1], [0], [0], [1], [0, 0, 1, 1], [], []>} : vector<256x128xbf16>, vector<128x128xbf16>, vector<256x128xf32> -> vector<256x128xf32>
    %c0_57 = arith.constant 0 : index
    %c0_58 = arith.constant 0 : index
    %108 = vector.load %arg9[%c0_57, %c0_58] : memref<1x128xf32, #tpu.memory_space<vmem>>, vector<1x128xf32>
    %109 = vector.broadcast %108 : vector<1x128xf32> to vector<256x128xf32>
    %110 = arith.addf %107, %109 : vector<256x128xf32>
    %111 = arith.extf %3 : vector<256x128xbf16> to vector<256x128xf32>
    %112 = arith.addf %110, %111 : vector<256x128xf32>
    %cst_59 = arith.constant 0.000000e+00 : f32
    %113 = vector.broadcast %cst_59 : f32 to vector<256x128xf32>
    %114 = arith.maximumf %112, %113 : vector<256x128xf32>
    %115 = arith.truncf %114 : vector<256x128xf32> to vector<256x128xbf16>
    %c0_60 = arith.constant 0 : index
    %c0_61 = arith.constant 0 : index
    %c0_62 = arith.constant 0 : index
    %116 = vector.load %arg10[%c0_60, %c0_61, %c0_62] : memref<1x256x128xbf16, #tpu.memory_space<vmem>>, vector<1x256x128xbf16>
    %117 = vector.shape_cast %116 : vector<1x256x128xbf16> to vector<256x128xbf16>
    %118 = vector.shape_cast %115 : vector<256x128xbf16> to vector<1x256x128xbf16>
    tpu.vector_store %arg10[%c0_60, %c0_61, %c0_62], %118 {strides = array<i32>} : memref<1x256x128xbf16, #tpu.memory_space<vmem>>, vector<1x256x128xbf16>,
    return
  }
  func.func @transform_0(%arg0: i32, %arg1: i32) -> (i32, i32, i32) {
    %c0_i32 = arith.constant 0 : i32
    %c0_i32_0 = arith.constant 0 : i32
    return %arg0, %arg1, %c0_i32 : i32, i32, i32
  }
  func.func @transform_1(%arg0: i32, %arg1: i32) -> (i32, i32, i32, i32) {
    %c0_i32 = arith.constant 0 : i32
    %c0_i32_0 = arith.constant 0 : i32
    %c0_i32_1 = arith.constant 0 : i32
    return %arg0, %arg1, %c0_i32, %c0_i32_0 : i32, i32, i32, i32
  }
  func.func @transform_2(%arg0: i32, %arg1: i32) -> (i32, i32) {
    %c0_i32 = arith.constant 0 : i32
    %c0_i32_0 = arith.constant 0 : i32
    %c0_i32_1 = arith.constant 0 : i32
    return %c0_i32, %c0_i32_0 : i32, i32
  }
  func.func @transform_3(%arg0: i32, %arg1: i32) -> (i32, i32) {
    %c0_i32 = arith.constant 0 : i32
    %c0_i32_0 = arith.constant 0 : i32
    %c0_i32_1 = arith.constant 0 : i32
    return %c0_i32, %c0_i32_0 : i32, i32
  }
  func.func @transform_4(%arg0: i32, %arg1: i32) -> (i32, i32) {
    %c0_i32 = arith.constant 0 : i32
    %c0_i32_0 = arith.constant 0 : i32
    %c0_i32_1 = arith.constant 0 : i32
    return %c0_i32, %c0_i32_0 : i32, i32
  }
  func.func @transform_5(%arg0: i32, %arg1: i32) -> (i32, i32) {
    %c0_i32 = arith.constant 0 : i32
    %c0_i32_0 = arith.constant 0 : i32
    %c0_i32_1 = arith.constant 0 : i32
    return %c0_i32, %c0_i32_0 : i32, i32
  }
  func.func @transform_6(%arg0: i32, %arg1: i32) -> (i32, i32) {
    %c0_i32 = arith.constant 0 : i32
    %c0_i32_0 = arith.constant 0 : i32
    %c0_i32_1 = arith.constant 0 : i32
    return %c0_i32, %c0_i32_0 : i32, i32
  }
  func.func @transform_7(%arg0: i32, %arg1: i32) -> (i32, i32) {
    %c0_i32 = arith.constant 0 : i32
    %c0_i32_0 = arith.constant 0 : i32
    %c0_i32_1 = arith.constant 0 : i32
    return %c0_i32, %c0_i32_0 : i32, i32
  }
  func.func @transform_8(%arg0: i32, %arg1: i32) -> (i32, i32, i32) {
    %c0_i32 = arith.constant 0 : i32
    %c0_i32_0 = arith.constant 0 : i32
    return %arg0, %arg1, %c0_i32 : i32, i32, i32
  }
}

</mosaic_0001>

<bundles_post_ra>
// kernel: tpu_custom_call.1
= control target key start
LH: loop header
LB: loop body
LE: loop exit
PB: predicated region body
PF: predicated region fallthrough
CT: control target
= control target key end

     0   :  { %s11699_s0 = inlined_call_operand.hbm [shape: bf16[2,256,128], index: 0, kind: input, shape index: {}]   ;;  %s11700_s1 = inlined_call_operand.hbm [shape: bf16[2,1,32,128], index: 1, kind: input, shape index: {}]   ;;  %s11701_s2 = inlined_call_operand.hbm [shape: bf16[128,128], index: 2, kind: input, shape index: {}]   ;;  %s11702_s3 = inlined_call_operand.vmem [shape: f32[1,128], index: 3, kind: input, shape index: {}]   ;;  %s11703_s4 = inlined_call_operand.hbm [shape: bf16[1152,128], index: 4, kind: input, shape index: {}]   ;;  %s11704_s5 = inlined_call_operand.vmem [shape: f32[1,128], index: 5, kind: input, shape index: {}]   ;;  %s11705_s6 = inlined_call_operand.hbm [shape: bf16[128,128], index: 6, kind: input, shape index: {}]   ;;  %s11706_s7 = inlined_call_operand.vmem [shape: f32[1,128], index: 7, kind: input, shape index: {}]   ;;  %s11707_s8 = inlined_call_operand.hbm [shape: bf16[2,256,128], index: 8, kind: output, shape index: {}]  }
   0x1   :  { %11821 = sst [smem:[#allocation139_spill]] %s11701_s2 }
   0x2   :  { %11822 = sst [smem:[#allocation140_spill]] %s11703_s4 }
   0x3   :  { %11823 = sst [smem:[#allocation141_spill]] %s11705_s6 }
   0x4   :  { %13 = vsyncpa [#allocation4], 0 }
   0x5   :  { %15 = vsyncpa [#allocation4 + $0x1], 0 }
   0x6   :  { %16 = vsyncpa [#allocation7], 0 }
   0x7   :  { %18 = vsyncpa [#allocation7 + $0x1], 0 }
   0x8   :  { %19 = vsyncpa [#allocation10], 0 }
   0x9   :  { %20 = vsyncpa [#allocation5], 0 }
   0xa   :  { %22 = vsyncpa [#allocation5 + $0x1], 0  ;;  %s8338_s27 = smov 0   ;;  %s8340_s28 = smov 0  }
   0xb   :  { %s8342_s29 = smov 0   ;;  %s8344_s30 = smov 0  }
   0xc   :  { %s8346_s9 = smov 0   ;;  %s8348_s10 = smov 0  }
   0xd LB: > { %11824 = sst [smem:[#allocation18_spill]] %s8262_s27  ;;  %s8369_s11 = sadd.s32 4294967295, %s8282_s10   ;;  %s8282_s10 = sphi %s8348_s10, %s28_s10   ;;  %s8278_s9 = sphi %s8346_s9, %s12622_s9   ;;  %s8274_s30 = sphi %s8344_s30, %s12621_s30   ;;  %s8270_s29 = sphi %s8342_s29, %s12617_s29   ;;  %s8266_s28 = sphi %s8340_s28, %s12620_s28   ;;  %s8262_s27 = sphi %s8338_s27, %s12619_s27  }
   0xe   : > { %11825 = sst [smem:[#allocation19_spill]] %s8270_s29  ;;  %s6934_s12 = sadd.s32 4294967294, %s8282_s10  }
   0xf   : > { %p62_p0 = scmp.ne.s32.totalorder %s8266_s28, %s8262_s27  ;;  %p63_p1 = scmp.eq.s32.totalorder %s8369_s11, 0 }
  0x10   : > { %p242_p2 = scmp.eq.s32.totalorder %s8369_s11, 1  ;;  %p248_p3 = scmp.eq.s32.totalorder %s6934_s12, 1 }
  0x11   : > { %p8378_p4 = por %p63_p1, %p62_p0  ;;  %p6935_p5 = scmp.ge.s32.totalorder %s8282_s10, 1 }
  0x12   : > { %p8383_p6 = por %p248_p3, %p62_p0  ;;  %p255_p7 = scmp.lt.s32.totalorder %s8282_s10, 3 }
  0x13   : > { %s11829_s2 = sld [smem:[#allocation139_spill]]  ;;  %s8284_s19 = smov [#allocation8]  }
  0x14   : > { %s11827_s14 = scalar_select %p8383_p6, 1, 0 }
  0x15   : > { %p8391_p8 = pnand %p6935_p5, %p255_p7  ;;  %s268_s20 = sshll.u32 %s8284_s19, 4  ;;  %s269_s20 = int_to_ptr.vmem [resolvable:$true] %s268_s20 }
  0x16   : > { %11828 = sst [smem:[#allocation20_spill]] %s11827_s14  ;;  %p6939_p11 = scmp.ge.s32.totalorder %s8282_s10, 2 }
  0x17   : > { %p7947_p9 = pneg %p8391_p8  ;;  %s11832_s4 = sld [smem:[#allocation140_spill]] }
  0x18   : > { %s11708_s25 = smov 64   ;;  %s11710_s26 = smov 4  }
  0x19   : > { %s266_s17 = sshll.u32 %s11829_s2, 4  ;;  %p8399_p10 = pnand %p7947_p9, %p63_p1  ;;  %s267_s17 = int_to_ptr.hbm [resolvable:$true] %s266_s17 }
  0x1a   : > { %s8287_s12 = smov [#allocation9]   ;;  %s11833_s6 = sld [smem:[#allocation141_spill]] }
  0x1b   : > { %7950 = dma.hbm_to_vmem [thread:$0]  (!%p8399_p10), %s267_s17, 1024, %s269_s20, [#allocation7], %s11708_s25, %s11708_s25, %s11710_s26  }
  0x1c   : > { %s285_s15 = sshll.u32 %s8287_s12, 4  ;;  %s8288_s23 = smov [#allocation11]   ;;  %s286_s15 = int_to_ptr.vmem [resolvable:$true] %s285_s15 }
  0x1d   : > { %s283_s24 = sshll.u32 %s11832_s4, 4  ;;  %s302_s2 = sshll.u32 %s8288_s23, 4  ;;  %s284_s24 = int_to_ptr.hbm [resolvable:$true] %s283_s24  ;;  %s303_s2 = int_to_ptr.vmem [resolvable:$true] %s302_s2 }
  0x1e   : > { %7953 = dma.hbm_to_vmem [thread:$0]  (!%p8399_p10), %s284_s24, 9216, %s286_s15, [#allocation10], %s11708_s25, %s11708_s25, %s11710_s26  }
  0x1f   : > { %s40_s17 = sadd.s32 1, %s8278_s9  ;;  %s49_s20 = sadd.s32 1, %s8270_s29 }
  0x20   : > { %s300_s22 = sshll.u32 %s11833_s6, 4  ;;  %p42_p12 = scmp.ge.s32.totalorder %s40_s17, 2  ;;  %s301_s22 = int_to_ptr.hbm [resolvable:$true] %s300_s22 }
  0x21   : > { %7956 = dma.hbm_to_vmem [thread:$0]  (!%p8399_p10), %s301_s22, 1024, %s303_s2, [#allocation10], %s11708_s25, %s11708_s25, %s11710_s26  }
  0x22   : > { %p56_p13 = scmp.ne.s32.totalorder %s8270_s29, %s8266_s28  ;;  %p57_p0 = scmp.eq.s32.totalorder %s8282_s10, 0 }
  0x23   : > { %s12624_s17 = smov (%p42_p12, %s40_s17), 0  ;;  %p7971_p7 = scmp.lt.s32.totalorder %s8282_s10, 2 }
  0x24   : > { %11834 = sst [smem:[#allocation21_spill]] %s12624_s17  ;;  %p8432_p3 = por %p57_p0, %p56_p13 }
  0x25   : > { %p8438_p5 = por %p242_p2, %p56_p13  ;;  %s44_s2 = ssub.s32 %s8278_s9, %s12624_s17 }
  0x26   : > { %p47_p9 = scmp.eq.s32.totalorder %s44_s2, 0  ;;  %s319_s12 = sand.u32 1, %s8270_s29  }
  0x27   : > { %s11836_s21 = scalar_select %p8438_p5, 1, 0 }
  0x28   : > { %s6940_s15 = sshll.u32 %s319_s12, 7  ;;  %s7565_s19 = sshll.u32 %s8278_s9, 7 }
  0x29   : > { %11837 = sst [smem:[#allocation22_spill]] %s11836_s21  ;;  %s330_s25 = scalar_lea.hbm %s11699_s0, %s7565_s19 }
  0x2a   : > { %s8447_s16 = scalar_select %p47_p9, %s8270_s29, %s49_s20  }
  0x2b   : > { %s323_s26 = scalar_lea.vmem [#allocation3], %s6940_s15  ;;  %s331_s6 = sshll.u32 %s330_s25, 4  ;;  %s332_s6 = int_to_ptr.hbm [resolvable:$true] %s331_s6 }
  0x2c   : > { %11838 = sst [smem:[#allocation23_spill]] %s8447_s16  ;;  %s333_s4 = sshll.u32 %s323_s26, 4  ;;  %s334_s4 = int_to_ptr.vmem [resolvable:$true] %s333_s4 }
  0x2d   : > { %p7958_p2 = pnand %p7971_p7, %p8432_p3  ;;  %s343_s17 = sand.u32 1, %s8282_s10  }
  0x2e   : > { %s6943_s14 = sshll.u32 %s319_s12, 4  ;;  %s320_s2 = scalar_lea.sflag [#allocation4], %s319_s12 }
  0x2f   : > { %s11839_s27 = smov 4   ;;  %s11840_s21 = smov 64  }
  0x30   : > { %7960 = dma.hbm_to_vmem [thread:$0]  (!%p7958_p2), %s332_s6, 2048, %s334_s4, %s320_s2, %s11840_s21, %s11840_s21, %s11839_s27  }
  0x31   : > { %s7566_s20 = sshll.u32 %s8278_s9, 4  ;;  %s347_s19 = scalar_lea.vmem [#allocation6], %s6943_s14 }
  0x32   : > { %s354_s22 = scalar_lea.hbm %s11700_s1, %s7566_s20  ;;  %s357_s15 = sshll.u32 %s347_s19, 4  ;;  %s358_s15 = int_to_ptr.vmem [resolvable:$true] %s357_s15 }
  0x33   : > { %s355_s26 = sshll.u32 %s354_s22, 4  ;;  %s344_s25 = scalar_lea.sflag [#allocation7], %s343_s17  ;;  %s356_s26 = int_to_ptr.hbm [resolvable:$true] %s355_s26 }
  0x34   : > { %7963 = dma.hbm_to_vmem [thread:$0]  (!%p7958_p2), %s356_s26, 256, %s358_s15, %s344_s25, %s11840_s21, %s11840_s21, %s11839_s27  }
  0x35   : > { %369 = sbr.rel (%p8391_p8) target bundleno = 1362 (0x552), region = 52 }
  0x3a   : > { %s8469_s4 = sand.u32 1, %s8266_s28  }
  0x3b   : > { %s6947_s6 = sshll.u32 %s8469_s4, 7  ;;  %s372_s29 = scalar_lea.sflag [#allocation4], %s8469_s4 }
  0x3c   : > { %s8475_s14 = scalar_lea.vmem [#allocation3], %s6947_s6 }
  0x3d   : > { %8241 = dma.done.wait (%p8378_p4), %s372_s29, 2048  }
  0x3e   : > { %8243 = vsyncadd (%p8378_p4), %s372_s29, 4294965248  ;;  %s381_s27 = sand.u32 1, %s8369_s11  }
  0x3f   : > { %s382_s18 = scalar_lea.sflag [#allocation7], %s381_s27 }
  0x40   : > { %8245 = dma.done.wait (%p8378_p4), %s382_s18, 256  }
  0x41   : > { %8247 = vsyncadd (%p8378_p4), %s382_s18, 4294967040 }
  0x42   : > { %8249 = dma.done.wait (%p63_p1), [#allocation7], 1024  }
  0x43   : > { %8251 = vsyncadd (%p63_p1), [#allocation7], 4294966272 }
  0x44   : > { %8253 = dma.done.wait (%p63_p1), [#allocation10], 10240  }
  0x45   : > { %8255 = vsyncadd (%p63_p1), [#allocation10], 4294957056  ;;  %v7574_v0 = vld [vmem:[#allocation8 + $0x38] sm:$0xff]  ;;  %v7573_v1 = vld [vmem:[#allocation8 + $0x30] sm:$0xff]  ;;  %v829_v18 = vlaneseq  ;;  %v11730_v26 = vmov 0   ;;  %vm8290_vm2 = vmmov 1  }
  0x46   : > { %640 = vmatpush.bf16.msra.mxu0 %v7574_v0  ;;  %7905 = vmatpush.bf16.msra.mxu3 %v7574_v0  ;;  %v7572_v2 = vld [vmem:[#allocation8 + $0x28] sm:$0xff]  ;;  %v7571_v3 = vld [vmem:[#allocation8 + $0x20] sm:$0xff]  ;;  %v7570_v4 = vld [vmem:[#allocation8 + $0x18] sm:$0xff]  ;;  %825 = vst [vmem:[#allocation2 + $0x4] sm:$0xf] %v11730_v26  ;;  %v8556_v62 = vunpack.c.l.b16 %v11730_v26  ;;  %v8559_v63 = vunpack.c.h.b16 %v11730_v26  ;;  %s11546_s2 = scalar_lea.vmem [#allocation12], %s6947_s6 }
  0x47   : > { %v7569_v5 = vld [vmem:[#allocation8 + $0x10] sm:$0xff]  ;;  %v7568_v6 = vld [vmem:[#allocation8 + $0x8] sm:$0xff]  ;;  %v7567_v7 = vld [vmem:[#allocation8] sm:$0xff]  ;;  %v8503_v20 = vshrl.u32 %v829_v18, 7  ;;  %826 = vst [vmem:[#allocation2 + $0x8] sm:$0xf] %v11730_v26 }
  0x48   : > { %v7575_v8 = vld [vmem:[%s8475_s14] sm:$0xff]  ;;  %v7576_v9 = vld [vmem:[%s8475_s14 + $0x8] sm:$0xff]  ;;  %v7577_v10 = vld [vmem:[%s8475_s14 + $0x10] sm:$0xff]  ;;  %827 = vst [vmem:[#allocation2 + $0x8c] sm:$0xf] %v11730_v26  ;;  %s7719_s19 = sshll.u32 %s8274_s30, 7 }
  0x49   : > { %v7578_v11 = vld [vmem:[%s8475_s14 + $0x18] sm:$0xff]  ;;  %v7579_v12 = vld [vmem:[%s8475_s14 + $0x20] sm:$0xff]  ;;  %v7580_v14 = vld [vmem:[%s8475_s14 + $0x28] sm:$0xff]  ;;  %v866_v21 = vand.u32 15, %v8503_v20  ;;  %v832_v25 = vadd.s32 16, %v8503_v20  ;;  %v834_v56 = vadd.s32 32, %v8503_v20  ;;  %s6788_s25 = scalar_lea.hbm %s11707_s8, %s7719_s19 }
  0x4a   : > { %641 = vmatpush.bf16.msra.mxu0 %v7573_v1  ;;  %7906 = vmatpush.bf16.msra.mxu3 %v7573_v1  ;;  %v7622_v13 = vld [vmem:[#allocation9 + $0x78] sm:$0xff]  ;;  %v7621_v15 = vld [vmem:[#allocation9 + $0x70] sm:$0xff]  ;;  %v7620_v17 = vld [vmem:[#allocation9 + $0x68] sm:$0xff]  ;;  %828 = vst [vmem:[#allocation2 + $0x90] sm:$0xf] %v11730_v26  ;;  %s6789_s29 = sshll.u32 %s11546_s2, 4  ;;  %s6790_s29 = int_to_ptr.vmem [resolvable:$true] %s6789_s29 }
  0x4b   : > { %2233 = vmatpush.bf16.msra.mxu1 %v7622_v13  ;;  %v8500_v16 = vld [vmem:[#allocation9 + $0x38] sm:$0xff]  ;;  %v7619_v19 = vld [vmem:[#allocation9 + $0x60] sm:$0xff]  ;;  %v8506_v22 = vld [vmem:[#allocation9 + $0x30] sm:$0xff]  ;;  %vm1246_vm0 = vcmp.ge.s32.totalorder %v866_v21, 1  ;;  %v880_v33 = vand.u32 15, %v832_v25  ;;  %s6791_s27 = sshll.u32 %s6788_s25, 4  ;;  %s6792_s27 = int_to_ptr.hbm [resolvable:$true] %s6791_s27 }
  0x4c   : > { %2622 = vmatpush.bf16.msra.mxu2 %v8500_v16  ;;  %v7581_v23 = vld [vmem:[%s8475_s14 + $0x30] sm:$0xff]  ;;  %v7618_v24 = vld [vmem:[#allocation9 + $0x58] sm:$0xff]  ;;  %vm1407_vm1 = vmpackc.low %vm1246_vm0, %vm1246_vm0  ;;  %vm1471_vm6 = vsmask.f32 3328  ;;  %vm1472_vm7 = vsmask.f32 7440 }
  0x4d   : > { %v1439_v27 = vsel %vm1407_vm1, 65537, %v11730_v26  ;;  %v8513_v28 = vld [vmem:[#allocation9 + $0x28] sm:$0xff]  ;;  %v7587_v31 = vld [vmem:[%s8475_s14 + $0x60] sm:$0xff]  ;;  %v7617_v32 = vld [vmem:[#allocation9 + $0x50] sm:$0xff]  ;;  %vm8523_vm4 = vcmp.ge.s32.totalorder %v880_v33, 1  ;;  %s6775_s30 = scalar_lea.sflag [#allocation5], %s8469_s4 }
  0x4e   : > { %642 = vmatpush.bf16.msra.mxu0 %v7572_v2  ;;  %7907 = vmatpush.bf16.msra.mxu3 %v7572_v2  ;;  %v1475_v29 = vshll.u32 %v1439_v27, 16  ;;  %v1478_v30 = vshrl.u32 %v1439_v27, 16  ;;  %vm1408_vm3 = vmpackc.low %vm8290_vm2, %vm8290_vm2  ;;  %v8520_v36 = vld [vmem:[#allocation9 + $0x20] sm:$0xff]  ;;  %v7616_v37 = vld [vmem:[#allocation9 + $0x48] sm:$0xff]  ;;  %s8208_s17 = scalar_lea.hbm %s11707_s8, 256 }
  0x4f   : > { %2234 = vmatpush.bf16.msra.mxu1 %v7621_v15  ;;  %v1440_v39 = vsel %vm1408_vm3, 65537, %v11730_v26  ;;  %v8528_v41 = vld [vmem:[#allocation9 + $0x18] sm:$0xff]  ;;  %v7615_v42 = vld [vmem:[#allocation9 + $0x40] sm:$0xff]  ;;  %vm1409_vm5 = vmpackc.low %vm8523_vm4, %vm8523_vm4 }
  0x50   : > { %2623 = vmatpush.bf16.msra.mxu2 %v8506_v22  ;;  %v1477_v34 = vrot.slane %v1475_v29, 5  ;;  %v1480_v35 = vrot.slane %v1478_v30, 4  ;;  %v1484_v43 = vshll.u32 %v1440_v39, 16  ;;  %v8534_v45 = vld [vmem:[#allocation9 + $0x10] sm:$0xff]  ;;  %v1441_v47 = vsel %vm1409_vm5, 65537, %v11730_v26  ;;  %vm8537_vm8 = vmor %vm1471_vm6, %vm1472_vm7  ;;  %v7582_v50 = vld [vmem:[%s8475_s14 + $0x38] sm:$0xff] }
  0x51   : > { %v7591_v46 = vld [vmem:[#allocation2 + $0x4] sm:$0xff]  ;;  %v1488_v49 = vshrl.u32 %v1440_v39, 16  ;;  %v1494_v54 = vshll.u32 %v1441_v47, 16  ;;  %v1498_v55 = vshrl.u32 %v1441_v47, 16 }
  0x52   : > { %643 = vmatpush.bf16.msra.mxu0 %v7571_v3  ;;  %7908 = vmatpush.bf16.msra.mxu3 %v7571_v3  ;;  %v1481_v40 = vor.u32 %v1480_v35, %v1477_v34  ;;  %v8542_v51 = vrot.slane %v1484_v43, 5  ;;  %v8552_v57 = vld [vmem:[#allocation9 + $0x8] sm:$0xff]  ;;  %v1793_v60 = vunpack.c.l.b16 %v1477_v34  ;;  %v1794_v61 = vunpack.c.h.b16 %v1477_v34  ;;  %v7589_v35 = vld [vmem:[%s8475_s14 + $0x70] sm:$0xff] }
  0x53   : > { %2235 = vmatpush.bf16.msra.mxu1 %v7620_v17  ;;  %v8546_v52 = vrot.slane %v1488_v49, 7  ;;  %v1490_v58 = vrot.slane %v1488_v49, 4  ;;  %v7588_v59 = vld [vmem:[%s8475_s14 + $0x68] sm:$0xff]  ;;  %v1496_v3 = vrot.slane %v1494_v54, 5 }
  0x54   : > { %2624 = vmatpush.bf16.msra.mxu2 %v8513_v28  ;;  %v1482_v44 = vrot.slane %v1481_v40, 4  ;;  %vm1797_vm9 = vcmp.ne.s32.totalorder %v1793_v60, %v8556_v62  ;;  %vm1798_vm10 = vcmp.ne.s32.totalorder %v1794_v61, %v8559_v63 }
  0x55   : > { %v8564_v2 = vor.u32 %v8546_v52, %v1484_v43  ;;  %vm8577_vm14 = vmpackc.low %vm1798_vm10, %vm1797_vm9 }
  0x56   : > { %644 = vmatpush.bf16.msra.mxu0 %v7570_v4  ;;  %7909 = vmatpush.bf16.msra.mxu3 %v7570_v4  ;;  %v1487_v53 = vsel %vm8537_vm8, %v1482_v44, %v8542_v51  ;;  %v1500_v4 = vrot.slane %v1498_v55, 4  ;;  %v7652_v55 = vld [vmem:[#allocation9 + $0xe8] sm:$0xff] }
  0x57   : > { %2236 = vmatpush.bf16.msra.mxu1 %v7619_v19  ;;  %v1800_v0 = vunpack.c.l.b16 %v1487_v53  ;;  %v1801_v1 = vunpack.c.h.b16 %v1487_v53 }
  0x58   : > { %2625 = vmatpush.bf16.msra.mxu2 %v8520_v36 }
  0x59   : > { %vm1804_vm11 = vcmp.ne.s32.totalorder %v1800_v0, %v8556_v62  ;;  %vm1805_vm12 = vcmp.ne.s32.totalorder %v1801_v1, %v8559_v63  ;;  %v7584_v1 = vld [vmem:[%s8475_s14 + $0x48] sm:$0xff] }
  0x5a   : > { %645 = vmatpush.bf16.msra.mxu0 %v7569_v5  ;;  %7910 = vmatpush.bf16.msra.mxu3 %v7569_v5  ;;  %v894_v5 = vand.u32 15, %v834_v56  ;;  %vm8581_vm15 = vmpackc.low %vm1805_vm12, %vm1804_vm11  ;;  %v11854_v56 = vmov 0  ;;  %vm11729_vm11 = vsmask.f32 4352 }
  0x5b   : > { %2237 = vmatpush.bf16.msra.mxu1 %v7618_v24 }
  0x5c   : > { %2626 = vmatpush.bf16.msra.mxu2 %v8528_v41  ;;  %vm1250_vm13 = vcmp.ge.s32.totalorder %v894_v5, 1  ;;  %v7651_v5 = vld [vmem:[#allocation9 + $0xe0] sm:$0xff] }
  0x5d   : > { %vm1411_vm0 = vmpackc.low %vm1250_vm13, %vm1250_vm13 }
  0x5e   : > { %646 = vmatpush.bf16.msra.mxu0 %v7568_v6  ;;  %7911 = vmatpush.bf16.msra.mxu3 %v7568_v6  ;;  %v8566_v6 = vld [vmem:[#allocation9] sm:$0xff]  ;;  %v1443_v21 = vsel %vm1411_vm0, 65537, %v11730_v26 }
  0x5f   : > { %2238 = vmatpush.bf16.msra.mxu1 %v7617_v32  ;;  %v1518_v33 = vshrl.u32 %v1443_v21, 16 }
  0x60   : > { %2627 = vmatpush.bf16.msra.mxu2 %v8534_v45 }
  0x61   : > { %v1520_v43 = vrot.slane %v1518_v33, 4 }
  0x62   : > { %647 = vmatpush.bf16.msra.mxu0 %v7567_v7  ;;  %7912 = vmatpush.bf16.msra.mxu3 %v7567_v7  ;;  %v1491_v7 = vor.u32 %v1490_v58, %v8542_v51 }
  0x63   : > { %2239 = vmatpush.bf16.msra.mxu1 %v7616_v37 }
  0x64   : > { %2628 = vmatpush.bf16.msra.mxu2 %v8552_v57 }
  0x65   : > { %648 = vmatmul.bf16.vlgmr.msra.gmra.mxu0 %v7575_v8  ;;  %708 = vmatmul.bf16.vlgmr.msra.gmra.mxu3 %v7587_v31  ;;  %v1501_v8 = vor.u32 %v1500_v4, %v1496_v3  ;;  %v7654_v31 = vld [vmem:[#allocation9 + $0xf8] sm:$0xff] }
  0x66   : > { %7913 = vmatpush.bf16.msrb.mxu3 %v7622_v13  ;;  %v1311_v13 = vld [vmem:[#allocation2 + $0x4] sm:$0xf]  ;;  %4224 = vmatpush.bf16.msrb.mxu0 %v7654_v31 }
  0x67   : > { %2240 = vmatpush.bf16.msra.mxu1 %v7615_v42 }
  0x68   : > { %2629 = vmatpush.bf16.msra.mxu2 %v8566_v6 }
  0x6a   : > { %7914 = vmatpush.bf16.msrb.mxu3 %v7621_v15  ;;  %2241 = vmatmul.bf16.vlgmr.msra.gmra.mxu1 %v7591_v46  ;;  %v1502_v15 = vrot.slane %v1501_v8, 4  ;;  %v1312_v46 = vld [vmem:[#allocation2 + $0x8] sm:$0xf] }
  0x6c   : > { %v1507_v25 = vsel %vm8537_vm8, %v1502_v15, %v8542_v51 }
  0x6d   : > { %v1815_v39 = vunpack.c.h.b16 %v1507_v25 }
  0x6e   : > { %7915 = vmatpush.bf16.msrb.mxu3 %v7620_v17  ;;  %v7583_v17 = vld [vmem:[%s8475_s14 + $0x40] sm:$0xff] }
  0x6f   : > { %vm1819_vm6 = vcmp.ne.s32.totalorder %v1815_v39, %v8559_v63  ;;  %v7649_v39 = vld [vmem:[#allocation9 + $0xd0] sm:$0xff] }
  0x72   : > { %7916 = vmatpush.bf16.msrb.mxu3 %v7619_v19  ;;  %v2025_v19 = vsel %vm8581_vm15, %v1311_v13, 0 }
  0x73   : > { %v2356_v30 = vunpack.c.l.b16 %v2025_v19 }
  0x75   : > { %653 = vmatmul.bf16.gmra.mxu0 %v7576_v9  ;;  %713 = vmatmul.bf16.gmra.mxu3 %v7588_v59  ;;  %v8575_v9 = vrot.slane %v1491_v7, 4 }
  0x76   : > { %7917 = vmatpush.bf16.msrb.mxu3 %v7618_v24 }
  0x7a   : > { %7918 = vmatpush.bf16.msrb.mxu3 %v7617_v32  ;;  %v1514_v32 = vshll.u32 %v1443_v21, 16 }
  0x7e   : > { %7919 = vmatpush.bf16.msrb.mxu3 %v7616_v37 }
  0x82   : > { %7920 = vmatpush.bf16.msrb.mxu3 %v7615_v42  ;;  %v1516_v42 = vrot.slane %v1514_v32, 5 }
  0x84   : > { %v1517_v13 = vsel %vm8537_vm8, %v8575_v9, %v1516_v42 }
  0x85   : > { %658 = vmatmul.bf16.gmra.mxu0 %v7577_v10  ;;  %718 = vmatmul.bf16.gmra.mxu3 %v7589_v35 }
  0x86   : > { %7921 = vmatpush.bf16.msra.mxu3 %v8500_v16  ;;  %v1497_v16 = vsel %vm8537_vm8, %v8575_v9, %v1496_v3 }
  0x87   : > { %v1807_v27 = vunpack.c.l.b16 %v1497_v16 }
  0x89   : > { %vm1811_vm1 = vcmp.ne.s32.totalorder %v1807_v27, %v8556_v62 }
  0x8a   : > { %7922 = vmatpush.bf16.msra.mxu3 %v8506_v22 }
  0x8e   : > { %7923 = vmatpush.bf16.msra.mxu3 %v8513_v28  ;;  %v1808_v28 = vunpack.c.h.b16 %v1497_v16 }
  0x90   : > { %vm1812_vm2 = vcmp.ne.s32.totalorder %v1808_v28, %v8559_v63  ;;  %v1821_v28 = vunpack.c.l.b16 %v1517_v13 }
  0x91   : > { %vm8611_vm3 = vmpackc.low %vm1812_vm2, %vm1811_vm1 }
  0x92   : > { %7924 = vmatpush.bf16.msra.mxu3 %v8520_v36  ;;  %v1814_v36 = vunpack.c.l.b16 %v1507_v25  ;;  %v2026_v53 = vsel %vm8611_vm3, %v1312_v46, 0  ;;  %vm1825_vm12 = vcmp.ne.s32.totalorder %v1821_v28, %v8556_v62  ;;  %v11859_v46 = vmov 0 }
  0x93   : > { %v2357_v58 = vunpack.c.l.b16 %v2026_v53 }
  0x94   : > { %vm1818_vm5 = vcmp.ne.s32.totalorder %v1814_v36, %v8556_v62 }
  0x95   : > { %663 = vmatmul.bf16.gmra.mxu0 %v7578_v11  ;;  %vm8627_vm9 = vmpackc.low %vm1819_vm6, %vm1818_vm5 }
  0x96   : > { %7925 = vmatpush.bf16.msra.mxu3 %v8528_v41  ;;  %v7653_v41 = vld [vmem:[#allocation9 + $0xf0] sm:$0xff]  ;;  %v11855_v56 = vsel %vm8627_vm9, 4294967295, %v11854_v56 }
  0x97   : > { %4225 = vmatpush.bf16.msrb.mxu0 %v7653_v41  ;;  %11856 = vst [vmem:[#allocation25_spill] sm:$0xff] %v11855_v56 }
  0x9a   : > { %7926 = vmatpush.bf16.msra.mxu3 %v8534_v45  ;;  %v11849_v45 = vmov 0 }
  0x9b   : > { %v11850_v45 = vsel %vm8611_vm3, 4294967295, %v11849_v45  ;;  %4226 = vmatpush.bf16.msrb.mxu0 %v7652_v55  ;;  %v7585_v55 = vld [vmem:[%s8475_s14 + $0x50] sm:$0xff] }
  0x9c   : > { %11851 = vst [vmem:[#allocation24_spill] sm:$0xff] %v11850_v45 }
  0x9e   : > { %7927 = vmatpush.bf16.msra.mxu3 %v8552_v57 }
  0x9f   : > { %4227 = vmatpush.bf16.msrb.mxu0 %v7651_v5  ;;  %v840_v5 = vadd.s32 80, %v8503_v20 }
  0xa2   : > { %7928 = vmatpush.bf16.msra.mxu3 %v8566_v6  ;;  %v838_v6 = vadd.s32 64, %v8503_v20 }
  0xa4   : > { %v922_v19 = vand.u32 15, %v838_v6 }
  0xa5   : > { %668 = vmatmul.bf16.gmra.mxu0 %v7579_v12  ;;  %v1310_v12 = vld [vmem:[#allocation2] sm:$0x8] }
  0xa6   : > { %v2024_v18 = vsel %vm8577_vm14, %v1310_v12, 0  ;;  %vm8645_vm10 = vcmp.ge.s32.totalorder %v922_v19, 1 }
  0xa7   : > { %v2355_v29 = vunpack.c.l.b16 %v2024_v18  ;;  %vm1415_vm0 = vmpackc.low %vm8645_vm10, %vm8645_vm10 }
  0xa8   : > { %v1447_v47 = vsel %vm1415_vm0, 65537, %v11730_v26 }
  0xa9   : > { %v2388_v40 = vpack.c.b16 %v2356_v30, %v2355_v29  ;;  %v1822_v29 = vunpack.c.h.b16 %v1517_v13  ;;  %v7590_v30 = vld [vmem:[%s8475_s14 + $0x78] sm:$0xff] }
  0xaa   : > { %723 = vmatmul.bf16.gmra.mxu3 %v7590_v30 }
  0xab   : > { %v2407_v49 = vshrl.u32 %v2388_v40, 16  ;;  %v2410_v54 = vshll.u32 %v2388_v40, 16  ;;  %vm1826_vm13 = vcmp.ne.s32.totalorder %v1822_v29, %v8559_v63 }
  0xad   : > { %v2409_v59 = vrot.slane %v2407_v49, 3  ;;  %v2412_v4 = vrot.slane %v2410_v54, 4  ;;  %v11862_v49 = vmov 0 }
  0xb5   : > { %673 = vmatmul.bf16.gmra.mxu0 %v7580_v14  ;;  %v8589_v14 = vld [vmem:[%s11702_s3] ss:$0 sm:$0xff] }
  0xc5   : > { %678 = vmatmul.bf16.gmra.mxu0 %v7581_v23  ;;  %v836_v23 = vadd.s32 48, %v8503_v20 }
  0xc7   : > { %v908_v37 = vand.u32 15, %v836_v23  ;;  %v2413_v23 = vor.u32 %v2412_v4, %v2409_v59  ;;  %v1558_v4 = vshrl.u32 %v1447_v47, 16 }
  0xc9   : > { %vm8615_vm4 = vcmp.ge.s32.totalorder %v908_v37, 1 }
  0xca   : > { %vm1413_vm7 = vmpackc.low %vm8615_vm4, %vm8615_vm4 }
  0xcb   : > { %v1445_v61 = vsel %vm1413_vm7, 65537, %v11730_v26  ;;  %vm8660_vm4 = vmpackc.low %vm1826_vm13, %vm1825_vm12 }
  0xcc   : > { %v1534_v15 = vshll.u32 %v1445_v61, 16  ;;  %v1538_v16 = vshrl.u32 %v1445_v61, 16  ;;  %v11860_v46 = vsel %vm8660_vm4, 4294967295, %v11859_v46 }
  0xcd   : > { %11861 = vst [vmem:[#allocation26_spill] sm:$0xff] %v11860_v46 }
  0xce   : > { %v1536_v33 = vrot.slane %v1534_v15, 5 }
  0xd0   : > { %v1537_v59 = vsel %vm8537_vm8, %v8575_v9, %v1536_v33 }
  0xd1   : > { %v1835_v13 = vunpack.c.l.b16 %v1537_v59 }
  0xd3   : > { %vm1839_vm6 = vcmp.ne.s32.totalorder %v1835_v13, %v8556_v62 }
  0xd5   : > { %683 = vmatmul.bf16.gmra.mxu0 %v7582_v50  ;;  %v1521_v50 = vor.u32 %v1520_v43, %v1516_v42 }
  0xd7   : > { %v1522_v60 = vrot.slane %v1521_v50, 4 }
  0xd9   : > { %v1527_v18 = vsel %vm8537_vm8, %v1522_v60, %v8542_v51  ;;  %v1554_v60 = vshll.u32 %v1447_v47, 16 }
  0xda   : > { %v1828_v32 = vunpack.c.l.b16 %v1527_v18  ;;  %v1829_v37 = vunpack.c.h.b16 %v1527_v18  ;;  %v1836_v18 = vunpack.c.h.b16 %v1537_v59 }
  0xdc   : > { %vm1832_vm1 = vcmp.ne.s32.totalorder %v1828_v32, %v8556_v62  ;;  %vm1833_vm2 = vcmp.ne.s32.totalorder %v1829_v37, %v8559_v63  ;;  %vm1840_vm7 = vcmp.ne.s32.totalorder %v1836_v18, %v8559_v63 }
  0xdd   : > { %vm8665_vm5 = vmpackc.low %vm1833_vm2, %vm1832_vm1 }
  0xde   : > { %v11863_v49 = vsel %vm8665_vm5, 4294967295, %v11862_v49  ;;  %vm8701_vm0 = vmpackc.low %vm1840_vm7, %vm1839_vm6 }
  0xdf   : > { %11864 = vst [vmem:[#allocation27_spill] sm:$0xff] %v11863_v49 }
  0xe2   : > { %v649_v22 = vpop.f32.mrf.mxu0 }
  0xe3   : > { %v650_v24 = vadd.f32 %v8589_v14, %v649_v22 }
  0xe5   : > { %v729_v34 = vmax.f32 %v650_v24, 0.0  ;;  %688 = vmatmul.bf16.gmra.mxu0 %v7583_v17  ;;  %v7650_v24 = vld [vmem:[#allocation9 + $0xd8] sm:$0xff] }
  0xe6   : > { %4228 = vmatpush.bf16.msrb.mxu0 %v7650_v24 }
  0xe7   : > { %v761_v38 = vpack.c.bf16 %v729_v34, %v729_v34  ;;  %v1540_v34 = vrot.slane %v1538_v16, 4 }
  0xe9   : > { %793 = vst [vmem:[#allocation2 + $0xc] sm:$0xf] %v761_v38  ;;  %v1541_v42 = vor.u32 %v1540_v34, %v1536_v33 }
  0xea   : > { %v651_v44 = vpop.f32.mrf.mxu0  ;;  %4229 = vmatpush.bf16.msrb.mxu0 %v7649_v39 }
  0xeb   : > { %v652_v0 = vadd.f32 %v8589_v14, %v651_v44  ;;  %v7648_v44 = vld [vmem:[#allocation9 + $0xc8] sm:$0xff]  ;;  %v1542_v50 = vrot.slane %v1541_v42, 4 }
  0xed   : > { %v730_v21 = vmax.f32 %v652_v0, 0.0 }
  0xee   : > { %4230 = vmatpush.bf16.msrb.mxu0 %v7648_v44 }
  0xf0   : > { %v1313_v57 = vld [vmem:[#allocation2 + $0xc] sm:$0xf] }
  0xf1   : > { %v2027_v3 = vsel %vm8627_vm9, %v1313_v57, 0 }
  0xf2   : > { %v654_v7 = vpop.f32.mrf.mxu0  ;;  %v2358_v8 = vunpack.c.l.b16 %v2027_v3  ;;  %v7647_v3 = vld [vmem:[#allocation9 + $0xc0] sm:$0xff] }
  0xf3   : > { %v655_v12 = vadd.f32 %v8589_v14, %v654_v7  ;;  %4231 = vmatpush.bf16.msrb.mxu0 %v7647_v3  ;;  %v7586_v3 = vld [vmem:[%s8475_s14 + $0x58] sm:$0xff] }
  0xf4   : > { %v2389_v17 = vpack.c.b16 %v2358_v8, %v2357_v58 }
  0xf5   : > { %v731_v22 = vmax.f32 %v655_v12, 0.0  ;;  %693 = vmatmul.bf16.gmra.mxu0 %v7584_v1  ;;  %v1547_v12 = vsel %vm8537_vm8, %v1542_v50, %v8542_v51 }
  0xf6   : > { %v2415_v25 = vshrl.u32 %v2389_v17, 16  ;;  %v2418_v27 = vshll.u32 %v2389_v17, 16  ;;  %v1842_v19 = vunpack.c.l.b16 %v1547_v12  ;;  %v1843_v28 = vunpack.c.h.b16 %v1547_v12 }
  0xf7   : > { %v7723_v31 = vpack.c.bf16 %v731_v22, %v730_v21  ;;  %v1556_v21 = vrot.slane %v1554_v60, 5  ;;  %v1560_v22 = vrot.slane %v1558_v4, 4 }
  0xf8   : > { %v2417_v35 = vrot.slane %v2415_v25, 3  ;;  %v2420_v36 = vrot.slane %v2418_v27, 4  ;;  %vm8686_vm10 = vcmp.ne.s32.totalorder %v1842_v19, %v8556_v62  ;;  %vm1847_vm13 = vcmp.ne.s32.totalorder %v1843_v28, %v8559_v63 }
  0xf9   : > { %7875 = vst [vmem:[#allocation2 + $0x10] sm:$0xff] %v7723_v31   ;;  %v1561_v37 = vor.u32 %v1560_v22, %v1556_v21  ;;  %vm8717_vm2 = vmpackc.low %vm1847_vm13, %vm8686_vm10  ;;  %v842_v28 = vadd.s32 96, %v8503_v20 }
  0xfa   : > { %v656_v40 = vpop.f32.mrf.mxu0  ;;  %v8649_v41 = vor.u32 %v2420_v36, %v2417_v35  ;;  %v3843_v35 = vld [vmem:[#allocation2 + $0x8] sm:$0x8]  ;;  %v3844_v36 = vld [vmem:[#allocation2 + $0xc] sm:$0xf] }
  0xfb   : > { %v657_v54 = vadd.f32 %v8589_v14, %v656_v40  ;;  %v3876_v47 = vsel %vm8577_vm14, %v3843_v35, 0  ;;  %v3877_v50 = vsel %vm8581_vm15, %v3844_v36, 0 }
  0xfc   : > { %v2422_v43 = vsel %vm11729_vm11, %v2413_v23, %v8649_v41  ;;  %v936_v23 = vand.u32 15, %v840_v5  ;;  %v3958_v60 = vunpack.c.l.b16 %v3876_v47 }
  0xfd   : > { %2630 = vmatmul.bf16.vlgmr.msra.gmra.mxu2 %v2422_v43  ;;  %v732_v15 = vmax.f32 %v657_v54, 0.0  ;;  %v11869_v43 = vmov 0 }
  0xfe   : > { %vm8690_vm12 = vcmp.ge.s32.totalorder %v936_v23, 1  ;;  %v11870_v43 = vsel %vm8701_vm0, 4294967295, %v11869_v43 }
  0xff   : > { %11871 = vst [vmem:[#allocation28_spill] sm:$0xff] %v11870_v43  ;;  %vm1417_vm1 = vmpackc.low %vm8690_vm12, %vm8690_vm12 }
 0x100   : > { %v7592_v53 = vld [vmem:[#allocation2 + $0xc] sm:$0xff]  ;;  %v1315_v58 = vld [vmem:[#allocation2 + $0x14] sm:$0xf] }
 0x101   : > { %v1314_v57 = vld [vmem:[#allocation2 + $0x10] sm:$0xf]  ;;  %2246 = vmatmul.bf16.gmra.mxu1 %v7592_v53  ;;  %v2029_v1 = vsel %vm8665_vm5, %v1315_v58, 0  ;;  %v3846_v30 = vld [vmem:[#allocation2 + $0x14] sm:$0xf]  ;;  %v11872_v53 = vmov 0 }
 0x102   : > { %v659_v61 = vpop.f32.mrf.mxu0  ;;  %v2028_v0 = vsel %vm8660_vm4, %v1314_v57, 0  ;;  %v2360_v8 = vunpack.c.l.b16 %v2029_v1  ;;  %v3845_v29 = vld [vmem:[#allocation2 + $0x10] sm:$0xf]  ;;  %v3879_v42 = vsel %vm8627_vm9, %v3846_v30, 0  ;;  %v11873_v53 = vsel %vm8717_vm2, 4294967295, %v11872_v53 }
 0x103   : > { %v660_v6 = vadd.f32 %v8589_v14, %v659_v61  ;;  %v2359_v7 = vunpack.c.l.b16 %v2028_v0  ;;  %v3878_v40 = vsel %vm8611_vm3, %v3845_v29, 0  ;;  %11874 = vst [vmem:[#allocation29_spill] sm:$0xff] %v11873_v53  ;;  %v3959_v61 = vunpack.c.l.b16 %v3877_v50 }
 0x104   : > { %v3960_v54 = vunpack.c.l.b16 %v3878_v40  ;;  %v1449_v0 = vsel %vm1417_vm1, 65537, %v11730_v26  ;;  %v950_v50 = vand.u32 15, %v842_v28 }
 0x105   : > { %v733_v16 = vmax.f32 %v660_v6, 0.0  ;;  %698 = vmatmul.bf16.gmra.mxu0 %v7585_v55  ;;  %v2390_v17 = vpack.c.b16 %v2360_v8, %v2359_v7  ;;  %v1562_v55 = vrot.slane %v1561_v37, 4  ;;  %v1557_v6 = vsel %vm8537_vm8, %v8575_v9, %v1556_v21 }
 0x106   : > { %v1578_v18 = vshrl.u32 %v1449_v0, 16  ;;  %v3991_v22 = vpack.c.b16 %v3959_v61, %v3958_v60  ;;  %v1849_v23 = vunpack.c.l.b16 %v1557_v6  ;;  %vm8750_vm13 = vcmp.ge.s32.totalorder %v950_v50, 1 }
 0x107   : > { %v7728_v24 = vpack.c.bf16 %v733_v16, %v732_v15  ;;  %v2424_v25 = vshrl.u32 %v2390_v17, 16  ;;  %v2427_v27 = vshll.u32 %v2390_v17, 16  ;;  %v1567_v15 = vsel %vm8537_vm8, %v1562_v55, %v8542_v51 }
 0x108   : > { %v1574_v17 = vshll.u32 %v1449_v0, 16  ;;  %v1856_v21 = vunpack.c.l.b16 %v1567_v15  ;;  %v1580_v36 = vrot.slane %v1578_v18, 4  ;;  %vm8737_vm6 = vcmp.ne.s32.totalorder %v1849_v23, %v8556_v62 }
 0x109   : > { %7876 = vst [vmem:[#allocation2 + $0x18] sm:$0xff] %v7728_v24   ;;  %v2426_v31 = vrot.slane %v2424_v25, 3  ;;  %v2429_v32 = vrot.slane %v2427_v27, 4  ;;  %v1850_v24 = vunpack.c.h.b16 %v1557_v6  ;;  %v4012_v55 = vshll.u32 %v3991_v22, 16 }
 0x10a   : > { %v661_v33 = vpop.f32.mrf.mxu0  ;;  %v1576_v35 = vrot.slane %v1574_v17, 5  ;;  %vm1860_vm10 = vcmp.ne.s32.totalorder %v1856_v21, %v8556_v62  ;;  %v11882_v6 = vmov 0 }
 0x10b   : > { %v8694_v39 = vor.u32 %v2429_v32, %v2426_v31  ;;  %v662_v1 = vadd.f32 %v8589_v14, %v661_v33  ;;  %v1857_v32 = vunpack.c.h.b16 %v1567_v15  ;;  %vm1854_vm7 = vcmp.ne.s32.totalorder %v1850_v24, %v8559_v63 }
 0x10c   : > { %vm8759_vm1 = vmpackc.low %vm1854_vm7, %vm8737_vm6  ;;  %v1577_v23 = vsel %vm8537_vm8, %v8575_v9, %v1576_v35 }
 0x10d   : > { %v2431_v44 = vsel %vm11729_vm11, %v8649_v41, %v8694_v39  ;;  %v3961_v41 = vunpack.c.l.b16 %v3879_v42  ;;  %v734_v25 = vmax.f32 %v662_v1, 0.0  ;;  %vm1861_vm12 = vcmp.ne.s32.totalorder %v1857_v32, %v8559_v63 }
 0x10e   : > { %2635 = vmatmul.bf16.gmra.mxu2 %v2431_v44  ;;  %v4009_v44 = vshrl.u32 %v3991_v22, 16 }
 0x10f   : > { %v3992_v13 = vpack.c.b16 %v3961_v41, %v3960_v54 }
 0x110   : > { %v7593_v57 = vld [vmem:[#allocation2 + $0x14] sm:$0xff]  ;;  %v1317_v59 = vld [vmem:[#allocation2 + $0x1c] sm:$0xf] }
 0x111   : > { %v1316_v58 = vld [vmem:[#allocation2 + $0x18] sm:$0xf]  ;;  %v2031_v5 = vsel %vm8717_vm2, %v1317_v59, 0  ;;  %2251 = vmatmul.bf16.gmra.mxu1 %v7593_v57  ;;  %v4017_v31 = vshrl.u32 %v3992_v13, 16  ;;  %v4020_v34 = vshll.u32 %v3992_v13, 16  ;;  %v1581_v59 = vor.u32 %v1580_v36, %v1576_v35 }
 0x112   : > { %v2030_v4 = vsel %vm8701_vm0, %v1316_v58, 0  ;;  %v664_v7 = vpop.f32.mrf.mxu0  ;;  %v2362_v12 = vunpack.c.l.b16 %v2031_v5  ;;  %v3847_v40 = vld [vmem:[#allocation2 + $0x18] sm:$0xf]  ;;  %v3848_v42 = vld [vmem:[#allocation2 + $0x1c] sm:$0xf]  ;;  %v4014_v5 = vrot.slane %v4012_v55, 4  ;;  %v1863_v36 = vunpack.c.l.b16 %v1577_v23 }
 0x113   : > { %v2361_v8 = vunpack.c.l.b16 %v2030_v4  ;;  %v665_v16 = vadd.f32 %v8589_v14, %v664_v7  ;;  %v3880_v57 = vsel %vm8660_vm4, %v3847_v40, 0  ;;  %v3881_v58 = vsel %vm8665_vm5, %v3848_v42, 0  ;;  %vm1419_vm5 = vmpackc.low %vm8750_vm13, %vm8750_vm13 }
 0x114   : > { %v4019_v0 = vrot.slane %v4017_v31, 3  ;;  %v4022_v1 = vrot.slane %v4020_v34, 4  ;;  %v4011_v4 = vrot.slane %v4009_v44, 3  ;;  %vm8766_vm4 = vmpackc.low %vm1861_vm12, %vm1860_vm10  ;;  %v3963_v7 = vunpack.c.l.b16 %v3881_v58 }
 0x115   : > { %v2391_v19 = vpack.c.b16 %v2362_v12, %v2361_v8  ;;  %v735_v27 = vmax.f32 %v665_v16, 0.0  ;;  %703 = vmatmul.bf16.gmra.mxu0 %v7586_v3  ;;  %v11879_v3 = vmov 0  ;;  %v11883_v6 = vsel %vm8766_vm4, 4294967295, %v11882_v6 }
 0x116   : > { %v11880_v3 = vsel %vm8759_vm1, 4294967295, %v11879_v3  ;;  %11884 = vst [vmem:[#allocation31_spill] sm:$0xff] %v11883_v6  ;;  %v1582_v8 = vrot.slane %v1581_v59, 4  ;;  %v8770_v13 = vor.u32 %v4022_v1, %v4019_v0  ;;  %v1451_v17 = vsel %vm1419_vm5, 65537, %v11730_v26 }
 0x117   : > { %v2433_v29 = vshrl.u32 %v2391_v19, 16  ;;  %v2436_v30 = vshll.u32 %v2391_v19, 16  ;;  %v7733_v33 = vpack.c.bf16 %v735_v27, %v734_v25  ;;  %11881 = vst [vmem:[#allocation30_spill] sm:$0xff] %v11880_v3  ;;  %v4015_v25 = vor.u32 %v4014_v5, %v4011_v4 }
 0x118   : > { %v1594_v31 = vshll.u32 %v1451_v17, 16  ;;  %v1598_v32 = vshrl.u32 %v1451_v17, 16  ;;  %v844_v40 = vadd.s32 112, %v8503_v20  ;;  %vm1867_vm5 = vcmp.ne.s32.totalorder %v1863_v36, %v8556_v62 }
 0x119   : > { %v2435_v37 = vrot.slane %v2433_v29, 3  ;;  %v2438_v38 = vrot.slane %v2436_v30, 4  ;;  %7877 = vst [vmem:[#allocation2 + $0x20] sm:$0xff] %v7733_v33   ;;  %v1587_v30 = vsel %vm8537_vm8, %v1582_v8, %v8542_v51  ;;  %v4024_v33 = vsel %vm11729_vm11, %v4015_v25, %v8770_v13 }
 0x11a   : > { %v666_v54 = vpop.f32.mrf.mxu0  ;;  %v1870_v50 = vunpack.c.l.b16 %v1587_v30  ;;  %v1871_v55 = vunpack.c.h.b16 %v1587_v30  ;;  %v1596_v58 = vrot.slane %v1594_v31, 5  ;;  %v1600_v59 = vrot.slane %v1598_v32, 4 }
 0x11b   : > { %v8742_v41 = vor.u32 %v2438_v38, %v2435_v37  ;;  %v667_v18 = vadd.f32 %v8589_v14, %v666_v54  ;;  %v1864_v38 = vunpack.c.h.b16 %v1577_v23  ;;  %v964_v4 = vand.u32 15, %v844_v40 }
 0x11c   : > { %vm1874_vm7 = vcmp.ne.s32.totalorder %v1870_v50, %v8556_v62  ;;  %vm1875_vm12 = vcmp.ne.s32.totalorder %v1871_v55, %v8559_v63 }
 0x11d   : > { %v2440_v61 = vsel %vm11729_vm11, %v8694_v39, %v8742_v41  ;;  %v3962_v39 = vunpack.c.l.b16 %v3880_v57  ;;  %v736_v35 = vmax.f32 %v667_v18, 0.0  ;;  %vm1868_vm6 = vcmp.ne.s32.totalorder %v1864_v38, %v8559_v63 }
 0x11e   : > { %2640 = vmatmul.bf16.gmra.mxu2 %v2440_v61  ;;  %vm8793_vm10 = vcmp.ge.s32.totalorder %v964_v4, 1  ;;  %vm8805_vm13 = vmpackc.low %vm1868_vm6, %vm1867_vm5 }
 0x11f   : > { %v3993_v28 = vpack.c.b16 %v3963_v7, %v3962_v39  ;;  %vm1421_vm9 = vmpackc.low %vm8793_vm10, %vm8793_vm10 }
 0x120   : > { %v7594_v12 = vld [vmem:[#allocation2 + $0x1c] sm:$0xff]  ;;  %v1319_v16 = vld [vmem:[#allocation2 + $0x24] sm:$0xf] }
 0x121   : > { %v1318_v15 = vld [vmem:[#allocation2 + $0x20] sm:$0xf]  ;;  %v2033_v22 = vsel %vm8766_vm4, %v1319_v16, 0  ;;  %2256 = vmatmul.bf16.gmra.mxu1 %v7594_v12  ;;  %v4026_v47 = vshrl.u32 %v3993_v28, 16  ;;  %v4029_v0 = vshll.u32 %v3993_v28, 16 }
 0x122   : > { %v2032_v19 = vsel %vm8759_vm1, %v1318_v15, 0  ;;  %v669_v24 = vpop.f32.mrf.mxu0  ;;  %v2364_v21 = vunpack.c.l.b16 %v2033_v22  ;;  %v3849_v57 = vld [vmem:[#allocation2 + $0x20] sm:$0xf]  ;;  %v3850_v1 = vld [vmem:[#allocation2 + $0x24] sm:$0xf]  ;;  %v1601_v15 = vor.u32 %v1600_v59, %v1596_v58  ;;  %v11890_v22 = vmov 0 }
 0x123   : > { %v2363_v27 = vunpack.c.l.b16 %v2032_v19  ;;  %v670_v29 = vadd.f32 %v8589_v14, %v669_v24  ;;  %v3882_v8 = vsel %vm8701_vm0, %v3849_v57, 0  ;;  %v3883_v12 = vsel %vm8717_vm2, %v3850_v1, 0  ;;  %vm8812_vm0 = vmpackc.low %vm1875_vm12, %vm1874_vm7 }
 0x124   : > { %v4028_v17 = vrot.slane %v4026_v47, 3  ;;  %v4031_v18 = vrot.slane %v4029_v0, 4  ;;  %v11887_v19 = vmov 0  ;;  %v11891_v22 = vsel %vm8812_vm0, 4294967295, %v11890_v22 }
 0x125   : > { %v2392_v34 = vpack.c.b16 %v2364_v21, %v2363_v27  ;;  %v737_v37 = vmax.f32 %v670_v29, 0.0  ;;  %4232 = vmatmul.bf16.vlgmr.msrb.gmra.mxu0 %v4024_v33  ;;  %v11888_v19 = vsel %vm8805_vm13, 4294967295, %v11887_v19  ;;  %11892 = vst [vmem:[#allocation33_spill] sm:$0xff] %v11891_v22  ;;  %v3964_v23 = vunpack.c.l.b16 %v3882_v8 }
 0x126   : > { %11889 = vst [vmem:[#allocation32_spill] sm:$0xff] %v11888_v19  ;;  %v3965_v24 = vunpack.c.l.b16 %v3883_v12  ;;  %v1602_v25 = vrot.slane %v1601_v15, 4  ;;  %v1453_v29 = vsel %vm1421_vm9, 65537, %v11730_v26  ;;  %v1597_v33 = vsel %vm8537_vm8, %v8575_v9, %v1596_v58 }
 0x127   : > { %v2442_v42 = vshrl.u32 %v2392_v34, 16  ;;  %v2445_v44 = vshll.u32 %v2392_v34, 16  ;;  %v7738_v54 = vpack.c.bf16 %v737_v37, %v736_v35  ;;  %v1878_v58 = vunpack.c.h.b16 %v1597_v33 }
 0x128   : > { %v3994_v37 = vpack.c.b16 %v3965_v24, %v3964_v23  ;;  %v1607_v40 = vsel %vm8537_vm8, %v1602_v25, %v8542_v51  ;;  %v846_v59 = vadd.s32 128, %v8503_v20 }
 0x129   : > { %v2444_v60 = vrot.slane %v2442_v42, 3  ;;  %v2447_v61 = vrot.slane %v2445_v44, 4  ;;  %7878 = vst [vmem:[#allocation2 + $0x28] sm:$0xff] %v7738_v54   ;;  %v1614_v42 = vshll.u32 %v1453_v29, 16  ;;  %v1618_v44 = vshrl.u32 %v1453_v29, 16 }
 0x12a   : > { %v671_v5 = vpop.f32.mrf.mxu0  ;;  %v1877_v54 = vunpack.c.l.b16 %v1597_v33  ;;  %v4035_v0 = vshrl.u32 %v3994_v37, 16  ;;  %v1884_v1 = vunpack.c.l.b16 %v1607_v40  ;;  %vm1882_vm5 = vcmp.ne.s32.totalorder %v1878_v58, %v8559_v63 }
 0x12b   : > { %v8790_v39 = vor.u32 %v2447_v61, %v2444_v60  ;;  %v672_v30 = vadd.f32 %v8589_v14, %v671_v5  ;;  %v1885_v5 = vunpack.c.h.b16 %v1607_v40  ;;  %v1616_v8 = vrot.slane %v1614_v42, 5 }
 0x12c   : > { %v1620_v12 = vrot.slane %v1618_v44, 4  ;;  %vm1881_vm9 = vcmp.ne.s32.totalorder %v1877_v54, %v8556_v62  ;;  %vm1888_vm6 = vcmp.ne.s32.totalorder %v1884_v1, %v8556_v62  ;;  %v11898_v33 = vmov 0 }
 0x12d   : > { %v2449_v16 = vsel %vm11729_vm11, %v8742_v41, %v8790_v39  ;;  %v8816_v41 = vor.u32 %v4031_v18, %v4028_v17  ;;  %v738_v55 = vmax.f32 %v672_v30, 0.0  ;;  %v978_v18 = vand.u32 15, %v846_v59  ;;  %vm8852_vm12 = vmpackc.low %vm1882_vm5, %vm1881_vm9 }
 0x12e   : > { %2645 = vmatmul.bf16.gmra.mxu2 %v2449_v16  ;;  %vm1889_vm10 = vcmp.ne.s32.totalorder %v1885_v5, %v8559_v63  ;;  %v4037_v30 = vrot.slane %v4035_v0, 3  ;;  %v1617_v54 = vsel %vm8537_vm8, %v8575_v9, %v1616_v8 }
 0x12f   : > { %v4033_v47 = vsel %vm11729_vm11, %v8770_v13, %v8816_v41  ;;  %v4038_v13 = vshll.u32 %v3994_v37, 16  ;;  %vm8840_vm7 = vcmp.ge.s32.totalorder %v978_v18, 1 }
 0x130   : > { %v7595_v27 = vld [vmem:[#allocation2 + $0x24] sm:$0xff]  ;;  %v1321_v28 = vld [vmem:[#allocation2 + $0x2c] sm:$0xf]  ;;  %vm1423_vm2 = vmpackc.low %vm8840_vm7, %vm8840_vm7 }
 0x131   : > { %v1320_v21 = vld [vmem:[#allocation2 + $0x28] sm:$0xf]  ;;  %v2035_v32 = vsel %vm8812_vm0, %v1321_v28, 0  ;;  %2261 = vmatmul.bf16.gmra.mxu1 %v7595_v27  ;;  %v3852_v17 = vld [vmem:[#allocation2 + $0x2c] sm:$0xf]  ;;  %v1621_v28 = vor.u32 %v1620_v12, %v1616_v8  ;;  %v1455_v42 = vsel %vm1423_vm2, 65537, %v11730_v26 }
 0x132   : > { %v2034_v31 = vsel %vm8805_vm13, %v1320_v21, 0  ;;  %v674_v34 = vpop.f32.mrf.mxu0  ;;  %v2366_v35 = vunpack.c.l.b16 %v2035_v32  ;;  %v3851_v7 = vld [vmem:[#allocation2 + $0x28] sm:$0xf]  ;;  %v3885_v21 = vsel %vm8766_vm4, %v3852_v17, 0  ;;  %v11895_v32 = vmov 0 }
 0x133   : > { %v2365_v36 = vunpack.c.l.b16 %v2034_v31  ;;  %v675_v38 = vadd.f32 %v8589_v14, %v674_v34  ;;  %v3884_v27 = vsel %vm8759_vm1, %v3851_v7, 0  ;;  %v4040_v31 = vrot.slane %v4038_v13, 4  ;;  %vm8859_vm1 = vmpackc.low %vm1889_vm10, %vm1888_vm6 }
 0x134   : > { %v11896_v32 = vsel %vm8852_vm12, 4294967295, %v11895_v32  ;;  %v11899_v33 = vsel %vm8859_vm1, 4294967295, %v11898_v33  ;;  %v3966_v34 = vunpack.c.l.b16 %v3884_v27  ;;  %v1634_v0 = vshll.u32 %v1455_v42, 16 }
 0x135   : > { %v2393_v50 = vpack.c.b16 %v2366_v35, %v2365_v36  ;;  %v739_v57 = vmax.f32 %v675_v38, 0.0  ;;  %4237 = vmatmul.bf16.gmra.mxu0 %v4033_v47  ;;  %11897 = vst [vmem:[#allocation34_spill] sm:$0xff] %v11896_v32  ;;  %v3967_v36 = vunpack.c.l.b16 %v3885_v21  ;;  %v1622_v35 = vrot.slane %v1621_v28, 4 }
 0x136   : > { %11900 = vst [vmem:[#allocation35_spill] sm:$0xff] %v11899_v33  ;;  %v1638_v1 = vshrl.u32 %v1455_v42, 16  ;;  %v1891_v7 = vunpack.c.l.b16 %v1617_v54  ;;  %vm11934_vm4 = vsmask.f32 4352 }
 0x137   : > { %v2451_v60 = vshrl.u32 %v2393_v50, 16  ;;  %v2454_v61 = vshll.u32 %v2393_v50, 16  ;;  %v7743_v4 = vpack.c.bf16 %v739_v57, %v738_v55  ;;  %v3995_v59 = vpack.c.b16 %v3967_v36, %v3966_v34 }
 0x138   : > { %vm1895_vm2 = vcmp.ne.s32.totalorder %v1891_v7, %v8556_v62 }
 0x139   : > { %v2453_v15 = vrot.slane %v2451_v60, 3  ;;  %v2456_v16 = vrot.slane %v2454_v61, 4  ;;  %7879 = vst [vmem:[#allocation2 + $0x30] sm:$0xff] %v7743_v4   ;;  %v1627_v61 = vsel %vm8537_vm8, %v1622_v35, %v8542_v51  ;;  %v4044_v18 = vshrl.u32 %v3995_v59, 16 }
 0x13a   : > { %v676_v23 = vpop.f32.mrf.mxu0  ;;  %v1899_v27 = vunpack.c.h.b16 %v1627_v61  ;;  %v4047_v34 = vshll.u32 %v3995_v59, 16  ;;  %v8903_v59 = vpop.f32.mrf.mxu3 }
 0x13b   : > { %v8837_v24 = vor.u32 %v2456_v16, %v2453_v15  ;;  %v677_v44 = vadd.f32 %v8589_v14, %v676_v23  ;;  %v1892_v15 = vunpack.c.h.b16 %v1617_v54  ;;  %v848_v16 = vadd.s32 144, %v8503_v20 }
 0x13c   : > { %v1898_v23 = vunpack.c.l.b16 %v1627_v61  ;;  %vm1903_vm7 = vcmp.ne.s32.totalorder %v1899_v27, %v8559_v63  ;;  %v4049_v54 = vrot.slane %v4047_v34, 4 }
 0x13d   : > { %v2458_v29 = vsel %vm11729_vm11, %v8790_v39, %v8837_v24  ;;  %v8863_v39 = vor.u32 %v4040_v31, %v4037_v30  ;;  %v740_v8 = vmax.f32 %v677_v44, 0.0  ;;  %v1640_v30 = vrot.slane %v1638_v1, 4 }
 0x13e   : > { %2650 = vmatmul.bf16.gmra.mxu2 %v2458_v29  ;;  %v1636_v29 = vrot.slane %v1634_v0, 5  ;;  %v992_v36 = vand.u32 15, %v848_v16  ;;  %vm1896_vm9 = vcmp.ne.s32.totalorder %v1892_v15, %v8559_v63  ;;  %vm1902_vm6 = vcmp.ne.s32.totalorder %v1898_v23, %v8556_v62 }
 0x13f   : > { %v4042_v4 = vsel %vm11729_vm11, %v8816_v41, %v8863_v39  ;;  %vm8899_vm10 = vmpackc.low %vm1896_vm9, %vm1895_vm2 }
 0x140   : > { %v7596_v37 = vld [vmem:[#allocation2 + $0x2c] sm:$0xff]  ;;  %v1323_v40 = vld [vmem:[#allocation2 + $0x34] sm:$0xf]  ;;  %vm8890_vm5 = vcmp.ge.s32.totalorder %v992_v36, 1  ;;  %v1641_v44 = vor.u32 %v1640_v30, %v1636_v29 }
 0x141   : > { %v1322_v38 = vld [vmem:[#allocation2 + $0x30] sm:$0xf]  ;;  %v2037_v50 = vsel %vm8859_vm1, %v1323_v40, 0  ;;  %2266 = vmatmul.bf16.gmra.mxu1 %v7596_v37  ;;  %v3854_v28 = vld [vmem:[#allocation2 + $0x34] sm:$0xf] }
 0x142   : > { %v2036_v47 = vsel %vm8852_vm12, %v1322_v38, 0  ;;  %v679_v55 = vpop.f32.mrf.mxu0  ;;  %v2368_v58 = vunpack.c.l.b16 %v2037_v50  ;;  %v3853_v21 = vld [vmem:[#allocation2 + $0x30] sm:$0xf]  ;;  %v3887_v40 = vsel %vm8812_vm0, %v3854_v28, 0  ;;  %v4046_v50 = vrot.slane %v4044_v18, 3  ;;  %vm1425_vm0 = vmpackc.low %vm8890_vm5, %vm8890_vm5 }
 0x143   : > { %v2367_v57 = vunpack.c.l.b16 %v2036_v47  ;;  %v680_v60 = vadd.f32 %v8589_v14, %v679_v55  ;;  %v3886_v38 = vsel %vm8805_vm13, %v3853_v21, 0  ;;  %v11903_v55 = vmov 0  ;;  %vm8908_vm13 = vmpackc.low %vm1903_vm7, %vm1902_vm6 }
 0x144   : > { %v11904_v55 = vsel %vm8899_vm10, 4294967295, %v11903_v55  ;;  %v8912_v0 = vor.u32 %v4049_v54, %v4046_v50  ;;  %v1457_v7 = vsel %vm1425_vm0, 65537, %v11730_v26  ;;  %v850_v54 = vadd.s32 160, %v8503_v20 }
 0x145   : > { %v2394_v5 = vpack.c.b16 %v2368_v58, %v2367_v57  ;;  %v741_v12 = vmax.f32 %v680_v60, 0.0  ;;  %4242 = vmatmul.bf16.gmra.mxu0 %v4042_v4  ;;  %11905 = vst [vmem:[#allocation36_spill] sm:$0xff] %v11904_v55  ;;  %v3968_v57 = vunpack.c.l.b16 %v3886_v38  ;;  %v3969_v58 = vunpack.c.l.b16 %v3887_v40  ;;  %v711_v38 = vpop.f32.mrf.mxu3 }
 0x146   : > { %v11906_v60 = vmov 0  ;;  %v1654_v27 = vshll.u32 %v1457_v7, 16  ;;  %v1658_v21 = vshrl.u32 %v1457_v7, 16  ;;  %v4051_v28 = vsel %vm11729_vm11, %v8863_v39, %v8912_v0 }
 0x147   : > { %v2460_v13 = vshrl.u32 %v2394_v5, 16  ;;  %v2463_v17 = vshll.u32 %v2394_v5, 16  ;;  %v7748_v25 = vpack.c.bf16 %v741_v12, %v740_v8  ;;  %v11907_v60 = vsel %vm8908_vm13, 4294967295, %v11906_v60 }
 0x148   : > { %11908 = vst [vmem:[#allocation37_spill] sm:$0xff] %v11907_v60  ;;  %v1637_v5 = vsel %vm8537_vm8, %v8575_v9, %v1636_v29  ;;  %v3996_v16 = vpack.c.b16 %v3969_v58, %v3968_v57  ;;  %v1660_v39 = vrot.slane %v1658_v21, 4 }
 0x149   : > { %v2462_v31 = vrot.slane %v2460_v13, 3  ;;  %v2465_v41 = vrot.slane %v2463_v17, 4  ;;  %7880 = vst [vmem:[#allocation2 + $0x38] sm:$0xff] %v7748_v25   ;;  %v1905_v30 = vunpack.c.l.b16 %v1637_v5 }
 0x14a   : > { %v681_v35 = vpop.f32.mrf.mxu0  ;;  %v4053_v36 = vshrl.u32 %v3996_v16, 16 }
 0x14b   : > { %v8884_v37 = vor.u32 %v2465_v41, %v2462_v31  ;;  %v682_v8 = vadd.f32 %v8589_v14, %v681_v35  ;;  %v1906_v31 = vunpack.c.h.b16 %v1637_v5  ;;  %v4056_v35 = vshll.u32 %v3996_v16, 16 }
 0x14c   : > { %vm8932_vm0 = vcmp.ne.s32.totalorder %v1905_v30, %v8556_v62  ;;  %v4055_v5 = vrot.slane %v4053_v36, 3 }
 0x14d   : > { %v2467_v47 = vsel %vm11729_vm11, %v8837_v24, %v8884_v37  ;;  %v1642_v24 = vrot.slane %v1641_v44, 4  ;;  %v742_v41 = vmax.f32 %v682_v8, 0.0  ;;  %vm1910_vm2 = vcmp.ne.s32.totalorder %v1906_v31, %v8559_v63 }
 0x14e   : > { %2655 = vmatmul.bf16.gmra.mxu2 %v2467_v47  ;;  %vm8951_vm6 = vmpackc.low %vm1910_vm2, %vm8932_vm0  ;;  %v11914_v31 = vmov 0 }
 0x14f   : > { %v1647_v25 = vsel %vm8537_vm8, %v1642_v24, %v8542_v51  ;;  %v1656_v24 = vrot.slane %v1654_v27, 5  ;;  %v11911_v27 = vmov 0 }
 0x150   : > { %v7597_v61 = vld [vmem:[#allocation2 + $0x34] sm:$0xff]  ;;  %v1325_v4 = vld [vmem:[#allocation2 + $0x3c] sm:$0xf]  ;;  %v1912_v47 = vunpack.c.l.b16 %v1647_v25  ;;  %v1913_v58 = vunpack.c.h.b16 %v1647_v25  ;;  %v11912_v27 = vsel %vm8951_vm6, 4294967295, %v11911_v27 }
 0x151   : > { %v1324_v1 = vld [vmem:[#allocation2 + $0x38] sm:$0xf]  ;;  %v2039_v15 = vsel %vm8908_vm13, %v1325_v4, 0  ;;  %2271 = vmatmul.bf16.gmra.mxu1 %v7597_v61  ;;  %v3856_v50 = vld [vmem:[#allocation2 + $0x3c] sm:$0xf]  ;;  %11913 = vst [vmem:[#allocation38_spill] sm:$0xff] %v11912_v27 }
 0x152   : > { %v2038_v12 = vsel %vm8899_vm10, %v1324_v1, 0  ;;  %v684_v13 = vpop.f32.mrf.mxu0  ;;  %v2370_v18 = vunpack.c.l.b16 %v2039_v15  ;;  %v3855_v40 = vld [vmem:[#allocation2 + $0x38] sm:$0xf]  ;;  %v3889_v8 = vsel %vm8859_vm1, %v3856_v50, 0  ;;  %vm1916_vm9 = vcmp.ne.s32.totalorder %v1912_v47, %v8556_v62  ;;  %v7657_v27 = vld [vmem:[#allocation9 + $0x110] sm:$0xff] }
 0x153   : > { %v2369_v17 = vunpack.c.l.b16 %v2038_v12  ;;  %v685_v23 = vadd.f32 %v8589_v14, %v684_v13  ;;  %v3888_v7 = vsel %vm8852_vm12, %v3855_v40, 0  ;;  %v7662_v12 = vld [vmem:[#allocation9 + $0x138] sm:$0xff]  ;;  %v4058_v13 = vrot.slane %v4056_v35, 4 }
 0x154   : > { %vm1917_vm5 = vcmp.ne.s32.totalorder %v1913_v58, %v8559_v63  ;;  %4505 = vmatpush.bf16.msrb.mxu1 %v7662_v12  ;;  %v3970_v21 = vunpack.c.l.b16 %v3888_v7 }
 0x155   : > { %v2395_v29 = vpack.c.b16 %v2370_v18, %v2369_v17  ;;  %v743_v34 = vmax.f32 %v685_v23, 0.0  ;;  %4247 = vmatmul.bf16.gmra.mxu0 %v4051_v28  ;;  %v712_v17 = vadd.f32 %v8589_v14, %v711_v38  ;;  %v1006_v18 = vand.u32 15, %v850_v54  ;;  %vm8957_vm12 = vmpackc.low %vm1917_vm5, %vm1916_vm9 }
 0x156   : > { %v1661_v23 = vor.u32 %v1660_v39, %v1656_v24  ;;  %v3971_v28 = vunpack.c.l.b16 %v3889_v8  ;;  %v8955_v30 = vor.u32 %v4058_v13, %v4055_v5  ;;  %v11915_v31 = vsel %vm8957_vm12, 4294967295, %v11914_v31 }
 0x157   : > { %v2469_v42 = vshrl.u32 %v2395_v29, 16  ;;  %v2472_v44 = vshll.u32 %v2395_v29, 16  ;;  %v7753_v57 = vpack.c.bf16 %v743_v34, %v742_v41  ;;  %vm1266_vm7 = vcmp.ge.s32.totalorder %v1006_v18, 1  ;;  %v714_v29 = vpop.f32.mrf.mxu3  ;;  %11916 = vst [vmem:[#allocation39_spill] sm:$0xff] %v11915_v31 }
 0x158   : > { %vm1427_vm1 = vmpackc.low %vm1266_vm7, %vm1266_vm7  ;;  %v754_v41 = vmax.f32 %v712_v17, 0.0  ;;  %v1662_v34 = vrot.slane %v1661_v23, 4  ;;  %v4060_v39 = vsel %vm11729_vm11, %v8912_v0, %v8955_v30  ;;  %v852_v17 = vadd.s32 176, %v8503_v20 }
 0x159   : > { %v2471_v61 = vrot.slane %v2469_v42, 3  ;;  %v2474_v1 = vrot.slane %v2472_v44, 4  ;;  %7881 = vst [vmem:[#allocation2 + $0x40] sm:$0xff] %v7753_v57   ;;  %v1459_v36 = vsel %vm1427_vm1, 65537, %v11730_v26  ;;  %v3997_v42 = vpack.c.b16 %v3971_v28, %v3970_v21 }
 0x15a   : > { %v686_v15 = vpop.f32.mrf.mxu0  ;;  %v1657_v57 = vsel %vm8537_vm8, %v8575_v9, %v1656_v24  ;;  %v1667_v7 = vsel %vm8537_vm8, %v1662_v34, %v8542_v51  ;;  %v1674_v8 = vshll.u32 %v1459_v36, 16  ;;  %v1678_v12 = vshrl.u32 %v1459_v36, 16 }
 0x15b   : > { %v8941_v16 = vor.u32 %v2474_v1, %v2471_v61  ;;  %v687_v47 = vadd.f32 %v8589_v14, %v686_v15  ;;  %v4062_v13 = vshrl.u32 %v3997_v42, 16  ;;  %v1919_v24 = vunpack.c.l.b16 %v1657_v57 }
 0x15c   : > { %v4065_v0 = vshll.u32 %v3997_v42, 16  ;;  %v1676_v36 = vrot.slane %v1674_v8, 5  ;;  %v831_v42 = vadd.s32 8, %v8503_v20 }
 0x15d   : > { %v2476_v25 = vsel %vm11729_vm11, %v8884_v37, %v8941_v16  ;;  %v715_v37 = vadd.f32 %v8589_v14, %v714_v29  ;;  %v744_v18 = vmax.f32 %v687_v47, 0.0  ;;  %v1926_v29 = vunpack.c.l.b16 %v1667_v7 }
 0x15e   : > { %2660 = vmatmul.bf16.gmra.mxu2 %v2476_v25  ;;  %v1920_v25 = vunpack.c.h.b16 %v1657_v57  ;;  %vm8980_vm1 = vcmp.ne.s32.totalorder %v1919_v24, %v8556_v62  ;;  %v4067_v57 = vrot.slane %v4065_v0, 4  ;;  %v873_v24 = vand.u32 15, %v831_v42 }
 0x15f   : > { %v755_v44 = vmax.f32 %v715_v37, 0.0  ;;  %v716_v21 = vpop.f32.mrf.mxu3  ;;  %vm1930_vm9 = vcmp.ne.s32.totalorder %v1926_v29, %v8556_v62 }
 0x160   : > { %v7598_v35 = vld [vmem:[#allocation2 + $0x3c] sm:$0xff]  ;;  %v1327_v40 = vld [vmem:[#allocation2 + $0x44] sm:$0xf]  ;;  %vm8986_vm0 = vcmp.ne.s32.totalorder %v1920_v25, %v8559_v63 }
 0x161   : > { %v1326_v38 = vld [vmem:[#allocation2 + $0x40] sm:$0xf]  ;;  %v2041_v54 = vsel %vm8957_vm12, %v1327_v40, 0  ;;  %2276 = vmatmul.bf16.gmra.mxu1 %v7598_v35  ;;  %v7783_v4 = vpack.c.bf16 %v755_v44, %v754_v41  ;;  %v1927_v41 = vunpack.c.h.b16 %v1667_v7  ;;  %v3858_v35 = vld [vmem:[#allocation2 + $0x44] sm:$0xf]  ;;  %v1020_v40 = vand.u32 15, %v852_v17 }
 0x162   : > { %v2040_v50 = vsel %vm8951_vm6, %v1326_v38, 0  ;;  %v689_v58 = vpop.f32.mrf.mxu0  ;;  %v2372_v1 = vunpack.c.l.b16 %v2041_v54  ;;  %v3857_v37 = vld [vmem:[#allocation2 + $0x40] sm:$0xf]  ;;  %v1680_v38 = vrot.slane %v1678_v12, 4  ;;  %v4064_v54 = vrot.slane %v4062_v13, 3  ;;  %v9006_v12 = vpop.f32.mrf.mxu1 }
 0x163   : > { %v2371_v61 = vunpack.c.l.b16 %v2040_v50  ;;  %v690_v5 = vadd.f32 %v8589_v14, %v689_v58  ;;  %7887 = vst [vmem:[#allocation2 + $0x70] sm:$0xff] %v7783_v4   ;;  %v8997_v4 = vld [vmem:[%s11702_s3] ss:$0 sm:$0xff]  ;;  %v3891_v7 = vsel %vm8908_vm13, %v3858_v35, 0  ;;  %vm9002_vm2 = vcmp.ge.s32.totalorder %v1020_v40, 1  ;;  %vm9020_vm13 = vmpackc.low %vm8986_vm0, %vm8980_vm1 }
 0x164   : > { %vm1931_vm5 = vcmp.ne.s32.totalorder %v1927_v41, %v8559_v63  ;;  %vm1429_vm7 = vmpackc.low %vm9002_vm2, %vm9002_vm2  ;;  %v11923_v17 = vmov 0  ;;  %v9024_v25 = vor.u32 %v4067_v57, %v4064_v54  ;;  %vm9038_vm1 = vcmp.le.s32.totalorder %v873_v24, 14 }
 0x165   : > { %v2396_v15 = vpack.c.b16 %v2372_v1, %v2371_v61  ;;  %v745_v23 = vmax.f32 %v690_v5, 0.0  ;;  %4252 = vmatmul.bf16.gmra.mxu0 %v4060_v39  ;;  %v3890_v39 = vsel %vm8899_vm10, %v3857_v37, 0  ;;  %v717_v5 = vadd.f32 %v8997_v4, %v716_v21  ;;  %vm2809_vm10 = vmpackc.low %vm9038_vm1, %vm9038_vm1 }
 0x166   : > { %v11924_v17 = vsel %vm9020_vm13, 4294967295, %v11923_v17  ;;  %v1461_v41 = vsel %vm1429_vm7, 65537, %v11730_v26  ;;  %v9033_v37 = vadd.s32 24, %v8503_v20  ;;  %vm11931_vm0 = vsmask.f32 4352 }
 0x167   : > { %v2478_v28 = vshrl.u32 %v2396_v15, 16  ;;  %v2481_v14 = vshll.u32 %v2396_v15, 16  ;;  %v7758_v34 = vpack.c.bf16 %v745_v23, %v744_v18  ;;  %v1681_v15 = vor.u32 %v1680_v38, %v1676_v36  ;;  %11925 = vst [vmem:[#allocation40_spill] sm:$0xff] %v11924_v17  ;;  %v719_v0 = vpop.f32.mrf.mxu3 }
 0x168   : > { %v3972_v18 = vunpack.c.l.b16 %v3890_v39  ;;  %v3973_v23 = vunpack.c.l.b16 %v3891_v7  ;;  %v756_v21 = vmax.f32 %v717_v5, 0.0 }
 0x169   : > { %v2480_v44 = vrot.slane %v2478_v28, 3  ;;  %v2483_v50 = vrot.slane %v2481_v14, 4  ;;  %7882 = vst [vmem:[#allocation2 + $0x48] sm:$0xff] %v7758_v34   ;;  %v720_v28 = vadd.f32 %v8997_v4, %v719_v0  ;;  %v7661_v14 = vld [vmem:[#allocation9 + $0x130] sm:$0xff]  ;;  %v1682_v29 = vrot.slane %v1681_v15, 4 }
 0x16a   : > { %v691_v61 = vpop.f32.mrf.mxu0  ;;  %4506 = vmatpush.bf16.msrb.mxu1 %v7661_v14  ;;  %v3998_v57 = vpack.c.b16 %v3973_v23, %v3972_v18  ;;  %v1694_v15 = vshll.u32 %v1461_v41, 16  ;;  %v854_v0 = vadd.s32 192, %v8503_v20 }
 0x16b   : > { %v8992_v1 = vor.u32 %v2483_v50, %v2480_v44  ;;  %v757_v40 = vmax.f32 %v720_v28, 0.0  ;;  %v1677_v44 = vsel %vm8537_vm8, %v8575_v9, %v1676_v36  ;;  %v692_v47 = vadd.f32 %v8997_v4, %v691_v61 }
 0x16c   : > { %v4069_v36 = vsel %vm11931_vm0, %v8955_v30, %v9024_v25  ;;  %v1687_v61 = vsel %vm8537_vm8, %v1682_v29, %v8542_v51  ;;  %v1933_v18 = vunpack.c.l.b16 %v1677_v44  ;;  %v1934_v23 = vunpack.c.h.b16 %v1677_v44  ;;  %v9055_v30 = vpop.f32.mrf.mxu1 }
 0x16d   : > { %v2485_v13 = vsel %vm11729_vm11, %v8941_v16, %v8992_v1  ;;  %vm9026_vm11 = vmpackc.low %vm1931_vm5, %vm1930_vm9  ;;  %v11926_v16 = vmov 0  ;;  %v7788_v7 = vpack.c.bf16 %v757_v40, %v756_v21  ;;  %v746_v28 = vmax.f32 %v692_v47, 0.0 }
 0x16e   : > { %2665 = vmatmul.bf16.gmra.mxu2 %v2485_v13  ;;  %v11927_v16 = vsel %vm9026_vm11, 4294967295, %v11926_v16  ;;  %v1698_v13 = vshrl.u32 %v1461_v41, 16  ;;  %v4071_v21 = vshrl.u32 %v3998_v57, 16  ;;  %v1941_v29 = vunpack.c.h.b16 %v1687_v61 }
 0x16f   : > { %11928 = vst [vmem:[#allocation41_spill] sm:$0xff] %v11927_v16  ;;  %v1696_v41 = vrot.slane %v1694_v15, 5  ;;  %vm1937_vm2 = vcmp.ne.s32.totalorder %v1933_v18, %v8556_v62  ;;  %vm1938_vm9 = vcmp.ne.s32.totalorder %v1934_v23, %v8559_v63 }
 0x170   : > { %v7599_v34 = vld [vmem:[#allocation2 + $0x44] sm:$0xff]  ;;  %v1329_v38 = vld [vmem:[#allocation2 + $0x4c] sm:$0xf]  ;;  %7888 = vst [vmem:[#allocation2 + $0x78] sm:$0xff] %v7788_v7   ;;  %v4073_v47 = vrot.slane %v4071_v21, 3  ;;  %vm1945_vm7 = vcmp.ne.s32.totalorder %v1941_v29, %v8559_v63  ;;  %vm9078_vm3 = vmpackc.low %vm1938_vm9, %vm1937_vm2 }
 0x171   : > { %v1328_v35 = vld [vmem:[#allocation2 + $0x48] sm:$0xf]  ;;  %v2043_v54 = vsel %vm9026_vm11, %v1329_v38, 0  ;;  %2281 = vmatmul.bf16.gmra.mxu1 %v7599_v34  ;;  %v4074_v34 = vshll.u32 %v3998_v57, 16  ;;  %v3860_v26 = vld [vmem:[#allocation2 + $0x4c] sm:$0xf] }
 0x172   : > { %v2042_v42 = vsel %vm9020_vm13, %v1328_v35, 0  ;;  %v694_v58 = vpop.f32.mrf.mxu0  ;;  %v2374_v5 = vunpack.c.l.b16 %v2043_v54  ;;  %v721_v35 = vpop.f32.mrf.mxu3  ;;  %v3859_v7 = vld [vmem:[#allocation2 + $0x48] sm:$0xf]  ;;  %v7670_v29 = vld [vmem:[#allocation9 + $0x178] sm:$0xff]  ;;  %vm2872_vm2 = vsmask.f32 256 }
 0x173   : > { %v2373_v39 = vunpack.c.l.b16 %v2042_v42  ;;  %v695_v8 = vadd.f32 %v8997_v4, %v694_v58  ;;  %v1940_v42 = vunpack.c.l.b16 %v1687_v61  ;;  %v1700_v58 = vrot.slane %v1698_v13, 4  ;;  %4987 = vmatpush.bf16.msrb.mxu2 %v7670_v29 }
 0x174   : > { %v722_v61 = vadd.f32 %v8997_v4, %v721_v35  ;;  %v3892_v15 = vsel %vm8951_vm6, %v3859_v7, 0  ;;  %v3893_v13 = vsel %vm8957_vm12, %v3860_v26, 0  ;;  %v11938_v26 = vmov 0 }
 0x175   : > { %v2397_v24 = vpack.c.b16 %v2374_v5, %v2373_v39  ;;  %v747_v14 = vmax.f32 %v695_v8, 0.0  ;;  %4257 = vmatmul.bf16.gmra.mxu0 %v4069_v36  ;;  %v1034_v39 = vand.u32 15, %v854_v0  ;;  %v4076_v36 = vrot.slane %v4074_v34, 4 }
 0x176   : > { %vm1944_vm5 = vcmp.ne.s32.totalorder %v1940_v42, %v8556_v62  ;;  %v11935_v0 = vmov 0  ;;  %v758_v21 = vmax.f32 %v722_v61, 0.0  ;;  %v3974_v34 = vunpack.c.l.b16 %v3892_v15 }
 0x177   : > { %v2487_v38 = vshrl.u32 %v2397_v24, 16  ;;  %v2490_v40 = vshll.u32 %v2397_v24, 16  ;;  %v7763_v54 = vpack.c.bf16 %v747_v14, %v746_v28  ;;  %v1701_v24 = vor.u32 %v1700_v58, %v1696_v41  ;;  %v7660_v28 = vld [vmem:[#allocation9 + $0x128] sm:$0xff]  ;;  %vm9082_vm6 = vmpackc.low %vm1945_vm7, %vm1944_vm5 }
 0x178   : > { %vm9068_vm0 = vcmp.ge.s32.totalorder %v1034_v39, 1  ;;  %v11936_v0 = vsel %vm9078_vm3, 4294967295, %v11935_v0  ;;  %v11939_v26 = vsel %vm9082_vm6, 4294967295, %v11938_v26  ;;  %v3975_v35 = vunpack.c.l.b16 %v3893_v13  ;;  %4507 = vmatpush.bf16.msrb.mxu1 %v7660_v28 }
 0x179   : > { %v2489_v5 = vrot.slane %v2487_v38, 3  ;;  %v2492_v44 = vrot.slane %v2490_v40, 4  ;;  %7883 = vst [vmem:[#allocation2 + $0x50] sm:$0xff] %v7763_v54   ;;  %v9092_v40 = vor.u32 %v4076_v36, %v4073_v47  ;;  %v1702_v42 = vrot.slane %v1701_v24, 4 }
 0x17a   : > { %v696_v57 = vpop.f32.mrf.mxu0  ;;  %11937 = vst [vmem:[#allocation42_spill] sm:$0xff] %v11936_v0  ;;  %v724_v14 = vpop.f32.mrf.mxu3  ;;  %v887_v54 = vand.u32 15, %v9033_v37  ;;  %v11941_v58 = vmov 0   ;;  %v1697_v36 = vsel %vm8537_vm8, %v8575_v9, %v1696_v41  ;;  %v3999_v28 = vpack.c.b16 %v3975_v35, %v3974_v34 }
 0x17b   : > { %v9059_v8 = vor.u32 %v2492_v44, %v2489_v5  ;;  %11940 = vst [vmem:[#allocation43_spill] sm:$0xff] %v11939_v26  ;;  %v725_v38 = vadd.f32 %v8997_v4, %v724_v14  ;;  %v9101_v39 = vsel %vm2809_vm10, 65537, %v11941_v58  ;;  %v697_v5 = vadd.f32 %v8997_v4, %v696_v57  ;;  %v7659_v57 = vld [vmem:[#allocation9 + $0x120] sm:$0xff] }
 0x17c   : > { %vm11943_vm10 = vsmask.f32 4352  ;;  %4508 = vmatpush.bf16.msrb.mxu1 %v7659_v57  ;;  %vm9124_vm1 = vcmp.le.s32.totalorder %v887_v54, 14  ;;  %v2884_v18 = vshrl.u32 %v9101_v39, 16  ;;  %v7668_v54 = vld [vmem:[#allocation9 + $0x168] sm:$0xff]  ;;  %v4080_v31 = vshrl.u32 %v3999_v28, 16 }
 0x17d   : > { %v2494_v23 = vsel %vm11934_vm4, %v8992_v1, %v9059_v8  ;;  %vm1431_vm4 = vmpackc.low %vm9068_vm0, %vm9068_vm0  ;;  %v759_v47 = vmax.f32 %v725_v38, 0.0  ;;  %v7669_v38 = vld [vmem:[#allocation9 + $0x170] sm:$0xff]  ;;  %v4078_v29 = vsel %vm11943_vm10, %v9024_v25, %v9092_v40  ;;  %v1947_v25 = vunpack.c.l.b16 %v1697_v36 }
 0x17e   : > { %2670 = vmatmul.bf16.gmra.mxu2 %v2494_v23  ;;  %v9090_v1 = vpop.f32.mrf.mxu1  ;;  %v1463_v24 = vsel %vm1431_vm4, 65537, %v11941_v58  ;;  %vm2811_vm9 = vmpackc.low %vm9124_vm1, %vm9124_vm1  ;;  %vm2873_vm5 = vsmask.f32 4368  ;;  %vm11955_vm1 = vsmask.f32 4352 }
 0x17f   : > { %v7793_v14 = vpack.c.bf16 %v759_v47, %v758_v21  ;;  %v1707_v21 = vsel %vm8537_vm8, %v1702_v42, %v8542_v51  ;;  %v1714_v34 = vshll.u32 %v1463_v24, 16  ;;  %v1718_v35 = vshrl.u32 %v1463_v24, 16  ;;  %4988 = vmatpush.bf16.msrb.mxu2 %v7669_v38 }
 0x180   : > { %v2631_v44 = vpop.f32.mrf.mxu2  ;;  %v7600_v7 = vld [vmem:[#allocation2 + $0x4c] sm:$0xff]  ;;  %v1331_v15 = vld [vmem:[#allocation2 + $0x54] sm:$0xf]  ;;  %v748_v47 = vmax.f32 %v697_v5, 0.0  ;;  %v4083_v24 = vshll.u32 %v3999_v28, 16  ;;  %v1954_v5 = vunpack.c.l.b16 %v1707_v21  ;;  %v9149_v28 = vsel %vm2811_vm9, 65537, %v11941_v58 }
 0x181   : > { %v1330_v61 = vld [vmem:[#allocation2 + $0x50] sm:$0xf]  ;;  %v9108_v37 = vadd.f32 %v2631_v44, %v9006_v12  ;;  %v2045_v13 = vsel %vm9082_vm6, %v1331_v15, 0  ;;  %2286 = vmatmul.bf16.gmra.mxu1 %v7600_v7  ;;  %7889 = vst [vmem:[#allocation2 + $0x80] sm:$0xff] %v7793_v14   ;;  %v1955_v14 = vunpack.c.h.b16 %v1707_v21  ;;  %v9138_v60 = vrot.slane %v1714_v34, 5 }
 0x182   : > { %v2044_v50 = vsel %vm9078_vm3, %v1330_v61, 0  ;;  %v699_v23 = vpop.f32.mrf.mxu0  ;;  %v2376_v12 = vunpack.c.l.b16 %v2045_v13  ;;  %v7658_v61 = vld [vmem:[#allocation9 + $0x118] sm:$0xff]  ;;  %v835_v13 = vadd.s32 40, %v8503_v20  ;;  %vm9154_vm7 = vcmp.ne.s32.totalorder %v1947_v25, %v8556_v62 }
 0x183   : > { %11942 = vst [vmem:[#allocation44_spill] sm:$0xff] %v9108_v37  ;;  %v2375_v41 = vunpack.c.l.b16 %v2044_v50  ;;  %v700_v44 = vadd.f32 %v8997_v4, %v699_v23  ;;  %4509 = vmatpush.bf16.msrb.mxu1 %v7658_v61  ;;  %4989 = vmatpush.bf16.msrb.mxu2 %v7668_v54  ;;  %v2886_v61 = vrot.slane %v2884_v18, 7  ;;  %v3862_v15 = vld [vmem:[#allocation2 + $0x54] sm:$0xf]  ;;  %v7667_v54 = vld [vmem:[#allocation9 + $0x160] sm:$0xff]  ;;  %vm9165_vm4 = vcmp.ne.s32.totalorder %v1954_v5, %v8556_v62 }
 0x184   : > { %vm9170_vm10 = vcmp.ne.s32.totalorder %v1955_v14, %v8559_v63  ;;  %v11956_v14 = vmov 0  ;;  %v2905_v18 = vshll.u32 %v9149_v28, 16 }
 0x185   : > { %v2398_v7 = vpack.c.b16 %v2376_v12, %v2375_v41  ;;  %v749_v50 = vmax.f32 %v700_v44, 0.0  ;;  %4262 = vmatmul.bf16.gmra.mxu0 %v4078_v29  ;;  %v1948_v41 = vunpack.c.h.b16 %v1697_v36  ;;  %v2891_v34 = vrot.slane %v2886_v61, 4 }
 0x186   : > { %v9136_v12 = vpop.f32.mrf.mxu1 }
 0x187   : > { %v2496_v57 = vshrl.u32 %v2398_v7, 16  ;;  %v2499_v23 = vshll.u32 %v2398_v7, 16  ;;  %v7768_v42 = vpack.c.bf16 %v749_v50, %v748_v47  ;;  %v1720_v7 = vrot.slane %v1718_v35, 4  ;;  %v3861_v35 = vld [vmem:[#allocation2 + $0x50] sm:$0xf]  ;;  %v726_v50 = vpop.f32.mrf.mxu3  ;;  %4510 = vmatpush.bf16.msrb.mxu1 %v7657_v27  ;;  %4990 = vmatpush.bf16.msrb.mxu2 %v7667_v54 }
 0x188   : > { %v2633_v44 = vpop.f32.mrf.mxu2  ;;  %vm9159_vm0 = vcmp.ne.s32.totalorder %v1948_v41, %v8559_v63  ;;  %v7656_v41 = vld [vmem:[#allocation9 + $0x108] sm:$0xff]  ;;  %v3894_v27 = vsel %vm9020_vm13, %v3861_v35, 0 }
 0x189   : > { %v2498_v38 = vrot.slane %v2496_v57, 3  ;;  %v2501_v29 = vrot.slane %v2499_v23, 4  ;;  %7884 = vst [vmem:[#allocation2 + $0x58] sm:$0xff] %v7768_v42   ;;  %v9141_v36 = vadd.f32 %v2633_v44, %v9055_v30  ;;  %v2887_v57 = vshll.u32 %v9101_v39, 16  ;;  %vm9183_vm9 = vmpackc.low %vm9159_vm0, %vm9154_vm7 }
 0x18a   : > { %v701_v21 = vpop.f32.mrf.mxu0  ;;  %v727_v23 = vadd.f32 %v8997_v4, %v726_v50  ;;  %v901_v42 = vand.u32 15, %v835_v13  ;;  %v4082_v39 = vrot.slane %v4080_v31, 3  ;;  %v1721_v5 = vor.u32 %v1720_v7, %v9138_v60  ;;  %vm9208_vm7 = vmor %vm2872_vm2, %vm2873_vm5 }
 0x18b   : > { %11946 = vst [vmem:[#allocation45_spill] sm:$0xff] %v9141_v36  ;;  %v9151_v47 = vor.u32 %v2501_v29, %v2498_v38  ;;  %v4085_v38 = vrot.slane %v4083_v24, 4  ;;  %v11957_v14 = vsel %vm9183_vm9, 4294967295, %v11956_v14  ;;  %v3895_v13 = vsel %vm9026_vm11, %v3862_v15, 0  ;;  %v7666_v24 = vld [vmem:[#allocation9 + $0x158] sm:$0xff]  ;;  %4511 = vmatpush.bf16.msrb.mxu1 %v7656_v41 }
 0x18c   : > { %11958 = vst [vmem:[#allocation46_spill] sm:$0xff] %v11957_v14  ;;  %v760_v29 = vmax.f32 %v727_v23, 0.0  ;;  %v2902_v31 = vshrl.u32 %v9149_v28, 16  ;;  %v9201_v7 = vrot.slane %v8546_v52, 4  ;;  %v2889_v54 = vor.u32 %v2887_v57, %v2886_v61  ;;  %4991 = vmatpush.bf16.msrb.mxu2 %v7666_v24  ;;  %v7655_v57 = vld [vmem:[#allocation9 + $0x100] sm:$0xff] }
 0x18d   : > { %v2503_v44 = vsel %vm11955_vm1, %v9059_v8, %v9151_v47  ;;  %vm9196_vm1 = vmpackc.low %vm9170_vm10, %vm9165_vm4  ;;  %v11959_v8 = vmov 0  ;;  %vm9213_vm0 = vcmp.le.s32.totalorder %v901_v42, 14  ;;  %v9217_v23 = vor.u32 %v4085_v38, %v4082_v39 }
 0x18e   : > { %2675 = vmatmul.bf16.gmra.mxu2 %v2503_v44  ;;  %v11960_v8 = vsel %vm9196_vm1, 4294967295, %v11959_v8  ;;  %v9204_v35 = vpop.f32.mrf.mxu1  ;;  %v792_v15 = vpack.c.bf16 %v760_v29, %v760_v29  ;;  %v3976_v29 = vunpack.c.l.b16 %v3894_v27  ;;  %v3977_v41 = vunpack.c.l.b16 %v3895_v13  ;;  %vm2813_vm2 = vmpackc.low %vm9213_vm0, %vm9213_vm0 }
 0x18f   : > { %11961 = vst [vmem:[#allocation47_spill] sm:$0xff] %v11960_v8  ;;  %v1722_v16 = vrot.slane %v1721_v5, 4  ;;  %v702_v17 = vadd.f32 %v8997_v4, %v701_v21  ;;  %v9224_v42 = vrot.slane %v2902_v31, 7  ;;  %v7665_v21 = vld [vmem:[#allocation9 + $0x150] sm:$0xff]  ;;  %v9232_v13 = vsel %vm9208_vm7, %v2891_v34, %v8564_v2  ;;  %4512 = vmatpush.bf16.msrb.mxu1 %v7655_v57 }
 0x190   : > { %v7601_v52 = vld [vmem:[#allocation2 + $0x54] sm:$0xff]  ;;  %v1333_v30 = vld [vmem:[#allocation2 + $0x5c] sm:$0xf]  ;;  %824 = vst [vmem:[#allocation2 + $0x88] sm:$0xf] %v792_v15  ;;  %v3163_v24 = vunpack.c.h.b16 %v8564_v2  ;;  %v4000_v15 = vpack.c.b16 %v3977_v41, %v3976_v29  ;;  %4992 = vmatpush.bf16.msrb.mxu2 %v7665_v21  ;;  %v7631_v8 = vld [vmem:[#allocation2 + $0xc] sm:$0xff] }
 0x191   : > { %v1332_v44 = vld [vmem:[#allocation2 + $0x58] sm:$0xf]  ;;  %v2636_v55 = vpop.f32.mrf.mxu2  ;;  %v2047_v28 = vsel %vm9196_vm1, %v1333_v30, 0  ;;  %2291 = vmatmul.bf16.gmra.mxu1 %v7601_v52  ;;  %vm11967_vm5 = vsmask.f32 4352  ;;  %v1727_v52 = vsel %vm8537_vm8, %v1722_v16, %v8542_v51 }
 0x192   : > { %v2046_v61 = vsel %vm9183_vm9, %v1332_v44, 0  ;;  %v9227_v39 = vadd.f32 %v2636_v55, %v9090_v1  ;;  %v704_v38 = vpop.f32.mrf.mxu0  ;;  %v2378_v27 = vunpack.c.l.b16 %v2047_v28  ;;  %v1717_v55 = vsel %vm8537_vm8, %v8575_v9, %v9138_v60 }
 0x193   : > { %v2377_v5 = vunpack.c.l.b16 %v2046_v61  ;;  %v705_v31 = vadd.f32 %v8997_v4, %v704_v38  ;;  %v9245_v1 = vsel %vm9208_vm7, %v9201_v7, %v2889_v54  ;;  %v4087_v34 = vsel %vm11967_vm5, %v9092_v40, %v9217_v23  ;;  %v7664_v61 = vld [vmem:[#allocation9 + $0x148] sm:$0xff] }
 0x194   : > { %11966 = vst [vmem:[#allocation48_spill] sm:$0xff] %v9227_v39  ;;  %v750_v44 = vmax.f32 %v702_v17, 0.0  ;;  %v2907_v54 = vor.u32 %v2905_v18, %v9224_v42  ;;  %v9261_v40 = vsel %vm2813_vm2, 65537, %v11941_v58  ;;  %v1961_v28 = vunpack.c.l.b16 %v1717_v55  ;;  %4993 = vmatpush.bf16.msrb.mxu2 %v7664_v61  ;;  %v3864_v61 = vld [vmem:[#allocation2 + $0x5c] sm:$0xf] }
 0x195   : > { %v2399_v30 = vpack.c.b16 %v2378_v27, %v2377_v5  ;;  %v751_v60 = vmax.f32 %v705_v31, 0.0  ;;  %4267 = vmatmul.bf16.gmra.mxu0 %v4087_v34  ;;  %v1962_v57 = vunpack.c.h.b16 %v1717_v55  ;;  %v710_v17 = vadd.f32 %v8997_v4, %v8903_v59 }
 0x196   : > { %v9265_v38 = vpop.f32.mrf.mxu1  ;;  %v1968_v5 = vunpack.c.l.b16 %v1727_v52  ;;  %v1969_v18 = vunpack.c.h.b16 %v1727_v52  ;;  %v4089_v31 = vshrl.u32 %v4000_v15, 16  ;;  %v4092_v34 = vshll.u32 %v4000_v15, 16  ;;  %v3863_v15 = vld [vmem:[#allocation2 + $0x58] sm:$0xf] }
 0x197   : > { %v2505_v29 = vshrl.u32 %v2399_v30, 16  ;;  %v2508_v41 = vshll.u32 %v2399_v30, 16  ;;  %v7773_v16 = vpack.c.bf16 %v751_v60, %v750_v44  ;;  %v3169_v33 = vunpack.c.l.b16 %v9245_v1 }
 0x198   : > { %v3170_v30 = vunpack.c.h.b16 %v9245_v1  ;;  %v2920_v55 = vshrl.u32 %v9261_v40, 16  ;;  %v837_v59 = vadd.s32 56, %v8503_v20  ;;  %vm1965_vm4 = vcmp.ne.s32.totalorder %v1961_v28, %v8556_v62 }
 0x199   : > { %v2507_v27 = vrot.slane %v2505_v29, 3  ;;  %v2510_v21 = vrot.slane %v2508_v41, 4  ;;  %7885 = vst [vmem:[#allocation2 + $0x60] sm:$0xff] %v7773_v16   ;;  %v2638_v25 = vpop.f32.mrf.mxu2  ;;  %vm1966_vm10 = vcmp.ne.s32.totalorder %v1962_v57, %v8559_v63  ;;  %v7663_v29 = vld [vmem:[#allocation9 + $0x140] sm:$0xff]  ;;  %v753_v41 = vmax.f32 %v710_v17, 0.0 }
 0x19a   : > { %v9272_v44 = vadd.f32 %v2638_v25, %v9136_v12  ;;  %v706_v60 = vpop.f32.mrf.mxu0  ;;  %vm1972_vm0 = vcmp.ne.s32.totalorder %v1968_v5, %v8556_v62  ;;  %vm1973_vm2 = vcmp.ne.s32.totalorder %v1969_v18, %v8559_v63  ;;  %v4091_v16 = vrot.slane %v4089_v31, 3  ;;  %vm9287_vm11 = vmpackc.low %vm1966_vm10, %vm1965_vm4  ;;  %4994 = vmatpush.bf16.msrb.mxu2 %v7663_v29 }
 0x19b   : > { %v9274_v52 = vor.u32 %v2510_v21, %v2507_v27  ;;  %v707_v1 = vadd.f32 %v8997_v4, %v706_v60  ;;  %v4094_v27 = vrot.slane %v4092_v34, 4  ;;  %v2908_v28 = vsel %vm9208_vm7, %v9201_v7, %v2907_v54 }
 0x19c   : > { %11968 = vst [vmem:[#allocation49_spill] sm:$0xff] %v9272_v44  ;;  %v11969_v21 = vmov 0  ;;  %v3896_v4 = vsel %vm9078_vm3, %v3863_v15, 0  ;;  %v3897_v17 = vsel %vm9082_vm6, %v3864_v61, 0  ;;  %v915_v5 = vand.u32 15, %v837_v59 }
 0x19d   : > { %v2512_v12 = vsel %vm11967_vm5, %v9151_v47, %v9274_v52  ;;  %v752_v57 = vmax.f32 %v707_v1, 0.0  ;;  %v11970_v21 = vsel %vm9287_vm11, 4294967295, %v11969_v21  ;;  %vm9295_vm5 = vmpackc.low %vm1973_vm2, %vm1972_vm0  ;;  %v11972_v47 = vmov 0 }
 0x19e   : > { %11971 = vst [vmem:[#allocation50_spill] sm:$0xff] %v11970_v21  ;;  %2680 = vmatmul.bf16.gmra.mxu2 %v2512_v12  ;;  %v11973_v47 = vsel %vm9295_vm5, 4294967295, %v11972_v47  ;;  %v11975_v54 = vunpack.c.l.b16 %v8564_v2  ;;  %vm9307_vm10 = vcmp.ne.s32.totalorder %v3163_v24, %v8559_v63  ;;  %vm9312_vm6 = vcmp.ne.s32.totalorder %v3169_v33, %v8556_v62  ;;  %v9317_v60 = vpop.f32.mrf.mxu1 }
 0x19f   : > { %11974 = vst [vmem:[#allocation51_spill] sm:$0xff] %v11973_v47  ;;  %v856_v25 = vadd.s32 208, %v8503_v20  ;;  %v7778_v59 = vpack.c.bf16 %v753_v41, %v752_v57  ;;  %vm9320_vm0 = vcmp.ne.s32.totalorder %v3170_v30, %v8559_v63  ;;  %v9324_v61 = vrot.slane %v2920_v55, 7 }
 0x1a0   : > { %vm9302_vm4 = vcmp.ne.s32.totalorder %v11975_v54, %v8556_v62  ;;  %v2923_v24 = vshll.u32 %v9261_v40, 16  ;;  %v7602_v29 = vld [vmem:[#allocation2 + $0x5c] sm:$0xff]  ;;  %v9327_v1 = vor.u32 %v4094_v27, %v4091_v16  ;;  %v1335_v12 = vld [vmem:[#allocation2 + $0x64] sm:$0xf]  ;;  %v3978_v54 = vunpack.c.l.b16 %v3896_v4  ;;  %vm9354_vm13 = vmpackc.low %vm9320_vm0, %vm9312_vm6 }
 0x1a1   : > { %v1334_v33 = vld [vmem:[#allocation2 + $0x60] sm:$0xf]  ;;  %v3979_v26 = vunpack.c.l.b16 %v3897_v17  ;;  %v3183_v0 = vunpack.c.l.b16 %v2908_v28  ;;  %7886 = vst [vmem:[#allocation2 + $0x68] sm:$0xff] %v7778_v59   ;;  %v2641_v41 = vpop.f32.mrf.mxu2  ;;  %v2049_v57 = vsel %vm9295_vm5, %v1335_v12, 0  ;;  %v3184_v55 = vunpack.c.h.b16 %v2908_v28  ;;  %2296 = vmatmul.bf16.gmra.mxu1 %v7602_v29  ;;  %vm9346_vm3 = vmpackc.low %vm9307_vm10, %vm9302_vm4  ;;  %v4626_v28 = vld [vmem:[#allocation2 + $0xc] sm:$0xf] }
 0x1a2   : > { %v2048_v30 = vsel %vm9287_vm11, %v1334_v33, 0  ;;  %vm9333_vm2 = vcmp.le.s32.totalorder %v915_v5, 14  ;;  %v9338_v40 = vadd.f32 %v2641_v41, %v9204_v35  ;;  %v9340_v16 = vpop.f32.mrf.mxu0  ;;  %v2380_v4 = vunpack.c.l.b16 %v2049_v57  ;;  %v4627_v5 = vld [vmem:[#allocation2 + $0x10] sm:$0xf] }
 0x1a3   : > { %11987 = vst [vmem:[#allocation53_spill] sm:$0xff] %v9340_v16  ;;  %v2379_v27 = vunpack.c.l.b16 %v2048_v30  ;;  %v11988_v17 = vmov 0  ;;  %v1048_v59 = vand.u32 15, %v856_v25  ;;  %v11990_v35 = vmov 0 }
 0x1a4   : > { %11986 = vst [vmem:[#allocation52_spill] sm:$0xff] %v9338_v40  ;;  %v11989_v17 = vsel %vm9346_vm3, 4294967295, %v11988_v17  ;;  %v11991_v35 = vsel %vm9354_vm13, 4294967295, %v11990_v35  ;;  %v3176_v29 = vunpack.c.l.b16 %v9232_v13  ;;  %v3177_v18 = vunpack.c.h.b16 %v9232_v13 }
 0x1a5   : > { %v2925_v31 = vor.u32 %v2923_v24, %v9324_v61  ;;  %vm11992_vm4 = vsmask.f32 4352  ;;  %v2400_v12 = vpack.c.b16 %v2380_v4, %v2379_v27  ;;  %v4001_v25 = vpack.c.b16 %v3979_v26, %v3978_v54  ;;  %v4629_v27 = vld [vmem:[#allocation2 + $0x18] sm:$0xf] }
 0x1a6   : > { %v4096_v33 = vsel %vm11992_vm4, %v9217_v23, %v9327_v1  ;;  %vm9365_vm10 = vcmp.ne.s32.totalorder %v3183_v0, %v8556_v62  ;;  %vm9373_vm0 = vcmp.ne.s32.totalorder %v3184_v55, %v8559_v63  ;;  %v4659_v23 = vsel %vm9346_vm3, %v4626_v28, 0  ;;  %v9387_v30 = vpop.f32.mrf.mxu1 }
 0x1a7   : > { %4272 = vmatmul.bf16.gmra.mxu0 %v4096_v33  ;;  %v4660_v26 = vsel %vm9354_vm13, %v4627_v5, 0  ;;  %v2909_v0 = vrot.slane %v9224_v42, 4  ;;  %v2514_v15 = vshrl.u32 %v2400_v12, 16  ;;  %v2517_v24 = vshll.u32 %v2400_v12, 16  ;;  %v4628_v42 = vld [vmem:[#allocation2 + $0x14] sm:$0xf]  ;;  %vm12003_vm13 = vmpackc.low %vm9333_vm2, %vm9333_vm2 }
 0x1a8   : > { %vm9382_vm4 = vcmp.ge.s32.totalorder %v1048_v59, 1  ;;  %v839_v41 = vadd.s32 72, %v8503_v20  ;;  %vm9390_vm6 = vcmp.ne.s32.totalorder %v3176_v29, %v8556_v62  ;;  %vm9395_vm12 = vcmp.ne.s32.totalorder %v3177_v18, %v8559_v63  ;;  %v7603_v5 = vld [vmem:[#allocation2 + $0x64] sm:$0xff]  ;;  %vm9412_vm3 = vmpackc.low %vm9373_vm0, %vm9365_vm10 }
 0x1a9   : > { %v2926_v4 = vsel %vm9208_vm7, %v9201_v7, %v2925_v31  ;;  %v2847_v28 = vsel %vm12003_vm13, 65537, %v11941_v58  ;;  %v2516_v59 = vrot.slane %v2514_v15, 3  ;;  %v2519_v29 = vrot.slane %v2517_v24, 4  ;;  %v2643_v31 = vpop.f32.mrf.mxu2  ;;  %vm1433_vm13 = vmpackc.low %vm9382_vm4, %vm9382_vm4  ;;  %2301 = vmatmul.bf16.vlgmr.msrb.gmra.mxu3 %v7603_v5  ;;  %v3866_v15 = vld [vmem:[#allocation2 + $0x64] sm:$0xf] }
 0x1aa   : > { %v4098_v18 = vshrl.u32 %v4001_v25, 16  ;;  %v4101_v33 = vshll.u32 %v4001_v25, 16  ;;  %v12004_v12 = vmov 0  ;;  %v4741_v16 = vunpack.c.l.b16 %v4659_v23  ;;  %v9425_v34 = vpop.f32.mrf.mxu0  ;;  %vm9433_vm2 = vmpackc.low %vm9395_vm12, %vm9390_vm6 }
 0x1ab   : > { %v12005_v12 = vsel %vm9412_vm3, 4294967295, %v12004_v12  ;;  %v4742_v22 = vunpack.c.l.b16 %v4660_v26  ;;  %v2917_v32 = vsel %vm9208_vm7, %v2909_v0, %v8564_v2  ;;  %v9423_v25 = vadd.f32 %v2643_v31, %v9265_v38  ;;  %12007 = vst [vmem:[#allocation55_spill] sm:$0xff] %v9425_v34  ;;  %v3865_v0 = vld [vmem:[#allocation2 + $0x60] sm:$0xf] }
 0x1ac   : > { %v9427_v13 = vor.u32 %v2519_v29, %v2516_v59  ;;  %v12008_v23 = vmov 0  ;;  %v4662_v26 = vsel %vm9412_vm3, %v4629_v27, 0  ;;  %v929_v38 = vand.u32 15, %v839_v41 }
 0x1ad   : > { %12006 = vst [vmem:[#allocation54_spill] sm:$0xff] %v9423_v25  ;;  %v12009_v23 = vsel %vm9433_vm2, 4294967295, %v12008_v23  ;;  %v4661_v24 = vsel %vm9433_vm2, %v4628_v42, 0  ;;  %v3197_v5 = vunpack.c.l.b16 %v2926_v4  ;;  %v2927_v59 = vrot.slane %v9324_v61, 4 }
 0x1ae   : > { %v2938_v29 = vshrl.u32 %v2847_v28, 16  ;;  %vm12010_vm10 = vsmask.f32 4352  ;;  %v4100_v55 = vrot.slane %v4098_v18, 3  ;;  %v4103_v31 = vrot.slane %v4101_v33, 4  ;;  %v9462_v33 = vpop.f32.mrf.mxu1 }
 0x1af   : > { %v2521_v57 = vsel %vm12010_vm10, %v9274_v52, %v9427_v13  ;;  %v1465_v41 = vsel %vm1433_vm13, 65537, %v11941_v58  ;;  %v4744_v27 = vunpack.c.l.b16 %v4662_v26  ;;  %v3898_v42 = vsel %vm9183_vm9, %v3865_v0, 0  ;;  %vm12019_vm13 = vmmov %vm12010_vm10 }
 0x1b0   : > { %v3899_v61 = vsel %vm9196_vm1, %v3866_v15, 0  ;;  %v3198_v34 = vunpack.c.h.b16 %v2926_v4  ;;  %2685 = vmatmul.bf16.gmra.mxu2 %v2521_v57  ;;  %v4743_v19 = vunpack.c.l.b16 %v4661_v24  ;;  %v9455_v52 = vpack.c.b16 %v4742_v22, %v4741_v16 }
 0x1b1   : > { %vm9457_vm12 = vcmp.le.s32.totalorder %v929_v38, 14  ;;  %v858_v54 = vadd.s32 224, %v8503_v20  ;;  %v9464_v26 = vrot.slane %v2938_v29, 7  ;;  %v2941_v14 = vshll.u32 %v2847_v28, 16  ;;  %v2646_v16 = vpop.f32.mrf.mxu2  ;;  %4513 = vmatmul.bf16.vlgmr.msrb.gmra.mxu1 %v7631_v8 }
 0x1b2   : > { %v1734_v0 = vshll.u32 %v1465_v41, 16  ;;  %v1738_v6 = vshrl.u32 %v1465_v41, 16  ;;  %v9466_v15 = vor.u32 %v4103_v31, %v4100_v55  ;;  %v3980_v4 = vunpack.c.l.b16 %v3898_v42  ;;  %vm2817_vm6 = vmpackc.low %vm9457_vm12, %vm9457_vm12  ;;  %v9479_v29 = vpop.f32.mrf.mxu0  ;;  %v4631_v42 = vld [vmem:[#allocation2 + $0x20] sm:$0xf] }
 0x1b3   : > { %v3981_v24 = vunpack.c.l.b16 %v3899_v61  ;;  %v3190_v22 = vunpack.c.l.b16 %v2917_v32  ;;  %v9468_v38 = vpack.c.b16 %v4744_v27, %v4743_v19  ;;  %v3191_v57 = vunpack.c.h.b16 %v2917_v32  ;;  %12014 = vst [vmem:[#allocation57_spill] sm:$0xff] %v9479_v29 }
 0x1b4   : > { %v2935_v3 = vsel %vm9208_vm7, %v2927_v59, %v8564_v2  ;;  %v9477_v28 = vadd.f32 %v2646_v16, %v9317_v60  ;;  %v4794_v55 = vshll.u32 %v9455_v52, 16  ;;  %vm9483_vm0 = vcmp.ne.s32.totalorder %v3197_v5, %v8556_v62 }
 0x1b5   : > { %v1062_v32 = vand.u32 15, %v858_v54  ;;  %vm9488_vm4 = vcmp.ne.s32.totalorder %v3198_v34, %v8559_v63  ;;  %v2943_v31 = vor.u32 %v2941_v14, %v9464_v26  ;;  %v1736_v60 = vrot.slane %v1734_v0, 5  ;;  %v4630_v0 = vld [vmem:[#allocation2 + $0x1c] sm:$0xf]  ;;  %v3867_v14 = vld [vmem:[#allocation2 + $0x68] sm:$0xf] }
 0x1b6   : > { %12013 = vst [vmem:[#allocation56_spill] sm:$0xff] %v9477_v28  ;;  %v1740_v41 = vrot.slane %v1738_v6, 4  ;;  %v4105_v8 = vsel %vm12019_vm13, %v9327_v1, %v9466_v15  ;;  %v4002_v27 = vpack.c.b16 %v3981_v24, %v3980_v4  ;;  %vm9497_vm10 = vcmp.ne.s32.totalorder %v3190_v22, %v8556_v62  ;;  %vm9512_vm13 = vmpackc.low %vm9488_vm4, %vm9483_vm0  ;;  %v9520_v24 = vpop.f32.mrf.mxu1 }
 0x1b7   : > { %v2849_v34 = vsel %vm2817_vm6, 65537, %v11941_v58  ;;  %4277 = vmatmul.bf16.gmra.mxu0 %v4105_v8  ;;  %v4799_v61 = vshll.u32 %v9468_v38, 16  ;;  %vm9504_vm12 = vcmp.ne.s32.totalorder %v3191_v57, %v8559_v63  ;;  %v3204_v6 = vunpack.c.l.b16 %v2935_v3 }
 0x1b8   : > { %v3205_v18 = vunpack.c.h.b16 %v2935_v3  ;;  %v4796_v1 = vrot.slane %v4794_v55, 1  ;;  %v12024_v54 = vmov 0  ;;  %vm9516_vm6 = vcmp.ge.s32.totalorder %v1062_v32, 1  ;;  %v7604_v55 = vld [vmem:[#allocation2 + $0x6c] sm:$0xff]  ;;  %vm9531_vm4 = vmpackc.low %vm9504_vm12, %vm9497_vm10 }
 0x1b9   : > { %v12025_v54 = vsel %vm9512_vm13, 4294967295, %v12024_v54  ;;  %v4664_v22 = vsel %vm9512_vm13, %v4631_v42, 0  ;;  %v2944_v3 = vsel %vm9208_vm7, %v9201_v7, %v2943_v31  ;;  %v1741_v16 = vor.u32 %v1740_v41, %v1736_v60  ;;  %v2648_v8 = vpop.f32.mrf.mxu2  ;;  %vm1435_vm10 = vmpackc.low %vm9516_vm6, %vm9516_vm6  ;;  %2306 = vmatmul.bf16.gmra.mxu3 %v7604_v55 }
 0x1ba   : > { %12026 = vst [vmem:[#allocation58_spill] sm:$0xff] %v12025_v54  ;;  %v2956_v57 = vshrl.u32 %v2849_v34, 16  ;;  %v4107_v19 = vshrl.u32 %v4002_v27, 16  ;;  %v4110_v59 = vshll.u32 %v4002_v27, 16  ;;  %v12029_v32 = vmov 0  ;;  %v9556_v5 = vpop.f32.mrf.mxu0 }
 0x1bb   : > { %v12030_v32 = vsel %vm9531_vm4, 4294967295, %v12029_v32  ;;  %v4792_v42 = vshrl.u32 %v9455_v52, 16  ;;  %v9536_v29 = vrot.slane %v4799_v61, 1  ;;  %v4663_v31 = vsel %vm9531_vm4, %v4630_v0, 0  ;;  %12037 = vst [vmem:[#allocation61_spill] sm:$0xff] %v9556_v5 }
 0x1bc   : > { %12031 = vst [vmem:[#allocation59_spill] sm:$0xff] %v12030_v32  ;;  %vm9541_vm0 = vcmp.ne.s32.totalorder %v3204_v6, %v8556_v62  ;;  %vm9546_vm1 = vcmp.ne.s32.totalorder %v3205_v18, %v8559_v63  ;;  %v9554_v52 = vadd.f32 %v2648_v8, %v9387_v30  ;;  %v4746_v61 = vunpack.c.l.b16 %v4664_v22  ;;  %v3868_v6 = vld [vmem:[#allocation2 + $0x6c] sm:$0xf]  ;;  %v7632_v8 = vld [vmem:[#allocation2 + $0x14] sm:$0xff]  ;;  %v5108_v27 = vld [vmem:[#allocation2 + $0x10] sm:$0x8] }
 0x1bd   : > { %v3211_v0 = vunpack.c.l.b16 %v2944_v3  ;;  %v3212_v53 = vunpack.c.h.b16 %v2944_v3  ;;  %v4797_v43 = vor.u32 %v4796_v1, %v4792_v42  ;;  %v1742_v18 = vrot.slane %v1741_v16, 4  ;;  %v3869_v5 = vld [vmem:[#allocation2 + $0x70] sm:$0xf] }
 0x1be   : > { %12036 = vst [vmem:[#allocation60_spill] sm:$0xff] %v9554_v52  ;;  %v9558_v49 = vrot.slane %v2956_v57, 7  ;;  %v2959_v46 = vshll.u32 %v2849_v34, 16  ;;  %v4109_v56 = vrot.slane %v4107_v19, 3  ;;  %v4112_v45 = vrot.slane %v4110_v59, 4  ;;  %v9588_v55 = vpop.f32.mrf.mxu1 }
 0x1bf   : > { %v4745_v28 = vunpack.c.l.b16 %v4663_v31  ;;  %v1467_v30 = vsel %vm1435_vm10, 65537, %v11941_v58  ;;  %vm12038_vm12 = vsmask.f32 7424  ;;  %v3900_v1 = vsel %vm9287_vm11, %v3867_v14, 0 }
 0x1c0   : > { %v4802_v22 = vsel %vm12038_vm12, %v4797_v43, %v9536_v29  ;;  %v3901_v3 = vsel %vm9295_vm5, %v3868_v6, 0  ;;  %v2945_v34 = vrot.slane %v9464_v26, 4  ;;  %vm9576_vm9 = vcmp.ne.s32.totalorder %v3211_v0, %v8556_v62  ;;  %vm9628_vm12 = vmpackc.low %vm9546_vm1, %vm9541_vm0 }
 0x1c1   : > { %4995 = vmatmul.bf16.vlgmr.msrb.gmra.mxu2 %v4802_v22  ;;  %v9573_v16 = vpack.c.b16 %v4746_v61, %v4745_v28  ;;  %vm9581_vm6 = vcmp.ne.s32.totalorder %v3212_v53, %v8559_v63  ;;  %v1737_v43 = vsel %vm8537_vm8, %v8575_v9, %v1736_v60  ;;  %v1747_v26 = vsel %vm8537_vm8, %v1742_v18, %v8542_v51  ;;  %v4633_v61 = vld [vmem:[#allocation2 + $0x28] sm:$0xf]  ;;  %v2651_v6 = vpop.f32.mrf.mxu2 }
 0x1c2   : > { %v2961_v28 = vor.u32 %v2959_v46, %v9558_v49  ;;  %v1754_v19 = vshll.u32 %v1467_v30, 16  ;;  %v841_v59 = vadd.s32 88, %v8503_v20  ;;  %v9595_v53 = vor.u32 %v4112_v45, %v4109_v56  ;;  %v9602_v46 = vpop.f32.mrf.mxu0  ;;  %4518 = vmatmul.bf16.gmra.mxu1 %v7632_v8  ;;  %vm9609_vm10 = vmpackc.low %vm9581_vm6, %vm9576_vm9 }
 0x1c3   : > { %v3982_v42 = vunpack.c.l.b16 %v3900_v1  ;;  %v3983_v31 = vunpack.c.l.b16 %v3901_v3  ;;  %v1758_v14 = vshrl.u32 %v1467_v30, 16  ;;  %v4803_v60 = vshrl.u32 %v9468_v38, 16  ;;  %12044 = vst [vmem:[#allocation63_spill] sm:$0xff] %v9602_v46  ;;  %v4632_v38 = vld [vmem:[#allocation2 + $0x24] sm:$0xf] }
 0x1c4   : > { %v1975_v0 = vunpack.c.l.b16 %v1737_v43  ;;  %v1976_v22 = vunpack.c.h.b16 %v1737_v43  ;;  %v860_v47 = vadd.s32 240, %v8503_v20  ;;  %v9600_v18 = vadd.f32 %v2651_v6, %v9462_v33 }
 0x1c5   : > { %v4807_v45 = vshll.u32 %v9573_v16, 16  ;;  %v12045_v56 = vmov 0  ;;  %v1982_v30 = vunpack.c.l.b16 %v1747_v26  ;;  %v1983_v1 = vunpack.c.h.b16 %v1747_v26 }
 0x1c6   : > { %12043 = vst [vmem:[#allocation62_spill] sm:$0xff] %v9600_v18  ;;  %v12046_v56 = vsel %vm9609_vm10, 4294967295, %v12045_v56  ;;  %v4666_v33 = vsel %vm9609_vm10, %v4633_v61, 0  ;;  %v2953_v3 = vsel %vm9208_vm7, %v2945_v34, %v8564_v2  ;;  %v2962_v57 = vsel %vm9208_vm7, %v9201_v7, %v2961_v28 }
 0x1c7   : > { %12047 = vst [vmem:[#allocation64_spill] sm:$0xff] %v12046_v56  ;;  %v943_v43 = vand.u32 15, %v841_v59  ;;  %vm12048_vm9 = vsmask.f32 4352  ;;  %v4003_v8 = vpack.c.b16 %v3983_v31, %v3982_v42  ;;  %v12049_v26 = vmov 0 }
 0x1c8   : > { %v4114_v4 = vsel %vm12048_vm9, %v9466_v15, %v9595_v53  ;;  %v12050_v26 = vsel %vm9628_vm12, 4294967295, %v12049_v26  ;;  %v1756_v61 = vrot.slane %v1754_v19, 5  ;;  %v1760_v34 = vrot.slane %v1758_v14, 4  ;;  %v5109_v42 = vld [vmem:[#allocation2 + $0x14] sm:$0xf] }
 0x1c9   : > { %12051 = vst [vmem:[#allocation65_spill] sm:$0xff] %v12050_v26  ;;  %4282 = vmatmul.bf16.gmra.mxu0 %v4114_v4  ;;  %v4665_v28 = vsel %vm9628_vm12, %v4632_v38, 0  ;;  %vm9635_vm6 = vcmp.ne.s32.totalorder %v1975_v0, %v8556_v62  ;;  %vm9640_vm9 = vcmp.ne.s32.totalorder %v1976_v22, %v8559_v63  ;;  %v1076_v41 = vand.u32 15, %v860_v47  ;;  %v9654_v0 = vpop.f32.mrf.mxu1  ;;  %v2653_v18 = vpop.f32.mrf.mxu2  ;;  %v7630_v15 = vld [vmem:[#allocation9 + $0xb8] sm:$0xff] }
 0x1ca   : > { %v4748_v31 = vunpack.c.l.b16 %v4666_v33  ;;  %vm9645_vm1 = vcmp.ne.s32.totalorder %v1982_v30, %v8556_v62  ;;  %vm9650_vm0 = vcmp.ne.s32.totalorder %v1983_v1, %v8559_v63  ;;  %v3218_v6 = vunpack.c.l.b16 %v2953_v3  ;;  %v7605_v33 = vld [vmem:[#allocation2 + $0x74] sm:$0xff]  ;;  %vm9664_vm11 = vmpackc.low %vm9640_vm9, %vm9635_vm6  ;;  %v9689_v11 = vpop.f32.mrf.mxu0  ;;  %3722 = vmatpush.bf16.msrb.mxu3 %v7630_v15  ;;  %v4635_v14 = vld [vmem:[#allocation2 + $0x30] sm:$0xf] }
 0x1cb   : > { %v3219_v22 = vunpack.c.h.b16 %v2953_v3  ;;  %v3225_v38 = vunpack.c.l.b16 %v2962_v57  ;;  %v3226_v4 = vunpack.c.h.b16 %v2962_v57  ;;  %vm9656_vm5 = vcmp.le.s32.totalorder %v943_v43, 14  ;;  %vm9678_vm12 = vmpackc.low %vm9650_vm0, %vm9645_vm1  ;;  %12071 = vst [vmem:[#allocation69_spill] sm:$0xff] %v9689_v11  ;;  %2311 = vmatmul.bf16.gmra.mxu3 %v7605_v33  ;;  %v7633_v15 = vld [vmem:[#allocation2 + $0x1c] sm:$0xff] }
 0x1cc   : > { %v4116_v30 = vshrl.u32 %v4003_v8, 16  ;;  %v4119_v46 = vshll.u32 %v4003_v8, 16  ;;  %v4747_v21 = vunpack.c.l.b16 %v4665_v28  ;;  %v12062_v1 = vmov 0  ;;  %v3870_v28 = vld [vmem:[#allocation2 + $0x74] sm:$0xf] }
 0x1cd   : > { %v12063_v1 = vsel %vm9664_vm11, 4294967295, %v12062_v1  ;;  %v1761_v3 = vor.u32 %v1760_v34, %v1756_v61  ;;  %v5141_v57 = vsel %vm8577_vm14, %v5108_v27, 0  ;;  %v5142_v43 = vsel %vm8581_vm15, %v5109_v42, 0  ;;  %vm2819_vm15 = vmpackc.low %vm9656_vm5, %vm9656_vm5  ;;  %v9721_v42 = vld [vmem:[#allocation2 + $0x2c] sm:$0xf] }
 0x1ce   : > { %12064 = vst [vmem:[#allocation66_spill] sm:$0xff] %v12063_v1  ;;  %v9672_v52 = vrot.slane %v4807_v45, 1  ;;  %v12065_v8 = vmov 0  ;;  %vm9682_vm6 = vcmp.ge.s32.totalorder %v1076_v41, 1  ;;  %v9687_v10 = vadd.f32 %v2653_v18, %v9520_v24 }
 0x1cf   : > { %v12066_v8 = vsel %vm9678_vm12, 4294967295, %v12065_v8  ;;  %v4805_v45 = vor.u32 %v4803_v60, %v9536_v29  ;;  %v9692_v59 = vpack.c.b16 %v4748_v31, %v4747_v21  ;;  %vm9695_vm14 = vcmp.ne.s32.totalorder %v3218_v6, %v8556_v62  ;;  %vm1437_vm5 = vmpackc.low %vm9682_vm6, %vm9682_vm6 }
 0x1d0   : > { %12067 = vst [vmem:[#allocation67_spill] sm:$0xff] %v12066_v8  ;;  %v3902_v24 = vsel %vm9664_vm11, %v3869_v5, 0  ;;  %vm9705_vm9 = vcmp.ne.s32.totalorder %v3219_v22, %v8559_v63  ;;  %vm9710_vm1 = vcmp.ne.s32.totalorder %v3225_v38, %v8556_v62  ;;  %vm9715_vm0 = vcmp.ne.s32.totalorder %v3226_v4, %v8559_v63  ;;  %v1336_v4 = vld [vmem:[#allocation2 + $0x68] sm:$0xf] }
 0x1d1   : > { %12070 = vst [vmem:[#allocation68_spill] sm:$0xff] %v9687_v10  ;;  %v4118_v60 = vrot.slane %v4116_v30, 3  ;;  %v4121_v41 = vrot.slane %v4119_v46, 4  ;;  %v3903_v5 = vsel %vm9678_vm12, %v3870_v28, 0  ;;  %v1762_v31 = vrot.slane %v1761_v3, 4  ;;  %vm9734_vm4 = vmpackc.low %vm9705_vm9, %vm9695_vm14  ;;  %v9741_v30 = vpop.f32.mrf.mxu1  ;;  %v2656_v29 = vpop.f32.mrf.mxu2 }
 0x1d2   : > { %vm12080_vm10 = vsmask.f32 7424  ;;  %v2851_v6 = vsel %vm2819_vm15, 65537, %v11941_v58  ;;  %v5223_v22 = vunpack.c.l.b16 %v5141_v57  ;;  %v5224_v38 = vunpack.c.l.b16 %v5142_v43  ;;  %v1337_v43 = vld [vmem:[#allocation2 + $0x6c] sm:$0xf]  ;;  %4523 = vmatmul.bf16.gmra.mxu1 %v7633_v15 }
 0x1d3   : > { %v4810_v19 = vsel %vm12080_vm10, %v4805_v45, %v9672_v52  ;;  %v4815_v46 = vshll.u32 %v9692_v59, 16  ;;  %v12081_v47 = vmov 0  ;;  %v1757_v33 = vsel %vm8537_vm8, %v8575_v9, %v1756_v61  ;;  %vm9747_vm10 = vmpackc.low %vm9715_vm0, %vm9710_vm1 }
 0x1d4   : > { %5000 = vmatmul.bf16.gmra.mxu2 %v4810_v19  ;;  %v12082_v47 = vsel %vm9734_vm4, 4294967295, %v12081_v47  ;;  %v3984_v3 = vunpack.c.l.b16 %v3902_v24  ;;  %v3985_v57 = vunpack.c.l.b16 %v3903_v5  ;;  %v12084_v28 = vmov 0 }
 0x1d5   : > { %12083 = vst [vmem:[#allocation70_spill] sm:$0xff] %v12082_v47  ;;  %v12085_v28 = vsel %vm9747_vm10, 4294967295, %v12084_v28  ;;  %v4667_v45 = vsel %vm9734_vm4, %v9721_v42, 0  ;;  %v1469_v61 = vsel %vm1437_vm5, 65537, %v11941_v58  ;;  %v9760_v27 = vor.u32 %v4121_v41, %v4118_v60  ;;  %v9773_v60 = vpop.f32.mrf.mxu0 }
 0x1d6   : > { %12086 = vst [vmem:[#allocation71_spill] sm:$0xff] %v12085_v28  ;;  %v4668_v24 = vsel %vm9747_vm10, %v4635_v14, 0  ;;  %v1767_v18 = vsel %vm8537_vm8, %v1762_v31, %v8542_v51  ;;  %v2974_v21 = vshrl.u32 %v2851_v6, 16  ;;  %v2050_v5 = vsel %vm9664_vm11, %v1336_v4, 0  ;;  %v7629_v14 = vld [vmem:[#allocation9 + $0xb0] sm:$0xff] }
 0x1d7   : > { %v1989_v42 = vunpack.c.l.b16 %v1757_v33  ;;  %v1990_v19 = vunpack.c.h.b16 %v1757_v33  ;;  %v843_v34 = vadd.s32 104, %v8503_v20  ;;  %v9771_v11 = vadd.f32 %v2656_v29, %v9588_v55  ;;  %12088 = vst [vmem:[#allocation73_spill] sm:$0xff] %v9773_v60  ;;  %3723 = vmatpush.bf16.msrb.mxu3 %v7629_v14 }
 0x1d8   : > { %v2051_v41 = vsel %vm9678_vm12, %v1337_v43, 0  ;;  %v1774_v31 = vshll.u32 %v1469_v61, 16  ;;  %v1778_v10 = vshrl.u32 %v1469_v61, 16  ;;  %v4004_v25 = vpack.c.b16 %v3985_v57, %v3984_v3 }
 0x1d9   : > { %12087 = vst [vmem:[#allocation72_spill] sm:$0xff] %v9771_v11  ;;  %v4750_v40 = vunpack.c.l.b16 %v4668_v24  ;;  %v1996_v1 = vunpack.c.l.b16 %v1767_v18  ;;  %v1997_v4 = vunpack.c.h.b16 %v1767_v18  ;;  %vm12089_vm6 = vsmask.f32 4352  ;;  %v9795_v61 = vpop.f32.mrf.mxu1  ;;  %v7606_v18 = vld [vmem:[#allocation2 + $0x7c] sm:$0xff] }
 0x1da   : > { %v4123_v33 = vsel %vm12089_vm6, %v9595_v53, %v9760_v27  ;;  %v2963_v55 = vrot.slane %v9558_v49, 4  ;;  %v9781_v29 = vrot.slane %v2974_v21, 7  ;;  %v2977_v15 = vshll.u32 %v2851_v6, 16 }
 0x1db   : > { %4287 = vmatmul.bf16.gmra.mxu0 %v4123_v33  ;;  %v2381_v60 = vunpack.c.l.b16 %v2050_v5  ;;  %v2382_v43 = vunpack.c.l.b16 %v2051_v41  ;;  %v957_v8 = vand.u32 15, %v843_v34  ;;  %v9783_v11 = vpack.c.b16 %v5224_v38, %v5223_v22  ;;  %v3871_v34 = vld [vmem:[#allocation2 + $0x78] sm:$0xf]  ;;  %2316 = vmatmul.bf16.gmra.mxu3 %v7606_v18 }
 0x1dc   : > { %vm9786_vm14 = vcmp.ne.s32.totalorder %v1989_v42, %v8556_v62  ;;  %vm9791_vm15 = vcmp.ne.s32.totalorder %v1990_v19, %v8559_v63  ;;  %v1776_v49 = vrot.slane %v1774_v31, 5  ;;  %v1780_v57 = vrot.slane %v1778_v10, 4  ;;  %v2658_v19 = vpop.f32.mrf.mxu2 }
 0x1dd   : > { %12090 = vst [vmem:[#allocation74_spill] sm:$0xff] %v9783_v11  ;;  %v4125_v6 = vshrl.u32 %v4004_v25, 16  ;;  %v4128_v24 = vshll.u32 %v4004_v25, 16  ;;  %vm9798_vm9 = vcmp.ne.s32.totalorder %v1996_v1, %v8556_v62  ;;  %vm9803_vm1 = vcmp.ne.s32.totalorder %v1997_v4, %v8559_v63  ;;  %vm9815_vm0 = vmpackc.low %vm9791_vm15, %vm9786_vm14  ;;  %v7628_v4 = vld [vmem:[#allocation9 + $0xa8] sm:$0xff] }
 0x1de   : > { %v4811_v21 = vshrl.u32 %v9573_v16, 16  ;;  %v9808_v5 = vrot.slane %v4815_v46, 1  ;;  %v4749_v10 = vunpack.c.l.b16 %v4667_v45  ;;  %v2979_v42 = vor.u32 %v2977_v15, %v9781_v29  ;;  %vm9840_vm6 = vmpackc.low %vm9803_vm1, %vm9798_vm9  ;;  %3724 = vmatpush.bf16.msrb.mxu3 %v7628_v4  ;;  %v7634_v46 = vld [vmem:[#allocation2 + $0x24] sm:$0xff] }
 0x1df   : > { %v2401_v25 = vpack.c.b16 %v2382_v43, %v2381_v60  ;;  %v12099_v1 = vmov 0  ;;  %v9822_v16 = vsel %vm9208_vm7, %v2963_v55, %v8564_v2  ;;  %vm9824_vm5 = vcmp.le.s32.totalorder %v957_v8, 14  ;;  %v9831_v60 = vpop.f32.mrf.mxu0  ;;  %v3872_v8 = vld [vmem:[#allocation2 + $0x7c] sm:$0xf]  ;;  %v1338_v43 = vld [vmem:[#allocation2 + $0x70] sm:$0xf] }
 0x1e0   : > { %v12100_v1 = vsel %vm9815_vm0, 4294967295, %v12099_v1  ;;  %v9829_v45 = vadd.f32 %v2658_v19, %v9654_v0  ;;  %12105 = vst [vmem:[#allocation77_spill] sm:$0xff] %v9831_v60  ;;  %v4813_v41 = vor.u32 %v4811_v21, %v9672_v52  ;;  %v9834_v14 = vpack.c.b16 %v4750_v40, %v4749_v10  ;;  %vm2821_vm15 = vmpackc.low %vm9824_vm5, %vm9824_vm5 }
 0x1e1   : > { %12101 = vst [vmem:[#allocation75_spill] sm:$0xff] %v12100_v1  ;;  %v12106_v31 = vmov 0  ;;  %v1781_v33 = vor.u32 %v1780_v57, %v1776_v49  ;;  %v4127_v0 = vrot.slane %v4125_v6, 3  ;;  %v4130_v55 = vrot.slane %v4128_v24, 4  ;;  %v1339_v24 = vld [vmem:[#allocation2 + $0x74] sm:$0xf]  ;;  %v9860_v10 = vpop.f32.mrf.mxu1 }
 0x1e2   : > { %12104 = vst [vmem:[#allocation76_spill] sm:$0xff] %v9829_v45  ;;  %v12107_v31 = vsel %vm9840_vm6, 4294967295, %v12106_v31  ;;  %vm12109_vm14 = vsmask.f32 7424  ;;  %v2980_v40 = vsel %vm9208_vm7, %v9201_v7, %v2979_v42  ;;  %v3232_v52 = vunpack.c.l.b16 %v9822_v16  ;;  %4528 = vmatmul.bf16.gmra.mxu1 %v7634_v46  ;;  %v7699_v1 = vld [vmem:[#allocation9 + $0x1e0] sm:$0xff] }
 0x1e3   : > { %12108 = vst [vmem:[#allocation78_spill] sm:$0xff] %v12107_v31  ;;  %v4818_v15 = vsel %vm12109_vm14, %v4813_v41, %v9808_v5  ;;  %v2523_v3 = vshrl.u32 %v2401_v25, 16  ;;  %v2526_v53 = vshll.u32 %v2401_v25, 16  ;;  %v3904_v57 = vsel %vm9815_vm0, %v3871_v34, 0 }
 0x1e4   : > { %v3905_v6 = vsel %vm9840_vm6, %v3872_v8, 0  ;;  %5005 = vmatmul.bf16.gmra.mxu2 %v4818_v15  ;;  %v4823_v22 = vshll.u32 %v9834_v14, 16  ;;  %v3233_v38 = vunpack.c.h.b16 %v9822_v16  ;;  %v1782_v18 = vrot.slane %v1781_v33, 4  ;;  %v2661_v33 = vpop.f32.mrf.mxu2 }
 0x1e5   : > { %v845_v21 = vadd.s32 120, %v8503_v20  ;;  %v9862_v42 = vor.u32 %v4130_v55, %v4127_v0  ;;  %v3239_v19 = vunpack.c.l.b16 %v2980_v40  ;;  %v3240_v25 = vunpack.c.h.b16 %v2980_v40 }
 0x1e6   : > { %v9865_v34 = vsel %vm2821_vm15, 65537, %v11941_v58  ;;  %v3986_v41 = vunpack.c.l.b16 %v3904_v57  ;;  %v3987_v8 = vunpack.c.l.b16 %v3905_v6  ;;  %v2052_v4 = vsel %vm9815_vm0, %v1338_v43, 0  ;;  %v7627_v43 = vld [vmem:[#allocation9 + $0xa0] sm:$0xff] }
 0x1e7   : > { %v2053_v16 = vsel %vm9840_vm6, %v1339_v24, 0  ;;  %v2525_v15 = vrot.slane %v2523_v3, 3  ;;  %v2528_v60 = vrot.slane %v2526_v53, 4  ;;  %vm9872_vm9 = vcmp.ne.s32.totalorder %v3232_v52, %v8556_v62  ;;  %v9886_v52 = vpop.f32.mrf.mxu0  ;;  %3725 = vmatpush.bf16.msrb.mxu3 %v7627_v43 }
 0x1e8   : > { %v1777_v55 = vsel %vm8537_vm8, %v8575_v9, %v1776_v49  ;;  %v9880_v40 = vadd.f32 %v2661_v33, %v9741_v30  ;;  %v1787_v57 = vsel %vm8537_vm8, %v1782_v18, %v8542_v51  ;;  %v2992_v3 = vshrl.u32 %v9865_v34, 16  ;;  %12113 = vst [vmem:[#allocation80_spill] sm:$0xff] %v9886_v52  ;;  %v4637_v51 = vld [vmem:[#allocation2 + $0x38] sm:$0xf] }
 0x1e9   : > { %v971_v53 = vand.u32 15, %v845_v21  ;;  %v2383_v6 = vunpack.c.l.b16 %v2052_v4  ;;  %v2384_v24 = vunpack.c.l.b16 %v2053_v16  ;;  %vm9889_vm1 = vcmp.ne.s32.totalorder %v3239_v19, %v8556_v62  ;;  %v9918_v33 = vpop.f32.mrf.mxu1 }
 0x1ea   : > { %12112 = vst [vmem:[#allocation79_spill] sm:$0xff] %v9880_v40  ;;  %vm3244_vm5 = vcmp.ne.s32.totalorder %v3240_v25, %v8559_v63  ;;  %vm12116_vm14 = vsmask.f32 4352  ;;  %v4005_v48 = vpack.c.b16 %v3987_v8, %v3986_v41  ;;  %v2003_v49 = vunpack.c.l.b16 %v1777_v55  ;;  %v7702_v25 = vld [vmem:[#allocation9 + $0x1f8] sm:$0xff] }
 0x1eb   : > { %v4132_v30 = vsel %vm12116_vm14, %v9760_v27, %v9862_v42  ;;  %v2004_v18 = vunpack.c.h.b16 %v1777_v55  ;;  %v9897_v21 = vor.u32 %v2528_v60, %v2525_v15  ;;  %vm9900_vm8 = vcmp.ne.s32.totalorder %v3233_v38, %v8559_v63  ;;  %vm9907_vm15 = vmpackc.low %vm3244_vm5, %vm9889_vm1  ;;  %v4636_v41 = vld [vmem:[#allocation2 + $0x34] sm:$0xf]  ;;  %5770 = vmatpush.bf16.msra.mxu0 %v7702_v25 }
 0x1ec   : > { %4292 = vmatmul.bf16.gmra.mxu0 %v4132_v30  ;;  %v2010_v46 = vunpack.c.l.b16 %v1787_v57  ;;  %v2011_v4 = vunpack.c.h.b16 %v1787_v57  ;;  %v4819_v16 = vshrl.u32 %v9692_v59, 16  ;;  %v12119_v27 = vmov 0  ;;  %vm9929_vm1 = vmpackc.low %vm9900_vm8, %vm9872_vm9  ;;  %v3873_v30 = vld [vmem:[#allocation2 + $0x80] sm:$0xf] }
 0x1ed   : > { %v12120_v27 = vsel %vm9907_vm15, 4294967295, %v12119_v27  ;;  %v9911_v8 = vrot.slane %v2992_v3, 7  ;;  %v2995_v60 = vshll.u32 %v9865_v34, 16  ;;  %vm9914_vm14 = vcmp.le.s32.totalorder %v971_v53, 14 }
 0x1ee   : > { %12121 = vst [vmem:[#allocation81_spill] sm:$0xff] %v12120_v27  ;;  %v9920_v15 = vrot.slane %v4823_v22, 1  ;;  %v2402_v59 = vpack.c.b16 %v2384_v24, %v2383_v6  ;;  %v4670_v31 = vsel %vm9907_vm15, %v4637_v51, 0  ;;  %v2981_v55 = vrot.slane %v9781_v29, 4  ;;  %v2663_v29 = vpop.f32.mrf.mxu2  ;;  %v3874_v51 = vld [vmem:[#allocation2 + $0x84] sm:$0xf] }
 0x1ef   : > { %v4134_v43 = vshrl.u32 %v4005_v48, 16  ;;  %v4137_v57 = vshll.u32 %v4005_v48, 16  ;;  %v12124_v34 = vmov 0  ;;  %vm9934_vm5 = vcmp.ne.s32.totalorder %v2003_v49, %v8556_v62  ;;  %v7701_v49 = vld [vmem:[#allocation9 + $0x1f0] sm:$0xff] }
 0x1f0   : > { %v12125_v34 = vsel %vm9929_vm1, 4294967295, %v12124_v34  ;;  %vm9939_vm6 = vcmp.ne.s32.totalorder %v2004_v18, %v8559_v63  ;;  %vm12131_vm0 = vsmask.f32 4352  ;;  %v4669_v53 = vsel %vm9929_vm1, %v4636_v41, 0  ;;  %v7626_v18 = vld [vmem:[#allocation9 + $0x98] sm:$0xff]  ;;  %5771 = vmatpush.bf16.msra.mxu0 %v7701_v49 }
 0x1f1   : > { %12126 = vst [vmem:[#allocation82_spill] sm:$0xff] %v12125_v34  ;;  %v2530_v0 = vsel %vm12131_vm0, %v9427_v13, %v9897_v21  ;;  %vm9949_vm9 = vcmp.ne.s32.totalorder %v2010_v46, %v8556_v62  ;;  %vm9954_vm8 = vcmp.ne.s32.totalorder %v2011_v4, %v8559_v63  ;;  %v9962_v13 = vadd.f32 %v2663_v29, %v9795_v61  ;;  %vm9970_vm0 = vmpackc.low %vm9939_vm6, %vm9934_vm5 }
 0x1f2   : > { %2690 = vmatmul.bf16.vlgmr.msra.gmra.mxu3 %v2530_v0  ;;  %v4752_v48 = vunpack.c.l.b16 %v4670_v31  ;;  %v2997_v19 = vor.u32 %v2995_v60, %v9911_v8  ;;  %v4821_v46 = vor.u32 %v4819_v16, %v9808_v5  ;;  %v2532_v4 = vshrl.u32 %v2402_v59, 16  ;;  %vm9978_vm12 = vmpackc.low %vm9954_vm8, %vm9949_vm9  ;;  %v9985_v16 = vpop.f32.mrf.mxu0  ;;  %v7700_v0 = vld [vmem:[#allocation9 + $0x1e8] sm:$0xff] }
 0x1f3   : > { %12136 = vst [vmem:[#allocation83_spill] sm:$0xff] %v9962_v13  ;;  %v2535_v25 = vshll.u32 %v2402_v59, 16  ;;  %v12137_v41 = vmov 0  ;;  %v4136_v61 = vrot.slane %v4134_v43, 3  ;;  %v4139_v29 = vrot.slane %v4137_v57, 4  ;;  %3726 = vmatpush.bf16.msrb.mxu3 %v7626_v18  ;;  %vm12145_vm5 = vmpackc.low %vm9914_vm14, %vm9914_vm14 }
 0x1f4   : > { %v12138_v41 = vsel %vm9970_vm0, 4294967295, %v12137_v41  ;;  %v4751_v31 = vunpack.c.l.b16 %v4669_v53  ;;  %v12140_v60 = vmov 0  ;;  %v2989_v5 = vsel %vm9208_vm7, %v2981_v55, %v8564_v2  ;;  %12143 = vst [vmem:[#allocation86_spill] sm:$0xff] %v9985_v16  ;;  %v10004_v53 = vpop.f32.mrf.mxu1  ;;  %5772 = vmatpush.bf16.msra.mxu0 %v7700_v0  ;;  %v4646_v13 = vld [vmem:[#allocation2 + $0x5c] sm:$0xf] }
 0x1f5   : > { %12139 = vst [vmem:[#allocation84_spill] sm:$0xff] %v12138_v41  ;;  %v12141_v60 = vsel %vm9978_vm12, 4294967295, %v12140_v60  ;;  %vm12144_vm6 = vsmask.f32 7424  ;;  %v3906_v43 = vsel %vm9970_vm0, %v3873_v30, 0  ;;  %v3907_v57 = vsel %vm9978_vm12, %v3874_v51, 0 }
 0x1f6   : > { %12142 = vst [vmem:[#allocation85_spill] sm:$0xff] %v12141_v60  ;;  %v4826_v59 = vsel %vm12144_vm6, %v4821_v46, %v9920_v15  ;;  %v2855_v22 = vsel %vm12145_vm5, 65537, %v11941_v58  ;;  %v9999_v55 = vpack.c.b16 %v4752_v48, %v4751_v31  ;;  %v2998_v3 = vsel %vm9208_vm7, %v9201_v7, %v2997_v19  ;;  %v1340_v30 = vld [vmem:[#allocation2 + $0x78] sm:$0xf]  ;;  %v1341_v51 = vld [vmem:[#allocation2 + $0x7c] sm:$0xf]  ;;  %v2666_v31 = vpop.f32.mrf.mxu2 }
 0x1f7   : > { %5010 = vmatmul.bf16.gmra.mxu2 %v4826_v59  ;;  %v2534_v6 = vrot.slane %v2532_v4, 3  ;;  %v2537_v24 = vrot.slane %v2535_v25, 4  ;;  %v3246_v49 = vunpack.c.l.b16 %v2989_v5  ;;  %v3247_v18 = vunpack.c.h.b16 %v2989_v5  ;;  %v7635_v46 = vld [vmem:[#allocation2 + $0x2c] sm:$0xff] }
 0x1f8   : > { %v10006_v38 = vor.u32 %v4139_v29, %v4136_v61  ;;  %v3988_v16 = vunpack.c.l.b16 %v3906_v43  ;;  %v3989_v59 = vunpack.c.l.b16 %v3907_v57  ;;  %v3010_v48 = vshrl.u32 %v2855_v22, 16  ;;  %4533 = vmatmul.bf16.gmra.mxu1 %v7635_v46  ;;  %v7625_v61 = vld [vmem:[#allocation9 + $0x90] sm:$0xff]  ;;  %5773 = vmatpush.bf16.msra.mxu0 %v7699_v1  ;;  %v7698_v60 = vld [vmem:[#allocation9 + $0x1d8] sm:$0xff] }
 0x1f9   : > { %v3253_v52 = vunpack.c.l.b16 %v2998_v3  ;;  %v10009_v19 = vadd.f32 %v2666_v31, %v9860_v10  ;;  %v2054_v4 = vsel %vm9970_vm0, %v1340_v30, 0  ;;  %v2055_v25 = vsel %vm9978_vm12, %v1341_v51, 0  ;;  %3727 = vmatpush.bf16.msrb.mxu3 %v7625_v61  ;;  %v3875_v43 = vld [vmem:[#allocation2 + $0x88] sm:$0xf] }
 0x1fa   : > { %v3254_v5 = vunpack.c.h.b16 %v2998_v3  ;;  %v4831_v29 = vshll.u32 %v9999_v55, 16  ;;  %vm10017_vm14 = vcmp.ne.s32.totalorder %v3246_v49, %v8556_v62  ;;  %vm10022_vm9 = vcmp.ne.s32.totalorder %v3247_v18, %v8559_v63  ;;  %v7697_v10 = vld [vmem:[#allocation9 + $0x1d0] sm:$0xff] }
 0x1fb   : > { %12146 = vst [vmem:[#allocation87_spill] sm:$0xff] %v10009_v19  ;;  %v3013_v57 = vshll.u32 %v2855_v22, 16  ;;  %vm12151_vm8 = vsmask.f32 4352  ;;  %v10029_v3 = vor.u32 %v2537_v24, %v2534_v6  ;;  %v4006_v30 = vpack.c.b16 %v3989_v59, %v3988_v16  ;;  %v10046_v16 = vpop.f32.mrf.mxu0 }
 0x1fc   : > { %v4141_v0 = vsel %vm12151_vm8, %v9862_v42, %v10006_v38  ;;  %v10031_v51 = vrot.slane %v3010_v48, 7  ;;  %v2385_v49 = vunpack.c.l.b16 %v2054_v4  ;;  %v2386_v46 = vunpack.c.l.b16 %v2055_v25  ;;  %12156 = vst [vmem:[#allocation88_spill] sm:$0xff] %v10046_v16  ;;  %v10048_v6 = vpop.f32.mrf.mxu1  ;;  %vm10057_vm8 = vmpackc.low %vm10022_vm9, %vm10017_vm14  ;;  %v4638_v4 = vld [vmem:[#allocation2 + $0x3c] sm:$0xf]  ;;  %5774 = vmatpush.bf16.msra.mxu0 %v7698_v60 }
 0x1fd   : > { %4297 = vmatmul.bf16.gmra.mxu0 %v4141_v0  ;;  %v2017_v18 = vunpack.c.l.b16 %v8575_v9  ;;  %v2018_v31 = vunpack.c.h.b16 %v8575_v9  ;;  %v4827_v22 = vshrl.u32 %v9834_v14, 16  ;;  %vm10037_vm6 = vcmp.ne.s32.totalorder %v3253_v52, %v8556_v62  ;;  %v4639_v9 = vld [vmem:[#allocation2 + $0x40] sm:$0xf] }
 0x1fe   : > { %vm10042_vm5 = vcmp.ne.s32.totalorder %v3254_v5, %v8559_v63  ;;  %v10050_v24 = vrot.slane %v4831_v29, 1  ;;  %v4143_v14 = vshrl.u32 %v4006_v30, 16  ;;  %v4146_v48 = vshll.u32 %v4006_v30, 16  ;;  %v2668_v5 = vpop.f32.mrf.mxu2 }
 0x1ff   : > { %v4829_v59 = vor.u32 %v4827_v22, %v9920_v15  ;;  %v12157_v52 = vmov 0  ;;  %v3015_v25 = vor.u32 %v3013_v57, %v10031_v51  ;;  %vm12160_vm12 = vsmask.f32 4352  ;;  %vm10069_vm0 = vmpackc.low %vm10042_vm5, %vm10037_vm6  ;;  %v7624_v57 = vld [vmem:[#allocation9 + $0x88] sm:$0xff] }
 0x200   : > { %v12158_v52 = vsel %vm10057_vm8, 4294967295, %v12157_v52  ;;  %v2539_v61 = vsel %vm12160_vm12, %v9897_v21, %v10029_v3  ;;  %v2403_v15 = vpack.c.b16 %v2386_v46, %v2385_v49  ;;  %v12161_v29 = vmov 0  ;;  %5775 = vmatpush.bf16.msra.mxu0 %v7697_v10  ;;  %3728 = vmatpush.bf16.msrb.mxu3 %v7624_v57 }
 0x201   : > { %12159 = vst [vmem:[#allocation89_spill] sm:$0xff] %v12158_v52  ;;  %v12162_v29 = vsel %vm10069_vm0, 4294967295, %v12161_v29  ;;  %vm2021_vm14 = vcmp.ne.s32.totalorder %v2017_v18, %v8556_v62  ;;  %vm2022_vm9 = vcmp.ne.s32.totalorder %v2018_v31, %v8559_v63  ;;  %v10076_v60 = vadd.f32 %v2668_v5, %v9918_v33  ;;  %v2726_v52 = vld [vmem:[#allocation2 + $0x40] sm:$0xf] }
 0x202   : > { %12163 = vst [vmem:[#allocation90_spill] sm:$0xff] %v12162_v29  ;;  %2695 = vmatmul.bf16.gmra.mxu3 %v2539_v61  ;;  %v4672_v21 = vsel %vm10069_vm0, %v4639_v9, 0  ;;  %vm12165_vm12 = vsmask.f32 7424  ;;  %v4671_v30 = vsel %vm10057_vm8, %v4638_v4, 0  ;;  %v4145_v49 = vrot.slane %v4143_v14, 3  ;;  %vm10084_vm6 = vmpackc.low %vm2022_vm9, %vm2021_vm14 }
 0x203   : > { %12164 = vst [vmem:[#allocation91_spill] sm:$0xff] %v10076_v60  ;;  %v4834_v0 = vsel %vm12165_vm12, %v4829_v59, %v10050_v24  ;;  %v4148_v46 = vrot.slane %v4146_v48, 4  ;;  %v12166_v18 = vmov 0  ;;  %v2999_v33 = vrot.slane %v9911_v8, 4  ;;  %v7696_v59 = vld [vmem:[#allocation9 + $0x1c8] sm:$0xff]  ;;  %v7636_v61 = vld [vmem:[#allocation2 + $0x34] sm:$0xff] }
 0x204   : > { %v12167_v18 = vsel %vm10084_vm6, 4294967295, %v12166_v18  ;;  %v3016_v31 = vsel %vm9208_vm7, %v9201_v7, %v3015_v25  ;;  %v2541_v22 = vshrl.u32 %v2403_v15, 16  ;;  %v2544_v42 = vshll.u32 %v2403_v15, 16  ;;  %v10094_v14 = vpop.f32.mrf.mxu1  ;;  %v1342_v4 = vld [vmem:[#allocation2 + $0x80] sm:$0xf]  ;;  %5776 = vmatpush.bf16.msra.mxu0 %v7696_v59 }
 0x205   : > { %12168 = vst [vmem:[#allocation92_spill] sm:$0xff] %v12167_v18  ;;  %v4754_v1 = vunpack.c.l.b16 %v4672_v21  ;;  %v3908_v9 = vsel %vm10084_vm6, %v3875_v43, 0  ;;  %v4753_v48 = vunpack.c.l.b16 %v4671_v30  ;;  %v3267_v5 = vunpack.c.l.b16 %v3016_v31  ;;  %v10101_v21 = vpop.f32.mrf.mxu0  ;;  %v4641_v59 = vld [vmem:[#allocation2 + $0x48] sm:$0xf]  ;;  %v4645_v60 = vld [vmem:[#allocation2 + $0x58] sm:$0xf] }
 0x206   : > { %v10096_v10 = vor.u32 %v4148_v46, %v4145_v49  ;;  %v3990_v8 = vunpack.c.l.b16 %v3908_v9  ;;  %v3007_v25 = vsel %vm9208_vm7, %v2999_v33, %v8564_v2  ;;  %v3268_v15 = vunpack.c.h.b16 %v3016_v31  ;;  %12169 = vst [vmem:[#allocation93_spill] sm:$0xff] %v10101_v21  ;;  %v2671_v43 = vpop.f32.mrf.mxu2  ;;  %v7695_v46 = vld [vmem:[#allocation9 + $0x1c0] sm:$0xff] }
 0x207   : > { %5015 = vmatmul.bf16.gmra.mxu2 %v4834_v0  ;;  %v2543_v57 = vrot.slane %v2541_v22, 3  ;;  %v2546_v0 = vrot.slane %v2544_v42, 4  ;;  %v10103_v16 = vpack.c.b16 %v4754_v1, %v4753_v48  ;;  %v10106_v30 = vadd.f32 %v2671_v43, %v10004_v53  ;;  %v7623_v9 = vld [vmem:[#allocation9 + $0x80] sm:$0xff] }
 0x208   : > { %4538 = vmatmul.bf16.gmra.mxu1 %v7636_v61  ;;  %v2056_v49 = vsel %vm10084_vm6, %v1342_v4, 0  ;;  %v3260_v41 = vunpack.c.l.b16 %v3007_v25  ;;  %v3261_v33 = vunpack.c.h.b16 %v3007_v25  ;;  %vm3271_vm5 = vcmp.ne.s32.totalorder %v3267_v5, %v8556_v62  ;;  %5777 = vmatpush.bf16.msra.mxu0 %v7695_v46  ;;  %v4640_v61 = vld [vmem:[#allocation2 + $0x44] sm:$0xf]  ;;  %v7694_v46 = vld [vmem:[#allocation9 + $0x1b8] sm:$0xff] }
 0x209   : > { %12170 = vst [vmem:[#allocation94_spill] sm:$0xff] %v10106_v30  ;;  %vm12171_vm14 = vsmask.f32 4352  ;;  %v4007_v22 = vpack.c.b16 %v3990_v8, %v3990_v8  ;;  %vm3272_vm9 = vcmp.ne.s32.totalorder %v3268_v15, %v8559_v63  ;;  %3729 = vmatpush.bf16.msrb.mxu3 %v7623_v9  ;;  %v10115_v53 = vor.u32 %v2546_v0, %v2543_v57 }
 0x20a   : > { %v4150_v31 = vsel %vm12171_vm14, %v10006_v38, %v10096_v10  ;;  %v4839_v42 = vshll.u32 %v10103_v16, 16  ;;  %v2387_v1 = vunpack.c.l.b16 %v2056_v49  ;;  %vm3264_vm12 = vcmp.ne.s32.totalorder %v3260_v41, %v8556_v62  ;;  %vm10122_vm11 = vmpackc.low %vm3272_vm9, %vm3271_vm5 }
 0x20b   : > { %vm3265_vm6 = vcmp.ne.s32.totalorder %v3261_v33, %v8559_v63  ;;  %v12172_v38 = vmov 0  ;;  %v4152_v4 = vshrl.u32 %v4007_v22, 16  ;;  %v4155_v5 = vshll.u32 %v4007_v22, 16 }
 0x20c   : > { %v10118_v48 = vpop.f32.mrf.mxu1  ;;  %v12173_v38 = vsel %vm10122_vm11, 4294967295, %v12172_v38  ;;  %v4674_v8 = vsel %vm10122_vm11, %v4641_v59, 0  ;;  %v2548_v15 = vsel %vm12171_vm14, %v10029_v3, %v10115_v53  ;;  %v4835_v43 = vshrl.u32 %v9999_v55, 16  ;;  %vm10137_vm5 = vmpackc.low %vm3265_vm6, %vm3264_vm12 }
 0x20d   : > { %4302 = vmatmul.bf16.gmra.mxu0 %v4150_v31  ;;  %12174 = vst [vmem:[#allocation95_spill] sm:$0xff] %v12173_v38  ;;  %v10132_v41 = vrot.slane %v4839_v42, 1  ;;  %v2404_v57 = vpack.c.b16 %v2387_v1, %v2387_v1  ;;  %v12176_v49 = vmov 0  ;;  %v847_v9 = vadd.s32 136, %v8503_v20  ;;  %v10142_v33 = vpop.f32.mrf.mxu0  ;;  %5489 = vmatpush.bf16.msra.mxu3 %v7694_v46 }
 0x20e   : > { %v2673_v25 = vpop.f32.mrf.mxu2  ;;  %v12177_v49 = vsel %vm10137_vm5, 4294967295, %v12176_v49  ;;  %12179 = vst [vmem:[#allocation98_spill] sm:$0xff] %v10142_v33  ;;  %v4837_v3 = vor.u32 %v4835_v43, %v10050_v24  ;;  %v4673_v55 = vsel %vm10137_vm5, %v4640_v61, 0  ;;  %v4756_v31 = vunpack.c.l.b16 %v4674_v8  ;;  %v2712_v43 = vld [vmem:[#allocation2 + $0x8] sm:$0xf] }
 0x20f   : > { %v10135_v0 = vadd.f32 %v2673_v25, %v10048_v6  ;;  %12178 = vst [vmem:[#allocation97_spill] sm:$0xff] %v12177_v49  ;;  %v4154_v22 = vrot.slane %v4152_v4, 3  ;;  %v4157_v42 = vrot.slane %v4155_v5, 4  ;;  %v2711_v6 = vld [vmem:[#allocation2 + $0x4] sm:$0xf]  ;;  %v985_v1 = vand.u32 15, %v847_v9 }
 0x210   : > { %v3017_v59 = vrot.slane %v10031_v51, 4  ;;  %vm12180_vm6 = vsmask.f32 7424  ;;  %v2553_v18 = vshll.u32 %v2404_v57, 16  ;;  %v4755_v33 = vunpack.c.l.b16 %v4673_v55  ;;  %v7637_v5 = vld [vmem:[#allocation2 + $0x3c] sm:$0xff] }
 0x211   : > { %12175 = vst [vmem:[#allocation96_spill] sm:$0xff] %v10135_v0  ;;  %v4842_v25 = vsel %vm12180_vm6, %v4837_v3, %v10132_v41  ;;  %vm1295_vm9 = vcmp.le.s32.totalorder %v985_v1, 14  ;;  %vm12181_vm12 = vnez %v11989_v17  ;;  %v4158_v61 = vor.u32 %v4157_v42, %v4154_v22  ;;  %v2714_v55 = vld [vmem:[#allocation2 + $0x10] sm:$0xf] }
 0x212   : > { %2700 = vmatmul.bf16.gmra.mxu3 %v2548_v15  ;;  %v2550_v15 = vshrl.u32 %v2404_v57, 16  ;;  %v3393_v4 = vsel %vm12181_vm12, %v2711_v6, 0  ;;  %vm2825_vm14 = vmpackc.low %vm1295_vm9, %vm1295_vm9  ;;  %v10154_v8 = vpack.c.b16 %v4756_v31, %v4755_v33  ;;  %v3025_v57 = vsel %vm9208_vm7, %v3017_v59, %v8564_v2  ;;  %v2713_v31 = vld [vmem:[#allocation2 + $0xc] sm:$0xf] }
 0x213   : > { %v2857_v51 = vsel %vm2825_vm14, 65537, %v11941_v58  ;;  %v2555_v3 = vrot.slane %v2553_v18, 4  ;;  %vm12183_vm6 = vnez %v11991_v35  ;;  %v3274_v42 = vunpack.c.l.b16 %v3025_v57 }
 0x214   : > { %v10150_v24 = vpop.f32.mrf.mxu1  ;;  %v2552_v9 = vrot.slane %v2550_v15, 3  ;;  %v3028_v1 = vshrl.u32 %v2857_v51, 16  ;;  %v3394_v33 = vsel %vm12183_vm6, %v2712_v43, 0  ;;  %v3275_v6 = vunpack.c.h.b16 %v3025_v57  ;;  %v7710_v43 = vld [vmem:[#allocation9 + $0x238] sm:$0xff] }
 0x215   : > { %vm12184_vm9 = vsmask.f32 4352  ;;  %v3396_v18 = vsel %vm9412_vm3, %v2714_v55, 0  ;;  %v3475_v15 = vunpack.c.l.b16 %v3393_v4  ;;  %v10169_v0 = vpop.f32.mrf.mxu0  ;;  %vm10180_vm14 = vcmp.ne.s32.totalorder %v3274_v42, %v8556_v62  ;;  %6252 = vmatpush.bf16.msra.mxu1 %v7710_v43  ;;  %v4643_v42 = vld [vmem:[#allocation2 + $0x50] sm:$0xf] }
 0x216   : > { %v2676_v46 = vpop.f32.mrf.mxu2  ;;  %v3030_v22 = vrot.slane %v3028_v1, 7  ;;  %v4159_v59 = vsel %vm12184_vm9, %v10096_v10, %v4158_v61  ;;  %12185 = vst [vmem:[#allocation100_spill] sm:$0xff] %v10169_v0  ;;  %v3395_v1 = vsel %vm9433_vm2, %v2713_v31, 0  ;;  %vm3279_vm9 = vcmp.ne.s32.totalorder %v3275_v6, %v8559_v63 }
 0x217   : > { %5020 = vmatmul.bf16.gmra.mxu2 %v4842_v25  ;;  %v3031_v25 = vshll.u32 %v2857_v51, 16  ;;  %v10161_v21 = vadd.f32 %v2676_v46, %v10094_v14  ;;  %v2556_v14 = vor.u32 %v2555_v3, %v2552_v9  ;;  %v3476_v51 = vunpack.c.l.b16 %v3394_v33  ;;  %vm10195_vm3 = vmpackc.low %vm3279_vm9, %vm10180_vm14 }
 0x218   : > { %4543 = vmatmul.bf16.gmra.mxu1 %v7637_v5  ;;  %v4847_v5 = vshll.u32 %v10154_v8, 16  ;;  %v4843_v61 = vshrl.u32 %v10103_v16, 16  ;;  %vm12188_vm2 = vsmask.f32 4352  ;;  %v3477_v31 = vunpack.c.l.b16 %v3395_v1 }
 0x219   : > { %12182 = vst [vmem:[#allocation99_spill] sm:$0xff] %v10161_v21  ;;  %v3033_v46 = vor.u32 %v3031_v25, %v3030_v22  ;;  %v3478_v21 = vunpack.c.l.b16 %v3396_v18  ;;  %v2557_v25 = vsel %vm12188_vm2, %v10115_v53, %v2556_v14  ;;  %v4642_v18 = vld [vmem:[#allocation2 + $0x4c] sm:$0xf]  ;;  %v849_v53 = vadd.s32 152, %v8503_v20 }
 0x21a   : > { %v10188_v33 = vrot.slane %v4847_v5, 1  ;;  %v4845_v6 = vor.u32 %v4843_v61, %v10132_v41  ;;  %v4675_v14 = vsel %vm10195_vm3, %v4642_v18, 0  ;;  %v3035_v43 = vrot.slane %v3030_v22, 4 }
 0x21b   : > { %v3034_v10 = vsel %vm9208_vm7, %v9201_v7, %v3033_v46  ;;  %vm12194_vm14 = vsmask.f32 7424  ;;  %v4757_v61 = vunpack.c.l.b16 %v4675_v14 }
 0x21c   : > { %v10174_v57 = vpop.f32.mrf.mxu1  ;;  %v3281_v9 = vunpack.c.l.b16 %v3034_v10  ;;  %v3282_v3 = vunpack.c.h.b16 %v3034_v10  ;;  %v4850_v1 = vsel %vm12194_vm14, %v4845_v6, %v10188_v33  ;;  %v3043_v22 = vsel %vm9208_vm7, %v3035_v43, %v8564_v2  ;;  %v2716_v6 = vld [vmem:[#allocation2 + $0x18] sm:$0xf] }
 0x21d   : > { %4307 = vmatmul.bf16.gmra.mxu0 %v4159_v59  ;;  %v3508_v59 = vpack.c.b16 %v3476_v51, %v3475_v15  ;;  %v10203_v15 = vpack.c.b16 %v3478_v21, %v3477_v31  ;;  %v999_v51 = vand.u32 15, %v849_v53  ;;  %v10215_v21 = vpop.f32.mrf.mxu0  ;;  %v2727_v31 = vld [vmem:[#allocation2 + $0x44] sm:$0xf]  ;;  %v3289_v0 = vunpack.c.h.b16 %v3043_v22 }
 0x21e   : > { %v2678_v55 = vpop.f32.mrf.mxu2  ;;  %vm3285_vm12 = vcmp.ne.s32.totalorder %v3281_v9, %v8556_v62  ;;  %vm3286_vm2 = vcmp.ne.s32.totalorder %v3282_v3, %v8559_v63  ;;  %12195 = vst [vmem:[#allocation102_spill] sm:$0xff] %v10215_v21  ;;  %v7638_v9 = vld [vmem:[#allocation2 + $0x44] sm:$0xff]  ;;  %v3288_v21 = vunpack.c.l.b16 %v3043_v22  ;;  %v3409_v43 = vsel %vm10195_vm3, %v2727_v31, 0 }
 0x21f   : > { %v10191_v46 = vadd.f32 %v2678_v55, %v10118_v48  ;;  %vm10205_vm6 = vmpackc.low %vm3286_vm2, %vm3285_vm12  ;;  %v3529_v10 = vshll.u32 %v3508_v59, 16  ;;  %vm1297_vm9 = vcmp.le.s32.totalorder %v999_v51, 14  ;;  %v3527_v3 = vshrl.u32 %v3508_v59, 16  ;;  %v7671_v59 = vld [vmem:[#allocation2 + $0x14] sm:$0xff] }
 0x220   : > { %v4676_v5 = vsel %vm10205_vm6, %v4643_v42, 0  ;;  %vm2827_vm12 = vmpackc.low %vm1297_vm9, %vm1297_vm9  ;;  %v3534_v55 = vshll.u32 %v10203_v15, 16  ;;  %v3491_v22 = vunpack.c.l.b16 %v3409_v43  ;;  %vm10247_vm2 = vcmp.ne.s32.totalorder %v3288_v21, %v8556_v62  ;;  %v2723_v48 = vld [vmem:[#allocation2 + $0x34] sm:$0xf] }
 0x221   : > { %12189 = vst [vmem:[#allocation101_spill] sm:$0xff] %v10191_v46  ;;  %v4758_v4 = vunpack.c.l.b16 %v4676_v5  ;;  %v3531_v42 = vrot.slane %v3529_v10, 1  ;;  %v3398_v10 = vsel %vm9512_vm13, %v2716_v6, 0  ;;  %vm10252_vm14 = vcmp.ne.s32.totalorder %v3289_v0, %v8559_v63  ;;  %v4644_v0 = vld [vmem:[#allocation2 + $0x54] sm:$0xf] }
 0x222   : > { %2705 = vmatmul.bf16.gmra.mxu3 %v2557_v25  ;;  %v2859_v25 = vsel %vm2827_vm12, 65537, %v11941_v58  ;;  %vm12201_vm9 = vnez %v12030_v32  ;;  %vm12203_vm12 = vsmask.f32 7424  ;;  %v4851_v46 = vshrl.u32 %v10154_v8, 16  ;;  %v2718_v8 = vld [vmem:[#allocation2 + $0x20] sm:$0xf] }
 0x223   : > { %v10224_v53 = vpack.c.b16 %v4758_v4, %v4757_v61  ;;  %v3046_v5 = vshrl.u32 %v2859_v25, 16  ;;  %v3049_v51 = vshll.u32 %v2859_v25, 16  ;;  %v3532_v4 = vor.u32 %v3531_v42, %v3527_v3 }
 0x224   : > { %v10217_v41 = vpop.f32.mrf.mxu1  ;;  %v10235_v61 = vrot.slane %v3534_v55, 1  ;;  %v2717_v55 = vld [vmem:[#allocation2 + $0x1c] sm:$0xf] }
 0x225   : > { %v4855_v25 = vshll.u32 %v10224_v53, 16 }
 0x226   : > { %v2681_v18 = vpop.f32.mrf.mxu2  ;;  %v3537_v21 = vsel %vm12203_vm12, %v3532_v4, %v10235_v61  ;;  %v7693_v4 = vld [vmem:[#allocation9 + $0x1b0] sm:$0xff] }
 0x227   : > { %5025 = vmatmul.bf16.gmra.mxu2 %v4850_v1  ;;  %v10227_v14 = vadd.f32 %v2681_v18, %v10150_v24  ;;  %v10229_v1 = vrot.slane %v3046_v5, 7  ;;  %v2715_v24 = vld [vmem:[#allocation2 + $0x14] sm:$0xf]  ;;  %v2728_v18 = vld [vmem:[#allocation2 + $0x48] sm:$0xf]  ;;  %v10263_v30 = vrot.slane %v4855_v25, 1  ;;  %5490 = vmatpush.bf16.msra.mxu3 %v7693_v4 }
 0x228   : > { %4548 = vmatmul.bf16.gmra.mxu1 %v7638_v9  ;;  %v3410_v5 = vsel %vm10205_vm6, %v2728_v18, 0  ;;  %v3397_v6 = vsel %vm12201_vm9, %v2715_v24, 0  ;;  %v10258_v18 = vpop.f32.mrf.mxu0  ;;  %vm10274_vm9 = vmpackc.low %vm10252_vm14, %vm10247_vm2  ;;  %v851_v25 = vadd.s32 168, %v8503_v20  ;;  %vm12209_vm2 = vsmask.f32 7424 }
 0x229   : > { %12196 = vst [vmem:[#allocation103_spill] sm:$0xff] %v10227_v14  ;;  %v3051_v9 = vor.u32 %v3049_v51, %v10229_v1  ;;  %v3492_v42 = vunpack.c.l.b16 %v3410_v5  ;;  %v3480_v51 = vunpack.c.l.b16 %v3398_v10  ;;  %v3479_v24 = vunpack.c.l.b16 %v3397_v6 }
 0x22a   : > { %12202 = vst [vmem:[#allocation104_spill] sm:$0xff] %v10258_v18  ;;  %v7672_v18 = vld [vmem:[#allocation2 + $0x1c] sm:$0xff] }
 0x22b   : > { %v3052_v31 = vsel %vm9208_vm7, %v9201_v7, %v3051_v9  ;;  %v10265_v11 = vpack.c.b16 %v3492_v42, %v3491_v22  ;;  %v12207_v22 = vmov 0  ;;  %v1013_v42 = vand.u32 15, %v851_v25 }
 0x22c   : > { %v10241_v14 = vpop.f32.mrf.mxu1  ;;  %v3296_v43 = vunpack.c.h.b16 %v3052_v31 }
 0x22d   : > { %5778 = vmatmul.bf16.vlgmr.msra.gmra.mxu0 %v7671_v59  ;;  %v3295_v59 = vunpack.c.l.b16 %v3052_v31  ;;  %v4677_v31 = vsel %vm10274_vm9, %v4644_v0, 0  ;;  %vm1299_vm14 = vcmp.le.s32.totalorder %v1013_v42, 14 }
 0x22e   : > { %v2683_v9 = vpop.f32.mrf.mxu2  ;;  %vm3300_vm13 = vcmp.ne.s32.totalorder %v3296_v43, %v8559_v63  ;;  %vm2829_vm11 = vmpackc.low %vm1299_vm14, %vm1299_vm14  ;;  %vm12220_vm14 = vsmask.f32 7424 }
 0x22f   : > { %v10268_v5 = vadd.f32 %v2683_v9, %v10174_v57  ;;  %vm3299_vm12 = vcmp.ne.s32.totalorder %v3295_v59, %v8556_v62  ;;  %v4853_v57 = vor.u32 %v4851_v46, %v10188_v33  ;;  %v3053_v59 = vrot.slane %v10229_v1, 4  ;;  %v10293_v33 = vpop.f32.mrf.mxu3  ;;  %v7639_v1 = vld [vmem:[#allocation2 + $0x4c] sm:$0xff] }
 0x230   : > { %vm10282_vm5 = vmpackc.low %vm3300_vm13, %vm3299_vm12  ;;  %v10295_v46 = vpack.c.b16 %v3480_v51, %v3479_v24  ;;  %vm12210_vm13 = vnez %v12046_v56  ;;  %vm12212_vm12 = vnez %v12050_v26  ;;  %v2861_v25 = vsel %vm2829_vm11, 65537, %v11941_v58 }
 0x231   : > { %12204 = vst [vmem:[#allocation105_spill] sm:$0xff] %v10268_v5  ;;  %v12208_v22 = vsel %vm10282_vm5, 4294967295, %v12207_v22  ;;  %v4678_v3 = vsel %vm10282_vm5, %v4645_v60, 0  ;;  %v4858_v43 = vsel %vm12209_vm2, %v4853_v57, %v10263_v30  ;;  %v3400_v9 = vsel %vm12210_vm13, %v2718_v8, 0  ;;  %v2729_v57 = vld [vmem:[#allocation2 + $0x4c] sm:$0xf] }
 0x232   : > { %3730 = vmatmul.bf16.vlgmr.msrb.gmra.mxu3 %v3537_v21  ;;  %v4760_v6 = vunpack.c.l.b16 %v4678_v3  ;;  %v4759_v60 = vunpack.c.l.b16 %v4677_v31  ;;  %v3399_v0 = vsel %vm12212_vm12, %v2717_v55, 0  ;;  %v3482_v4 = vunpack.c.l.b16 %v3400_v9  ;;  %v10313_v9 = vpop.f32.mrf.mxu0 }
 0x233   : > { %v3061_v51 = vsel %vm9208_vm7, %v3053_v59, %v8564_v2  ;;  %v3542_v8 = vshll.u32 %v10295_v46, 16  ;;  %v3064_v42 = vshrl.u32 %v2861_v25, 16  ;;  %v3067_v31 = vshll.u32 %v2861_v25, 16  ;;  %12214 = vst [vmem:[#allocation108_spill] sm:$0xff] %v10313_v9 }
 0x234   : > { %v10299_v21 = vpop.f32.mrf.mxu1  ;;  %v10308_v3 = vpack.c.b16 %v4760_v6, %v4759_v60  ;;  %v3481_v55 = vunpack.c.l.b16 %v3399_v0  ;;  %v3302_v5 = vunpack.c.l.b16 %v3061_v51  ;;  %v3303_v59 = vunpack.c.h.b16 %v3061_v51  ;;  %v2730_v51 = vld [vmem:[#allocation2 + $0x50] sm:$0xf] }
 0x235   : > { %12211 = vst [vmem:[#allocation106_spill] sm:$0xff] %v10299_v21  ;;  %v10315_v21 = vrot.slane %v3064_v42, 7  ;;  %v3411_v19 = vsel %vm10274_vm9, %v2729_v57, 0  ;;  %v3538_v6 = vshrl.u32 %v10203_v15, 16  ;;  %v3590_v42 = vshll.u32 %v10265_v11, 16 }
 0x236   : > { %v2686_v24 = vpop.f32.mrf.mxu2  ;;  %v10320_v60 = vpack.c.b16 %v3482_v4, %v3481_v55  ;;  %v4863_v0 = vshll.u32 %v10308_v3, 16  ;;  %v3412_v15 = vsel %vm10282_vm5, %v2730_v51, 0  ;;  %v3493_v4 = vunpack.c.l.b16 %v3411_v19 }
 0x237   : > { %5030 = vmatmul.bf16.gmra.mxu2 %v4858_v43  ;;  %v10311_v43 = vadd.f32 %v2686_v24, %v10217_v41  ;;  %v10322_v25 = vpop.f32.mrf.mxu3  ;;  %v10324_v41 = vrot.slane %v3542_v8, 1  ;;  %v7709_v24 = vld [vmem:[#allocation9 + $0x230] sm:$0xff]  ;;  %v3540_v9 = vor.u32 %v3538_v6, %v10235_v61  ;;  %vm10338_vm11 = vcmp.ne.s32.totalorder %v3302_v5, %v8556_v62 }
 0x238   : > { %4553 = vmatmul.bf16.gmra.mxu1 %v7639_v1  ;;  %v3069_v1 = vor.u32 %v3067_v31, %v10315_v21  ;;  %vm10343_vm2 = vcmp.ne.s32.totalorder %v3303_v59, %v8559_v63  ;;  %v3494_v61 = vunpack.c.l.b16 %v3412_v15  ;;  %v4859_v19 = vshrl.u32 %v10224_v53, 16  ;;  %v4647_v59 = vld [vmem:[#allocation2 + $0x60] sm:$0xf]  ;;  %v2719_v31 = vld [vmem:[#allocation2 + $0x24] sm:$0xf] }
 0x239   : > { %12213 = vst [vmem:[#allocation107_spill] sm:$0xff] %v10311_v43  ;;  %6253 = vmatpush.bf16.msra.mxu1 %v7709_v24  ;;  %v3550_v55 = vshll.u32 %v10320_v60, 16  ;;  %v3545_v5 = vsel %vm12220_vm14, %v3540_v9, %v10324_v41  ;;  %v10351_v43 = vrot.slane %v4863_v0, 1  ;;  %v10353_v40 = vrot.slane %v3590_v42, 1  ;;  %vm10364_vm12 = vmpackc.low %vm10343_vm2, %vm10338_vm11 }
 0x23a   : > { %v10355_v45 = vpack.c.b16 %v3494_v61, %v3493_v4  ;;  %v853_v9 = vadd.s32 184, %v8503_v20  ;;  %v4861_v0 = vor.u32 %v4859_v19, %v10263_v30  ;;  %v3594_v15 = vshrl.u32 %v10265_v11, 16  ;;  %v10385_v19 = vpop.f32.mrf.mxu0 }
 0x23b   : > { %v3071_v30 = vrot.slane %v10315_v21, 4  ;;  %12226 = vst [vmem:[#allocation111_spill] sm:$0xff] %v10385_v19  ;;  %v3401_v21 = vsel %vm9734_vm4, %v2719_v31, 0 }
 0x23c   : > { %v10332_v57 = vpop.f32.mrf.mxu1  ;;  %v3598_v4 = vshll.u32 %v10355_v45, 16  ;;  %v1027_v61 = vand.u32 15, %v853_v9  ;;  %v7640_v9 = vld [vmem:[#allocation2 + $0x54] sm:$0xff] }
 0x23d   : > { %5783 = vmatmul.bf16.gmra.mxu0 %v7672_v18  ;;  %12215 = vst [vmem:[#allocation109_spill] sm:$0xff] %v10332_v57  ;;  %v3070_v18 = vsel %vm9208_vm7, %v9201_v7, %v3069_v1  ;;  %v2720_v57 = vld [vmem:[#allocation2 + $0x28] sm:$0xf] }
 0x23e   : > { %v3309_v6 = vunpack.c.l.b16 %v3070_v18  ;;  %v3310_v51 = vunpack.c.h.b16 %v3070_v18  ;;  %v2688_v1 = vpop.f32.mrf.mxu2  ;;  %v3402_v42 = vsel %vm9747_vm10, %v2720_v57, 0  ;;  %v4679_v18 = vsel %vm10364_vm12, %v4646_v13, 0 }
 0x23f   : > { %v10358_v24 = vadd.f32 %v2688_v1, %v10241_v14  ;;  %v10389_v57 = vpop.f32.mrf.mxu3  ;;  %v10392_v1 = vrot.slane %v3598_v4, 1  ;;  %vm1301_vm11 = vcmp.le.s32.totalorder %v1027_v61, 14  ;;  %v3079_v4 = vsel %vm9208_vm7, %v3071_v30, %v8564_v2  ;;  %v2731_v61 = vld [vmem:[#allocation2 + $0x54] sm:$0xf] }
 0x240   : > { %vm3313_vm14 = vcmp.ne.s32.totalorder %v3309_v6, %v8556_v62  ;;  %vm3314_vm13 = vcmp.ne.s32.totalorder %v3310_v51, %v8559_v63  ;;  %v3596_v51 = vor.u32 %v3594_v15, %v10353_v40  ;;  %vm2831_vm2 = vmpackc.low %vm1301_vm11, %vm1301_vm11  ;;  %v3413_v28 = vsel %vm10364_vm12, %v2731_v61, 0 }
 0x241   : > { %12221 = vst [vmem:[#allocation110_spill] sm:$0xff] %v10358_v24  ;;  %vm10372_vm5 = vmpackc.low %vm3314_vm13, %vm3313_vm14  ;;  %vm12227_vm13 = vsmask.f32 7424  ;;  %v2863_v15 = vsel %vm2831_vm2, 65537, %v11941_v58  ;;  %v7673_v24 = vld [vmem:[#allocation2 + $0x24] sm:$0xff] }
 0x242   : > { %3735 = vmatmul.bf16.gmra.mxu3 %v3545_v5  ;;  %v4680_v8 = vsel %vm10372_vm5, %v4647_v59, 0  ;;  %v4866_v6 = vsel %vm12227_vm13, %v4861_v0, %v10351_v43  ;;  %v4761_v5 = vunpack.c.l.b16 %v4679_v18  ;;  %vm12229_vm14 = vmmov %vm12227_vm13  ;;  %v3546_v0 = vshrl.u32 %v10295_v46, 16 }
 0x243   : > { %v4762_v11 = vunpack.c.l.b16 %v4680_v8  ;;  %v10400_v59 = vsel %vm12229_vm14, %v3596_v51, %v10392_v1  ;;  %v3484_v8 = vunpack.c.l.b16 %v3402_v42  ;;  %v3552_v18 = vrot.slane %v3550_v55, 1 }
 0x244   : > { %v10394_v13 = vpop.f32.mrf.mxu1  ;;  %12230 = vst [vmem:[#allocation113_spill] sm:$0xff] %v10400_v59  ;;  %v3082_v31 = vshrl.u32 %v2863_v15, 16  ;;  %v3085_v19 = vshll.u32 %v2863_v15, 16  ;;  %v3548_v51 = vor.u32 %v3546_v0, %v10324_v41  ;;  %v3316_v46 = vunpack.c.l.b16 %v3079_v4  ;;  %v7643_v59 = vld [vmem:[#allocation2 + $0x6c] sm:$0xff] }
 0x245   : > { %12228 = vst [vmem:[#allocation112_spill] sm:$0xff] %v10394_v13  ;;  %v3483_v13 = vunpack.c.l.b16 %v3401_v21  ;;  %v3317_v42 = vunpack.c.h.b16 %v3079_v4  ;;  %v3554_v55 = vshrl.u32 %v10320_v60, 16  ;;  %v10422_v21 = vld [vmem:[#allocation2 + $0x2c] sm:$0xf]  ;;  %v4867_v0 = vshrl.u32 %v10308_v3, 16 }
 0x246   : > { %v10410_v47 = vrot.slane %v3082_v31, 7  ;;  %vm10437_vm11 = vcmp.ne.s32.totalorder %v3316_v46, %v8556_v62  ;;  %v4649_v46 = vld [vmem:[#allocation2 + $0x68] sm:$0xf] }
 0x247   : > { %5035 = vmatmul.bf16.gmra.mxu2 %v4866_v6  ;;  %v10407_v6 = vpack.c.b16 %v4762_v11, %v4761_v5  ;;  %v10414_v44 = vpack.c.b16 %v3484_v8, %v3483_v13  ;;  %v10417_v30 = vpop.f32.mrf.mxu3  ;;  %v3553_v11 = vsel %vm12227_vm13, %v3548_v51, %v3552_v18  ;;  %v10425_v15 = vor.u32 %v3554_v55, %v3552_v18  ;;  %v2722_v13 = vld [vmem:[#allocation2 + $0x30] sm:$0xf]  ;;  %v10429_v8 = vpop.f32.mrf.mxu0  ;;  %v4648_v51 = vld [vmem:[#allocation2 + $0x64] sm:$0xf] }
 0x248   : > { %4558 = vmatmul.bf16.gmra.mxu1 %v7640_v9  ;;  %v3087_v5 = vor.u32 %v3085_v19, %v10410_v47  ;;  %v2732_v9 = vld [vmem:[#allocation2 + $0x58] sm:$0xf]  ;;  %12231 = vst [vmem:[#allocation114_spill] sm:$0xff] %v10429_v8  ;;  %vm3321_vm2 = vcmp.ne.s32.totalorder %v3317_v42, %v8559_v63  ;;  %v3403_v55 = vsel %vm9929_vm1, %v10422_v21, 0  ;;  %v3404_v8 = vsel %vm9907_vm15, %v2722_v13, 0 }
 0x249   : > { %v4871_v41 = vshll.u32 %v10407_v6, 16  ;;  %v3414_v60 = vsel %vm10372_vm5, %v2732_v9, 0  ;;  %v3558_v18 = vshll.u32 %v10414_v44, 16  ;;  %v4869_v9 = vor.u32 %v4867_v0, %v10351_v43  ;;  %v5908_v42 = vld [vmem:[#allocation2 + $0x58] sm:$0xf]  ;;  %vm10455_vm14 = vmpackc.low %vm3321_vm2, %vm10437_vm11  ;;  %v7692_v43 = vld [vmem:[#allocation9 + $0x1a8] sm:$0xff] }
 0x24a   : > { %v3088_v19 = vsel %vm9208_vm7, %v9201_v7, %v3087_v5  ;;  %v3496_v3 = vunpack.c.l.b16 %v3414_v60  ;;  %v3602_v21 = vshrl.u32 %v10355_v45, 16  ;;  %v12237_v0 = vmov 0  ;;  %5491 = vmatpush.bf16.msra.mxu3 %v7692_v43 }
 0x24b   : > { %v3323_v31 = vunpack.c.l.b16 %v3088_v19  ;;  %v10447_v5 = vrot.slane %v4871_v41, 1  ;;  %v855_v41 = vadd.s32 200, %v8503_v20  ;;  %v857_v13 = vadd.s32 216, %v8503_v20 }
 0x24c   : > { %v10431_v4 = vpop.f32.mrf.mxu1  ;;  %v3089_v45 = vrot.slane %v10410_v47, 4  ;;  %v3486_v26 = vunpack.c.l.b16 %v3404_v8  ;;  %v10506_v16 = vrot.slane %v3558_v18, 1 }
 0x24d   : > { %5788 = vmatmul.bf16.gmra.mxu0 %v7673_v24  ;;  %v3495_v24 = vunpack.c.l.b16 %v3413_v28  ;;  %12232 = vst [vmem:[#allocation115_spill] sm:$0xff] %v10431_v4  ;;  %v3324_v28 = vunpack.c.h.b16 %v3088_v19  ;;  %vm3327_vm13 = vcmp.ne.s32.totalorder %v3323_v31, %v8556_v62  ;;  %v5907_v31 = vld [vmem:[#allocation2 + $0x54] sm:$0xf]  ;;  %v1055_v56 = vand.u32 15, %v857_v13  ;;  %v7641_v13 = vld [vmem:[#allocation2 + $0x5c] sm:$0xff] }
 0x24e   : > { %v5940_v8 = vsel %vm10195_vm3, %v5907_v31, 0 }
 0x24f   : > { %v10451_v4 = vpack.c.b16 %v3496_v3, %v3495_v24  ;;  %vm3328_vm1 = vcmp.ne.s32.totalorder %v3324_v28, %v8559_v63  ;;  %v859_v24 = vadd.s32 232, %v8503_v20  ;;  %v1041_v3 = vand.u32 15, %v855_v41  ;;  %v10479_v34 = vpop.f32.mrf.mxu3 }
 0x250   : > { %vm10463_vm15 = vmpackc.low %vm3328_vm1, %vm3327_vm13  ;;  %v5941_v28 = vsel %vm10205_vm6, %v5908_v42, 0  ;;  %vm12239_vm1 = vsmask.f32 7424  ;;  %vm10486_vm6 = vcmp.le.s32.totalorder %v1055_v56, 14  ;;  %v6022_v18 = vunpack.c.l.b16 %v5940_v8 }
 0x251   : > { %v12238_v0 = vsel %vm10463_vm15, 4294967295, %v12237_v0  ;;  %v3606_v19 = vshll.u32 %v10451_v4, 16  ;;  %v4682_v61 = vsel %vm10463_vm15, %v4649_v46, 0  ;;  %vm1303_vm11 = vcmp.le.s32.totalorder %v1041_v3, 14  ;;  %vm2835_vm3 = vmpackc.low %vm10486_vm6, %vm10486_vm6 }
 0x252   : > { %3740 = vmatmul.bf16.gmra.mxu3 %v3553_v11  ;;  %v4681_v11 = vsel %vm10455_vm14, %v4648_v51, 0  ;;  %v4874_v51 = vsel %vm12239_vm1, %v4869_v9, %v10447_v5  ;;  %v4764_v27 = vunpack.c.l.b16 %v4682_v61  ;;  %v1069_v39 = vand.u32 15, %v859_v24  ;;  %vm2833_vm2 = vmpackc.low %vm1303_vm11, %vm1303_vm11 }
 0x253   : > { %v3604_v46 = vor.u32 %v3602_v21, %v10392_v1  ;;  %v10482_v43 = vrot.slane %v3606_v19, 1  ;;  %v4763_v41 = vunpack.c.l.b16 %v4681_v11  ;;  %v6023_v9 = vunpack.c.l.b16 %v5941_v28  ;;  %v10504_v11 = vpop.f32.mrf.mxu0 }
 0x254   : > { %v10484_v47 = vpop.f32.mrf.mxu1  ;;  %v2865_v24 = vsel %vm2833_vm2, 65537, %v11941_v58  ;;  %v3097_v1 = vsel %vm9208_vm7, %v3089_v45, %v8564_v2  ;;  %vm10496_vm13 = vcmp.le.s32.totalorder %v1069_v39, 14  ;;  %12246 = vst [vmem:[#allocation118_spill] sm:$0xff] %v10504_v11  ;;  %v3485_v39 = vunpack.c.l.b16 %v3403_v55  ;;  %vm12247_vm2 = vmmov %vm12239_vm1 }
 0x255   : > { %12240 = vst [vmem:[#allocation116_spill] sm:$0xff] %v10484_v47  ;;  %v10502_v56 = vsel %vm12239_vm1, %v3604_v46, %v10482_v43  ;;  %v10508_v19 = vpack.c.b16 %v4764_v27, %v4763_v41  ;;  %v3100_v61 = vshrl.u32 %v2865_v24, 16  ;;  %v3103_v3 = vshll.u32 %v2865_v24, 16  ;;  %vm2837_vm11 = vmpackc.low %vm10496_vm13, %vm10496_vm13  ;;  %v7674_v27 = vld [vmem:[#allocation2 + $0x2c] sm:$0xff]  ;;  %v2724_v41 = vld [vmem:[#allocation2 + $0x38] sm:$0xf] }
 0x256   : > { %12245 = vst [vmem:[#allocation117_spill] sm:$0xff] %v10502_v56  ;;  %v3405_v45 = vsel %vm10057_vm8, %v2723_v48, 0  ;;  %v2867_v31 = vsel %vm2835_vm3, 65537, %v11941_v58  ;;  %v3331_v46 = vunpack.c.h.b16 %v3097_v1  ;;  %v10519_v24 = vpack.c.b16 %v3486_v26, %v3485_v39  ;;  %v4651_v56 = vld [vmem:[#allocation2 + $0x70] sm:$0xf] }
 0x257   : > { %5040 = vmatmul.bf16.gmra.mxu2 %v4874_v51  ;;  %v3102_v28 = vrot.slane %v3100_v61, 7  ;;  %v3330_v51 = vunpack.c.l.b16 %v3097_v1  ;;  %v3118_v42 = vshrl.u32 %v2867_v31, 16  ;;  %v3562_v55 = vshrl.u32 %v10414_v44, 16  ;;  %v10525_v11 = vpop.f32.mrf.mxu3  ;;  %v7708_v61 = vld [vmem:[#allocation9 + $0x228] sm:$0xff] }
 0x258   : > { %4563 = vmatmul.bf16.gmra.mxu1 %v7641_v13  ;;  %v2869_v13 = vsel %vm2837_vm11, 65537, %v11941_v58  ;;  %v10523_v48 = vpack.c.b16 %v6023_v9, %v6022_v18  ;;  %v3561_v8 = vsel %vm12247_vm2, %v10425_v15, %v10506_v16  ;;  %v4879_v21 = vshll.u32 %v10508_v19, 16 }
 0x259   : > { %v3105_v1 = vor.u32 %v3103_v3, %v3102_v28  ;;  %v3487_v47 = vunpack.c.l.b16 %v3405_v45  ;;  %v3406_v26 = vsel %vm10069_vm0, %v2724_v41, 0  ;;  %v3120_v44 = vrot.slane %v3118_v42, 7  ;;  %6254 = vmatpush.bf16.msra.mxu1 %v7708_v61 }
 0x25a   : > { %v3136_v39 = vshrl.u32 %v2869_v13, 16  ;;  %v861_v9 = vadd.s32 248, %v8503_v20  ;;  %vm10540_vm6 = vcmp.ne.s32.totalorder %v3330_v51, %v8556_v62  ;;  %vm10545_vm13 = vcmp.ne.s32.totalorder %v3331_v46, %v8559_v63  ;;  %v2725_v46 = vld [vmem:[#allocation2 + $0x3c] sm:$0xf] }
 0x25b   : > { %v3121_v45 = vshll.u32 %v2867_v31, 16  ;;  %v3566_v20 = vshll.u32 %v10519_v24, 16  ;;  %v3139_v29 = vshll.u32 %v2869_v13, 16  ;;  %v10551_v51 = vrot.slane %v4879_v21, 1  ;;  %vm10559_vm1 = vmpackc.low %vm10545_vm13, %vm10540_vm6  ;;  %v10565_v21 = vpop.f32.mrf.mxu0 }
 0x25c   : > { %v10534_v18 = vpop.f32.mrf.mxu1  ;;  %v3107_v36 = vrot.slane %v3102_v28, 4  ;;  %v10553_v32 = vrot.slane %v3136_v39, 7  ;;  %v3125_v13 = vrot.slane %v3120_v44, 4  ;;  %12255 = vst [vmem:[#allocation120_spill] sm:$0xff] %v10565_v21  ;;  %vm12258_vm6 = vnez %v12173_v38 }
 0x25d   : > { %5793 = vmatmul.bf16.gmra.mxu0 %v7674_v27  ;;  %12248 = vst [vmem:[#allocation119_spill] sm:$0xff] %v10534_v18  ;;  %v3106_v27 = vsel %vm9208_vm7, %v9201_v7, %v3105_v1  ;;  %v4650_v18 = vld [vmem:[#allocation2 + $0x6c] sm:$0xf]  ;;  %v4875_v1 = vshrl.u32 %v10407_v6, 16  ;;  %v3488_v6 = vunpack.c.l.b16 %v3406_v26  ;;  %v3123_v39 = vor.u32 %v3121_v45, %v3120_v44  ;;  %v2733_v45 = vld [vmem:[#allocation2 + $0x5c] sm:$0xf] }
 0x25e   : > { %v3337_v41 = vunpack.c.l.b16 %v3106_v27  ;;  %v3338_v42 = vunpack.c.h.b16 %v3106_v27  ;;  %v4683_v61 = vsel %vm10559_vm1, %v4650_v18, 0  ;;  %v1083_v27 = vand.u32 15, %v861_v9 }
 0x25f   : > { %v4877_v28 = vor.u32 %v4875_v1, %v10447_v5  ;;  %v3568_v15 = vrot.slane %v3566_v20, 1  ;;  %v3408_v26 = vsel %vm12258_vm6, %v2726_v52, 0  ;;  %vm12259_vm13 = vsmask.f32 7424 }
 0x260   : > { %vm3341_vm3 = vcmp.ne.s32.totalorder %v3337_v41, %v8556_v62  ;;  %vm3342_vm11 = vcmp.ne.s32.totalorder %v3338_v42, %v8559_v63  ;;  %v3141_v41 = vor.u32 %v3139_v29, %v10553_v32  ;;  %v10581_v42 = vpop.f32.mrf.mxu3  ;;  %v3564_v1 = vor.u32 %v3562_v55, %v10506_v16 }
 0x261   : > { %vm10568_vm2 = vmpackc.low %vm3342_vm11, %vm3341_vm3  ;;  %v4882_v5 = vsel %vm12259_vm13, %v4877_v28, %v10551_v51  ;;  %v3115_v44 = vsel %vm9208_vm7, %v3107_v36, %v8564_v2  ;;  %vm12260_vm3 = vnez %v12177_v49  ;;  %v10589_v52 = vpack.c.b16 %v3488_v6, %v3487_v47  ;;  %v7642_v47 = vld [vmem:[#allocation2 + $0x64] sm:$0xff] }
 0x262   : > { %3745 = vmatmul.bf16.gmra.mxu3 %v3561_v8  ;;  %v4684_v3 = vsel %vm10568_vm2, %v4651_v56, 0  ;;  %v3407_v9 = vsel %vm12260_vm3, %v2725_v46, 0  ;;  %v4765_v56 = vunpack.c.l.b16 %v4683_v61  ;;  %v3133_v29 = vsel %vm9208_vm7, %v3125_v13, %v8564_v2  ;;  %v2737_v46 = vld [vmem:[#allocation2 + $0x6c] sm:$0xf] }
 0x263   : > { %v4766_v18 = vunpack.c.l.b16 %v4684_v3  ;;  %v3124_v16 = vsel %vm9208_vm7, %v9201_v7, %v3123_v39  ;;  %v3490_v36 = vunpack.c.l.b16 %v3408_v26  ;;  %v3142_v55 = vsel %vm9208_vm7, %v9201_v7, %v3141_v41  ;;  %v2734_v39 = vld [vmem:[#allocation2 + $0x60] sm:$0xf] }
 0x264   : > { %v10594_v20 = vpop.f32.mrf.mxu1  ;;  %vm10602_vm11 = vcmp.le.s32.totalorder %v1083_v27, 14  ;;  %v3569_v6 = vsel %vm12259_vm13, %v3564_v1, %v3568_v15  ;;  %v3570_v13 = vshrl.u32 %v10519_v24, 16  ;;  %v3344_v28 = vunpack.c.l.b16 %v3115_v44  ;;  %v7675_v24 = vld [vmem:[#allocation2 + $0x34] sm:$0xff] }
 0x265   : > { %12261 = vst [vmem:[#allocation121_spill] sm:$0xff] %v10594_v20  ;;  %v3345_v61 = vunpack.c.h.b16 %v3115_v44  ;;  %v3489_v3 = vunpack.c.l.b16 %v3407_v9  ;;  %v3359_v21 = vunpack.c.h.b16 %v3133_v29  ;;  %v3415_v26 = vsel %vm10455_vm14, %v2733_v45, 0  ;;  %vm12274_vm0 = vmpackc.low %vm10602_vm11, %vm10602_vm11  ;;  %v10690_v45 = vpop.f32.mrf.mxu2 }
 0x266   : > { %v10610_v41 = vpack.c.b16 %v4766_v18, %v4765_v56  ;;  %v3351_v27 = vunpack.c.l.b16 %v3124_v16  ;;  %v3352_v20 = vunpack.c.h.b16 %v3124_v16  ;;  %v3365_v49 = vunpack.c.l.b16 %v3142_v55  ;;  %v2735_v16 = vld [vmem:[#allocation2 + $0x64] sm:$0xf]  ;;  %12286 = vst [vmem:[#allocation125_spill] sm:$0xff] %v10690_v45  ;;  %v7691_v45 = vld [vmem:[#allocation9 + $0x1a0] sm:$0xff] }
 0x267   : > { %5045 = vmatmul.bf16.gmra.mxu2 %v4882_v5  ;;  %v3358_v5 = vunpack.c.l.b16 %v3133_v29  ;;  %v10615_v1 = vor.u32 %v3570_v13, %v3568_v15  ;;  %v3574_v44 = vshll.u32 %v10589_v52, 16  ;;  %v10618_v9 = vpack.c.b16 %v3490_v36, %v3489_v3  ;;  %v10632_v13 = vpop.f32.mrf.mxu0  ;;  %5492 = vmatpush.bf16.msra.mxu3 %v7691_v45 }
 0x268   : > { %4568 = vmatmul.bf16.gmra.mxu1 %v7642_v47  ;;  %v3366_v29 = vunpack.c.h.b16 %v3142_v55  ;;  %vm10621_vm3 = vcmp.ne.s32.totalorder %v3344_v28, %v8556_v62  ;;  %vm10626_vm6 = vcmp.ne.s32.totalorder %v3345_v61, %v8559_v63  ;;  %v3416_v18 = vsel %vm10463_vm15, %v2734_v39, 0  ;;  %v2736_v47 = vld [vmem:[#allocation2 + $0x68] sm:$0xf]  ;;  %12268 = vst [vmem:[#allocation122_spill] sm:$0xff] %v10632_v13  ;;  %v10634_v36 = vpop.f32.mrf.mxu3  ;;  %v2738_v13 = vld [vmem:[#allocation2 + $0x70] sm:$0xf] }
 0x269   : > { %v3497_v15 = vunpack.c.l.b16 %v3415_v26  ;;  %12269 = vst [vmem:[#allocation123_spill] sm:$0xff] %v10634_v36  ;;  %v4883_v55 = vshrl.u32 %v10508_v19, 16  ;;  %vm10638_vm13 = vcmp.ne.s32.totalorder %v3358_v5, %v8556_v62  ;;  %vm10643_vm8 = vcmp.ne.s32.totalorder %v3359_v21, %v8559_v63 }
 0x26a   : > { %v10653_v3 = vsel %vm12274_vm0, 65537, %v11941_v58  ;;  %v4887_v19 = vshll.u32 %v10610_v41, 16  ;;  %vm10657_vm4 = vcmp.ne.s32.totalorder %v3351_v27, %v8556_v62  ;;  %vm10662_vm10 = vcmp.ne.s32.totalorder %v3352_v20, %v8559_v63  ;;  %vm10677_vm0 = vmpackc.low %vm10626_vm6, %vm10621_vm3 }
 0x26b   : > { %vm10667_vm15 = vcmp.ne.s32.totalorder %v3365_v49, %v8556_v62  ;;  %vm10682_vm11 = vcmp.ne.s32.totalorder %v3366_v29, %v8559_v63  ;;  %v3498_v49 = vunpack.c.l.b16 %v3416_v18  ;;  %v3417_v27 = vsel %vm10559_vm1, %v2735_v16, 0  ;;  %vm10700_vm6 = vmpackc.low %vm10643_vm8, %vm10638_vm13  ;;  %v2739_v16 = vld [vmem:[#allocation2 + $0x74] sm:$0xf] }
 0x26c   : > { %v10671_v58 = vpop.f32.mrf.mxu1  ;;  %v4885_v56 = vor.u32 %v4883_v55, %v10551_v51  ;;  %v3610_v18 = vshrl.u32 %v10451_v4, 16  ;;  %vm10709_vm3 = vmpackc.low %vm10662_vm10, %vm10657_vm4  ;;  %v3499_v28 = vunpack.c.l.b16 %v3417_v27  ;;  %v3419_v38 = vsel %vm10677_vm0, %v2737_v46, 0  ;;  %v2740_v46 = vld [vmem:[#allocation2 + $0x78] sm:$0xf]  ;;  %v4657_v51 = vld [vmem:[#allocation2 + $0x88] sm:$0xf] }
 0x26d   : > { %5798 = vmatmul.bf16.gmra.mxu0 %v7675_v24  ;;  %12281 = vst [vmem:[#allocation124_spill] sm:$0xff] %v10671_v58  ;;  %v3418_v24 = vsel %vm10568_vm2, %v2736_v47, 0  ;;  %v10693_v58 = vrot.slane %v3574_v44, 1  ;;  %v4652_v44 = vld [vmem:[#allocation2 + $0x74] sm:$0xf]  ;;  %v3519_v55 = vpack.c.b16 %v3498_v49, %v3497_v15  ;;  %vm10719_vm8 = vmpackc.low %vm10682_vm11, %vm10667_vm15  ;;  %v3154_v5 = vshrl.u32 %v10653_v3, 16 }
 0x26e   : > { %v4653_v47 = vld [vmem:[#allocation2 + $0x78] sm:$0xf]  ;;  %v3500_v61 = vunpack.c.l.b16 %v3418_v24  ;;  %v3157_v21 = vshll.u32 %v10653_v3, 16  ;;  %v3612_v15 = vor.u32 %v3610_v18, %v10482_v43  ;;  %v3420_v49 = vsel %vm10709_vm3, %v2738_v13, 0 }
 0x26f   : > { %v3614_v27 = vshll.u32 %v3519_v55, 16  ;;  %v3421_v20 = vsel %vm10700_vm6, %v2739_v16, 0  ;;  %v4685_v24 = vsel %vm10677_vm0, %v4652_v44, 0  ;;  %v4686_v54 = vsel %vm10709_vm3, %v4653_v47, 0  ;;  %v10745_v45 = vpop.f32.mrf.mxu0 }
 0x270   : > { %v3520_v39 = vpack.c.b16 %v3500_v61, %v3499_v28  ;;  %v3501_v3 = vunpack.c.l.b16 %v3419_v38  ;;  %v3502_v43 = vunpack.c.l.b16 %v3420_v49  ;;  %vm12293_vm4 = vsmask.f32 7424  ;;  %12294 = vst [vmem:[#allocation126_spill] sm:$0xff] %v10745_v45 }
 0x271   : > { %v3618_v37 = vshrl.u32 %v3519_v55, 16  ;;  %v3422_v28 = vsel %vm10719_vm8, %v2740_v46, 0  ;;  %v10743_v44 = vrot.slane %v3154_v5, 7  ;;  %v3503_v47 = vunpack.c.l.b16 %v3421_v20  ;;  %vm12295_vm10 = vmmov %vm12293_vm4  ;;  %v4654_v46 = vld [vmem:[#allocation2 + $0x7c] sm:$0xf] }
 0x272   : > { %3750 = vmatmul.bf16.gmra.mxu3 %v3569_v6  ;;  %v10728_v6 = vrot.slane %v4887_v19, 1  ;;  %v3616_v19 = vrot.slane %v3614_v27, 1  ;;  %v3622_v61 = vshll.u32 %v3520_v39, 16  ;;  %v4767_v38 = vunpack.c.l.b16 %v4685_v24  ;;  %vm12297_vm15 = vmmov %vm12293_vm4  ;;  %v10757_v24 = vpop.f32.mrf.mxu2 }
 0x273   : > { %v4768_v49 = vunpack.c.l.b16 %v4686_v54  ;;  %v3521_v36 = vpack.c.b16 %v3502_v43, %v3501_v3  ;;  %v3577_v5 = vsel %vm12297_vm15, %v10615_v1, %v10693_v58  ;;  %v3578_v20 = vshrl.u32 %v10589_v52, 16  ;;  %vm12298_vm13 = vmmov %vm12293_vm4  ;;  %v7676_v43 = vld [vmem:[#allocation2 + $0x3c] sm:$0xff] }
 0x274   : > { %v4890_v13 = vsel %vm12293_vm4, %v4885_v56, %v10728_v6  ;;  %v10748_v56 = vsel %vm12295_vm10, %v3612_v15, %v3616_v19  ;;  %v3620_v27 = vor.u32 %v3618_v37, %v3616_v19  ;;  %v3143_v54 = vrot.slane %v10553_v32, 4  ;;  %v4655_v37 = vld [vmem:[#allocation2 + $0x80] sm:$0xf]  ;;  %vm12300_vm11 = vmmov %vm12293_vm4 }
 0x275   : > { %v2691_v18 = vpop.f32.mrf.mxu3  ;;  %v10750_v55 = vpop.f32.mrf.mxu1  ;;  %v3580_v1 = vor.u32 %v3578_v20, %v10693_v58  ;;  %v12299_v52 = vshll.u32 %v10618_v9, 16  ;;  %v4688_v58 = vsel %vm10719_vm8, %v4655_v37, 0  ;;  %v6120_v10 = vshll.u32 %v10523_v48, 16 }
 0x276   : > { %v10741_v16 = vadd.f32 %v2691_v18, %v10293_v33  ;;  %12296 = vst [vmem:[#allocation127_spill] sm:$0xff] %v10750_v55  ;;  %v3626_v33 = vshrl.u32 %v3520_v39, 16  ;;  %v3504_v18 = vunpack.c.l.b16 %v3422_v28  ;;  %v5909_v39 = vld [vmem:[#allocation2 + $0x5c] sm:$0xf]  ;;  %v10764_v28 = vpack.c.b16 %v4768_v49, %v4767_v38 }
 0x277   : > { %5050 = vmatmul.bf16.gmra.mxu2 %v4890_v13  ;;  %v3624_v13 = vrot.slane %v3622_v61, 1  ;;  %v3630_v61 = vshll.u32 %v3521_v36, 16  ;;  %v10769_v32 = vrot.slane %v12299_v52, 1  ;;  %v4891_v38 = vshrl.u32 %v10610_v41, 16  ;;  %v7707_v49 = vld [vmem:[#allocation9 + $0x220] sm:$0xff]  ;;  %v10811_v52 = vpop.f32.mrf.mxu0 }
 0x278   : > { %4573 = vmatmul.bf16.gmra.mxu1 %v7643_v59  ;;  %v10762_v3 = vpack.c.b16 %v3504_v18, %v3503_v47  ;;  %v4687_v59 = vsel %vm10700_vm6, %v4654_v46, 0  ;;  %v10781_v18 = vsel %vm9208_vm7, %v3143_v54, %v8564_v2  ;;  %v5910_v46 = vld [vmem:[#allocation2 + $0x60] sm:$0xf]  ;;  %v4895_v37 = vshll.u32 %v10764_v28, 16  ;;  %v5911_v54 = vld [vmem:[#allocation2 + $0x64] sm:$0xf] }
 0x279   : > { %v10760_v15 = vsel %vm12298_vm13, %v3620_v27, %v3624_v13  ;;  %v3628_v19 = vor.u32 %v3626_v33, %v3624_v13  ;;  %v3159_v27 = vor.u32 %v3157_v21, %v10743_v44  ;;  %v3632_v45 = vrot.slane %v3630_v61, 1  ;;  %6255 = vmatpush.bf16.msra.mxu1 %v7707_v49  ;;  %12303 = vst [vmem:[#allocation128_spill] sm:$0xff] %v10811_v52 }
 0x27a   : > { %v3634_v13 = vshrl.u32 %v3521_v36, 16  ;;  %v3638_v47 = vshll.u32 %v10762_v3, 16  ;;  %v5942_v21 = vsel %vm10274_vm9, %v5909_v39, 0  ;;  %v4769_v2 = vunpack.c.l.b16 %v4687_v59  ;;  %v5912_v39 = vld [vmem:[#allocation2 + $0x68] sm:$0xf]  ;;  %vm12301_vm9 = vmmov %vm12293_vm4 }
 0x27b   : > { %v10789_v20 = vsel %vm12300_vm11, %v3628_v19, %v3632_v45  ;;  %vm12302_vm10 = vnez %v12208_v22  ;;  %v4893_v59 = vor.u32 %v4891_v38, %v10728_v6  ;;  %v3373_v50 = vunpack.c.h.b16 %v10781_v18 }
 0x27c   : > { %v3636_v41 = vor.u32 %v3634_v13, %v3632_v45  ;;  %v10791_v61 = vrot.slane %v3638_v47, 1  ;;  %v3372_v45 = vunpack.c.l.b16 %v10781_v18  ;;  %v4770_v13 = vunpack.c.l.b16 %v4688_v58  ;;  %v10826_v18 = vpop.f32.mrf.mxu2 }
 0x27d   : > { %5803 = vmatmul.bf16.gmra.mxu0 %v7676_v43  ;;  %v2693_v33 = vpop.f32.mrf.mxu3  ;;  %v10796_v43 = vsel %vm12293_vm4, %v3580_v1, %v10769_v32  ;;  %v5943_v1 = vsel %vm12302_vm10, %v5910_v46, 0  ;;  %v6024_v49 = vunpack.c.l.b16 %v5942_v21  ;;  %v5944_v22 = vsel %vm10364_vm12, %v5911_v54, 0  ;;  %vm12306_vm12 = vmmov %vm12293_vm4 }
 0x27e   : > { %v10786_v36 = vadd.f32 %v2693_v33, %v10322_v25  ;;  %v10802_v25 = vsel %vm9208_vm7, %v9201_v7, %v3159_v27  ;;  %v10807_v19 = vsel %vm12301_vm9, %v3636_v41, %v10791_v61  ;;  %v5913_v7 = vld [vmem:[#allocation2 + $0x6c] sm:$0xf]  ;;  %v5914_v27 = vld [vmem:[#allocation2 + $0x70] sm:$0xf]  ;;  %v10816_v33 = vpop.f32.mrf.mxu1  ;;  %v6025_v41 = vunpack.c.l.b16 %v5943_v1  ;;  %v5916_v1 = vld [vmem:[#allocation2 + $0x78] sm:$0xf] }
 0x27f   : > { %12304 = vst [vmem:[#allocation129_spill] sm:$0xff] %v10816_v33  ;;  %v5945_v46 = vsel %vm10372_vm5, %v5912_v39, 0  ;;  %v10822_v52 = vrot.slane %v4895_v37, 1  ;;  %v10824_v6 = vrot.slane %v6120_v10, 1  ;;  %v6026_v38 = vunpack.c.l.b16 %v5944_v22  ;;  %v5915_v39 = vld [vmem:[#allocation2 + $0x74] sm:$0xf]  ;;  %v10857_v31 = vpop.f32.mrf.mxu0 }
 0x280   : > { %v6027_v58 = vunpack.c.l.b16 %v5945_v46  ;;  %v3379_v47 = vunpack.c.l.b16 %v10802_v25  ;;  %v6048_v33 = vpack.c.b16 %v6025_v41, %v6024_v49  ;;  %vm12305_vm7 = vnez %v12238_v0  ;;  %v5917_v41 = vld [vmem:[#allocation2 + $0x7c] sm:$0xf]  ;;  %v7644_v46 = vld [vmem:[#allocation2 + $0x74] sm:$0xff]  ;;  %12310 = vst [vmem:[#allocation130_spill] sm:$0xff] %v10857_v31 }
 0x281   : > { %v5947_v53 = vsel %vm12305_vm7, %v5914_v27, 0  ;;  %v4898_v14 = vsel %vm12306_vm12, %v4893_v59, %v10822_v52  ;;  %v6124_v37 = vshrl.u32 %v10523_v48, 16  ;;  %v10839_v49 = vpack.c.b16 %v4770_v13, %v4769_v2 }
 0x282   : > { %3755 = vmatmul.bf16.gmra.mxu3 %v3577_v5  ;;  %v5946_v5 = vsel %vm10455_vm14, %v5913_v7, 0  ;;  %v6049_v10 = vpack.c.b16 %v6027_v58, %v6026_v38  ;;  %vm10842_vm5 = vcmp.ne.s32.totalorder %v3372_v45, %v8556_v62  ;;  %v6128_v0 = vshll.u32 %v6048_v33, 16  ;;  %vm12309_vm14 = vmmov %vm12293_vm4 }
 0x283   : > { %v6028_v54 = vunpack.c.l.b16 %v5946_v5  ;;  %v3380_v59 = vunpack.c.h.b16 %v10802_v25  ;;  %v6126_v48 = vor.u32 %v6124_v37, %v10824_v6  ;;  %v6029_v27 = vunpack.c.l.b16 %v5947_v53  ;;  %v7706_v25 = vld [vmem:[#allocation9 + $0x218] sm:$0xff] }
 0x284   : > { %v6136_v7 = vshll.u32 %v6049_v10, 16  ;;  %v6130_v38 = vrot.slane %v6128_v0, 1  ;;  %v6132_v58 = vshrl.u32 %v6048_v33, 16  ;;  %v5949_v2 = vsel %vm10568_vm2, %v5916_v1, 0  ;;  %6256 = vmatpush.bf16.msra.mxu1 %v7706_v25 }
 0x285   : > { %v2696_v21 = vpop.f32.mrf.mxu3  ;;  %v6050_v13 = vpack.c.b16 %v6029_v27, %v6028_v54  ;;  %v6140_v5 = vshrl.u32 %v6049_v10, 16  ;;  %v6031_v55 = vunpack.c.l.b16 %v5949_v2  ;;  %v5950_v33 = vsel %vm10677_vm0, %v5917_v41, 0  ;;  %vm12316_vm0 = vmmov %vm12293_vm4  ;;  %v5919_v27 = vld [vmem:[#allocation2 + $0x84] sm:$0xf]  ;;  %v10882_v2 = vpop.f32.mrf.mxu2  ;;  %v7705_v10 = vld [vmem:[#allocation9 + $0x210] sm:$0xff] }
 0x286   : > { %v10837_v22 = vadd.f32 %v2696_v21, %v10389_v57  ;;  %v5948_v57 = vsel %vm10559_vm1, %v5915_v39, 0  ;;  %v6138_v45 = vrot.slane %v6136_v7, 1  ;;  %v5918_v21 = vld [vmem:[#allocation2 + $0x80] sm:$0xf]  ;;  %v10853_v37 = vsel %vm12309_vm14, %v6126_v48, %v6130_v38  ;;  %v7677_v39 = vld [vmem:[#allocation2 + $0x44] sm:$0xff]  ;;  %v10869_v0 = vpop.f32.mrf.mxu1  ;;  %vm12322_vm13 = vmmov %vm12316_vm0 }
 0x287   : > { %5055 = vmatmul.bf16.gmra.mxu2 %v4898_v14  ;;  %v6030_v14 = vunpack.c.l.b16 %v5948_v57  ;;  %v6134_v53 = vor.u32 %v6132_v58, %v6130_v38  ;;  %vm10860_vm1 = vcmp.ne.s32.totalorder %v3373_v50, %v8559_v63  ;;  %vm10865_vm2 = vcmp.ne.s32.totalorder %v3379_v47, %v8556_v62  ;;  %12315 = vst [vmem:[#allocation131_spill] sm:$0xff] %v10869_v0  ;;  %v5920_v57 = vld [vmem:[#allocation2 + $0x88] sm:$0xf]  ;;  %vm12329_vm4 = vmmov %vm12316_vm0  ;;  %v12399_v0 = vld [vmem:[#allocation95_spill] sm:$0xff] }
 0x288   : > { %4578 = vmatmul.bf16.gmra.mxu1 %v7644_v46  ;;  %v6142_v54 = vor.u32 %v6140_v5, %v6138_v45  ;;  %v6144_v1 = vshll.u32 %v6050_v13, 16  ;;  %v4903_v26 = vshll.u32 %v10839_v49, 16  ;;  %v5951_v50 = vsel %vm10709_vm3, %v5918_v21, 0  ;;  %vm10894_vm3 = vmpackc.low %vm10860_vm1, %vm10842_vm5 }
 0x289   : > { %v10873_v48 = vsel %vm12316_vm0, %v6134_v53, %v6138_v45  ;;  %v6051_v7 = vpack.c.b16 %v6031_v55, %v6030_v14  ;;  %vm10878_vm15 = vcmp.ne.s32.totalorder %v3380_v59, %v8559_v63  ;;  %v6148_v38 = vshrl.u32 %v6050_v13, 16  ;;  %v4656_v55 = vld [vmem:[#allocation2 + $0x84] sm:$0xf]  ;;  %6257 = vmatpush.bf16.msra.mxu1 %v7705_v10  ;;  %vm12330_vm9 = vmmov %vm12316_vm0 }
 0x28a   : > { %v6146_v46 = vrot.slane %v6144_v1, 1  ;;  %v6032_v58 = vunpack.c.l.b16 %v5950_v33  ;;  %v6033_v14 = vunpack.c.l.b16 %v5951_v50  ;;  %v12319_v59 = vshrl.u32 %v10764_v28, 16  ;;  %vm10907_vm11 = vmpackc.low %vm10878_vm15, %vm10865_vm2  ;;  %v7690_v50 = vld [vmem:[#allocation9 + $0x198] sm:$0xff] }
 0x28b   : > { %v6152_v5 = vshll.u32 %v6051_v7, 16  ;;  %v6156_v21 = vshrl.u32 %v6051_v7, 16  ;;  %v5952_v33 = vsel %vm10700_vm6, %v5919_v27, 0  ;;  %v4689_v1 = vsel %vm10894_vm3, %v4656_v55, 0  ;;  %vm12325_vm6 = vmmov %vm12316_vm0  ;;  %5493 = vmatpush.bf16.msra.mxu3 %v7690_v50 }
 0x28c   : > { %v4901_v25 = vor.u32 %v12319_v59, %v10822_v52  ;;  %v6150_v53 = vor.u32 %v6148_v38, %v6146_v46  ;;  %v6052_v60 = vpack.c.b16 %v6033_v14, %v6032_v58  ;;  %v6034_v8 = vunpack.c.l.b16 %v5952_v33  ;;  %v10923_v58 = vpop.f32.mrf.mxu0  ;;  %vm12333_vm12 = vmmov %vm12316_vm0 }
 0x28d   : > { %5808 = vmatmul.bf16.gmra.mxu0 %v7677_v39  ;;  %v2698_v47 = vpop.f32.mrf.mxu3  ;;  %v6154_v52 = vrot.slane %v6152_v5, 1  ;;  %v5953_v39 = vsel %vm10719_vm8, %v5920_v57, 0  ;;  %v4690_v29 = vsel %vm10907_vm11, %v4657_v51, 0  ;;  %12326 = vst [vmem:[#allocation132_spill] sm:$0xff] %v10923_v58  ;;  %vm12327_vm8 = vmmov %vm12316_vm0  ;;  %v4771_v51 = vunpack.c.l.b16 %v4689_v1 }
 0x28e   : > { %v10885_v45 = vadd.f32 %v2698_v47, %v10417_v30  ;;  %v10899_v30 = vsel %vm12322_vm13, %v6142_v54, %v6146_v46  ;;  %v4905_v54 = vrot.slane %v4903_v26, 1  ;;  %v6035_v7 = vunpack.c.l.b16 %v5953_v39  ;;  %v7704_v46 = vld [vmem:[#allocation9 + $0x208] sm:$0xff]  ;;  %v10927_v14 = vpop.f32.mrf.mxu1  ;;  %vm12337_vm1 = vmmov %vm12316_vm0 }
 0x28f   : > { %v10919_v27 = vsel %vm12325_vm6, %v6150_v53, %v6154_v52  ;;  %v6158_v47 = vor.u32 %v6156_v21, %v6154_v52  ;;  %v6160_v41 = vshll.u32 %v6052_v60, 16  ;;  %v6164_v4 = vshrl.u32 %v6052_v60, 16  ;;  %12328 = vst [vmem:[#allocation133_spill] sm:$0xff] %v10927_v14  ;;  %6258 = vmatpush.bf16.msra.mxu1 %v7704_v46  ;;  %v7645_v60 = vld [vmem:[#allocation2 + $0x7c] sm:$0xff]  ;;  %vm12347_vm13 = vmmov %vm12337_vm1 }
 0x290   : > { %v10921_v26 = vpack.c.b16 %v6035_v7, %v6034_v8  ;;  %v4906_v57 = vsel %vm12327_vm8, %v4901_v25, %v4905_v54  ;;  %v3161_v59 = vrot.slane %v10743_v44, 4  ;;  %v10938_v25 = vpop.f32.mrf.mxu2  ;;  %v7703_v8 = vld [vmem:[#allocation9 + $0x200] sm:$0xff]  ;;  %v7678_v44 = vld [vmem:[#allocation2 + $0x4c] sm:$0xff]  ;;  %v3586_v7 = vshrl.u32 %v10618_v9, 16 }
 0x291   : > { %v6162_v38 = vrot.slane %v6160_v41, 1  ;;  %v4907_v50 = vshrl.u32 %v10839_v49, 16  ;;  %vm12336_vm14 = vnez %v11991_v35  ;;  %vm12338_vm2 = vnez %v11989_v17  ;;  %v12397_v14 = vld [vmem:[#allocation72_spill] sm:$0xff] }
 0x292   : > { %3760 = vmatmul.bf16.gmra.mxu3 %v10796_v43  ;;  %v4772_v43 = vunpack.c.l.b16 %v4690_v29  ;;  %v6168_v5 = vshll.u32 %v10921_v26, 16  ;;  %v3387_v29 = vunpack.c.h.b16 %v3161_v59  ;;  %v3588_v46 = vor.u32 %v3586_v7, %v10769_v32  ;;  %v5891_v32 = vld [vmem:[#allocation2 + $0x14] sm:$0xf] }
 0x293   : > { %v10934_v53 = vsel %vm12329_vm4, %v6158_v47, %v6162_v38  ;;  %v6166_v33 = vor.u32 %v6164_v4, %v6162_v38  ;;  %6259 = vmatpush.bf16.msra.mxu1 %v7703_v8  ;;  %v4658_v38 = vld [vmem:[#allocation2 + $0x8c] sm:$0x1]  ;;  %v5924_v8 = vsel %vm12338_vm2, %v5891_v32, 0  ;;  %vm12339_vm0 = vnez %v12005_v12  ;;  %v12343_v32 = vld [vmem:[#allocation123_spill] sm:$0xff]  ;;  %vm12354_vm4 = vmmov %vm12337_vm1 }
 0x294   : > { %v10936_v52 = vrot.slane %v6168_v5, 1  ;;  %v4789_v39 = vpack.c.b16 %v4772_v43, %v4771_v51  ;;  %vm3391_vm7 = vcmp.ne.s32.totalorder %v3387_v29, %v8559_v63  ;;  %v10951_v4 = vpop.f32.mrf.mxu0  ;;  %v3593_v9 = vsel %vm12333_vm12, %v3588_v46, %v10353_v40  ;;  %v5894_v43 = vld [vmem:[#allocation2 + $0x20] sm:$0xf] }
 0x295   : > { %v2701_v55 = vpop.f32.mrf.mxu3  ;;  %12331 = vst [vmem:[#allocation134_spill] sm:$0xff] %v10951_v4  ;;  %vm12340_vm15 = vnez %v12009_v23 }
 0x296   : > { %v10930_v21 = vadd.f32 %v2701_v55, %v10479_v34  ;;  %v10942_v1 = vsel %vm12330_vm9, %v6166_v33, %v10936_v52  ;;  %v3386_v34 = vunpack.c.l.b16 %v3161_v59  ;;  %v4911_v47 = vshll.u32 %v4789_v39, 16  ;;  %v5893_v33 = vld [vmem:[#allocation2 + $0x1c] sm:$0xf] }
 0x297   : > { %5060 = vmatmul.bf16.gmra.mxu2 %v4906_v57  ;;  %v10954_v57 = vpop.f32.mrf.mxu1  ;;  %v4909_v55 = vor.u32 %v4907_v50, %v4905_v54  ;;  %v5926_v35 = vsel %vm12340_vm15, %v5893_v33, 0  ;;  %v6006_v50 = vunpack.c.l.b16 %v5924_v8  ;;  %v12344_v33 = vld [vmem:[#allocation113_spill] sm:$0xff]  ;;  %v7689_v8 = vld [vmem:[#allocation9 + $0x190] sm:$0xff]  ;;  %vm12383_vm15 = vmmov %vm12337_vm1 }
 0x298   : > { %4583 = vmatmul.bf16.gmra.mxu1 %v7645_v60  ;;  %vm3390_vm10 = vcmp.ne.s32.totalorder %v3386_v34, %v8556_v62  ;;  %12332 = vst [vmem:[#allocation135_spill] sm:$0xff] %v10954_v57  ;;  %v4913_v49 = vrot.slane %v4911_v47, 1  ;;  %v10962_v62 = vpop.f32.mrf.mxu2  ;;  %v5927_v34 = vsel %vm12339_vm0, %v5894_v43, 0  ;;  %v6008_v17 = vunpack.c.l.b16 %v5926_v35  ;;  %5494 = vmatpush.bf16.msra.mxu3 %v7689_v8  ;;  %v2741_v57 = vld [vmem:[#allocation2 + $0x7c] sm:$0xf] }
 0x299   : > { %vm10958_vm5 = vmpackc.low %vm3391_vm7, %vm3390_vm10  ;;  %v6009_v47 = vunpack.c.l.b16 %v5927_v34 }
 0x29a   : > { %v4691_v63 = vsel %vm10958_vm5, %v4658_v38, 0  ;;  %v4914_v40 = vsel %vm12337_vm1, %v4909_v55, %v4913_v49  ;;  %v7679_v38 = vld [vmem:[#allocation2 + $0x54] sm:$0xff]  ;;  %vm12366_vm7 = vmmov %vm12337_vm1 }
 0x29b   : > { %v4773_v59 = vunpack.c.l.b16 %v4691_v63  ;;  %v6040_v63 = vpack.c.b16 %v6009_v47, %v6008_v17 }
 0x29d   : > { %5813 = vmatmul.bf16.gmra.mxu0 %v7678_v44  ;;  %v2703_v10 = vpop.f32.mrf.mxu3  ;;  %v7646_v44 = vld [vmem:[#allocation2 + $0x84] sm:$0xff]  ;;  %v4790_v7 = vpack.c.b16 %v4773_v59, %v4773_v59  ;;  %v6064_v59 = vshll.u32 %v6040_v63, 16 }
 0x29e   : > { %v10947_v41 = vadd.f32 %v2703_v10, %v10525_v11  ;;  %v5892_v11 = vld [vmem:[#allocation2 + $0x18] sm:$0xf]  ;;  %v10978_v10 = vpop.f32.mrf.mxu0 }
 0x29f   : > { %v5925_v5 = vsel %vm12336_vm14, %v5892_v11, 0  ;;  %12341 = vst [vmem:[#allocation136_spill] sm:$0xff] %v10978_v10  ;;  %v10980_v46 = vpop.f32.mrf.mxu1  ;;  %v4915_v11 = vshrl.u32 %v4789_v39, 16  ;;  %v4919_v23 = vshll.u32 %v4790_v7, 16  ;;  %v6066_v47 = vrot.slane %v6064_v59, 1 }
 0x2a0   : > { %v6007_v29 = vunpack.c.l.b16 %v5925_v5  ;;  %12342 = vst [vmem:[#allocation137_spill] sm:$0xff] %v10980_v46  ;;  %v10982_v55 = vpop.f32.mrf.mxu2 }
 0x2a2   : > { %3765 = vmatmul.bf16.gmra.mxu3 %v3593_v9  ;;  %v6039_v9 = vpack.c.b16 %v6007_v29, %v6006_v50 }
 0x2a4   : > { %v6059_v5 = vshll.u32 %v6039_v9, 16  ;;  %v6057_v50 = vshrl.u32 %v6039_v9, 16  ;;  %v7680_v9 = vld [vmem:[#allocation2 + $0x5c] sm:$0xff] }
 0x2a5   : > { %v2706_v54 = vpop.f32.mrf.mxu3 }
 0x2a6   : > { %v10970_v60 = vadd.f32 %v2706_v54, %v10581_v42  ;;  %v7718_v42 = vld [vmem:[#allocation11 + $0x38] sm:$0xff]  ;;  %v4921_v54 = vrot.slane %v4919_v23, 1  ;;  %v10988_v34 = vpop.f32.mrf.mxu0  ;;  %v6061_v29 = vrot.slane %v6059_v5, 1 }
 0x2a7   : > { %5065 = vmatmul.bf16.gmra.mxu2 %v4914_v40  ;;  %v4917_v40 = vor.u32 %v4915_v11, %v4913_v49  ;;  %12345 = vst [vmem:[#allocation123_spill] sm:$0xff] %v10988_v34  ;;  %v10990_v35 = vpop.f32.mrf.mxu1  ;;  %v12349_v49 = vld [vmem:[#allocation44_spill] sm:$0xff] }
 0x2a8   : > { %4588 = vmatmul.bf16.gmra.mxu1 %v7646_v44  ;;  %6525 = vmatpush.bf16.msra.mxu2 %v7718_v42  ;;  %v5896_v44 = vld [vmem:[#allocation2 + $0x28] sm:$0xf]  ;;  %12346 = vst [vmem:[#allocation113_spill] sm:$0xff] %v10990_v35  ;;  %v5895_v42 = vld [vmem:[#allocation2 + $0x24] sm:$0xf]  ;;  %v6062_v23 = vor.u32 %v6061_v29, %v6057_v50 }
 0x2a9   : > { %v4922_v39 = vsel %vm12347_vm13, %v4917_v40, %v4921_v54  ;;  %v5898_v50 = vld [vmem:[#allocation2 + $0x30] sm:$0xf] }
 0x2ad   : > { %5818 = vmatmul.bf16.gmra.mxu0 %v7679_v38  ;;  %v2708_v12 = vpop.f32.mrf.mxu3  ;;  %v10993_v38 = vpop.f32.mrf.mxu2 }
 0x2ae   : > { %v10985_v43 = vadd.f32 %v2708_v12, %v12343_v32  ;;  %12348 = vst [vmem:[#allocation138_spill] sm:$0xff] %v10993_v38  ;;  %v12350_v12 = vld [vmem:[#allocation58_spill] sm:$0xff]  ;;  %v12352_v32 = vld [vmem:[#allocation59_spill] sm:$0xff]  ;;  %v11003_v59 = vpop.f32.mrf.mxu0  ;;  %v3642_v38 = vshrl.u32 %v10762_v3, 16 }
 0x2af   : > { %vm12351_vm6 = vnez %v12350_v12  ;;  %vm12353_vm8 = vnez %v12352_v32  ;;  %12355 = vst [vmem:[#allocation44_spill] sm:$0xff] %v11003_v59  ;;  %v5897_v32 = vld [vmem:[#allocation2 + $0x2c] sm:$0xf]  ;;  %v12360_v59 = vld [vmem:[#allocation64_spill] sm:$0xff] }
 0x2b0   : > { %v5929_v11 = vsel %vm12351_vm6, %v5896_v44, 0  ;;  %v5928_v5 = vsel %vm12353_vm8, %v5895_v42, 0  ;;  %v12358_v44 = vld [vmem:[#allocation117_spill] sm:$0xff]  ;;  %vm12361_vm9 = vnez %v12360_v59  ;;  %vm12392_vm8 = vmmov %vm12337_vm1 }
 0x2b1   : > { %v6011_v40 = vunpack.c.l.b16 %v5929_v11  ;;  %v6010_v54 = vunpack.c.l.b16 %v5928_v5 }
 0x2b2   : > { %3770 = vmatmul.bf16.gmra.mxu3 %v12344_v33  ;;  %v6067_v33 = vsel %vm12354_vm4, %v6062_v23, %v6066_v47  ;;  %v6068_v23 = vshrl.u32 %v6040_v63, 16  ;;  %v7717_v63 = vld [vmem:[#allocation11 + $0x30] sm:$0xff]  ;;  %vm12400_vm4 = vnez %v12399_v0 }
 0x2b3   : > { %6526 = vmatpush.bf16.msra.mxu2 %v7717_v63  ;;  %v12370_v63 = vld [vmem:[#allocation52_spill] sm:$0xff] }
 0x2b5   : > { %v3731_v7 = vpop.f32.mrf.mxu3 }
 0x2b6   : > { %v10996_v17 = vadd.f32 %v3731_v7, %v12349_v49  ;;  %v11005_v7 = vpop.f32.mrf.mxu1  ;;  %v12357_v49 = vld [vmem:[#allocation45_spill] sm:$0xff] }
 0x2b7   : > { %5070 = vmatmul.bf16.gmra.mxu2 %v4922_v39  ;;  %v6041_v39 = vpack.c.b16 %v6011_v40, %v6010_v54  ;;  %12356 = vst [vmem:[#allocation58_spill] sm:$0xff] %v11005_v7  ;;  %v11016_v40 = vpop.f32.mrf.mxu0  ;;  %v6070_v54 = vor.u32 %v6068_v23, %v6066_v47  ;;  %v7716_v7 = vld [vmem:[#allocation11 + $0x28] sm:$0xff] }
 0x2b8   : > { %6260 = vmatmul.bf16.vlgmr.msra.gmra.mxu1 %v6067_v33  ;;  %v12359_v33 = vld [vmem:[#allocation48_spill] sm:$0xff]  ;;  %12362 = vst [vmem:[#allocation59_spill] sm:$0xff] %v11016_v40  ;;  %6527 = vmatpush.bf16.msra.mxu2 %v7716_v7  ;;  %v5903_v7 = vld [vmem:[#allocation2 + $0x44] sm:$0xf] }
 0x2b9   : > { %v6072_v29 = vshll.u32 %v6041_v39, 16 }
 0x2bb   : > { %v6074_v11 = vrot.slane %v6072_v29, 1  ;;  %v7681_v29 = vld [vmem:[#allocation2 + $0x64] sm:$0xff] }
 0x2bd   : > { %5823 = vmatmul.bf16.gmra.mxu0 %v7680_v9  ;;  %v3733_v8 = vpop.f32.mrf.mxu3  ;;  %v5931_v9 = vsel %vm12361_vm9, %v5898_v50, 0  ;;  %v12367_v50 = vld [vmem:[#allocation49_spill] sm:$0xff] }
 0x2be   : > { %v11008_v12 = vadd.f32 %v3733_v8, %v12357_v49  ;;  %v11018_v34 = vpop.f32.mrf.mxu1  ;;  %v12364_v8 = vld [vmem:[#allocation65_spill] sm:$0xff]  ;;  %v6013_v10 = vunpack.c.l.b16 %v5931_v9  ;;  %v5900_v9 = vld [vmem:[#allocation2 + $0x38] sm:$0xf] }
 0x2bf   : > { %12363 = vst [vmem:[#allocation45_spill] sm:$0xff] %v11018_v34  ;;  %vm12365_vm10 = vnez %v12364_v8  ;;  %v11026_v47 = vpop.f32.mrf.mxu0  ;;  %v6076_v8 = vshrl.u32 %v6041_v39, 16 }
 0x2c0   : > { %v5930_v49 = vsel %vm12365_vm10, %v5897_v32, 0  ;;  %12368 = vst [vmem:[#allocation117_spill] sm:$0xff] %v11026_v47  ;;  %v7688_v32 = vld [vmem:[#allocation9 + $0x188] sm:$0xff]  ;;  %vm12403_vm10 = vmmov %vm12337_vm1 }
 0x2c1   : > { %v6012_v4 = vunpack.c.l.b16 %v5930_v49  ;;  %5495 = vmatpush.bf16.msra.mxu3 %v7688_v32  ;;  %v7682_v32 = vld [vmem:[#allocation2 + $0x6c] sm:$0xff] }
 0x2c2   : > { %3775 = vmatmul.bf16.gmra.mxu3 %v12358_v44  ;;  %v6075_v44 = vsel %vm12366_vm7, %v6070_v54, %v6074_v11  ;;  %vm12406_vm7 = vmmov %vm12337_vm1 }
 0x2c3   : > { %v6042_v59 = vpack.c.b16 %v6013_v10, %v6012_v4  ;;  %v12371_v4 = vld [vmem:[#allocation71_spill] sm:$0xff] }
 0x2c4   : > { %vm12372_vm12 = vnez %v12371_v4 }
 0x2c5   : > { %v3736_v42 = vpop.f32.mrf.mxu3  ;;  %v6080_v23 = vshll.u32 %v6042_v59, 16  ;;  %v5933_v10 = vsel %vm12372_vm12, %v5900_v9, 0  ;;  %v5902_v9 = vld [vmem:[#allocation2 + $0x40] sm:$0xf]  ;;  %vm12410_vm12 = vmmov %vm12337_vm1 }
 0x2c6   : > { %v11012_v5 = vadd.f32 %v3736_v42, %v12359_v33  ;;  %v11028_v40 = vpop.f32.mrf.mxu1 }
 0x2c7   : > { %12369 = vst [vmem:[#allocation48_spill] sm:$0xff] %v11028_v40  ;;  %v6082_v49 = vrot.slane %v6080_v23, 1  ;;  %v11039_v31 = vpop.f32.mrf.mxu0  ;;  %v12376_v40 = vld [vmem:[#allocation54_spill] sm:$0xff] }
 0x2c8   : > { %6265 = vmatmul.bf16.gmra.mxu1 %v6075_v44  ;;  %v5899_v44 = vld [vmem:[#allocation2 + $0x34] sm:$0xf] }
 0x2cd   : > { %5828 = vmatmul.bf16.gmra.mxu0 %v7681_v29  ;;  %v3738_v42 = vpop.f32.mrf.mxu3 }
 0x2ce   : > { %v11024_v33 = vadd.f32 %v3738_v42, %v12367_v50  ;;  %v6078_v42 = vor.u32 %v6076_v8, %v6074_v11  ;;  %v12373_v50 = vld [vmem:[#allocation70_spill] sm:$0xff]  ;;  %v11041_v23 = vpop.f32.mrf.mxu1 }
 0x2cf   : > { %vm12374_vm14 = vnez %v12373_v50  ;;  %12375 = vst [vmem:[#allocation64_spill] sm:$0xff] %v11041_v23  ;;  %v11047_v8 = vpop.f32.mrf.mxu0 }
 0x2d0   : > { %v5932_v47 = vsel %vm12374_vm14, %v5899_v44, 0  ;;  %v6083_v58 = vsel %vm12337_vm1, %v6078_v42, %v6082_v49  ;;  %v5901_v42 = vld [vmem:[#allocation2 + $0x3c] sm:$0xf] }
 0x2d1   : > { %v6014_v39 = vunpack.c.l.b16 %v5932_v47  ;;  %v12378_v47 = vld [vmem:[#allocation56_spill] sm:$0xff] }
 0x2d2   : > { %3780 = vmatmul.bf16.gmra.mxu3 %v10748_v56  ;;  %v6015_v56 = vunpack.c.l.b16 %v5933_v10 }
 0x2d5   : > { %v3741_v54 = vpop.f32.mrf.mxu3 }
 0x2d6   : > { %v11032_v29 = vadd.f32 %v3741_v54, %v12370_v63  ;;  %v6043_v63 = vpack.c.b16 %v6015_v56, %v6014_v39  ;;  %v11049_v50 = vpop.f32.mrf.mxu1  ;;  %v12381_v39 = vld [vmem:[#allocation82_spill] sm:$0xff] }
 0x2d7   : > { %12377 = vst [vmem:[#allocation65_spill] sm:$0xff] %v11049_v50  ;;  %vm12382_vm0 = vnez %v12381_v39 }
 0x2d8   : > { %6270 = vmatmul.bf16.gmra.mxu1 %v6083_v58  ;;  %v6088_v11 = vshll.u32 %v6043_v63, 16  ;;  %v6084_v58 = vshrl.u32 %v6042_v59, 16  ;;  %v7683_v59 = vld [vmem:[#allocation2 + $0x74] sm:$0xff] }
 0x2da   : > { %v6090_v10 = vrot.slane %v6088_v11, 1 }
 0x2dd   : > { %5833 = vmatmul.bf16.gmra.mxu0 %v7682_v32  ;;  %v3743_v54 = vpop.f32.mrf.mxu3  ;;  %v12379_v32 = vld [vmem:[#allocation81_spill] sm:$0xff] }
 0x2de   : > { %v11044_v4 = vadd.f32 %v3743_v54, %v12376_v40  ;;  %vm12380_vm2 = vnez %v12379_v32  ;;  %v6086_v40 = vor.u32 %v6084_v58, %v6082_v49  ;;  %v5934_v54 = vsel %vm12382_vm0, %v5901_v42, 0  ;;  %v11062_v32 = vpop.f32.mrf.mxu0  ;;  %v11064_v49 = vpop.f32.mrf.mxu1  ;;  %v7687_v58 = vld [vmem:[#allocation9 + $0x180] sm:$0xff]  ;;  %v5904_v42 = vld [vmem:[#allocation2 + $0x48] sm:$0xf] }
 0x2df   : > { %v5935_v56 = vsel %vm12380_vm2, %v5902_v9, 0  ;;  %v6016_v11 = vunpack.c.l.b16 %v5934_v54  ;;  %12385 = vst [vmem:[#allocation49_spill] sm:$0xff] %v11064_v49  ;;  %5496 = vmatpush.bf16.msra.mxu3 %v7687_v58  ;;  %v12386_v54 = vld [vmem:[#allocation62_spill] sm:$0xff]  ;;  %vm12416_vm2 = vmmov %vm12406_vm7 }
 0x2e0   : > { %v6017_v34 = vunpack.c.l.b16 %v5935_v56  ;;  %vm12421_vm0 = vmmov %vm12416_vm2 }
 0x2e2   : > { %3785 = vmatmul.bf16.gmra.mxu3 %v10760_v15  ;;  %v6091_v15 = vsel %vm12383_vm15, %v6086_v40, %v6090_v10  ;;  %v6044_v35 = vpack.c.b16 %v6017_v34, %v6016_v11  ;;  %v6092_v40 = vshrl.u32 %v6043_v63, 16  ;;  %v12388_v34 = vld [vmem:[#allocation90_spill] sm:$0xff]  ;;  %v12390_v11 = vld [vmem:[#allocation89_spill] sm:$0xff] }
 0x2e3   : > { %vm12389_vm13 = vnez %v12388_v34  ;;  %vm12391_vm6 = vnez %v12390_v11  ;;  %v7684_v63 = vld [vmem:[#allocation2 + $0x7c] sm:$0xff] }
 0x2e4   : > { %v6096_v9 = vshll.u32 %v6044_v35, 16 }
 0x2e5   : > { %v3746_v44 = vpop.f32.mrf.mxu3 }
 0x2e6   : > { %v11052_v23 = vadd.f32 %v3746_v44, %v12378_v47  ;;  %v12384_v44 = vld [vmem:[#allocation60_spill] sm:$0xff]  ;;  %v6098_v39 = vrot.slane %v6096_v9, 1  ;;  %v11074_v49 = vpop.f32.mrf.mxu0  ;;  %v11077_v58 = vpop.f32.mrf.mxu1 }
 0x2e7   : > { %12393 = vst [vmem:[#allocation71_spill] sm:$0xff] %v11077_v58  ;;  %v5905_v58 = vld [vmem:[#allocation2 + $0x4c] sm:$0xf] }
 0x2e8   : > { %6275 = vmatmul.bf16.gmra.mxu1 %v6091_v15 }
 0x2ed   : > { %5838 = vmatmul.bf16.gmra.mxu0 %v7683_v59  ;;  %v3748_v50 = vpop.f32.mrf.mxu3  ;;  %v6094_v59 = vor.u32 %v6092_v40, %v6090_v10  ;;  %v3423_v40 = vsel %vm10894_vm3, %v2741_v57, 0 }
 0x2ee   : > { %v11060_v47 = vadd.f32 %v3748_v50, %v12384_v44  ;;  %v5937_v50 = vsel %vm12389_vm13, %v5904_v42, 0  ;;  %v5936_v44 = vsel %vm12391_vm6, %v5903_v7, 0  ;;  %v12394_v42 = vld [vmem:[#allocation68_spill] sm:$0xff]  ;;  %vm12428_vm6 = vsmask.f32 4352 }
 0x2ef   : > { %v6019_v46 = vunpack.c.l.b16 %v5937_v50  ;;  %v6018_v9 = vunpack.c.l.b16 %v5936_v44  ;;  %v11087_v44 = vpop.f32.mrf.mxu0 }
 0x2f1   : > { %v6045_v34 = vpack.c.b16 %v6019_v46, %v6018_v9  ;;  %v6100_v9 = vshrl.u32 %v6044_v35, 16  ;;  %v7715_v35 = vld [vmem:[#allocation11 + $0x20] sm:$0xff] }
 0x2f2   : > { %3790 = vmatmul.bf16.gmra.mxu3 %v10789_v20  ;;  %v6099_v20 = vsel %vm12392_vm8, %v6094_v59, %v6098_v39  ;;  %v3505_v59 = vunpack.c.l.b16 %v3423_v40  ;;  %6528 = vmatpush.bf16.msra.mxu2 %v7715_v35 }
 0x2f3   : > { %v6104_v50 = vshll.u32 %v6045_v34, 16  ;;  %v6102_v40 = vor.u32 %v6100_v9, %v6098_v39  ;;  %v3644_v39 = vor.u32 %v3642_v38, %v10791_v61  ;;  %v12405_v9 = vld [vmem:[#allocation76_spill] sm:$0xff]  ;;  %v6108_v35 = vshrl.u32 %v6045_v34, 16  ;;  %v12407_v61 = vld [vmem:[#allocation79_spill] sm:$0xff] }
 0x2f5   : > { %v3751_v56 = vpop.f32.mrf.mxu3 }
 0x2f6   : > { %v11068_v15 = vadd.f32 %v3751_v56, %v12386_v54  ;;  %v2742_v56 = vld [vmem:[#allocation2 + $0x80] sm:$0xf] }
 0x2f7   : > { %v3424_v7 = vsel %vm10907_vm11, %v2742_v56, 0 }
 0x2f8   : > { %12387 = vst [vmem:[#allocation52_spill] sm:$0xff] %v11068_v15  ;;  %6280 = vmatmul.bf16.gmra.mxu1 %v6099_v20  ;;  %v3506_v11 = vunpack.c.l.b16 %v3424_v7  ;;  %v5906_v20 = vld [vmem:[#allocation2 + $0x50] sm:$0xf]  ;;  %v12401_v7 = vld [vmem:[#allocation97_spill] sm:$0xff] }
 0x2f9   : > { %v5939_v56 = vsel %vm12400_vm4, %v5906_v20, 0  ;;  %vm12402_vm9 = vnez %v12401_v7 }
 0x2fa   : > { %v6021_v15 = vunpack.c.l.b16 %v5939_v56 }
 0x2fd   : > { %5843 = vmatmul.bf16.gmra.mxu0 %v7684_v63  ;;  %v3753_v54 = vpop.f32.mrf.mxu3  ;;  %v11089_v63 = vpop.f32.mrf.mxu1 }
 0x2fe   : > { %v11080_v10 = vadd.f32 %v3753_v54, %v12394_v42  ;;  %12396 = vst [vmem:[#allocation54_spill] sm:$0xff] %v11089_v63  ;;  %v6106_v54 = vrot.slane %v6104_v50, 1  ;;  %v3523_v42 = vpack.c.b16 %v3506_v11, %v3505_v59  ;;  %v7685_v50 = vld [vmem:[#allocation2 + $0x84] sm:$0xff] }
 0x2ff   : > { %v2743_v11 = vld [vmem:[#allocation2 + $0x84] sm:$0x1] }
 0x300   : > { %12395 = vst [vmem:[#allocation70_spill] sm:$0xff] %v11080_v10  ;;  %v6107_v10 = vsel %vm12403_vm10, %v6102_v40, %v6106_v54  ;;  %v3646_v63 = vshll.u32 %v3523_v42, 16 }
 0x302   : > { %3795 = vmatmul.bf16.gmra.mxu3 %v10807_v19  ;;  %v5938_v19 = vsel %vm12402_vm9, %v5905_v58, 0  ;;  %v3648_v20 = vrot.slane %v3646_v63, 1  ;;  %v5110_v63 = vld [vmem:[#allocation2 + $0x18] sm:$0xf]  ;;  %vm12437_vm9 = vmmov %vm12428_vm6 }
 0x303   : > { %v6020_v59 = vunpack.c.l.b16 %v5938_v19 }
 0x304   : > { %v3649_v56 = vsel %vm12406_vm7, %v3644_v39, %v3648_v20  ;;  %v12411_v39 = vld [vmem:[#allocation24_spill] sm:$0xff] }
 0x305   : > { %v3756_v46 = vpop.f32.mrf.mxu3  ;;  %v6046_v58 = vpack.c.b16 %v6021_v15, %v6020_v59  ;;  %v6110_v15 = vor.u32 %v6108_v35, %v6106_v54  ;;  %v5111_v59 = vld [vmem:[#allocation2 + $0x1c] sm:$0xf]  ;;  %vm12412_vm14 = vnez %v12411_v39  ;;  %v12415_v35 = vld [vmem:[#allocation83_spill] sm:$0xff] }
 0x306   : > { %v11092_v57 = vadd.f32 %v3756_v46, %v12397_v14  ;;  %v11100_v14 = vpop.f32.mrf.mxu0  ;;  %v11103_v46 = vpop.f32.mrf.mxu1 }
 0x307   : > { %12404 = vst [vmem:[#allocation81_spill] sm:$0xff] %v11103_v46  ;;  %v6112_v40 = vshll.u32 %v6046_v58, 16 }
 0x308   : > { %12398 = vst [vmem:[#allocation56_spill] sm:$0xff] %v11092_v57  ;;  %6285 = vmatmul.bf16.gmra.mxu1 %v6107_v10  ;;  %v3425_v10 = vsel %vm10958_vm5, %v2743_v11, 0  ;;  %v3650_v11 = vshrl.u32 %v3523_v42, 16 }
 0x309   : > { %v3507_v7 = vunpack.c.l.b16 %v3425_v10  ;;  %v5143_v10 = vsel %vm12412_vm14, %v5110_v63, 0 }
 0x30b   : > { %v3524_v57 = vpack.c.b16 %v3507_v7, %v3507_v7  ;;  %v3652_v7 = vor.u32 %v3650_v11, %v3648_v20 }
 0x30d   : > { %5848 = vmatmul.bf16.gmra.mxu0 %v7685_v50  ;;  %v3758_v0 = vpop.f32.mrf.mxu3  ;;  %v6114_v50 = vrot.slane %v6112_v40, 1  ;;  %v3654_v46 = vshll.u32 %v3524_v57, 16 }
 0x30e   : > { %v11106_v3 = vadd.f32 %v3758_v0, %v12405_v9  ;;  %v11114_v0 = vpop.f32.mrf.mxu1 }
 0x30f   : > { %12409 = vst [vmem:[#allocation60_spill] sm:$0xff] %v11114_v0  ;;  %v6115_v9 = vsel %vm12410_vm12, %v6110_v15, %v6114_v50  ;;  %vm12447_vm12 = vmmov %vm12428_vm6 }
 0x312   : > { %3800 = vmatmul.bf16.gmra.mxu3 %v3649_v56  ;;  %v12413_v56 = vld [vmem:[#allocation25_spill] sm:$0xff] }
 0x313   : > { %vm12414_vm1 = vnez %v12413_v56  ;;  %v12418_v56 = vld [vmem:[#allocation87_spill] sm:$0xff] }
 0x314   : > { %v5144_v34 = vsel %vm12414_vm1, %v5111_v59, 0 }
 0x315   : > { %v3761_v19 = vpop.f32.mrf.mxu3  ;;  %v5226_v54 = vunpack.c.l.b16 %v5144_v34  ;;  %v5112_v34 = vld [vmem:[#allocation2 + $0x20] sm:$0xf] }
 0x316   : > { %v11112_v38 = vadd.f32 %v3761_v19, %v12407_v61  ;;  %v3656_v19 = vrot.slane %v3654_v46, 1  ;;  %v5225_v61 = vunpack.c.l.b16 %v5143_v10  ;;  %v11125_v42 = vpop.f32.mrf.mxu1  ;;  %v12420_v46 = vld [vmem:[#allocation74_spill] sm:$0xff] }
 0x317   : > { %12417 = vst [vmem:[#allocation62_spill] sm:$0xff] %v11125_v42  ;;  %v5274_v11 = vshrl.u32 %v12420_v46, 16  ;;  %v5277_v10 = vshll.u32 %v12420_v46, 16 }
 0x318   : > { %12408 = vst [vmem:[#allocation82_spill] sm:$0xff] %v11112_v38  ;;  %6290 = vmatmul.bf16.gmra.mxu1 %v6115_v9  ;;  %v3657_v0 = vsel %vm12416_vm2, %v3652_v7, %v3656_v19  ;;  %v5257_v15 = vpack.c.b16 %v5226_v54, %v5225_v61  ;;  %v6116_v9 = vshrl.u32 %v6046_v58, 16  ;;  %v12424_v54 = vld [vmem:[#allocation27_spill] sm:$0xff]  ;;  %vm12458_vm2 = vmmov %vm12428_vm6 }
 0x319   : > { %vm12425_vm13 = vnez %v12424_v54 }
 0x31a   : > { %v5282_v63 = vshrl.u32 %v5257_v15, 16  ;;  %v5285_v39 = vshll.u32 %v5257_v15, 16  ;;  %v6118_v20 = vor.u32 %v6116_v9, %v6114_v50  ;;  %v7714_v15 = vld [vmem:[#allocation11 + $0x18] sm:$0xff]  ;;  %v5276_v50 = vrot.slane %v5274_v11, 3 }
 0x31b   : > { %6529 = vmatpush.bf16.msra.mxu2 %v7714_v15  ;;  %v5114_v15 = vld [vmem:[#allocation2 + $0x28] sm:$0xf] }
 0x31c   : > { %v6123_v7 = vsel %vm12421_vm0, %v6118_v20, %v10824_v6  ;;  %v5284_v19 = vrot.slane %v5282_v63, 3  ;;  %v5287_v61 = vrot.slane %v5285_v39, 4  ;;  %v12427_v6 = vld [vmem:[#allocation91_spill] sm:$0xff] }
 0x31d   : > { %v3763_v40 = vpop.f32.mrf.mxu3 }
 0x31e   : > { %v11122_v38 = vadd.f32 %v3763_v40, %v12415_v35  ;;  %v5113_v40 = vld [vmem:[#allocation2 + $0x24] sm:$0xf]  ;;  %v11138_v9 = vpop.f32.mrf.mxu1  ;;  %v5288_v46 = vor.u32 %v5287_v61, %v5284_v19  ;;  %v5115_v19 = vld [vmem:[#allocation2 + $0x2c] sm:$0xf] }
 0x31f   : > { %v5146_v35 = vsel %vm12425_vm13, %v5113_v40, 0  ;;  %12426 = vst [vmem:[#allocation89_spill] sm:$0xff] %v11138_v9  ;;  %v5119_v9 = vld [vmem:[#allocation2 + $0x3c] sm:$0xf]  ;;  %vm12467_vm13 = vmmov %vm12458_vm2 }
 0x322   : > { %3805 = vmatmul.bf16.gmra.mxu3 %v3657_v0  ;;  %v12422_v0 = vld [vmem:[#allocation26_spill] sm:$0xff] }
 0x323   : > { %vm12423_vm15 = vnez %v12422_v0 }
 0x324   : > { %v5145_v58 = vsel %vm12423_vm15, %v5112_v34, 0 }
 0x325   : > { %v3766_v57 = vpop.f32.mrf.mxu3  ;;  %v5227_v42 = vunpack.c.l.b16 %v5145_v58 }
 0x326   : > { %v11128_v59 = vadd.f32 %v3766_v57, %v12418_v56  ;;  %v5279_v57 = vrot.slane %v5277_v10, 4  ;;  %v11144_v11 = vpop.f32.mrf.mxu1  ;;  %v12430_v10 = vld [vmem:[#allocation94_spill] sm:$0xff] }
 0x327   : > { %12429 = vst [vmem:[#allocation68_spill] sm:$0xff] %v11144_v11 }
 0x328   : > { %12419 = vst [vmem:[#allocation90_spill] sm:$0xff] %v11128_v59  ;;  %6295 = vmatmul.bf16.gmra.mxu1 %v6123_v7  ;;  %v5228_v59 = vunpack.c.l.b16 %v5146_v35  ;;  %v5280_v39 = vor.u32 %v5279_v57, %v5276_v50  ;;  %v12431_v35 = vld [vmem:[#allocation28_spill] sm:$0xff]  ;;  %v12433_v57 = vld [vmem:[#allocation29_spill] sm:$0xff] }
 0x329   : > { %vm12432_vm8 = vnez %v12431_v35  ;;  %vm12434_vm4 = vnez %v12433_v57  ;;  %v5117_v57 = vld [vmem:[#allocation2 + $0x34] sm:$0xf] }
 0x32a   : > { %v5289_v20 = vsel %vm12428_vm6, %v5280_v39, %v5288_v46  ;;  %v5258_v34 = vpack.c.b16 %v5228_v59, %v5227_v42  ;;  %v5147_v50 = vsel %vm12432_vm8, %v5114_v15, 0  ;;  %v5148_v42 = vsel %vm12434_vm4, %v5115_v19, 0  ;;  %v12438_v15 = vld [vmem:[#allocation99_spill] sm:$0xff]  ;;  %vm12474_vm4 = vmmov %vm12458_vm2 }
 0x32b   : > { %v5230_v39 = vunpack.c.l.b16 %v5148_v42  ;;  %v5116_v19 = vld [vmem:[#allocation2 + $0x30] sm:$0xf]  ;;  %v12441_v42 = vld [vmem:[#allocation30_spill] sm:$0xff] }
 0x32c   : > { %v5291_v40 = vshrl.u32 %v5258_v34, 16  ;;  %v5294_v0 = vshll.u32 %v5258_v34, 16  ;;  %vm12442_vm10 = vnez %v12441_v42 }
 0x32d   : > { %v3768_v56 = vpop.f32.mrf.mxu3 }
 0x32e   : > { %v11141_v63 = vadd.f32 %v3768_v56, %v12427_v6  ;;  %v5293_v61 = vrot.slane %v5291_v40, 3  ;;  %v5296_v58 = vrot.slane %v5294_v0, 4  ;;  %v5229_v6 = vunpack.c.l.b16 %v5147_v50 }
 0x330   : > { %v5297_v56 = vor.u32 %v5296_v58, %v5293_v61  ;;  %v5259_v0 = vpack.c.b16 %v5230_v39, %v5229_v6  ;;  %v7713_v39 = vld [vmem:[#allocation11 + $0x10] sm:$0xff] }
 0x331   : > { %6530 = vmatpush.bf16.msra.mxu2 %v7713_v39  ;;  %v5118_v39 = vld [vmem:[#allocation2 + $0x38] sm:$0xf] }
 0x332   : > { %5497 = vmatmul.bf16.vlgmr.msra.gmra.mxu3 %v5289_v20  ;;  %v12435_v20 = vld [vmem:[#allocation96_spill] sm:$0xff]  ;;  %v5298_v40 = vsel %vm12437_vm9, %v5288_v46, %v5297_v56  ;;  %v5303_v35 = vshll.u32 %v5259_v0, 16  ;;  %v12443_v46 = vld [vmem:[#allocation31_spill] sm:$0xff] }
 0x333   : > { %vm12444_vm7 = vnez %v12443_v46  ;;  %v12449_v46 = vld [vmem:[#allocation103_spill] sm:$0xff] }
 0x334   : > { %v5305_v58 = vrot.slane %v5303_v35, 4  ;;  %v5150_v6 = vsel %vm12444_vm7, %v5117_v57, 0 }
 0x335   : > { %v3771_v7 = vpop.f32.mrf.mxu3 }
 0x336   : > { %v11147_v54 = vadd.f32 %v3771_v7, %v12430_v10  ;;  %v11157_v7 = vpop.f32.mrf.mxu1  ;;  %v5300_v10 = vshrl.u32 %v5259_v0, 16 }
 0x337   : > { %12436 = vst [vmem:[#allocation72_spill] sm:$0xff] %v11157_v7 }
 0x338   : > { %6300 = vmatmul.bf16.gmra.mxu1 %v10853_v37  ;;  %v5302_v61 = vrot.slane %v5300_v10, 3 }
 0x33d   : > { %v3773_v59 = vpop.f32.mrf.mxu3 }
 0x33e   : > { %v11155_v34 = vadd.f32 %v3773_v59, %v12435_v20  ;;  %v11163_v50 = vpop.f32.mrf.mxu1  ;;  %v5149_v59 = vsel %vm12442_vm10, %v5116_v19, 0 }
 0x33f   : > { %12440 = vst [vmem:[#allocation97_spill] sm:$0xff] %v11163_v50  ;;  %v5231_v0 = vunpack.c.l.b16 %v5149_v59  ;;  %v12451_v59 = vld [vmem:[#allocation32_spill] sm:$0xff] }
 0x340   : > { %vm12452_vm14 = vnez %v12451_v59 }
 0x342   : > { %5502 = vmatmul.bf16.gmra.mxu3 %v5298_v40  ;;  %v5306_v40 = vor.u32 %v5305_v58, %v5302_v61 }
 0x344   : > { %v5307_v10 = vsel %vm12447_vm12, %v5297_v56, %v5306_v40  ;;  %v12453_v56 = vld [vmem:[#allocation33_spill] sm:$0xff] }
 0x345   : > { %v3776_v37 = vpop.f32.mrf.mxu3  ;;  %vm12454_vm1 = vnez %v12453_v56  ;;  %v12459_v56 = vld [vmem:[#allocation107_spill] sm:$0xff] }
 0x346   : > { %v11161_v11 = vadd.f32 %v3776_v37, %v12438_v15  ;;  %v5232_v37 = vunpack.c.l.b16 %v5150_v6  ;;  %v12445_v15 = vld [vmem:[#allocation101_spill] sm:$0xff]  ;;  %v5151_v6 = vsel %vm12452_vm14, %v5118_v39, 0  ;;  %vm12489_vm14 = vmmov %vm12458_vm2 }
 0x348   : > { %12439 = vst [vmem:[#allocation95_spill] sm:$0xff] %v11161_v11  ;;  %6305 = vmatmul.bf16.gmra.mxu1 %v10873_v48  ;;  %v5260_v35 = vpack.c.b16 %v5232_v37, %v5231_v0  ;;  %v11174_v48 = vpop.f32.mrf.mxu1 }
 0x349   : > { %12448 = vst [vmem:[#allocation79_spill] sm:$0xff] %v11174_v48  ;;  %v11189_v48 = vpop.f32.mrf.mxu2 }
 0x34a   : > { %v5309_v19 = vshrl.u32 %v5260_v35, 16  ;;  %v5312_v50 = vshll.u32 %v5260_v35, 16 }
 0x34c   : > { %v5311_v61 = vrot.slane %v5309_v19, 3  ;;  %v5314_v58 = vrot.slane %v5312_v50, 4 }
 0x34d   : > { %v3778_v20 = vpop.f32.mrf.mxu3 }
 0x34e   : > { %v11171_v7 = vadd.f32 %v3778_v20, %v12445_v15  ;;  %v5152_v20 = vsel %vm12454_vm1, %v5119_v9, 0  ;;  %v5315_v37 = vor.u32 %v5314_v58, %v5311_v61  ;;  %v5233_v15 = vunpack.c.l.b16 %v5151_v6  ;;  %v5120_v61 = vld [vmem:[#allocation2 + $0x40] sm:$0xf]  ;;  %v5121_v58 = vld [vmem:[#allocation2 + $0x44] sm:$0xf] }
 0x350   : > { %12446 = vst [vmem:[#allocation76_spill] sm:$0xff] %v11171_v7  ;;  %v11184_v35 = vpop.f32.mrf.mxu1  ;;  %v5316_v50 = vsel %vm12458_vm2, %v5306_v40, %v5315_v37 }
 0x351   : > { %12455 = vst [vmem:[#allocation25_spill] sm:$0xff] %v11184_v35  ;;  %v12461_v35 = vld [vmem:[#allocation34_spill] sm:$0xff] }
 0x352   : > { %5507 = vmatmul.bf16.gmra.mxu3 %v5307_v10  ;;  %v5234_v10 = vunpack.c.l.b16 %v5152_v20  ;;  %v11197_v20 = vpop.f32.mrf.mxu2  ;;  %vm12462_vm0 = vnez %v12461_v35 }
 0x353   : > { %v5153_v40 = vsel %vm12462_vm0, %v5120_v61, 0 }
 0x355   : > { %v3781_v42 = vpop.f32.mrf.mxu3 }
 0x356   : > { %v11177_v57 = vadd.f32 %v3781_v42, %v12449_v46  ;;  %v12456_v42 = vld [vmem:[#allocation105_spill] sm:$0xff] }
 0x358   : > { %12450 = vst [vmem:[#allocation24_spill] sm:$0xff] %v11177_v57  ;;  %6310 = vmatmul.bf16.gmra.mxu1 %v10899_v30  ;;  %v5261_v30 = vpack.c.b16 %v5234_v10, %v5233_v15  ;;  %v11195_v6 = vpop.f32.mrf.mxu1  ;;  %v12463_v15 = vld [vmem:[#allocation35_spill] sm:$0xff] }
 0x359   : > { %vm12464_vm15 = vnez %v12463_v15 }
 0x35a   : > { %v5318_v39 = vshrl.u32 %v5261_v30, 16  ;;  %v5321_v59 = vshll.u32 %v5261_v30, 16  ;;  %v5154_v10 = vsel %vm12464_vm15, %v5121_v58, 0 }
 0x35d   : > { %v3783_v0 = vpop.f32.mrf.mxu3 }
 0x35e   : > { %v11187_v46 = vadd.f32 %v3783_v0, %v12456_v42  ;;  %v5320_v0 = vrot.slane %v5318_v39, 3  ;;  %v5323_v42 = vrot.slane %v5321_v59, 4 }
 0x360   : > { %12457 = vst [vmem:[#allocation83_spill] sm:$0xff] %v11187_v46  ;;  %v12465_v46 = vld [vmem:[#allocation110_spill] sm:$0xff]  ;;  %v11208_v7 = vpop.f32.mrf.mxu1 }
 0x362   : > { %5512 = vmatmul.bf16.gmra.mxu3 %v5316_v50  ;;  %v7712_v50 = vld [vmem:[#allocation11 + $0x8] sm:$0xff] }
 0x363   : > { %6531 = vmatpush.bf16.msra.mxu2 %v7712_v50 }
 0x365   : > { %v3786_v19 = vpop.f32.mrf.mxu3 }
 0x366   : > { %v11193_v9 = vadd.f32 %v3786_v19, %v12459_v56  ;;  %v5324_v19 = vor.u32 %v5323_v42, %v5320_v0  ;;  %v5235_v56 = vunpack.c.l.b16 %v5153_v40  ;;  %v5122_v0 = vld [vmem:[#allocation2 + $0x48] sm:$0xf]  ;;  %v5123_v42 = vld [vmem:[#allocation2 + $0x4c] sm:$0xf] }
 0x368   : > { %12460 = vst [vmem:[#allocation87_spill] sm:$0xff] %v11193_v9  ;;  %6315 = vmatmul.bf16.gmra.mxu1 %v10919_v27  ;;  %v5236_v9 = vunpack.c.l.b16 %v5154_v10  ;;  %v5325_v39 = vsel %vm12467_vm13, %v5315_v37, %v5324_v19  ;;  %v11210_v27 = vpop.f32.mrf.mxu2 }
 0x36a   : > { %v5262_v59 = vpack.c.b16 %v5236_v9, %v5235_v56  ;;  %v12471_v9 = vld [vmem:[#allocation37_spill] sm:$0xff] }
 0x36b   : > { %vm12472_vm8 = vnez %v12471_v9 }
 0x36c   : > { %v5327_v61 = vshrl.u32 %v5262_v59, 16  ;;  %v5330_v58 = vshll.u32 %v5262_v59, 16  ;;  %v5156_v50 = vsel %vm12472_vm8, %v5123_v42, 0 }
 0x36d   : > { %v3788_v30 = vpop.f32.mrf.mxu3 }
 0x36e   : > { %v11205_v57 = vadd.f32 %v3788_v30, %v12465_v46  ;;  %v5329_v40 = vrot.slane %v5327_v61, 3  ;;  %v5332_v10 = vrot.slane %v5330_v58, 4  ;;  %v12469_v46 = vld [vmem:[#allocation36_spill] sm:$0xff]  ;;  %v11220_v30 = vpop.f32.mrf.mxu1  ;;  %v5921_v58 = vld [vmem:[#allocation2 + $0x8c] sm:$0xf] }
 0x36f   : > { %vm12470_vm6 = vnez %v12469_v46 }
 0x370   : > { %12466 = vst [vmem:[#allocation74_spill] sm:$0xff] %v11205_v57  ;;  %v5155_v37 = vsel %vm12470_vm6, %v5122_v0, 0  ;;  %v11222_v56 = vpop.f32.mrf.mxu2  ;;  %v5333_v59 = vor.u32 %v5332_v10, %v5329_v40  ;;  %v5922_v0 = vld [vmem:[#allocation2 + $0x90] sm:$0xf]  ;;  %v5954_v40 = vsel %vm10894_vm3, %v5921_v58, 0  ;;  %vm12481_vm3 = vmmov %vm12458_vm2 }
 0x371   : > { %vm12499_vm0 = vmmov %vm12481_vm3 }
 0x372   : > { %5517 = vmatmul.bf16.gmra.mxu3 %v5325_v39  ;;  %v5334_v61 = vsel %vm12474_vm4, %v5324_v19, %v5333_v59  ;;  %v5124_v19 = vld [vmem:[#allocation2 + $0x50] sm:$0xf]  ;;  %vm12509_vm6 = vmmov %vm12499_vm0 }
 0x375   : > { %v3791_v35 = vpop.f32.mrf.mxu3 }
 0x376   : > { %v11213_v15 = vadd.f32 %v3791_v35, %v10741_v16  ;;  %v5237_v16 = vunpack.c.l.b16 %v5155_v37  ;;  %v5238_v35 = vunpack.c.l.b16 %v5156_v50  ;;  %v11228_v57 = vpop.f32.mrf.mxu1  ;;  %v5125_v37 = vld [vmem:[#allocation2 + $0x54] sm:$0xf]  ;;  %v7711_v50 = vld [vmem:[#allocation11] sm:$0xff] }
 0x377   : > { %6532 = vmatpush.bf16.msra.mxu2 %v7711_v50 }
 0x378   : > { %12468 = vst [vmem:[#allocation26_spill] sm:$0xff] %v11213_v15  ;;  %6320 = vmatmul.bf16.gmra.mxu1 %v10934_v53  ;;  %v5263_v53 = vpack.c.b16 %v5238_v35, %v5237_v16  ;;  %v11237_v10 = vpop.f32.mrf.mxu2  ;;  %v6036_v35 = vunpack.c.l.b16 %v5954_v40 }
 0x37a   : > { %v5336_v9 = vshrl.u32 %v5263_v53, 16  ;;  %v5339_v42 = vshll.u32 %v5263_v53, 16  ;;  %v12476_v53 = vld [vmem:[#allocation38_spill] sm:$0xff] }
 0x37b   : > { %vm12477_vm9 = vnez %v12476_v53  ;;  %v5126_v53 = vld [vmem:[#allocation2 + $0x58] sm:$0xf] }
 0x37c   : > { %v5341_v16 = vrot.slane %v5339_v42, 4 }
 0x37d   : > { %v3793_v39 = vpop.f32.mrf.mxu3 }
 0x37e   : > { %v11225_v15 = vadd.f32 %v3793_v39, %v10786_v36  ;;  %v5955_v36 = vsel %vm10907_vm11, %v5922_v0, 0  ;;  %v5338_v39 = vrot.slane %v5336_v9, 3  ;;  %v11249_v42 = vpop.f32.mrf.mxu1  ;;  %vm12483_vm11 = vsmask.f32 7424 }
 0x380   : > { %12473 = vst [vmem:[#allocation27_spill] sm:$0xff] %v11225_v15  ;;  %v5342_v58 = vor.u32 %v5341_v16, %v5338_v39  ;;  %v11251_v40 = vpop.f32.mrf.mxu2 }
 0x382   : > { %5522 = vmatmul.bf16.gmra.mxu3 %v5334_v61  ;;  %v6037_v61 = vunpack.c.l.b16 %v5955_v36  ;;  %v6172_v36 = vshrl.u32 %v10921_v26, 16 }
 0x384   : > { %v11244_v0 = vpack.c.b16 %v6037_v61, %v6036_v35  ;;  %v6174_v39 = vor.u32 %v6172_v36, %v10936_v52 }
 0x385   : > { %v3796_v46 = vpop.f32.mrf.mxu3 }
 0x386   : > { %v11231_v11 = vadd.f32 %v3796_v46, %v10837_v22  ;;  %v5157_v22 = vsel %vm12477_vm9, %v5124_v19, 0  ;;  %v12478_v46 = vld [vmem:[#allocation39_spill] sm:$0xff]  ;;  %v6176_v19 = vshll.u32 %v11244_v0, 16  ;;  %vm12518_vm9 = vmmov %vm12499_vm0 }
 0x387   : > { %vm12479_vm10 = vnez %v12478_v46 }
 0x388   : > { %12475 = vst [vmem:[#allocation91_spill] sm:$0xff] %v11231_v11  ;;  %6325 = vmatmul.bf16.gmra.mxu1 %v10942_v1  ;;  %v5158_v13 = vsel %vm12479_vm10, %v5125_v37, 0  ;;  %v5239_v11 = vunpack.c.l.b16 %v5157_v22  ;;  %v5343_v1 = vsel %vm12481_vm3, %v5333_v59, %v5342_v58  ;;  %v11257_v16 = vrot.slane %v6176_v19, 1  ;;  %v5127_v22 = vld [vmem:[#allocation2 + $0x5c] sm:$0xf] }
 0x389   : > { %v5240_v15 = vunpack.c.l.b16 %v5158_v13  ;;  %v11264_v13 = vpop.f32.mrf.mxu1 }
 0x38a   : > { %v6179_v59 = vsel %vm12483_vm11, %v6174_v39, %v11257_v16  ;;  %vm12527_vm11 = vmmov %vm12499_vm0 }
 0x38b   : > { %v5264_v37 = vpack.c.b16 %v5240_v15, %v5239_v11  ;;  %v12484_v11 = vld [vmem:[#allocation40_spill] sm:$0xff]  ;;  %v12486_v15 = vld [vmem:[#allocation41_spill] sm:$0xff] }
 0x38c   : > { %vm12485_vm7 = vnez %v12484_v11  ;;  %vm12487_vm12 = vnez %v12486_v15  ;;  %v5128_v15 = vld [vmem:[#allocation2 + $0x60] sm:$0xf] }
 0x38d   : > { %v3798_v28 = vpop.f32.mrf.mxu3  ;;  %v5345_v35 = vshrl.u32 %v5264_v37, 16  ;;  %v5159_v52 = vsel %vm12485_vm7, %v5126_v53, 0 }
 0x38e   : > { %v11247_v9 = vadd.f32 %v3798_v28, %v10885_v45  ;;  %v5348_v45 = vshll.u32 %v5264_v37, 16  ;;  %v5160_v28 = vsel %vm12487_vm12, %v5127_v22, 0  ;;  %v5241_v19 = vunpack.c.l.b16 %v5159_v52  ;;  %v12491_v52 = vld [vmem:[#allocation42_spill] sm:$0xff] }
 0x38f   : > { %v5347_v26 = vrot.slane %v5345_v35, 3  ;;  %v5242_v37 = vunpack.c.l.b16 %v5160_v28  ;;  %vm12492_vm1 = vnez %v12491_v52  ;;  %v12493_v28 = vld [vmem:[#allocation43_spill] sm:$0xff] }
 0x390   : > { %12480 = vst [vmem:[#allocation94_spill] sm:$0xff] %v11247_v9  ;;  %v5350_v46 = vrot.slane %v5348_v45, 4  ;;  %vm12494_vm2 = vnez %v12493_v28 }
 0x391   : > { %v5265_v35 = vpack.c.b16 %v5242_v37, %v5241_v19 }
 0x392   : > { %5527 = vmatmul.bf16.gmra.mxu3 %v5343_v1  ;;  %v11270_v1 = vpop.f32.mrf.mxu2  ;;  %v5351_v36 = vor.u32 %v5350_v46, %v5347_v26 }
 0x393   : > { %v5354_v53 = vshrl.u32 %v5265_v35, 16  ;;  %v5357_v11 = vshll.u32 %v5265_v35, 16 }
 0x394   : > { %v5352_v39 = vsel %vm12489_vm14, %v5342_v58, %v5351_v36  ;;  %vm12538_vm14 = vmmov %vm12499_vm0 }
 0x395   : > { %v3801_v50 = vpop.f32.mrf.mxu3  ;;  %v5356_v26 = vrot.slane %v5354_v53, 3  ;;  %v5359_v46 = vrot.slane %v5357_v11, 4  ;;  %v12498_v53 = vld [vmem:[#allocation106_spill] sm:$0xff] }
 0x396   : > { %v11260_v61 = vadd.f32 %v3801_v50, %v10930_v21 }
 0x398   : > { %12482 = vst [vmem:[#allocation28_spill] sm:$0xff] %v11260_v61  ;;  %6330 = vmatmul.bf16.gmra.mxu1 %v6179_v59  ;;  %v5129_v61 = vld [vmem:[#allocation2 + $0x64] sm:$0xf] }
 0x399   : > { %v5162_v58 = vsel %vm12494_vm2, %v5129_v61, 0  ;;  %v12500_v61 = vld [vmem:[#allocation55_spill] sm:$0xff] }
 0x39a   : > { %v11276_v45 = vpop.f32.mrf.mxu2  ;;  %v5244_v35 = vunpack.c.l.b16 %v5162_v58  ;;  %v4314_v28 = vadd.f32 %v12500_v61, %v11008_v12  ;;  %v5130_v58 = vld [vmem:[#allocation2 + $0x68] sm:$0xf]  ;;  %v12507_v61 = vld [vmem:[#allocation57_spill] sm:$0xff] }
 0x39d   : > { %v3803_v21 = vpop.f32.mrf.mxu3 }
 0x39e   : > { %v11273_v50 = vadd.f32 %v3803_v21, %v10947_v41  ;;  %v5161_v41 = vsel %vm12492_vm1, %v5128_v15, 0  ;;  %v12495_v21 = vld [vmem:[#allocation53_spill] sm:$0xff] }
 0x39f   : > { %v4313_v19 = vadd.f32 %v12495_v21, %v10996_v17 }
 0x3a0   : > { %12488 = vst [vmem:[#allocation29_spill] sm:$0xff] %v11273_v50  ;;  %v5243_v50 = vunpack.c.l.b16 %v5161_v41  ;;  %v11297_v41 = vpop.f32.mrf.mxu0 }
 0x3a1   : > { %v4594_v11 = vadd.f32 %v12498_v53, %v4313_v19  ;;  %v12502_v19 = vld [vmem:[#allocation109_spill] sm:$0xff] }
 0x3a2   : > { %5532 = vmatmul.bf16.gmra.mxu3 %v5352_v39  ;;  %v5360_v39 = vor.u32 %v5359_v46, %v5356_v26  ;;  %v5266_v15 = vpack.c.b16 %v5244_v35, %v5243_v50  ;;  %v4595_v53 = vadd.f32 %v12502_v19, %v4314_v28 }
 0x3a4   : > { %v5361_v52 = vsel %vm12499_vm0, %v5351_v36, %v5360_v39  ;;  %v5363_v26 = vshrl.u32 %v5266_v15, 16  ;;  %v5366_v46 = vshll.u32 %v5266_v15, 16 }
 0x3a5   : > { %v3806_v59 = vpop.f32.mrf.mxu3 }
 0x3a6   : > { %v11279_v22 = vadd.f32 %v3806_v59, %v10970_v60  ;;  %v11290_v59 = vpop.f32.mrf.mxu2  ;;  %v5365_v50 = vrot.slane %v5363_v26, 3  ;;  %v5368_v35 = vrot.slane %v5366_v46, 4 }
 0x3a7   : > { %12497 = vst [vmem:[#allocation30_spill] sm:$0xff] %v11290_v59 }
 0x3a8   : > { %12490 = vst [vmem:[#allocation96_spill] sm:$0xff] %v11279_v22  ;;  %v12501_v22 = vld [vmem:[#allocation125_spill] sm:$0xff]  ;;  %v5369_v59 = vor.u32 %v5368_v35, %v5365_v50 }
 0x3a9   : > { %v5076_v17 = vadd.f32 %v12501_v22, %v4594_v11  ;;  %v12505_v11 = vld [vmem:[#allocation47_spill] sm:$0xff] }
 0x3aa   : > { %vm12506_vm13 = vnez %v12505_v11 }
 0x3ad   : > { %v3808_v37 = vpop.f32.mrf.mxu3 }
 0x3ae   : > { %v11288_v60 = vadd.f32 %v3808_v37, %v10985_v43  ;;  %v5131_v37 = vld [vmem:[#allocation2 + $0x6c] sm:$0xf]  ;;  %v11302_v36 = vpop.f32.mrf.mxu2 }
 0x3af   : > { %v5164_v15 = vsel %vm12506_vm13, %v5131_v37, 0  ;;  %v12508_v37 = vld [vmem:[#allocation112_spill] sm:$0xff]  ;;  %vm12557_vm13 = vmmov %vm12499_vm0 }
 0x3b0   : > { %12496 = vst [vmem:[#allocation99_spill] sm:$0xff] %v11288_v60  ;;  %v11299_v60 = vpop.f32.mrf.mxu1  ;;  %v5246_v19 = vunpack.c.l.b16 %v5164_v15 }
 0x3b2   : > { %5537 = vmatmul.bf16.gmra.mxu3 %v5361_v52  ;;  %v12503_v52 = vld [vmem:[#allocation46_spill] sm:$0xff] }
 0x3b3   : > { %vm12504_vm15 = vnez %v12503_v52 }
 0x3b4   : > { %v5163_v22 = vsel %vm12504_vm15, %v5130_v58, 0  ;;  %vm12555_vm15 = vsmask.f32 7424 }
 0x3b5   : > { %v5498_v21 = vpop.f32.mrf.mxu3  ;;  %v5245_v28 = vunpack.c.l.b16 %v5163_v22 }
 0x3b6   : > { %v5578_v43 = vadd.f32 %v5498_v21, %v5076_v17  ;;  %v4315_v17 = vadd.f32 %v12507_v61, %v11012_v5  ;;  %v5077_v21 = vadd.f32 %v10757_v24, %v4595_v53  ;;  %v5370_v24 = vsel %vm12509_vm6, %v5360_v39, %v5369_v59  ;;  %vm12563_vm6 = vmmov %vm12499_vm0 }
 0x3b7   : > { %v5267_v53 = vpack.c.b16 %v5246_v19, %v5245_v28  ;;  %v5132_v28 = vld [vmem:[#allocation2 + $0x70] sm:$0xf]  ;;  %v5133_v19 = vld [vmem:[#allocation2 + $0x74] sm:$0xf] }
 0x3b8   : > { %v5859_v12 = vadd.f32 %v11039_v31, %v5578_v43  ;;  %v11316_v31 = vld [vmem:[%s11704_s5] ss:$0 sm:$0xff]  ;;  %v11318_v43 = vpop.f32.mrf.mxu0  ;;  %v4596_v5 = vadd.f32 %v12508_v37, %v4315_v17  ;;  %v11323_v50 = vpop.f32.mrf.mxu1 }
 0x3b9   : > { %v5372_v15 = vshrl.u32 %v5267_v53, 16  ;;  %v5375_v39 = vshll.u32 %v5267_v53, 16 }
 0x3ba   : > { %v6341_v26 = vadd.f32 %v11195_v6, %v5859_v12  ;;  %v11327_v12 = vpop.f32.mrf.mxu2 }
 0x3bb   : > { %v5377_v37 = vrot.slane %v5375_v39, 4 }
 0x3bc   : > { %v6377_v35 = vadd.f32 %v11316_v31, %v6341_v26 }
 0x3bd   : > { %v5500_v9 = vpop.f32.mrf.mxu3 }
 0x3be   : > { %v5579_v46 = vadd.f32 %v5500_v9, %v5077_v21  ;;  %v12510_v9 = vld [vmem:[#allocation61_spill] sm:$0xff]  ;;  %v6409_v61 = vmax.f32 %v6377_v35, 0.0  ;;  %v12516_v35 = vld [vmem:[#allocation63_spill] sm:$0xff] }
 0x3bf   : > { %v4316_v52 = vadd.f32 %v12510_v9, %v11024_v33  ;;  %v4317_v9 = vadd.f32 %v12516_v35, %v11032_v29 }
 0x3c0   : > { %v5860_v58 = vadd.f32 %v11047_v8, %v5579_v46  ;;  %v5078_v8 = vadd.f32 %v10826_v18, %v4596_v5  ;;  %v12514_v5 = vld [vmem:[#allocation51_spill] sm:$0xff] }
 0x3c1   : > { %vm12515_vm4 = vnez %v12514_v5 }
 0x3c2   : > { %v6342_v6 = vadd.f32 %v11208_v7, %v5860_v58  ;;  %5542 = vmatmul.bf16.gmra.mxu3 %v5370_v24  ;;  %v12511_v7 = vld [vmem:[#allocation115_spill] sm:$0xff]  ;;  %v5374_v58 = vrot.slane %v5372_v15, 3  ;;  %v11334_v24 = vpop.f32.mrf.mxu0  ;;  %v5166_v53 = vsel %vm12515_vm4, %v5133_v19, 0 }
 0x3c3   : > { %v4597_v46 = vadd.f32 %v12511_v7, %v4316_v52 }
 0x3c4   : > { %v6378_v22 = vadd.f32 %v11316_v31, %v6342_v6  ;;  %v12512_v6 = vld [vmem:[#allocation50_spill] sm:$0xff]  ;;  %v5378_v15 = vor.u32 %v5377_v37, %v5374_v58 }
 0x3c5   : > { %v5503_v11 = vpop.f32.mrf.mxu3  ;;  %vm12513_vm8 = vnez %v12512_v6  ;;  %v5079_v52 = vadd.f32 %v10882_v2, %v4597_v46  ;;  %v12519_v46 = vld [vmem:[#allocation69_spill] sm:$0xff] }
 0x3c6   : > { %v6410_v17 = vmax.f32 %v6378_v22, 0.0  ;;  %v5580_v21 = vadd.f32 %v5503_v11, %v5078_v8  ;;  %v5165_v18 = vsel %vm12513_vm8, %v5132_v28, 0  ;;  %v11343_v22 = vpop.f32.mrf.mxu1  ;;  %v11346_v8 = vpop.f32.mrf.mxu2  ;;  %v12517_v28 = vld [vmem:[#allocation116_spill] sm:$0xff]  ;;  %v4318_v58 = vadd.f32 %v12519_v46, %v11044_v4  ;;  %v12520_v4 = vld [vmem:[#allocation119_spill] sm:$0xff] }
 0x3c7   : > { %v5247_v39 = vunpack.c.l.b16 %v5165_v18  ;;  %v4598_v19 = vadd.f32 %v12517_v28, %v4317_v9  ;;  %v5134_v9 = vld [vmem:[#allocation2 + $0x78] sm:$0xf]  ;;  %v12523_v28 = vld [vmem:[#allocation67_spill] sm:$0xff] }
 0x3c8   : > { %v6441_v26 = vpack.c.bf16 %v6410_v17, %v6409_v61  ;;  %v5861_v33 = vadd.f32 %v11062_v32, %v5580_v21  ;;  %v5248_v32 = vunpack.c.l.b16 %v5166_v53  ;;  %vm12524_vm3 = vnez %v12523_v28  ;;  %v5137_v28 = vld [vmem:[#allocation2 + $0x84] sm:$0xf] }
 0x3ca   : > { %6533 = vmatmul.bf16.vlgmr.msra.gmra.mxu2 %v6441_v26  ;;  %v6343_v61 = vadd.f32 %v11220_v30, %v5861_v33  ;;  %v5379_v26 = vsel %vm12518_vm9, %v5369_v59, %v5378_v15  ;;  %v5268_v29 = vpack.c.b16 %v5248_v32, %v5247_v39  ;;  %v11356_v37 = vpop.f32.mrf.mxu0  ;;  %v5080_v30 = vadd.f32 %v10938_v25, %v4598_v19 }
 0x3cb   : > { %v4599_v39 = vadd.f32 %v12520_v4, %v4318_v58 }
 0x3cc   : > { %v6379_v2 = vadd.f32 %v11316_v31, %v6343_v61  ;;  %v5381_v6 = vshrl.u32 %v5268_v29, 16  ;;  %v5384_v18 = vshll.u32 %v5268_v29, 16 }
 0x3cd   : > { %v5505_v11 = vpop.f32.mrf.mxu3 }
 0x3ce   : > { %v5581_v17 = vadd.f32 %v5505_v11, %v5079_v52  ;;  %v11360_v5 = vpop.f32.mrf.mxu1  ;;  %v6411_v53 = vmax.f32 %v6379_v2, 0.0  ;;  %v11362_v35 = vpop.f32.mrf.mxu2  ;;  %v5135_v52 = vld [vmem:[#allocation2 + $0x7c] sm:$0xf]  ;;  %v5383_v32 = vrot.slane %v5381_v6, 3  ;;  %v5386_v61 = vrot.slane %v5384_v18, 4 }
 0x3cf   : > { %v5168_v19 = vsel %vm12524_vm3, %v5135_v52, 0 }
 0x3d0   : > { %v5862_v21 = vadd.f32 %v11074_v49, %v5581_v17  ;;  %v12521_v17 = vld [vmem:[#allocation66_spill] sm:$0xff]  ;;  %v5387_v46 = vor.u32 %v5386_v61, %v5383_v32  ;;  %v5250_v58 = vunpack.c.l.b16 %v5168_v19 }
 0x3d1   : > { %vm12522_vm10 = vnez %v12521_v17 }
 0x3d2   : > { %v6344_v7 = vadd.f32 %v11228_v57, %v5862_v21  ;;  %5547 = vmatmul.bf16.gmra.mxu3 %v5379_v26  ;;  %v5167_v21 = vsel %vm12522_vm10, %v5134_v9, 0  ;;  %v12525_v26 = vld [vmem:[#allocation73_spill] sm:$0xff] }
 0x3d3   : > { %v4319_v29 = vadd.f32 %v12525_v26, %v11052_v23  ;;  %v5388_v23 = vsel %vm12527_vm11, %v5378_v15, %v5387_v46  ;;  %v5136_v15 = vld [vmem:[#allocation2 + $0x80] sm:$0xf]  ;;  %v12529_v26 = vld [vmem:[#allocation124_spill] sm:$0xff] }
 0x3d4   : > { %v6380_v33 = vadd.f32 %v11316_v31, %v6344_v7  ;;  %v5081_v7 = vadd.f32 %v10962_v62, %v4599_v39 }
 0x3d5   : > { %v5508_v49 = vpop.f32.mrf.mxu3 }
 0x3d6   : > { %v5582_v59 = vadd.f32 %v5508_v49, %v5080_v30  ;;  %v6412_v57 = vmax.f32 %v6380_v33, 0.0  ;;  %v5249_v30 = vunpack.c.l.b16 %v5167_v21  ;;  %v11373_v33 = vpop.f32.mrf.mxu0  ;;  %v11376_v6 = vpop.f32.mrf.mxu1 }
 0x3d8   : > { %v6442_v11 = vpack.c.bf16 %v6412_v57, %v6411_v53  ;;  %v5863_v25 = vadd.f32 %v11087_v44, %v5582_v59  ;;  %v12526_v59 = vld [vmem:[#allocation121_spill] sm:$0xff]  ;;  %v11380_v57 = vpop.f32.mrf.mxu2  ;;  %v5269_v62 = vpack.c.b16 %v5250_v58, %v5249_v30  ;;  %v12530_v30 = vld [vmem:[#allocation75_spill] sm:$0xff] }
 0x3d9   : > { %v4600_v53 = vadd.f32 %v12526_v59, %v4319_v29  ;;  %vm12531_vm7 = vnez %v12530_v30  ;;  %v12534_v59 = vld [vmem:[#allocation52_spill] sm:$0xff] }
 0x3da   : > { %6538 = vmatmul.bf16.gmra.mxu2 %v6442_v11  ;;  %v6345_v44 = vadd.f32 %v11249_v42, %v5863_v25  ;;  %v12528_v11 = vld [vmem:[#allocation77_spill] sm:$0xff]  ;;  %v5390_v32 = vshrl.u32 %v5269_v62, 16  ;;  %v5393_v61 = vshll.u32 %v5269_v62, 16  ;;  %v5169_v58 = vsel %vm12531_vm7, %v5136_v15, 0  ;;  %v12536_v62 = vld [vmem:[#allocation138_spill] sm:$0xff] }
 0x3db   : > { %v4320_v42 = vadd.f32 %v12528_v11, %v11060_v47  ;;  %v5082_v4 = vadd.f32 %v10982_v55, %v4600_v53  ;;  %v12535_v53 = vld [vmem:[#allocation80_spill] sm:$0xff] }
 0x3dc   : > { %v6381_v52 = vadd.f32 %v11316_v31, %v6345_v44  ;;  %v12532_v44 = vld [vmem:[#allocation78_spill] sm:$0xff] }
 0x3dd   : > { %v5510_v2 = vpop.f32.mrf.mxu3  ;;  %v4601_v29 = vadd.f32 %v12529_v26, %v4320_v42  ;;  %vm12533_vm12 = vnez %v12532_v44  ;;  %v5251_v42 = vunpack.c.l.b16 %v5169_v58  ;;  %v12540_v26 = vld [vmem:[#allocation86_spill] sm:$0xff] }
 0x3de   : > { %v5583_v49 = vadd.f32 %v5510_v2, %v5081_v7  ;;  %v6413_v17 = vmax.f32 %v6381_v52, 0.0  ;;  %v11389_v19 = vpop.f32.mrf.mxu0  ;;  %v5392_v7 = vrot.slane %v5390_v32, 3  ;;  %v5395_v2 = vrot.slane %v5393_v61, 4  ;;  %v11392_v47 = vpop.f32.mrf.mxu1  ;;  %v12537_v32 = vld [vmem:[#allocation127_spill] sm:$0xff] }
 0x3e0   : > { %v5864_v18 = vadd.f32 %v11100_v14, %v5583_v49  ;;  %v5170_v49 = vsel %vm12533_vm12, %v5137_v28, 0  ;;  %v5396_v11 = vor.u32 %v5395_v2, %v5392_v7 }
 0x3e2   : > { %v6346_v9 = vadd.f32 %v11264_v13, %v5864_v18  ;;  %5552 = vmatmul.bf16.gmra.mxu3 %v5388_v23  ;;  %v11399_v18 = vpop.f32.mrf.mxu2  ;;  %v4321_v23 = vadd.f32 %v12535_v53, %v12534_v59  ;;  %v5139_v59 = vld [vmem:[#allocation2 + $0x8c] sm:$0xf] }
 0x3e4   : > { %v6382_v39 = vadd.f32 %v11316_v31, %v6346_v9  ;;  %v5083_v9 = vadd.f32 %v12536_v62, %v4601_v29  ;;  %v4602_v61 = vadd.f32 %v12537_v32, %v4321_v23  ;;  %v12541_v23 = vld [vmem:[#allocation129_spill] sm:$0xff]  ;;  %v12547_v32 = vld [vmem:[#allocation88_spill] sm:$0xff] }
 0x3e5   : > { %v5513_v14 = vpop.f32.mrf.mxu3 }
 0x3e6   : > { %v5584_v25 = vadd.f32 %v5513_v14, %v5082_v4  ;;  %v6414_v21 = vmax.f32 %v6382_v39, 0.0  ;;  %v5252_v4 = vunpack.c.l.b16 %v5170_v49  ;;  %v11414_v7 = vpop.f32.mrf.mxu1  ;;  %v5138_v49 = vld [vmem:[#allocation2 + $0x88] sm:$0xf] }
 0x3e8   : > { %v6443_v13 = vpack.c.bf16 %v6414_v21, %v6413_v17  ;;  %v5865_v55 = vadd.f32 %v11297_v41, %v5584_v25  ;;  %v5397_v25 = vsel %vm12538_vm14, %v5387_v46, %v5396_v11  ;;  %v5270_v17 = vpack.c.b16 %v5252_v4, %v5251_v42  ;;  %v11408_v21 = vpop.f32.mrf.mxu0 }
 0x3ea   : > { %6543 = vmatmul.bf16.gmra.mxu2 %v6443_v13  ;;  %v6347_v41 = vadd.f32 %v11299_v60, %v5865_v55  ;;  %v12539_v13 = vld [vmem:[#allocation70_spill] sm:$0xff]  ;;  %v5084_v60 = vadd.f32 %v11189_v48, %v4602_v61  ;;  %v11418_v2 = vpop.f32.mrf.mxu2  ;;  %v5399_v55 = vshrl.u32 %v5270_v17, 16  ;;  %v5402_v30 = vshll.u32 %v5270_v17, 16  ;;  %v12542_v48 = vld [vmem:[#allocation84_spill] sm:$0xff] }
 0x3eb   : > { %v4322_v29 = vadd.f32 %v12540_v26, %v12539_v13  ;;  %vm12543_vm1 = vnez %v12542_v48 }
 0x3ec   : > { %v6383_v28 = vadd.f32 %v11316_v31, %v6347_v41  ;;  %v5171_v4 = vsel %vm12543_vm1, %v5138_v49, 0  ;;  %v12544_v41 = vld [vmem:[#allocation85_spill] sm:$0xff]  ;;  %v7686_v49 = vld [vmem:[#allocation2 + $0x8c] sm:$0xff] }
 0x3ed   : > { %v5515_v52 = vpop.f32.mrf.mxu3  ;;  %v4603_v62 = vadd.f32 %v12541_v23, %v4322_v29  ;;  %vm12545_vm2 = vnez %v12544_v41  ;;  %v5253_v13 = vunpack.c.l.b16 %v5171_v4  ;;  %5853 = vmatmul.bf16.gmra.mxu0 %v7686_v49 }
 0x3ee   : > { %v5585_v39 = vadd.f32 %v5515_v52, %v5083_v9  ;;  %v6415_v44 = vmax.f32 %v6383_v28, 0.0  ;;  %v5401_v9 = vrot.slane %v5399_v55, 3  ;;  %v5404_v52 = vrot.slane %v5402_v30, 4  ;;  %v11431_v29 = vpop.f32.mrf.mxu1  ;;  %v12548_v55 = vld [vmem:[#allocation131_spill] sm:$0xff] }
 0x3ef   : > { %v5085_v17 = vadd.f32 %v11197_v20, %v4603_v62 }
 0x3f0   : > { %v5866_v14 = vadd.f32 %v11318_v43, %v5585_v39  ;;  %v5172_v39 = vsel %vm12545_vm2, %v5139_v59, 0  ;;  %v5405_v28 = vor.u32 %v5404_v52, %v5401_v9  ;;  %v5923_v59 = vld [vmem:[#allocation2 + $0x94] sm:$0x1]  ;;  %v6180_v9 = vshrl.u32 %v11244_v0, 16 }
 0x3f1   : > { %v5254_v26 = vunpack.c.l.b16 %v5172_v39  ;;  %v5956_v23 = vsel %vm10958_vm5, %v5923_v59, 0 }
 0x3f2   : > { %v6348_v15 = vadd.f32 %v11323_v50, %v5866_v14  ;;  %5557 = vmatmul.bf16.gmra.mxu3 %v5397_v25  ;;  %v12546_v14 = vld [vmem:[#allocation56_spill] sm:$0xff]  ;;  %v11428_v25 = vpop.f32.mrf.mxu0 }
 0x3f3   : > { %v4323_v61 = vadd.f32 %v12547_v32, %v12546_v14  ;;  %v5140_v14 = vld [vmem:[#allocation2 + $0x90] sm:$0xf] }
 0x3f4   : > { %v6384_v43 = vadd.f32 %v11316_v31, %v6348_v15 }
 0x3f5   : > { %v5518_v46 = vpop.f32.mrf.mxu3  ;;  %v4604_v30 = vadd.f32 %v12548_v55, %v4323_v61 }
 0x3f6   : > { %v5586_v58 = vadd.f32 %v5518_v46, %v5084_v60  ;;  %v6416_v50 = vmax.f32 %v6384_v43, 0.0  ;;  %v11434_v43 = vpop.f32.mrf.mxu2  ;;  %v11450_v51 = vpop.f32.mrf.mxu1 }
 0x3f8   : > { %v6444_v53 = vpack.c.bf16 %v6416_v50, %v6415_v44  ;;  %v5867_v42 = vadd.f32 %v11334_v24, %v5586_v58  ;;  %v5406_v58 = vsel %vm12499_vm0, %v5396_v11, %v5405_v28  ;;  %v5271_v44 = vpack.c.b16 %v5254_v26, %v5253_v13 }
 0x3f9   : > { %v6038_v11 = vunpack.c.l.b16 %v5956_v23 }
 0x3fa   : > { %6548 = vmatmul.bf16.gmra.mxu2 %v6444_v53  ;;  %v6349_v24 = vadd.f32 %v11343_v22, %v5867_v42  ;;  %v12549_v53 = vld [vmem:[#allocation93_spill] sm:$0xff]  ;;  %v5408_v52 = vshrl.u32 %v5271_v44, 16  ;;  %v5411_v42 = vshll.u32 %v5271_v44, 16  ;;  %v11448_v48 = vpop.f32.mrf.mxu0 }
 0x3fb   : > { %v4324_v22 = vadd.f32 %v12549_v53, %v11106_v3  ;;  %v6055_v3 = vpack.c.b16 %v6038_v11, %v6038_v11 }
 0x3fc   : > { %v6385_v50 = vadd.f32 %v11316_v31, %v6349_v24  ;;  %v5410_v0 = vrot.slane %v5408_v52, 3  ;;  %v5413_v26 = vrot.slane %v5411_v42, 4 }
 0x3fd   : > { %v5520_v15 = vpop.f32.mrf.mxu3 }
 0x3fe   : > { %v5587_v60 = vadd.f32 %v5520_v15, %v5085_v17  ;;  %v6417_v41 = vmax.f32 %v6385_v50, 0.0  ;;  %v6182_v17 = vor.u32 %v6180_v9, %v11257_v16  ;;  %v6184_v15 = vshll.u32 %v6055_v3, 16  ;;  %v11454_v13 = vpop.f32.mrf.mxu2 }
 0x3ff   : > { %v5414_v49 = vor.u32 %v5413_v26, %v5410_v0 }
 0x400   : > { %v5868_v46 = vadd.f32 %v11356_v37, %v5587_v60  ;;  %v5086_v37 = vadd.f32 %v11210_v27, %v4604_v30  ;;  %v12550_v27 = vld [vmem:[#allocation133_spill] sm:$0xff]  ;;  %v12551_v60 = vld [vmem:[#allocation92_spill] sm:$0xff]  ;;  %v6186_v55 = vrot.slane %v6184_v15, 1  ;;  %v12553_v30 = vld [vmem:[#allocation82_spill] sm:$0xff] }
 0x401   : > { %v4605_v61 = vadd.f32 %v12550_v27, %v4324_v22  ;;  %vm12552_vm5 = vnez %v12551_v60  ;;  %v5415_v11 = vsel %vm12557_vm13, %v5405_v28, %v5414_v49  ;;  %v12561_v60 = vld [vmem:[#allocation102_spill] sm:$0xff] }
 0x402   : > { %v6350_v20 = vadd.f32 %v11360_v5, %v5868_v46  ;;  %5562 = vmatmul.bf16.gmra.mxu3 %v5406_v58  ;;  %v5173_v46 = vsel %vm12552_vm5, %v5140_v14, 0  ;;  %v12554_v58 = vld [vmem:[#allocation98_spill] sm:$0xff]  ;;  %v6187_v50 = vsel %vm12555_vm15, %v6182_v17, %v6186_v55 }
 0x403   : > { %v4325_v44 = vadd.f32 %v12554_v58, %v12553_v30  ;;  %v5255_v59 = vunpack.c.l.b16 %v5173_v46  ;;  %6335 = vmatmul.bf16.gmra.mxu1 %v6187_v50 }
 0x404   : > { %v6386_v62 = vadd.f32 %v11316_v31, %v6350_v20  ;;  %v5087_v20 = vadd.f32 %v11222_v56, %v4605_v61 }
 0x405   : > { %v5523_v5 = vpop.f32.mrf.mxu3  ;;  %v5272_v9 = vpack.c.b16 %v5255_v59, %v5255_v59  ;;  %v12562_v59 = vld [vmem:[#allocation113_spill] sm:$0xff] }
 0x406   : > { %v5588_v4 = vadd.f32 %v5523_v5, %v5086_v37  ;;  %v6418_v39 = vmax.f32 %v6386_v62, 0.0  ;;  %v12556_v37 = vld [vmem:[#allocation135_spill] sm:$0xff]  ;;  %v6298_v5 = vpop.f32.mrf.mxu1  ;;  %v11469_v42 = vpop.f32.mrf.mxu2 }
 0x407   : > { %v4606_v62 = vadd.f32 %v12556_v37, %v4325_v44  ;;  %v5417_v3 = vshrl.u32 %v5272_v9, 16  ;;  %v5420_v14 = vshll.u32 %v5272_v9, 16 }
 0x408   : > { %v6445_v32 = vpack.c.bf16 %v6418_v39, %v6417_v41  ;;  %v5869_v24 = vadd.f32 %v11373_v33, %v5588_v4  ;;  %v5816_v33 = vpop.f32.mrf.mxu0  ;;  %v12558_v4 = vld [vmem:[#allocation100_spill] sm:$0xff] }
 0x409   : > { %v5088_v41 = vadd.f32 %v11237_v10, %v4606_v62  ;;  %v5419_v15 = vrot.slane %v5417_v3, 3  ;;  %v5422_v0 = vrot.slane %v5420_v14, 4 }
 0x40a   : > { %6553 = vmatmul.bf16.gmra.mxu2 %v6445_v32  ;;  %v6351_v53 = vadd.f32 %v11376_v6, %v5869_v24  ;;  %v4326_v6 = vadd.f32 %v12558_v4, %v11122_v38  ;;  %v12560_v38 = vld [vmem:[#allocation90_spill] sm:$0xff] }
 0x40b   : > { %v4327_v10 = vadd.f32 %v12561_v60, %v12560_v38  ;;  %v5423_v44 = vor.u32 %v5422_v0, %v5419_v15 }
 0x40c   : > { %v6387_v52 = vadd.f32 %v11316_v31, %v6351_v53 }
 0x40d   : > { %v5525_v16 = vpop.f32.mrf.mxu3  ;;  %v4608_v53 = vadd.f32 %v12562_v59, %v4327_v10 }
 0x40e   : > { %v5589_v22 = vadd.f32 %v5525_v16, %v5087_v20  ;;  %v6419_v32 = vmax.f32 %v6387_v52, 0.0  ;;  %v6301_v46 = vpop.f32.mrf.mxu1  ;;  %v11480_v30 = vpop.f32.mrf.mxu2 }
 0x410   : > { %v5870_v23 = vadd.f32 %v11389_v19, %v5589_v22  ;;  %v5819_v26 = vpop.f32.mrf.mxu0 }
 0x412   : > { %v6352_v56 = vadd.f32 %v11392_v47, %v5870_v23  ;;  %5567 = vmatmul.bf16.gmra.mxu3 %v5415_v11  ;;  %v12559_v47 = vld [vmem:[#allocation137_spill] sm:$0xff]  ;;  %v5090_v11 = vadd.f32 %v11270_v1, %v4608_v53  ;;  %v12571_v53 = vld [vmem:[#allocation95_spill] sm:$0xff] }
 0x413   : > { %v4607_v17 = vadd.f32 %v12559_v47, %v4326_v6  ;;  %v12567_v47 = vld [vmem:[#allocation45_spill] sm:$0xff] }
 0x414   : > { %v6388_v19 = vadd.f32 %v11316_v31, %v6352_v56 }
 0x415   : > { %v5528_v39 = vpop.f32.mrf.mxu3  ;;  %v5089_v55 = vadd.f32 %v11251_v40, %v4607_v17  ;;  %v12564_v40 = vld [vmem:[#allocation104_spill] sm:$0xff] }
 0x416   : > { %v5590_v28 = vadd.f32 %v5528_v39, %v5088_v41  ;;  %v6420_v27 = vmax.f32 %v6388_v19, 0.0  ;;  %v4328_v37 = vadd.f32 %v12564_v40, %v11141_v63  ;;  %v6303_v56 = vpop.f32.mrf.mxu1  ;;  %v11492_v6 = vpop.f32.mrf.mxu2  ;;  %v12566_v63 = vld [vmem:[#allocation108_spill] sm:$0xff] }
 0x417   : > { %v4329_v39 = vadd.f32 %v12566_v63, %v11147_v54  ;;  %v12569_v54 = vld [vmem:[#allocation30_spill] sm:$0xff] }
 0x418   : > { %v6446_v61 = vpack.c.bf16 %v6420_v27, %v6419_v32  ;;  %v5871_v24 = vadd.f32 %v11408_v21, %v5590_v28  ;;  %v5424_v21 = vsel %vm12563_vm6, %v5414_v49, %v5423_v44  ;;  %v5821_v62 = vpop.f32.mrf.mxu0 }
 0x419   : > { %v4610_v17 = vadd.f32 %v12567_v47, %v4329_v39  ;;  %v12577_v47 = vld [vmem:[#allocation24_spill] sm:$0xff] }
 0x41a   : > { %6558 = vmatmul.bf16.gmra.mxu2 %v6446_v61  ;;  %v6353_v20 = vadd.f32 %v11414_v7, %v5871_v24  ;;  %v12568_v24 = vld [vmem:[#allocation111_spill] sm:$0xff] }
 0x41b   : > { %v4330_v38 = vadd.f32 %v12568_v24, %v11155_v34  ;;  %v5092_v60 = vadd.f32 %v12569_v54, %v4610_v17  ;;  %v12578_v17 = vld [vmem:[#allocation120_spill] sm:$0xff] }
 0x41c   : > { %v6389_v23 = vadd.f32 %v11316_v31, %v6353_v20  ;;  %v12570_v20 = vld [vmem:[#allocation48_spill] sm:$0xff] }
 0x41d   : > { %v5530_v58 = vpop.f32.mrf.mxu3 }
 0x41e   : > { %v5591_v50 = vadd.f32 %v5530_v58, %v5089_v55  ;;  %v6421_v52 = vmax.f32 %v6389_v23, 0.0  ;;  %v6306_v27 = vpop.f32.mrf.mxu1  ;;  %v11501_v15 = vpop.f32.mrf.mxu2 }
 0x420   : > { %v5872_v16 = vadd.f32 %v11428_v25, %v5591_v50  ;;  %v5824_v14 = vpop.f32.mrf.mxu0  ;;  %v4611_v50 = vadd.f32 %v12570_v20, %v4330_v38 }
 0x422   : > { %v6354_v22 = vadd.f32 %v11431_v29, %v5872_v16  ;;  %5572 = vmatmul.bf16.gmra.mxu3 %v5424_v21  ;;  %v12565_v29 = vld [vmem:[#allocation58_spill] sm:$0xff] }
 0x423   : > { %v4609_v41 = vadd.f32 %v12565_v29, %v4328_v37  ;;  %v12572_v21 = vld [vmem:[#allocation114_spill] sm:$0xff] }
 0x424   : > { %v6390_v7 = vadd.f32 %v11316_v31, %v6354_v22  ;;  %v4331_v34 = vadd.f32 %v12572_v21, %v12571_v53  ;;  %v5093_v22 = vadd.f32 %v11302_v36, %v4611_v50  ;;  %v12581_v50 = vld [vmem:[#allocation122_spill] sm:$0xff] }
 0x425   : > { %v5533_v9 = vpop.f32.mrf.mxu3  ;;  %v5091_v1 = vadd.f32 %v11276_v45, %v4609_v41 }
 0x426   : > { %v5592_v25 = vadd.f32 %v5533_v9, %v5090_v11  ;;  %v6422_v4 = vmax.f32 %v6390_v7, 0.0  ;;  %v6308_v16 = vpop.f32.mrf.mxu1  ;;  %v12573_v7 = vld [vmem:[#allocation64_spill] sm:$0xff] }
 0x427   : > { %v4612_v9 = vadd.f32 %v12573_v7, %v4331_v34 }
 0x428   : > { %v6447_v49 = vpack.c.bf16 %v6422_v4, %v6421_v52  ;;  %v5873_v19 = vadd.f32 %v11448_v48, %v5592_v25  ;;  %v5826_v44 = vpop.f32.mrf.mxu0 }
 0x42a   : > { %6563 = vmatmul.bf16.gmra.mxu2 %v6447_v49  ;;  %v6355_v28 = vadd.f32 %v11450_v51, %v5873_v19  ;;  %v12574_v49 = vld [vmem:[#allocation76_spill] sm:$0xff]  ;;  %v5094_v19 = vadd.f32 %v11327_v12, %v4612_v9 }
 0x42c   : > { %v6391_v48 = vadd.f32 %v11316_v31, %v6355_v28  ;;  %v12576_v28 = vld [vmem:[#allocation65_spill] sm:$0xff] }
 0x42d   : > { %v5535_v3 = vpop.f32.mrf.mxu3 }
 0x42e   : > { %v5593_v32 = vadd.f32 %v5535_v3, %v5091_v1  ;;  %v6423_v51 = vmax.f32 %v6391_v48, 0.0  ;;  %v6311_v41 = vpop.f32.mrf.mxu1 }
 0x430   : > { %v5874_v61 = vadd.f32 %v5816_v33, %v5593_v32  ;;  %v5829_v25 = vpop.f32.mrf.mxu0 }
 0x432   : > { %v6356_v0 = vadd.f32 %v6298_v5, %v5874_v61  ;;  %v11509_v5 = vpop.f32.mrf.mxu2 }
 0x434   : > { %v6392_v45 = vadd.f32 %v11316_v31, %v6356_v0  ;;  %v4333_v0 = vadd.f32 %v12578_v17, %v12577_v47  ;;  %v463_v47 = vld [vmem:[%s8475_s14 + $0x8] sm:$0xff]  }
 0x435   : > { %v5538_v10 = vpop.f32.mrf.mxu3 }
 0x436   : > { %v5594_v55 = vadd.f32 %v5538_v10, %v5092_v60  ;;  %v6424_v58 = vmax.f32 %v6392_v45, 0.0  ;;  %v6313_v54 = vpop.f32.mrf.mxu1  ;;  %v11529_v45 = vld [vmem:[%s11706_s7] ss:$0 sm:$0xff]  ;;  %v461_v10 = vld [vmem:[%s8475_s14] sm:$0xff]  }
 0x437   : > { %v6615_v21 = vunpack.c.h.bf16 %v461_v10 }
 0x438   : > { %v6448_v33 = vpack.c.bf16 %v6424_v58, %v6423_v51  ;;  %v5875_v59 = vadd.f32 %v5819_v26, %v5594_v55  ;;  %v12575_v26 = vld [vmem:[#allocation118_spill] sm:$0xff]  ;;  %v5831_v61 = vpop.f32.mrf.mxu0 }
 0x439   : > { %v4332_v29 = vadd.f32 %v12575_v26, %v12574_v49  ;;  %v12582_v49 = vld [vmem:[#allocation71_spill] sm:$0xff] }
 0x43a   : > { %6568 = vmatmul.bf16.gmra.mxu2 %v6448_v33  ;;  %v6357_v40 = vadd.f32 %v6301_v46, %v5875_v59  ;;  %v11520_v39 = vpop.f32.mrf.mxu2 }
 0x43c   : > { %v6393_v4 = vadd.f32 %v11316_v31, %v6357_v40 }
 0x43d   : > { %v5540_v23 = vpop.f32.mrf.mxu3 }
 0x43e   : > { %v5595_v37 = vadd.f32 %v5540_v23, %v5093_v22  ;;  %v6316_v9 = vpop.f32.mrf.mxu1 }
 0x440   : > { %v5876_v11 = vadd.f32 %v5821_v62, %v5595_v37  ;;  %v6425_v62 = vmax.f32 %v6393_v4, 0.0 }
 0x442   : > { %v6358_v52 = vadd.f32 %v6303_v56, %v5876_v11  ;;  %v4613_v56 = vadd.f32 %v12576_v28, %v4332_v29 }
 0x444   : > { %v6394_v63 = vadd.f32 %v11316_v31, %v6358_v52  ;;  %v5095_v12 = vadd.f32 %v11346_v8, %v4613_v56  ;;  %v6614_v8 = vunpack.c.l.bf16 %v461_v10  ;;  %v12587_v10 = vld [vmem:[#allocation128_spill] sm:$0xff] }
 0x445   : > { %v5543_v36 = vpop.f32.mrf.mxu3 }
 0x446   : > { %v5596_v46 = vadd.f32 %v5543_v36, %v5094_v19  ;;  %v6426_v1 = vmax.f32 %v6394_v63, 0.0  ;;  %v12583_v63 = vld [vmem:[#allocation87_spill] sm:$0xff]  ;;  %v12584_v36 = vld [vmem:[#allocation126_spill] sm:$0xff] }
 0x448   : > { %v6449_v3 = vpack.c.bf16 %v6426_v1, %v6425_v62  ;;  %v5877_v32 = vadd.f32 %v5824_v14, %v5596_v46  ;;  %v12579_v14 = vld [vmem:[#allocation49_spill] sm:$0xff]  ;;  %v4335_v46 = vadd.f32 %v12584_v36, %v12583_v63  ;;  %v12591_v36 = vld [vmem:[#allocation60_spill] sm:$0xff] }
 0x449   : > { %v4614_v51 = vadd.f32 %v12579_v14, %v4333_v0  ;;  %v12585_v0 = vld [vmem:[#allocation54_spill] sm:$0xff] }
 0x44a   : > { %6573 = vmatmul.bf16.gmra.mxu2 %v6449_v3  ;;  %v6359_v48 = vadd.f32 %v6306_v27, %v5877_v32  ;;  %v12580_v27 = vld [vmem:[#allocation83_spill] sm:$0xff] }
 0x44b   : > { %v4334_v59 = vadd.f32 %v12581_v50, %v12580_v27  ;;  %v5096_v53 = vadd.f32 %v11362_v35, %v4614_v51  ;;  %v6617_v51 = vunpack.c.h.bf16 %v463_v47 }
 0x44c   : > { %v6395_v58 = vadd.f32 %v11316_v31, %v6359_v48 }
 0x44d   : > { %v5545_v24 = vpop.f32.mrf.mxu3  ;;  %v6534_v38 = vpop.f32.mrf.mxu2  ;;  %v4615_v26 = vadd.f32 %v12582_v49, %v4334_v59 }
 0x44e   : > { %v5597_v60 = vadd.f32 %v5545_v24, %v5095_v12  ;;  %v6535_v20 = vadd.f32 %v11529_v45, %v6534_v38  ;;  %v6427_v40 = vmax.f32 %v6395_v58, 0.0  ;;  %v4616_v12 = vadd.f32 %v12585_v0, %v4335_v46  ;;  %v6318_v24 = vpop.f32.mrf.mxu1 }
 0x44f   : > { %v5097_v1 = vadd.f32 %v11380_v57, %v4615_v26 }
 0x450   : > { %v5878_v55 = vadd.f32 %v5826_v44, %v5597_v60  ;;  %v5834_v44 = vpop.f32.mrf.mxu0  ;;  %v6646_v37 = vadd.f32 %v6614_v8, %v6535_v20  ;;  %v12586_v60 = vld [vmem:[#allocation74_spill] sm:$0xff]  ;;  %v5098_v14 = vadd.f32 %v11399_v18, %v4616_v12 }
 0x452   : > { %v6360_v33 = vadd.f32 %v6308_v16, %v5878_v55  ;;  %v6678_v29 = vmax.f32 %v6646_v37, 0.0  ;;  %v4336_v55 = vadd.f32 %v12587_v10, %v12586_v60  ;;  %v12589_v37 = vld [vmem:[#allocation26_spill] sm:$0xff] }
 0x454   : > { %v6396_v34 = vadd.f32 %v11316_v31, %v6360_v33 }
 0x455   : > { %v5548_v22 = vpop.f32.mrf.mxu3  ;;  %v6536_v23 = vpop.f32.mrf.mxu2 }
 0x456   : > { %v5598_v11 = vadd.f32 %v5548_v22, %v5096_v53  ;;  %v6537_v7 = vadd.f32 %v11529_v45, %v6536_v23  ;;  %v6428_v16 = vmax.f32 %v6396_v34, 0.0 }
 0x458   : > { %v6647_v52 = vadd.f32 %v6615_v21, %v6537_v7  ;;  %v6450_v4 = vpack.c.bf16 %v6428_v16, %v6427_v40  ;;  %v5879_v35 = vadd.f32 %v5829_v25, %v5598_v11  ;;  %v5836_v25 = vpop.f32.mrf.mxu0  ;;  %v12588_v21 = vld [vmem:[#allocation81_spill] sm:$0xff]  ;;  %v12590_v11 = vld [vmem:[#allocation130_spill] sm:$0xff]  ;;  %v6321_v16 = vpop.f32.mrf.mxu1 }
 0x459   : > { %v4617_v34 = vadd.f32 %v12588_v21, %v4336_v55  ;;  %v4337_v7 = vadd.f32 %v12590_v11, %v12589_v37  ;;  %v12594_v55 = vld [vmem:[#allocation62_spill] sm:$0xff] }
 0x45a   : > { %v6679_v19 = vmax.f32 %v6647_v52, 0.0  ;;  %6578 = vmatmul.bf16.gmra.mxu2 %v6450_v4  ;;  %v6361_v3 = vadd.f32 %v6311_v41, %v5879_v35  ;;  %v6616_v41 = vunpack.c.l.bf16 %v463_v47 }
 0x45b   : > { %v5099_v4 = vadd.f32 %v11418_v2, %v4617_v34  ;;  %v467_v34 = vld [vmem:[%s8475_s14 + $0x18] sm:$0xff]  }
 0x45c   : > { %v7798_v62 = vpack.c.bf16 %v6679_v19, %v6678_v29  ;;  %v6397_v48 = vadd.f32 %v11316_v31, %v6361_v3  ;;  %v465_v19 = vld [vmem:[%s8475_s14 + $0x10] sm:$0xff]  }
 0x45d   : > { %v5550_v28 = vpop.f32.mrf.mxu3  ;;  %v6539_v56 = vpop.f32.mrf.mxu2  ;;  %v6618_v3 = vunpack.c.l.bf16 %v465_v19 }
 0x45e   : > { %7799 = vst [vmem:[%s11546_s2] sm:$0xff] %v7798_v62   ;;  %v5599_v32 = vadd.f32 %v5550_v28, %v5097_v1  ;;  %v6540_v57 = vadd.f32 %v11529_v45, %v6539_v56  ;;  %v12592_v56 = vld [vmem:[#allocation27_spill] sm:$0xff] }
 0x460   : > { %v5880_v17 = vadd.f32 %v5831_v61, %v5599_v32  ;;  %v6429_v61 = vmax.f32 %v6397_v48, 0.0  ;;  %v6648_v8 = vadd.f32 %v6616_v41, %v6540_v57  ;;  %v5839_v23 = vpop.f32.mrf.mxu0  ;;  %v12593_v32 = vld [vmem:[#allocation132_spill] sm:$0xff]  ;;  %v6323_v48 = vpop.f32.mrf.mxu1 }
 0x461   : > { %v4338_v47 = vadd.f32 %v12593_v32, %v12592_v56  ;;  %v12600_v56 = vld [vmem:[#allocation68_spill] sm:$0xff] }
 0x462   : > { %v6362_v38 = vadd.f32 %v6313_v54, %v5880_v17  ;;  %v6680_v18 = vmax.f32 %v6648_v8, 0.0 }
 0x464   : > { %v6398_v58 = vadd.f32 %v11316_v31, %v6362_v38 }
 0x465   : > { %v5553_v33 = vpop.f32.mrf.mxu3  ;;  %v6541_v20 = vpop.f32.mrf.mxu2 }
 0x466   : > { %v5600_v27 = vadd.f32 %v5553_v33, %v5098_v14  ;;  %v6542_v50 = vadd.f32 %v11529_v45, %v6541_v20  ;;  %v6430_v59 = vmax.f32 %v6398_v58, 0.0  ;;  %v4619_v14 = vadd.f32 %v12594_v55, %v4338_v47  ;;  %v12595_v33 = vld [vmem:[#allocation91_spill] sm:$0xff]  ;;  %v12596_v20 = vld [vmem:[#allocation134_spill] sm:$0xff]  ;;  %v12603_v55 = vld [vmem:[#allocation72_spill] sm:$0xff] }
 0x468   : > { %v6649_v54 = vadd.f32 %v6617_v51, %v6542_v50  ;;  %v6451_v53 = vpack.c.bf16 %v6430_v59, %v6429_v61  ;;  %v5881_v22 = vadd.f32 %v5834_v44, %v5600_v27  ;;  %v4618_v44 = vadd.f32 %v12591_v36, %v4337_v7  ;;  %v5841_v28 = vpop.f32.mrf.mxu0 }
 0x469   : > { %v4339_v61 = vadd.f32 %v12596_v20, %v12595_v33  ;;  %v5101_v27 = vadd.f32 %v11454_v13, %v4619_v14 }
 0x46a   : > { %v6681_v40 = vmax.f32 %v6649_v54, 0.0  ;;  %6583 = vmatmul.bf16.gmra.mxu2 %v6451_v53  ;;  %v6363_v49 = vadd.f32 %v6316_v9, %v5881_v22  ;;  %v5100_v2 = vadd.f32 %v11434_v43, %v4618_v44  ;;  %v6619_v9 = vunpack.c.h.bf16 %v465_v19  ;;  %v6326_v22 = vpop.f32.mrf.mxu1 }
 0x46c   : > { %v7803_v52 = vpack.c.bf16 %v6681_v40, %v6680_v18  ;;  %v6399_v46 = vadd.f32 %v11316_v31, %v6363_v49  ;;  %v12597_v40 = vld [vmem:[#allocation89_spill] sm:$0xff]  ;;  %v12599_v49 = vld [vmem:[#allocation136_spill] sm:$0xff] }
 0x46d   : > { %v5555_v26 = vpop.f32.mrf.mxu3  ;;  %v6544_v35 = vpop.f32.mrf.mxu2 }
 0x46e   : > { %7890 = vst [vmem:[%s11546_s2 + $0x8] sm:$0xff] %v7803_v52   ;;  %v5601_v29 = vadd.f32 %v5555_v26, %v5099_v4  ;;  %v6545_v1 = vadd.f32 %v11529_v45, %v6544_v35  ;;  %v6620_v52 = vunpack.c.l.bf16 %v467_v34  ;;  %v12598_v4 = vld [vmem:[#allocation94_spill] sm:$0xff]  ;;  %v6621_v26 = vunpack.c.h.bf16 %v467_v34 }
 0x46f   : > { %v4340_v13 = vadd.f32 %v12599_v49, %v12598_v4 }
 0x470   : > { %v5882_v63 = vadd.f32 %v5836_v25, %v5601_v29  ;;  %v6431_v25 = vmax.f32 %v6399_v46, 0.0  ;;  %v6650_v38 = vadd.f32 %v6618_v3, %v6545_v1  ;;  %v5844_v53 = vpop.f32.mrf.mxu0 }
 0x471   : > { %v4621_v32 = vadd.f32 %v12600_v56, %v4340_v13 }
 0x472   : > { %v6364_v62 = vadd.f32 %v6318_v24, %v5882_v63  ;;  %v6682_v43 = vmax.f32 %v6650_v38, 0.0 }
 0x474   : > { %v6400_v17 = vadd.f32 %v11316_v31, %v6364_v62 }
 0x475   : > { %v5558_v0 = vpop.f32.mrf.mxu3  ;;  %v6546_v12 = vpop.f32.mrf.mxu2 }
 0x476   : > { %v5602_v57 = vadd.f32 %v5558_v0, %v5100_v2  ;;  %v6547_v24 = vadd.f32 %v11529_v45, %v6546_v12  ;;  %v6432_v41 = vmax.f32 %v6400_v17, 0.0  ;;  %v12601_v17 = vld [vmem:[#allocation28_spill] sm:$0xff]  ;;  %v12602_v0 = vld [vmem:[#allocation123_spill] sm:$0xff] }
 0x477   : > { %v4341_v12 = vadd.f32 %v12602_v0, %v12601_v17  ;;  %v12611_v17 = vld [vmem:[#allocation117_spill] sm:$0xff] }
 0x478   : > { %v6651_v60 = vadd.f32 %v6619_v9, %v6547_v24  ;;  %v6452_v10 = vpack.c.bf16 %v6432_v41, %v6431_v25  ;;  %v5883_v51 = vadd.f32 %v5839_v23, %v5602_v57  ;;  %v4620_v23 = vadd.f32 %v12597_v40, %v4339_v61  ;;  %v5846_v1 = vpop.f32.mrf.mxu0  ;;  %v12604_v61 = vld [vmem:[#allocation29_spill] sm:$0xff] }
 0x479   : > { %v4622_v14 = vadd.f32 %v12603_v55, %v4341_v12 }
 0x47a   : > { %v6683_v58 = vmax.f32 %v6651_v60, 0.0  ;;  %6588 = vmatmul.bf16.gmra.mxu2 %v6452_v10  ;;  %v6365_v50 = vadd.f32 %v6321_v16, %v5883_v51  ;;  %v5102_v16 = vadd.f32 %v11469_v42, %v4620_v23  ;;  %v6328_v42 = vpop.f32.mrf.mxu1  ;;  %v469_v60 = vld [vmem:[%s8475_s14 + $0x20] sm:$0xff]  }
 0x47b   : > { %v6622_v20 = vunpack.c.l.bf16 %v469_v60 }
 0x47c   : > { %v7808_v8 = vpack.c.bf16 %v6683_v58, %v6682_v43  ;;  %v6401_v37 = vadd.f32 %v11316_v31, %v6365_v50  ;;  %v5104_v50 = vadd.f32 %v11492_v6, %v4622_v14 }
 0x47d   : > { %v5560_v59 = vpop.f32.mrf.mxu3  ;;  %v6549_v54 = vpop.f32.mrf.mxu2 }
 0x47e   : > { %7891 = vst [vmem:[%s11546_s2 + $0x10] sm:$0xff] %v7808_v8   ;;  %v5603_v21 = vadd.f32 %v5560_v59, %v5101_v27  ;;  %v6550_v7 = vadd.f32 %v11529_v45, %v6549_v54  ;;  %v6433_v63 = vmax.f32 %v6401_v37, 0.0  ;;  %v12605_v8 = vld [vmem:[#allocation44_spill] sm:$0xff]  ;;  %v6623_v59 = vunpack.c.h.bf16 %v469_v60 }
 0x47f   : > { %v4342_v27 = vadd.f32 %v12605_v8, %v12604_v61 }
 0x480   : > { %v5884_v18 = vadd.f32 %v5841_v28, %v5603_v21  ;;  %v6652_v36 = vadd.f32 %v6620_v52, %v6550_v7  ;;  %v5849_v43 = vpop.f32.mrf.mxu0  ;;  %v12606_v7 = vld [vmem:[#allocation97_spill] sm:$0xff] }
 0x481   : > { %v4623_v52 = vadd.f32 %v12606_v7, %v4342_v27 }
 0x482   : > { %v6366_v11 = vadd.f32 %v6323_v48, %v5884_v18  ;;  %v6684_v2 = vmax.f32 %v6652_v36, 0.0  ;;  %v5103_v48 = vadd.f32 %v11480_v30, %v4621_v32  ;;  %v6331_v30 = vpop.f32.mrf.mxu1 }
 0x484   : > { %v6402_v35 = vadd.f32 %v11316_v31, %v6366_v11 }
 0x485   : > { %v5563_v29 = vpop.f32.mrf.mxu3  ;;  %v6551_v19 = vpop.f32.mrf.mxu2 }
 0x486   : > { %v5604_v44 = vadd.f32 %v5563_v29, %v5102_v16  ;;  %v6552_v46 = vadd.f32 %v11529_v45, %v6551_v19  ;;  %v6434_v62 = vmax.f32 %v6402_v35, 0.0  ;;  %v12607_v16 = vld [vmem:[#allocation96_spill] sm:$0xff]  ;;  %v5105_v19 = vadd.f32 %v11501_v15, %v4623_v52 }
 0x488   : > { %v6653_v3 = vadd.f32 %v6621_v26, %v6552_v46  ;;  %v6453_v28 = vpack.c.bf16 %v6434_v62, %v6433_v63  ;;  %v5885_v47 = vadd.f32 %v5844_v53, %v5604_v44  ;;  %v5851_v13 = vpop.f32.mrf.mxu0  ;;  %v12608_v26 = vld [vmem:[#allocation59_spill] sm:$0xff] }
 0x489   : > { %v4343_v35 = vadd.f32 %v12608_v26, %v12607_v16 }
 0x48a   : > { %v6685_v9 = vmax.f32 %v6653_v3, 0.0  ;;  %6593 = vmatmul.bf16.gmra.mxu2 %v6453_v28  ;;  %v6367_v38 = vadd.f32 %v6326_v22, %v5885_v47  ;;  %v6333_v62 = vpop.f32.mrf.mxu1  ;;  %v12609_v28 = vld [vmem:[#allocation79_spill] sm:$0xff] }
 0x48b   : > { %v4624_v56 = vadd.f32 %v12609_v28, %v4343_v35 }
 0x48c   : > { %v7813_v25 = vpack.c.bf16 %v6685_v9, %v6684_v2  ;;  %v6403_v51 = vadd.f32 %v11316_v31, %v6367_v38  ;;  %v12610_v9 = vld [vmem:[#allocation99_spill] sm:$0xff] }
 0x48d   : > { %v5565_v57 = vpop.f32.mrf.mxu3  ;;  %v6554_v24 = vpop.f32.mrf.mxu2  ;;  %v4344_v0 = vadd.f32 %v12611_v17, %v12610_v9  ;;  %v5106_v12 = vadd.f32 %v11509_v5, %v4624_v56 }
 0x48e   : > { %7892 = vst [vmem:[%s11546_s2 + $0x18] sm:$0xff] %v7813_v25   ;;  %v5605_v41 = vadd.f32 %v5565_v57, %v5103_v48  ;;  %v6555_v33 = vadd.f32 %v11529_v45, %v6554_v24  ;;  %v6435_v34 = vmax.f32 %v6403_v51, 0.0 }
 0x490   : > { %v5886_v10 = vadd.f32 %v5846_v1, %v5605_v41  ;;  %v6654_v22 = vadd.f32 %v6622_v20, %v6555_v33  ;;  %v471_v1 = vld [vmem:[%s8475_s14 + $0x28] sm:$0xff]   ;;  %v5854_v15 = vpop.f32.mrf.mxu0 }
 0x491   : > { %v6624_v2 = vunpack.c.l.bf16 %v471_v1  ;;  %v6625_v25 = vunpack.c.h.bf16 %v471_v1 }
 0x492   : > { %v6368_v58 = vadd.f32 %v6328_v42, %v5886_v10  ;;  %v6686_v49 = vmax.f32 %v6654_v22, 0.0  ;;  %v6336_v14 = vpop.f32.mrf.mxu1 }
 0x494   : > { %v6404_v54 = vadd.f32 %v11316_v31, %v6368_v58  ;;  %v12612_v58 = vld [vmem:[#allocation25_spill] sm:$0xff] }
 0x495   : > { %v5568_v53 = vpop.f32.mrf.mxu3  ;;  %v6556_v21 = vpop.f32.mrf.mxu2  ;;  %v4625_v33 = vadd.f32 %v12612_v58, %v4344_v0 }
 0x496   : > { %v5606_v18 = vadd.f32 %v5568_v53, %v5104_v50  ;;  %v6557_v40 = vadd.f32 %v11529_v45, %v6556_v21  ;;  %v6436_v23 = vmax.f32 %v6404_v54, 0.0  ;;  %v473_v53 = vld [vmem:[%s8475_s14 + $0x30] sm:$0xff]  }
 0x497   : > { %v5107_v8 = vadd.f32 %v11520_v39, %v4625_v33  ;;  %v6627_v39 = vunpack.c.h.bf16 %v473_v53 }
 0x498   : > { %v6655_v37 = vadd.f32 %v6623_v59, %v6557_v40  ;;  %v6454_v11 = vpack.c.bf16 %v6436_v23, %v6435_v34  ;;  %v5887_v4 = vadd.f32 %v5849_v43, %v5606_v18  ;;  %v5856_v54 = vpop.f32.mrf.mxu0  ;;  %v6626_v40 = vunpack.c.l.bf16 %v473_v53  ;;  %v8037_v23 = vld [vmem:[%s11704_s5] ss:$0 sm:$0xff] }
 0x49a   : > { %v6687_v6 = vmax.f32 %v6655_v37, 0.0  ;;  %6598 = vmatmul.bf16.gmra.mxu2 %v6454_v11  ;;  %v6369_v63 = vadd.f32 %v6331_v30, %v5887_v4  ;;  %v6338_v34 = vpop.f32.mrf.mxu1 }
 0x49c   : > { %v7818_v29 = vpack.c.bf16 %v6687_v6, %v6686_v49  ;;  %v6405_v32 = vadd.f32 %v11316_v31, %v6369_v63  ;;  %v475_v63 = vld [vmem:[%s8475_s14 + $0x38] sm:$0xff]  }
 0x49d   : > { %v5570_v36 = vpop.f32.mrf.mxu3  ;;  %v6559_v44 = vpop.f32.mrf.mxu2 }
 0x49e   : > { %7893 = vst [vmem:[%s11546_s2 + $0x20] sm:$0xff] %v7818_v29   ;;  %v5607_v46 = vadd.f32 %v5570_v36, %v5105_v19  ;;  %v6560_v42 = vadd.f32 %v11529_v45, %v6559_v44  ;;  %v6437_v24 = vmax.f32 %v6405_v32, 0.0  ;;  %v6628_v44 = vunpack.c.l.bf16 %v475_v63 }
 0x4a0   : > { %v5888_v3 = vadd.f32 %v5851_v13, %v5607_v46  ;;  %v6656_v41 = vadd.f32 %v6624_v2, %v6560_v42  ;;  %v6629_v46 = vunpack.c.h.bf16 %v475_v63  ;;  %v477_v2 = vld [vmem:[%s8475_s14 + $0x40] sm:$0xff]  }
 0x4a1   : > { %v6630_v17 = vunpack.c.l.bf16 %v477_v2  ;;  %v6631_v0 = vunpack.c.h.bf16 %v477_v2 }
 0x4a2   : > { %v6370_v47 = vadd.f32 %v6333_v62, %v5888_v3  ;;  %v6688_v20 = vmax.f32 %v6656_v41, 0.0 }
 0x4a4   : > { %v6406_v48 = vadd.f32 %v11316_v31, %v6370_v47 }
 0x4a5   : > { %v5573_v38 = vpop.f32.mrf.mxu3  ;;  %v6561_v57 = vpop.f32.mrf.mxu2 }
 0x4a6   : > { %v5608_v60 = vadd.f32 %v5573_v38, %v5106_v12  ;;  %v6562_v10 = vadd.f32 %v11529_v45, %v6561_v57  ;;  %v6438_v55 = vmax.f32 %v6406_v48, 0.0 }
 0x4a8   : > { %v6657_v51 = vadd.f32 %v6625_v25, %v6562_v10  ;;  %v6455_v43 = vpack.c.bf16 %v6438_v55, %v6437_v24  ;;  %v5889_v5 = vadd.f32 %v5854_v15, %v5608_v60  ;;  %v479_v60 = vld [vmem:[%s8475_s14 + $0x48] sm:$0xff]  }
 0x4a9   : > { %v6632_v55 = vunpack.c.l.bf16 %v479_v60 }
 0x4aa   : > { %v6689_v61 = vmax.f32 %v6657_v51, 0.0  ;;  %6603 = vmatmul.bf16.gmra.mxu2 %v6455_v43  ;;  %v6371_v50 = vadd.f32 %v6336_v14, %v5889_v5  ;;  %v6633_v14 = vunpack.c.h.bf16 %v479_v60 }
 0x4ac   : > { %v7823_v31 = vpack.c.bf16 %v6689_v61, %v6688_v20  ;;  %v6407_v37 = vadd.f32 %v8037_v23, %v6371_v50 }
 0x4ad   : > { %v5575_v27 = vpop.f32.mrf.mxu3  ;;  %v6564_v30 = vpop.f32.mrf.mxu2 }
 0x4ae   : > { %7894 = vst [vmem:[%s11546_s2 + $0x28] sm:$0xff] %v7823_v31   ;;  %v5609_v59 = vadd.f32 %v5575_v27, %v5107_v8  ;;  %v6565_v18 = vadd.f32 %v11529_v45, %v6564_v30  ;;  %v6439_v49 = vmax.f32 %v6407_v37, 0.0  ;;  %v481_v8 = vld [vmem:[%s8475_s14 + $0x50] sm:$0xff]  }
 0x4af   : > { %v6634_v30 = vunpack.c.l.bf16 %v481_v8  ;;  %v6635_v50 = vunpack.c.h.bf16 %v481_v8 }
 0x4b0   : > { %v5890_v21 = vadd.f32 %v5856_v54, %v5609_v59  ;;  %v6658_v52 = vadd.f32 %v6626_v40, %v6565_v18 }
 0x4b2   : > { %v6372_v22 = vadd.f32 %v6338_v34, %v5890_v21  ;;  %v6690_v26 = vmax.f32 %v6658_v52, 0.0 }
 0x4b4   : > { %v6408_v11 = vadd.f32 %v8037_v23, %v6372_v22  ;;  %v483_v23 = vld [vmem:[%s8475_s14 + $0x58] sm:$0xff]  }
 0x4b5   : > { %v6566_v7 = vpop.f32.mrf.mxu2 }
 0x4b6   : > { %v6567_v4 = vadd.f32 %v11529_v45, %v6566_v7  ;;  %v6440_v6 = vmax.f32 %v6408_v11, 0.0  ;;  %v6637_v11 = vunpack.c.h.bf16 %v483_v23 }
 0x4b8   : > { %v6659_v13 = vadd.f32 %v6627_v39, %v6567_v4  ;;  %v6456_v16 = vpack.c.bf16 %v6440_v6, %v6439_v49  ;;  %v6636_v39 = vunpack.c.l.bf16 %v483_v23 }
 0x4ba   : > { %v6691_v35 = vmax.f32 %v6659_v13, 0.0  ;;  %6608 = vmatmul.bf16.gmra.mxu2 %v6456_v16 }
 0x4bc   : > { %v7828_v29 = vpack.c.bf16 %v6691_v35, %v6690_v26  ;;  %v485_v35 = vld [vmem:[%s8475_s14 + $0x60] sm:$0xff]  }
 0x4bd   : > { %v6569_v19 = vpop.f32.mrf.mxu2  ;;  %v6639_v63 = vunpack.c.h.bf16 %v485_v35 }
 0x4be   : > { %7895 = vst [vmem:[%s11546_s2 + $0x30] sm:$0xff] %v7828_v29   ;;  %v6570_v36 = vadd.f32 %v11529_v45, %v6569_v19  ;;  %v6638_v19 = vunpack.c.l.bf16 %v485_v35 }
 0x4c0   : > { %v6660_v1 = vadd.f32 %v6628_v44, %v6570_v36 }
 0x4c2   : > { %v6692_v56 = vmax.f32 %v6660_v1, 0.0 }
 0x4c5   : > { %v6571_v62 = vpop.f32.mrf.mxu2 }
 0x4c6   : > { %v6572_v3 = vadd.f32 %v11529_v45, %v6571_v62 }
 0x4c8   : > { %v6661_v28 = vadd.f32 %v6629_v46, %v6572_v3 }
 0x4ca   : > { %v6693_v32 = vmax.f32 %v6661_v28, 0.0 }
 0x4cc   : > { %v7833_v47 = vpack.c.bf16 %v6693_v32, %v6692_v56  ;;  %v487_v32 = vld [vmem:[%s8475_s14 + $0x68] sm:$0xff]  }
 0x4cd   : > { %v6574_v42 = vpop.f32.mrf.mxu2  ;;  %v6641_v2 = vunpack.c.h.bf16 %v487_v32 }
 0x4ce   : > { %7896 = vst [vmem:[%s11546_s2 + $0x38] sm:$0xff] %v7833_v47   ;;  %v6575_v9 = vadd.f32 %v11529_v45, %v6574_v42  ;;  %v6640_v42 = vunpack.c.l.bf16 %v487_v32 }
 0x4d0   : > { %v6662_v12 = vadd.f32 %v6630_v17, %v6575_v9 }
 0x4d2   : > { %v6694_v38 = vmax.f32 %v6662_v12, 0.0 }
 0x4d5   : > { %v6576_v15 = vpop.f32.mrf.mxu2 }
 0x4d6   : > { %v6577_v25 = vadd.f32 %v11529_v45, %v6576_v15 }
 0x4d8   : > { %v6663_v48 = vadd.f32 %v6631_v0, %v6577_v25 }
 0x4da   : > { %v6695_v57 = vmax.f32 %v6663_v48, 0.0 }
 0x4dc   : > { %v7838_v24 = vpack.c.bf16 %v6695_v57, %v6694_v38  ;;  %v489_v57 = vld [vmem:[%s8475_s14 + $0x70] sm:$0xff]  }
 0x4dd   : > { %v6579_v41 = vpop.f32.mrf.mxu2  ;;  %v6643_v60 = vunpack.c.h.bf16 %v489_v57 }
 0x4de   : > { %7897 = vst [vmem:[%s11546_s2 + $0x40] sm:$0xff] %v7838_v24   ;;  %v6580_v10 = vadd.f32 %v11529_v45, %v6579_v41  ;;  %v6642_v41 = vunpack.c.l.bf16 %v489_v57 }
 0x4e0   : > { %v6664_v43 = vadd.f32 %v6632_v55, %v6580_v10 }
 0x4e2   : > { %v6696_v20 = vmax.f32 %v6664_v43, 0.0 }
 0x4e5   : > { %v6581_v51 = vpop.f32.mrf.mxu2 }
 0x4e6   : > { %v6582_v58 = vadd.f32 %v11529_v45, %v6581_v51 }
 0x4e8   : > { %v6665_v33 = vadd.f32 %v6633_v14, %v6582_v58 }
 0x4ea   : > { %v6697_v5 = vmax.f32 %v6665_v33, 0.0 }
 0x4ec   : > { %v7843_v61 = vpack.c.bf16 %v6697_v5, %v6696_v20  ;;  %v491_v5 = vld [vmem:[%s8475_s14 + $0x78] sm:$0xff]   ;;  %s8202_s14 = sshra.s32 %s6792_s27, 4  ;;  %s8203_s14 = int_to_ptr.hbm [resolvable:$true] %s8202_s14 }
 0x4ed   : > { %v6584_v31 = vpop.f32.mrf.mxu2  ;;  %v6645_v8 = vunpack.c.h.bf16 %v491_v5  ;;  %s8204_s18 = scalar_lea.hbm %s8203_s14, 128  ;;  %p8209_p10 = scmp.lt.s32.totalorder %s8203_s14, %s11707_s8 }
 0x4ee   : > { %7898 = vst [vmem:[%s11546_s2 + $0x48] sm:$0xff] %v7843_v61   ;;  %v6585_v27 = vadd.f32 %v11529_v45, %v6584_v31  ;;  %v6644_v31 = vunpack.c.l.bf16 %v491_v5  ;;  %p8205_p1 = scmp.ne.s32.totalorder %s8203_s14, %s8204_s18  ;;  %p8210_p12 = scmp.lt.s32.totalorder %s8208_s17, %s8204_s18 }
 0x4f0   : > { %v6666_v54 = vadd.f32 %v6634_v30, %v6585_v27  ;;  %p8206_p4 = pnand %p8205_p1, %p8438_p5  ;;  %p8211_p13 = por %p8210_p12, %p8209_p10 }
 0x4f2   : > { %v6698_v34 = vmax.f32 %v6666_v54, 0.0  ;;  %p8207_p8 = pneg %p8206_p4 }
 0x4f4   : > { %p8212_p0 = pnand %p8211_p13, %p8207_p8 }
 0x4f5   : > { %v6586_v59 = vpop.f32.mrf.mxu2 }
 0x4f6   : > { %v6587_v53 = vadd.f32 %v11529_v45, %v6586_v59 }
 0x4f8   : > { %v6667_v21 = vadd.f32 %v6635_v50, %v6587_v53 }
 0x4fa   : > { %v6699_v22 = vmax.f32 %v6667_v21, 0.0 }
 0x4fc   : > { %v7848_v18 = vpack.c.bf16 %v6699_v22, %v6698_v34 }
 0x4fd   : > { %v6589_v40 = vpop.f32.mrf.mxu2 }
 0x4fe   : > { %7899 = vst [vmem:[%s11546_s2 + $0x50] sm:$0xff] %v7848_v18   ;;  %v6590_v37 = vadd.f32 %v11529_v45, %v6589_v40 }
 0x500   : > { %v6668_v52 = vadd.f32 %v6636_v39, %v6590_v37 }
 0x502   : > { %v6700_v6 = vmax.f32 %v6668_v52, 0.0 }
 0x505   : > { %v6591_v7 = vpop.f32.mrf.mxu2 }
 0x506   : > { %v6592_v4 = vadd.f32 %v11529_v45, %v6591_v7 }
 0x508   : > { %v6669_v49 = vadd.f32 %v6637_v11, %v6592_v4 }
 0x50a   : > { %v6701_v13 = vmax.f32 %v6669_v49, 0.0 }
 0x50c   : > { %v7853_v16 = vpack.c.bf16 %v6701_v13, %v6700_v6 }
 0x50d   : > { %v6594_v26 = vpop.f32.mrf.mxu2 }
 0x50e   : > { %7900 = vst [vmem:[%s11546_s2 + $0x58] sm:$0xff] %v7853_v16   ;;  %v6595_v29 = vadd.f32 %v11529_v45, %v6594_v26 }
 0x510   : > { %v6670_v44 = vadd.f32 %v6638_v19, %v6595_v29 }
 0x512   : > { %v6702_v1 = vmax.f32 %v6670_v44, 0.0 }
 0x515   : > { %v6596_v36 = vpop.f32.mrf.mxu2 }
 0x516   : > { %v6597_v46 = vadd.f32 %v11529_v45, %v6596_v36 }
 0x518   : > { %v6671_v62 = vadd.f32 %v6639_v63, %v6597_v46 }
 0x51a   : > { %v6703_v3 = vmax.f32 %v6671_v62, 0.0 }
 0x51c   : > { %v7858_v28 = vpack.c.bf16 %v6703_v3, %v6702_v1 }
 0x51d   : > { %v6599_v56 = vpop.f32.mrf.mxu2 }
 0x51e   : > { %7901 = vst [vmem:[%s11546_s2 + $0x60] sm:$0xff] %v7858_v28   ;;  %v6600_v47 = vadd.f32 %v11529_v45, %v6599_v56 }
 0x520   : > { %v6672_v17 = vadd.f32 %v6640_v42, %v6600_v47 }
 0x522   : > { %v6704_v12 = vmax.f32 %v6672_v17, 0.0 }
 0x525   : > { %v6601_v9 = vpop.f32.mrf.mxu2 }
 0x526   : > { %v6602_v0 = vadd.f32 %v11529_v45, %v6601_v9 }
 0x528   : > { %v6673_v15 = vadd.f32 %v6641_v2, %v6602_v0 }
 0x52a   : > { %v6705_v25 = vmax.f32 %v6673_v15, 0.0 }
 0x52c   : > { %v7863_v48 = vpack.c.bf16 %v6705_v25, %v6704_v12 }
 0x52d   : > { %v6604_v38 = vpop.f32.mrf.mxu2 }
 0x52e   : > { %7902 = vst [vmem:[%s11546_s2 + $0x68] sm:$0xff] %v7863_v48   ;;  %v6605_v24 = vadd.f32 %v11529_v45, %v6604_v38 }
 0x530   : > { %v6674_v55 = vadd.f32 %v6642_v41, %v6605_v24 }
 0x532   : > { %v6706_v43 = vmax.f32 %v6674_v55, 0.0 }
 0x535   : > { %v6606_v10 = vpop.f32.mrf.mxu2 }
 0x536   : > { %v6607_v14 = vadd.f32 %v11529_v45, %v6606_v10 }
 0x538   : > { %v6675_v51 = vadd.f32 %v6643_v60, %v6607_v14 }
 0x53a   : > { %v6707_v58 = vmax.f32 %v6675_v51, 0.0 }
 0x53c   : > { %v7868_v33 = vpack.c.bf16 %v6707_v58, %v6706_v43 }
 0x53d   : > { %v6609_v20 = vpop.f32.mrf.mxu2 }
 0x53e   : > { %7903 = vst [vmem:[%s11546_s2 + $0x70] sm:$0xff] %v7868_v33   ;;  %v6610_v61 = vadd.f32 %v11529_v45, %v6609_v20 }
 0x540   : > { %v6676_v30 = vadd.f32 %v6644_v31, %v6610_v61 }
 0x542   : > { %v6708_v54 = vmax.f32 %v6676_v30, 0.0 }
 0x545   : > { %v6611_v27 = vpop.f32.mrf.mxu2 }
 0x546   : > { %v6612_v50 = vadd.f32 %v11529_v45, %v6611_v27 }
 0x548   : > { %v6677_v59 = vadd.f32 %v6645_v8, %v6612_v50 }
 0x54a   : > { %v6709_v53 = vmax.f32 %v6677_v59, 0.0 }
 0x54c   : > { %v7873_v21 = vpack.c.bf16 %v6709_v53, %v6708_v54 }
 0x54e   : > { %7904 = vst [vmem:[%s11546_s2 + $0x78] sm:$0xff] %v7873_v21  }
 0x54f   : > { %8215 = shalt.err (!%p8212_p0)
}
 0x550   : > { %s8291_s4 = smov 64   ;;  %s8292_s12 = smov 4  }
 0x551   : > { %7945 = dma.vmem_to_hbm [thread:$0]  (%p8438_p5), %s6790_s29, 2048, %s6792_s27, %s6775_s30, %s8291_s4, %s8291_s4, %s8292_s12  }
 0x552 PF: > { %s12614_s16 = sld [smem:[#allocation18_spill]]  ;;  %p7965_p3 = pnand %p6939_p11, %p8383_p6 }
 0x554   : > { %p7966_p7 = pneg %p7965_p3 }
 0x558   : > { %s6806_s2 = sand.u32 1, %s12614_s16  }
 0x559   : > { %s6807_s20 = scalar_lea.sflag [#allocation5], %s6806_s2 }
 0x55a   : > { %8257 = dma.done.wait (%p7966_p7), %s6807_s20, 2048  }
 0x55b   : > { %8259 = vsyncadd (%p7966_p7), %s6807_s20, 4294965248  ;;  %s28_s10 = sadd.s32 1, %s8282_s10   ;;  %s12616_s22 = sld [smem:[#allocation19_spill]] }
 0x55c   : > { %p25_p9 = scmp.ge.s32.totalorder %s28_s10, 4   ;;  %s12617_s29 = sld [smem:[#allocation23_spill]] }
 0x55d   : > { %s12618_s19 = sld [smem:[#allocation21_spill]]  ;;  %s12619_s27 = smov %s8266_s28 }
 0x55e   : > { %s12621_s30 = smov %s8278_s9 }
 0x55f   :  { %27 = sbr.rel (!%p25_p9) target bundleno = 13 (0xd), region = 122 }
 0x561   : > { %s12620_s28 = smov %s12616_s22 }
 0x563   : > { %s12622_s9 = smov %s12618_s19 }
 0x564   :  { %6813 = vsyncpa [#allocation4], 1 }
 0x565   :  { %6815 = vsyncpa [#allocation4 + $0x1], 1 }
 0x566   :  { %6816 = vsyncpa [#allocation7], 1 }
 0x567   :  { %6818 = vsyncpa [#allocation7 + $0x1], 1 }
 0x568   :  { %6819 = vsyncpa [#allocation10], 1 }
 0x569   :  { %6820 = vsyncpa [#allocation5], 1 }
 0x56a   :  { %6822 = vsyncpa [#allocation5 + $0x1], 1 }

</bundles_post_ra>
